<compile_context>
chip_gen: v6e
topology: v6e:2x2x1
jax: 0.10.0
libtpu: 0.0.40
codegen_flags: <defaults>
</compile_context>

<pallas_src>
import jax
import jax.numpy as jnp
import numpy as np
from jax.experimental import pallas as pl
from jax.experimental.pallas import tpu as pltpu


# ----------------------------------------------------------------------------
# Fused Pallas kernel: conv1 + conv2 + fc + heads for B_TILE samples per step
# ----------------------------------------------------------------------------
def _make_actor_critic_kernel(b_tile, num_actions):
    f32 = jnp.float32

    def kernel(x_ref, w1_ref, b1_ref, w2_ref, b2_ref,
               fcw_ref, fcb_ref, wh_ref, bh_ref,
               out_ref, h1_ref, h2_ref, h3_ref):
        # Junk lanes of the stride-folded layouts (>=110 for h1, >=99 for h2)
        # must be zero for the downstream GEMM slices / fc zero-rows to work.
        # Zeroing is ~50 vector stores per step -> negligible, and keeps the
        # kernel safe under megacore grid partitioning (no first-step init).
        h1_ref[...] = jnp.zeros_like(h1_ref)
        h2_ref[...] = jnp.zeros_like(h2_ref)

        for b in range(b_tile):
            # -------- conv1 (4->16, k=8, s=4) as 9 GEMMs ---------------------
            # x_ref[b] is (256, 128): rows = (c, Rh, Rw) with h = 8*Qh + Rh,
            # columns = 11*Qh + Qw (zero padded past 121).  conv1 output
            # spatial (y1, x1) is split as y1 = 2*uy + r1y (same for x); h1 is
            # stored as rows (r1y, r1x, oc) = 64, columns flat_u = 11*uy + ux.
            for r1y in range(2):
                for r1x in range(2):
                    acc = jnp.zeros((16, 110), f32)
                    for ay in range(r1y + 1):        # (r1=0, a=1) blocks are 0
                        for ax in range(r1x + 1):
                            idx = ((r1y * 2 + r1x) * 2 + ay) * 2 + ax
                            off = 11 * ay + ax
                            acc = acc + jnp.dot(
                                w1_ref[idx], x_ref[b, :, off:off + 110],
                                preferred_element_type=f32)
                    h1 = jnp.maximum(acc + b1_ref[...], 0.0)
                    base = (r1y * 2 + r1x) * 16
                    h1_ref[b, base:base + 16, 0:110] = h1.astype(h1_ref.dtype)

            # -------- conv2 (16->32, k=4, s=2) as 4 GEMMs --------------------
            # h2 columns flat_v = 11*vy + vx (vy, vx in [0, 9)); junk columns
            # are matched by zero rows of the fc weights.
            acc2 = jnp.zeros((32, 99), f32)
            for a2y in range(2):
                for a2x in range(2):
                    off = 11 * a2y + a2x
                    acc2 = acc2 + jnp.dot(
                        w2_ref[a2y * 2 + a2x], h1_ref[b, :, off:off + 99],
                        preferred_element_type=f32)
            h2 = jnp.maximum(acc2 + b2_ref[...], 0.0)
            h2_ref[b, :, 0:99] = h2.astype(h2_ref.dtype)

            # -------- fc (2592 -> 256), contraction split per conv2 channel --
            # fcw_ref row (c*128 + flat_v) already encodes the PyTorch NCHW
            # flatten order (and zeros for junk columns).
            acc3 = jnp.zeros((1, 256), f32)
            for c in range(32):
                acc3 = acc3 + jnp.dot(
                    h2_ref[b, c:c + 1, :], fcw_ref[c * 128:(c + 1) * 128, :],
                    preferred_element_type=f32)
            h3 = jnp.maximum(acc3 + fcb_ref[...], 0.0)
            h3_ref[b:b + 1, :] = h3.astype(h3_ref.dtype)

        # -------- fused policy (softmax) + value heads, batched over tile ----
        # wh/bh are zero-padded to 128 lanes: [policy | value | zeros].
        logits = jnp.dot(h3_ref[...], wh_ref[...],
                         preferred_element_type=f32) + bh_ref[...]
        lane = jax.lax.broadcasted_iota(jnp.int32, logits.shape, 1)
        is_act = lane < num_actions
        pol_logits = jnp.where(is_act, logits, -1e30)
        m = jnp.max(pol_logits, axis=-1, keepdims=True)
        e = jnp.exp(pol_logits - m)
        denom = jnp.sum(e, axis=-1, keepdims=True)
        probs = e * pl.reciprocal(denom, approx=True)
        # Single lane-dense store: probs in lanes [0:A), value at lane A.
        out_ref[...] = jnp.where(
            is_act, probs, jnp.where(lane == num_actions, logits, 0.0))

    return kernel


# ----------------------------------------------------------------------------
# Wrapper-side layout plumbing (pure pad/reshape/transpose, no gather)
# ----------------------------------------------------------------------------
def _prep_input(x, dtype=jnp.bfloat16):
    """(N, 4, 84, 84) -> (N, 256, 128): rows (c, h%8-ish, w%8-ish), cols (h//8, w//8)."""
    n, c, h, w = x.shape
    assert (c, h, w) == (4, 84, 84), "ActorCriticNet expects (N, 4, 84, 84) input"
    xp = jnp.pad(x, ((0, 0), (0, 0), (0, 4), (0, 4)))                # (N,4,88,88)
    xt = xp.reshape(n, 4, 11, 8, 11, 8).transpose(0, 1, 3, 5, 2, 4)  # (N,4,8,8,11,11)
    xf = xt.reshape(n, 256, 121)
    xf = jnp.pad(xf, ((0, 0), (0, 0), (0, 7)))                       # (N,256,128)
    return xf.astype(dtype)


# ----------------------------------------------------------------------------
# Parameters: PyTorch-layout init + one-time "effective weight" scrambling
# ----------------------------------------------------------------------------
def init_params(key, action_size):
    ks = jax.random.split(key, 10)

    def u(k, shape, fan_in):
        bound = 1.0 / jnp.sqrt(fan_in)
        return jax.random.uniform(k, shape, jnp.float32, -bound, bound)

    return {
        "conv1_w": u(ks[0], (16, 4, 8, 8), 4 * 8 * 8),
        "conv1_b": u(ks[1], (1, 16), 4 * 8 * 8),
        "conv2_w": u(ks[2], (32, 16, 4, 4), 16 * 4 * 4),
        "conv2_b": u(ks[3], (1, 32), 16 * 4 * 4),
        "fc_w": u(ks[4], (32 * 9 * 9, 256), 32 * 9 * 9),   # = torch fc.weight.T
        "fc_b": u(ks[5], (1, 256), 32 * 9 * 9),
        "policy_w": u(ks[6], (256, action_size), 256),
        "policy_b": u(ks[7], (1, action_size), 256),
        "value_w": u(ks[8], (256, 1), 256),
        "value_b": u(ks[9], (1, 1), 256),
    }


def prepare_params(params, dtype=jnp.bfloat16):
    """One-time (host-side) re-layout of the PyTorch weights for the kernel."""
    w1 = np.asarray(params["conv1_w"], np.float32)   # (16, 4, 8, 8)
    w2 = np.asarray(params["conv2_w"], np.float32)   # (32, 16, 4, 4)
    fc_w = np.asarray(params["fc_w"], np.float32)    # (2592, 256)

    # conv1: W1_eff[r1y,r1x,ay,ax][oc, c*64+Rh*8+Rw] = W1[oc,c,kh,kw]
    #        with 4*r1 + k = 8*a + R (per spatial dim), zeros elsewhere.
    w1_eff = np.zeros((2, 2, 2, 2, 16, 4, 8, 8), np.float32)
    for r1y in range(2):
        for r1x in range(2):
            for kh in range(8):
                ay, rh = divmod(4 * r1y + kh, 8)
                for kw in range(8):
                    ax, rw = divmod(4 * r1x + kw, 8)
                    w1_eff[r1y, r1x, ay, ax, :, :, rh, rw] = w1[:, :, kh, kw]
    w1_eff = w1_eff.reshape(16, 16, 256)

    # conv2: W2_eff[a2y,a2x][oc2, r1y*32+r1x*16+c] = W2[oc2,c,2*a2y+r1y,2*a2x+r1x]
    w2_eff = np.zeros((2, 2, 32, 2, 2, 16), np.float32)
    for kh2 in range(4):
        a2y, r1y = divmod(kh2, 2)
        for kw2 in range(4):
            a2x, r1x = divmod(kw2, 2)
            w2_eff[a2y, a2x, :, r1y, r1x, :] = w2[:, :, kh2, kw2]
    w2_eff = w2_eff.reshape(4, 32, 64)

    # fc: fold PyTorch NCHW-flatten order + junk columns of the 11-wide grid
    # into the weight rows: row (c*128 + 11*vy + vx) <- fc_w[c*81 + 9*vy + vx].
    fcw_src = fc_w.reshape(32, 9, 9, 256)
    fcw_eff = np.zeros((32, 128, 256), np.float32)
    for vy in range(9):
        fcw_eff[:, 11 * vy:11 * vy + 9, :] = fcw_src[:, vy, :, :]
    fcw_eff = fcw_eff.reshape(4096, 256)

    # fused heads: [policy | value]
    w_head = np.concatenate(
        [np.asarray(params["policy_w"]), np.asarray(params["value_w"])], axis=1)
    b_head = np.concatenate(
        [np.asarray(params["policy_b"]), np.asarray(params["value_b"])], axis=1)

    return {
        "w1": jnp.asarray(w1_eff, dtype),
        "b1": jnp.asarray(params["conv1_b"], jnp.float32).reshape(16, 1),
        "w2": jnp.asarray(w2_eff, dtype),
        "b2": jnp.asarray(params["conv2_b"], jnp.float32).reshape(32, 1),
        "fc_w": jnp.asarray(fcw_eff, dtype),
        "fc_b": jnp.asarray(params["fc_b"], jnp.float32).reshape(1, 256),
        "w_head": jnp.asarray(w_head, dtype),
        "b_head": jnp.asarray(b_head, jnp.float32).reshape(1, -1),
    }


# ----------------------------------------------------------------------------
# Forward pass: single fused pallas_call, grid over batch tiles
# ----------------------------------------------------------------------------
def actor_critic_forward(kernel_params, x):
    n = x.shape[0]
    act = kernel_params["w_head"].shape[1] - 1
    assert act + 1 <= 128, "fused head slab holds at most 127 actions + value"

    b_tile = min(8, n)
    n_blocks = pl.cdiv(n, b_tile)
    n_pad = n_blocks * b_tile

    x_exp = _prep_input(x)                                    # (n, 256, 128)
    if n_pad != n:
        x_exp = jnp.pad(x_exp, ((0, n_pad - n), (0, 0), (0, 0)))

    # Heads padded to a 128-lane slab: [policy | value | zeros].
    wh = jnp.pad(kernel_params["w_head"], ((0, 0), (0, 128 - (act + 1))))
    bh = jnp.pad(kernel_params["b_head"], ((0, 0), (0, 128 - (act + 1))))

    flops = n_pad * 2 * (9 * 16 * 256 * 110 + 4 * 32 * 64 * 99
                         + 32 * 128 * 256 + 256 * 128)
    param_bytes = sum(int(v.size) * v.dtype.itemsize
                      for v in kernel_params.values())
    bytes_accessed = int(x_exp.size) * 2 + param_bytes + n_pad * 128 * 4

    kernel = _make_actor_critic_kernel(b_tile, act)

    out = pl.pallas_call(
        kernel,
        out_shape=jax.ShapeDtypeStruct((n_pad, 128), jnp.float32),
        grid_spec=pltpu.PrefetchScalarGridSpec(
            num_scalar_prefetch=0,
            grid=(n_blocks,),
            in_specs=[
                pl.BlockSpec((b_tile, 256, 128), lambda i: (i, 0, 0)),  # x_exp
                pl.BlockSpec((16, 16, 256), lambda i: (0, 0, 0)),       # conv1 w
                pl.BlockSpec((16, 1), lambda i: (0, 0)),                # conv1 b
                pl.BlockSpec((4, 32, 64), lambda i: (0, 0, 0)),         # conv2 w
                pl.BlockSpec((32, 1), lambda i: (0, 0)),                # conv2 b
                pl.BlockSpec((4096, 256), lambda i: (0, 0)),            # fc w
                pl.BlockSpec((1, 256), lambda i: (0, 0)),               # fc b
                pl.BlockSpec((256, 128), lambda i: (0, 0)),             # head w
                pl.BlockSpec((1, 128), lambda i: (0, 0)),               # head b
            ],
            out_specs=pl.BlockSpec((b_tile, 128), lambda i: (i, 0)),
            scratch_shapes=[
                pltpu.VMEM((b_tile, 64, 128), jnp.bfloat16),   # h1 per sample
                pltpu.VMEM((b_tile, 32, 128), jnp.bfloat16),   # h2 per sample
                pltpu.VMEM((b_tile, 256), jnp.bfloat16),       # fc activations
            ],
        ),
        compiler_params=pltpu.CompilerParams(
            dimension_semantics=("parallel",),
            vmem_limit_bytes=32 * 1024 * 1024,
        ),
        cost_estimate=pl.CostEstimate(
            flops=flops, transcendentals=n_pad * 128,
            bytes_accessed=int(bytes_accessed)),
    )(x_exp, kernel_params["w1"], kernel_params["b1"],
      kernel_params["w2"], kernel_params["b2"],
      kernel_params["fc_w"], kernel_params["fc_b"], wh, bh)

    policy = out[:n, :act]
    value = out[:n, act:act + 1]
    return policy, value


# ----------------------------------------------------------------------------
# Pure-JAX reference (exact PyTorch semantics) for correctness checking
# ----------------------------------------------------------------------------
def reference_forward(params, x):
    hp = jax.lax.Precision.HIGHEST
    y = jax.lax.conv_general_dilated(
        x, params["conv1_w"], window_strides=(4, 4), padding="VALID",
        dimension_numbers=("NCHW", "OIHW", "NCHW"), precision=hp)
    y = jnp.maximum(y + params["conv1_b"].reshape(1, -1, 1, 1), 0.0)
    y = jax.lax.conv_general_dilated(
        y, params["conv2_w"], window_strides=(2, 2), padding="VALID",
        dimension_numbers=("NCHW", "OIHW", "NCHW"), precision=hp)
    y = jnp.maximum(y + params["conv2_b"].reshape(1, -1, 1, 1), 0.0)
    flat = y.reshape(y.shape[0], -1)                      # NCHW flatten
    h = jnp.maximum(jnp.dot(flat, params["fc_w"], precision=hp)
                    + params["fc_b"], 0.0)
    logits = jnp.dot(h, params["policy_w"], precision=hp) + params["policy_b"]
    policy = jax.nn.softmax(logits, axis=1)
    value = jnp.dot(h, params["value_w"], precision=hp) + params["value_b"]
    return policy, value


# ----------------------------------------------------------------------------
# Demo
# ----------------------------------------------------------------------------
if __name__ == "__main__":
    ACTION_SIZE = 4   # Breakout action space
    BATCH = 2

    key = jax.random.PRNGKey(0)
    k_params, k_x = jax.random.split(key)

    params = init_params(k_params, ACTION_SIZE)
    kernel_params = prepare_params(params)
    # forward implies 84x84 Atari frames (fc expects 32*9*9 flattened features)
    x = jax.random.normal(k_x, (BATCH, 4, 84, 84), dtype=jnp.float32)

    fwd = jax.jit(actor_critic_forward)
    policy, value = fwd(kernel_params, x)
    jax.block_until_ready((policy, value))

    assert policy.shape == (BATCH, ACTION_SIZE)
    assert value.shape == (BATCH, 1)
    # softmax rows sum to 1 (approx reciprocal -> loose tolerance)
    assert jnp.allclose(jnp.sum(policy, axis=1), 1.0, atol=2e-3)

    # cross-check against the pure-JAX reference of the PyTorch module
    ref_policy, ref_value = jax.jit(reference_forward)(params, x)
    assert jnp.allclose(policy, ref_policy, atol=2e-2, rtol=2e-2)
    assert jnp.allclose(value, ref_value, atol=2e-2, rtol=2e-2)

    print("KERNEL_OK")
</pallas_src>

<mosaic_0001>
module attributes {stable_mosaic.version = 11 : i64} {
  func.func @kernel(%arg0: i32, %arg1: memref<2x256x128xbf16, #tpu.memory_space<vmem>>, %arg2: memref<16x16x256xbf16, #tpu.memory_space<vmem>>, %arg3: memref<16x1xf32, #tpu.memory_space<vmem>>, %arg4: memref<4x32x64xbf16, #tpu.memory_space<vmem>>, %arg5: memref<32x1xf32, #tpu.memory_space<vmem>>, %arg6: memref<4096x256xbf16, #tpu.memory_space<vmem>>, %arg7: memref<1x256xf32, #tpu.memory_space<vmem>>, %arg8: memref<256x128xbf16, #tpu.memory_space<vmem>>, %arg9: memref<1x128xf32, #tpu.memory_space<vmem>>, %arg10: memref<2x128xf32, #tpu.memory_space<vmem>>, %arg11: memref<2x64x128xbf16, #tpu.memory_space<vmem>>, %arg12: memref<2x32x128xbf16, #tpu.memory_space<vmem>>, %arg13: memref<2x256xbf16, #tpu.memory_space<vmem>>) attributes {dimension_semantics = [#tpu.dimension_semantics<parallel>], iteration_bounds = array<i64: 1>, scalar_prefetch = 0 : i64, scratch_operands = 3 : i64, tpu.core_type = #tpu.core_type<tc>, window_params = [{transform_indices = @transform_0, window_bounds = array<i64: 2, 256, 128>}, {pipeline_mode = #tpu.pipeline_mode<synchronous>, transform_indices = @transform_1, window_bounds = array<i64: 16, 16, 256>}, {pipeline_mode = #tpu.pipeline_mode<synchronous>, transform_indices = @transform_2, window_bounds = array<i64: 16, 1>}, {pipeline_mode = #tpu.pipeline_mode<synchronous>, transform_indices = @transform_3, window_bounds = array<i64: 4, 32, 64>}, {pipeline_mode = #tpu.pipeline_mode<synchronous>, transform_indices = @transform_4, window_bounds = array<i64: 32, 1>}, {pipeline_mode = #tpu.pipeline_mode<synchronous>, transform_indices = @transform_5, window_bounds = array<i64: 4096, 256>}, {pipeline_mode = #tpu.pipeline_mode<synchronous>, transform_indices = @transform_6, window_bounds = array<i64: 1, 256>}, {pipeline_mode = #tpu.pipeline_mode<synchronous>, transform_indices = @transform_7, window_bounds = array<i64: 256, 128>}, {pipeline_mode = #tpu.pipeline_mode<synchronous>, transform_indices = @transform_8, window_bounds = array<i64: 1, 128>}, {transform_indices = @transform_9, window_bounds = array<i64: 2, 128>}]} {
    %cst = arith.constant 0.000000e+00 : bf16
    %0 = vector.broadcast %cst : bf16 to vector<2x64x128xbf16>
    %c0 = arith.constant 0 : index
    %c0_0 = arith.constant 0 : index
    %c0_1 = arith.constant 0 : index
    %1 = vector.load %arg11[%c0, %c0_0, %c0_1] : memref<2x64x128xbf16, #tpu.memory_space<vmem>>, vector<2x64x128xbf16>
    tpu.vector_store %arg11[%c0, %c0_0, %c0_1], %0 {strides = array<i32>} : memref<2x64x128xbf16, #tpu.memory_space<vmem>>, vector<2x64x128xbf16>,
    %cst_2 = arith.constant 0.000000e+00 : bf16
    %2 = vector.broadcast %cst_2 : bf16 to vector<2x32x128xbf16>
    %c0_3 = arith.constant 0 : index
    %c0_4 = arith.constant 0 : index
    %c0_5 = arith.constant 0 : index
    %3 = vector.load %arg12[%c0_3, %c0_4, %c0_5] : memref<2x32x128xbf16, #tpu.memory_space<vmem>>, vector<2x32x128xbf16>
    tpu.vector_store %arg12[%c0_3, %c0_4, %c0_5], %2 {strides = array<i32>} : memref<2x32x128xbf16, #tpu.memory_space<vmem>>, vector<2x32x128xbf16>,
    %cst_6 = arith.constant 0.000000e+00 : f32
    %4 = vector.broadcast %cst_6 : f32 to vector<16x110xf32>
    %c0_7 = arith.constant 0 : index
    %c0_8 = arith.constant 0 : index
    %c0_9 = arith.constant 0 : index
    %5 = vector.load %arg2[%c0_7, %c0_8, %c0_9] : memref<16x16x256xbf16, #tpu.memory_space<vmem>>, vector<1x16x256xbf16>
    %6 = vector.shape_cast %5 : vector<1x16x256xbf16> to vector<16x256xbf16>
    %c0_10 = arith.constant 0 : index
    %c0_11 = arith.constant 0 : index
    %c0_12 = arith.constant 0 : index
    %7 = vector.load %arg1[%c0_10, %c0_11, %c0_12] : memref<2x256x128xbf16, #tpu.memory_space<vmem>>, vector<1x256x110xbf16>
    %8 = vector.shape_cast %7 : vector<1x256x110xbf16> to vector<256x110xbf16>
    %cst_13 = arith.constant dense<0.000000e+00> : vector<16x110xf32>
    %9 = tpu.matmul %6, %8, %cst_13 {dimension_numbers = #tpu.dot_dimension_numbers<[1], [0], [0], [1], [0, 0, 1, 1], [], []>} : vector<16x256xbf16>, vector<256x110xbf16>, vector<16x110xf32> -> vector<16x110xf32>
    %10 = arith.addf %4, %9 : vector<16x110xf32>
    %c0_14 = arith.constant 0 : index
    %c0_15 = arith.constant 0 : index
    %11 = vector.load %arg3[%c0_14, %c0_15] : memref<16x1xf32, #tpu.memory_space<vmem>>, vector<16x1xf32>
    %12 = vector.broadcast %11 : vector<16x1xf32> to vector<16x110xf32>
    %13 = arith.addf %10, %12 : vector<16x110xf32>
    %cst_16 = arith.constant 0.000000e+00 : f32
    %14 = vector.broadcast %cst_16 : f32 to vector<16x110xf32>
    %15 = arith.maximumf %13, %14 : vector<16x110xf32>
    %16 = arith.truncf %15 : vector<16x110xf32> to vector<16x110xbf16>
    %c0_17 = arith.constant 0 : index
    %c0_18 = arith.constant 0 : index
    %c0_19 = arith.constant 0 : index
    %17 = vector.load %arg11[%c0_17, %c0_18, %c0_19] : memref<2x64x128xbf16, #tpu.memory_space<vmem>>, vector<1x16x110xbf16>
    %18 = vector.shape_cast %17 : vector<1x16x110xbf16> to vector<16x110xbf16>
    %19 = vector.shape_cast %16 : vector<16x110xbf16> to vector<1x16x110xbf16>
    tpu.vector_store %arg11[%c0_17, %c0_18, %c0_19], %19 {strides = array<i32>} : memref<2x64x128xbf16, #tpu.memory_space<vmem>>, vector<1x16x110xbf16>,
    %cst_20 = arith.constant 0.000000e+00 : f32
    %20 = vector.broadcast %cst_20 : f32 to vector<16x110xf32>
    %c4 = arith.constant 4 : index
    %c0_21 = arith.constant 0 : index
    %c0_22 = arith.constant 0 : index
    %21 = vector.load %arg2[%c4, %c0_21, %c0_22] : memref<16x16x256xbf16, #tpu.memory_space<vmem>>, vector<1x16x256xbf16>
    %22 = vector.shape_cast %21 : vector<1x16x256xbf16> to vector<16x256xbf16>
    %c0_23 = arith.constant 0 : index
    %c0_24 = arith.constant 0 : index
    %c0_25 = arith.constant 0 : index
    %23 = vector.load %arg1[%c0_23, %c0_24, %c0_25] : memref<2x256x128xbf16, #tpu.memory_space<vmem>>, vector<1x256x110xbf16>
    %24 = vector.shape_cast %23 : vector<1x256x110xbf16> to vector<256x110xbf16>
    %cst_26 = arith.constant dense<0.000000e+00> : vector<16x110xf32>
    %25 = tpu.matmul %22, %24, %cst_26 {dimension_numbers = #tpu.dot_dimension_numbers<[1], [0], [0], [1], [0, 0, 1, 1], [], []>} : vector<16x256xbf16>, vector<256x110xbf16>, vector<16x110xf32> -> vector<16x110xf32>
    %26 = arith.addf %20, %25 : vector<16x110xf32>
    %c5 = arith.constant 5 : index
    %c0_27 = arith.constant 0 : index
    %c0_28 = arith.constant 0 : index
    %27 = vector.load %arg2[%c5, %c0_27, %c0_28] : memref<16x16x256xbf16, #tpu.memory_space<vmem>>, vector<1x16x256xbf16>
    %28 = vector.shape_cast %27 : vector<1x16x256xbf16> to vector<16x256xbf16>
    %c0_29 = arith.constant 0 : index
    %c0_30 = arith.constant 0 : index
    %c1 = arith.constant 1 : index
    %29 = vector.load %arg1[%c0_29, %c0_30, %c1] : memref<2x256x128xbf16, #tpu.memory_space<vmem>>, vector<1x256x110xbf16>
    %30 = vector.shape_cast %29 : vector<1x256x110xbf16> to vector<256x110xbf16>
    %cst_31 = arith.constant dense<0.000000e+00> : vector<16x110xf32>
    %31 = tpu.matmul %28, %30, %cst_31 {dimension_numbers = #tpu.dot_dimension_numbers<[1], [0], [0], [1], [0, 0, 1, 1], [], []>} : vector<16x256xbf16>, vector<256x110xbf16>, vector<16x110xf32> -> vector<16x110xf32>
    %32 = arith.addf %26, %31 : vector<16x110xf32>
    %c0_32 = arith.constant 0 : index
    %c0_33 = arith.constant 0 : index
    %33 = vector.load %arg3[%c0_32, %c0_33] : memref<16x1xf32, #tpu.memory_space<vmem>>, vector<16x1xf32>
    %34 = vector.broadcast %33 : vector<16x1xf32> to vector<16x110xf32>
    %35 = arith.addf %32, %34 : vector<16x110xf32>
    %cst_34 = arith.constant 0.000000e+00 : f32
    %36 = vector.broadcast %cst_34 : f32 to vector<16x110xf32>
    %37 = arith.maximumf %35, %36 : vector<16x110xf32>
    %38 = arith.truncf %37 : vector<16x110xf32> to vector<16x110xbf16>
    %c0_35 = arith.constant 0 : index
    %c16 = arith.constant 16 : index
    %c0_36 = arith.constant 0 : index
    %39 = vector.load %arg11[%c0_35, %c16, %c0_36] : memref<2x64x128xbf16, #tpu.memory_space<vmem>>, vector<1x16x110xbf16>
    %40 = vector.shape_cast %39 : vector<1x16x110xbf16> to vector<16x110xbf16>
    %41 = vector.shape_cast %38 : vector<16x110xbf16> to vector<1x16x110xbf16>
    tpu.vector_store %arg11[%c0_35, %c16, %c0_36], %41 {strides = array<i32>} : memref<2x64x128xbf16, #tpu.memory_space<vmem>>, vector<1x16x110xbf16>,
    %cst_37 = arith.constant 0.000000e+00 : f32
    %42 = vector.broadcast %cst_37 : f32 to vector<16x110xf32>
    %c8 = arith.constant 8 : index
    %c0_38 = arith.constant 0 : index
    %c0_39 = arith.constant 0 : index
    %43 = vector.load %arg2[%c8, %c0_38, %c0_39] : memref<16x16x256xbf16, #tpu.memory_space<vmem>>, vector<1x16x256xbf16>
    %44 = vector.shape_cast %43 : vector<1x16x256xbf16> to vector<16x256xbf16>
    %c0_40 = arith.constant 0 : index
    %c0_41 = arith.constant 0 : index
    %c0_42 = arith.constant 0 : index
    %45 = vector.load %arg1[%c0_40, %c0_41, %c0_42] : memref<2x256x128xbf16, #tpu.memory_space<vmem>>, vector<1x256x110xbf16>
    %46 = vector.shape_cast %45 : vector<1x256x110xbf16> to vector<256x110xbf16>
    %cst_43 = arith.constant dense<0.000000e+00> : vector<16x110xf32>
    %47 = tpu.matmul %44, %46, %cst_43 {dimension_numbers = #tpu.dot_dimension_numbers<[1], [0], [0], [1], [0, 0, 1, 1], [], []>} : vector<16x256xbf16>, vector<256x110xbf16>, vector<16x110xf32> -> vector<16x110xf32>
    %48 = arith.addf %42, %47 : vector<16x110xf32>
    %c10 = arith.constant 10 : index
    %c0_44 = arith.constant 0 : index
    %c0_45 = arith.constant 0 : index
    %49 = vector.load %arg2[%c10, %c0_44, %c0_45] : memref<16x16x256xbf16, #tpu.memory_space<vmem>>, vector<1x16x256xbf16>
    %50 = vector.shape_cast %49 : vector<1x16x256xbf16> to vector<16x256xbf16>
    %c0_46 = arith.constant 0 : index
    %c0_47 = arith.constant 0 : index
    %c11 = arith.constant 11 : index
    %51 = vector.load %arg1[%c0_46, %c0_47, %c11] : memref<2x256x128xbf16, #tpu.memory_space<vmem>>, vector<1x256x110xbf16>
    %52 = vector.shape_cast %51 : vector<1x256x110xbf16> to vector<256x110xbf16>
    %cst_48 = arith.constant dense<0.000000e+00> : vector<16x110xf32>
    %53 = tpu.matmul %50, %52, %cst_48 {dimension_numbers = #tpu.dot_dimension_numbers<[1], [0], [0], [1], [0, 0, 1, 1], [], []>} : vector<16x256xbf16>, vector<256x110xbf16>, vector<16x110xf32> -> vector<16x110xf32>
    %54 = arith.addf %48, %53 : vector<16x110xf32>
    %c0_49 = arith.constant 0 : index
    %c0_50 = arith.constant 0 : index
    %55 = vector.load %arg3[%c0_49, %c0_50] : memref<16x1xf32, #tpu.memory_space<vmem>>, vector<16x1xf32>
    %56 = vector.broadcast %55 : vector<16x1xf32> to vector<16x110xf32>
    %57 = arith.addf %54, %56 : vector<16x110xf32>
    %cst_51 = arith.constant 0.000000e+00 : f32
    %58 = vector.broadcast %cst_51 : f32 to vector<16x110xf32>
    %59 = arith.maximumf %57, %58 : vector<16x110xf32>
    %60 = arith.truncf %59 : vector<16x110xf32> to vector<16x110xbf16>
    %c0_52 = arith.constant 0 : index
    %c32 = arith.constant 32 : index
    %c0_53 = arith.constant 0 : index
    %61 = vector.load %arg11[%c0_52, %c32, %c0_53] : memref<2x64x128xbf16, #tpu.memory_space<vmem>>, vector<1x16x110xbf16>
    %62 = vector.shape_cast %61 : vector<1x16x110xbf16> to vector<16x110xbf16>
    %63 = vector.shape_cast %60 : vector<16x110xbf16> to vector<1x16x110xbf16>
    tpu.vector_store %arg11[%c0_52, %c32, %c0_53], %63 {strides = array<i32>} : memref<2x64x128xbf16, #tpu.memory_space<vmem>>, vector<1x16x110xbf16>,
    %cst_54 = arith.constant 0.000000e+00 : f32
    %64 = vector.broadcast %cst_54 : f32 to vector<16x110xf32>
    %c12 = arith.constant 12 : index
    %c0_55 = arith.constant 0 : index
    %c0_56 = arith.constant 0 : index
    %65 = vector.load %arg2[%c12, %c0_55, %c0_56] : memref<16x16x256xbf16, #tpu.memory_space<vmem>>, vector<1x16x256xbf16>
    %66 = vector.shape_cast %65 : vector<1x16x256xbf16> to vector<16x256xbf16>
    %c0_57 = arith.constant 0 : index
    %c0_58 = arith.constant 0 : index
    %c0_59 = arith.constant 0 : index
    %67 = vector.load %arg1[%c0_57, %c0_58, %c0_59] : memref<2x256x128xbf16, #tpu.memory_space<vmem>>, vector<1x256x110xbf16>
    %68 = vector.shape_cast %67 : vector<1x256x110xbf16> to vector<256x110xbf16>
    %cst_60 = arith.constant dense<0.000000e+00> : vector<16x110xf32>
    %69 = tpu.matmul %66, %68, %cst_60 {dimension_numbers = #tpu.dot_dimension_numbers<[1], [0], [0], [1], [0, 0, 1, 1], [], []>} : vector<16x256xbf16>, vector<256x110xbf16>, vector<16x110xf32> -> vector<16x110xf32>
    %70 = arith.addf %64, %69 : vector<16x110xf32>
    %c13 = arith.constant 13 : index
    %c0_61 = arith.constant 0 : index
    %c0_62 = arith.constant 0 : index
    %71 = vector.load %arg2[%c13, %c0_61, %c0_62] : memref<16x16x256xbf16, #tpu.memory_space<vmem>>, vector<1x16x256xbf16>
    %72 = vector.shape_cast %71 : vector<1x16x256xbf16> to vector<16x256xbf16>
    %c0_63 = arith.constant 0 : index
    %c0_64 = arith.constant 0 : index
    %c1_65 = arith.constant 1 : index
    %73 = vector.load %arg1[%c0_63, %c0_64, %c1_65] : memref<2x256x128xbf16, #tpu.memory_space<vmem>>, vector<1x256x110xbf16>
    %74 = vector.shape_cast %73 : vector<1x256x110xbf16> to vector<256x110xbf16>
    %cst_66 = arith.constant dense<0.000000e+00> : vector<16x110xf32>
    %75 = tpu.matmul %72, %74, %cst_66 {dimension_numbers = #tpu.dot_dimension_numbers<[1], [0], [0], [1], [0, 0, 1, 1], [], []>} : vector<16x256xbf16>, vector<256x110xbf16>, vector<16x110xf32> -> vector<16x110xf32>
    %76 = arith.addf %70, %75 : vector<16x110xf32>
    %c14 = arith.constant 14 : index
    %c0_67 = arith.constant 0 : index
    %c0_68 = arith.constant 0 : index
    %77 = vector.load %arg2[%c14, %c0_67, %c0_68] : memref<16x16x256xbf16, #tpu.memory_space<vmem>>, vector<1x16x256xbf16>
    %78 = vector.shape_cast %77 : vector<1x16x256xbf16> to vector<16x256xbf16>
    %c0_69 = arith.constant 0 : index
    %c0_70 = arith.constant 0 : index
    %c11_71 = arith.constant 11 : index
    %79 = vector.load %arg1[%c0_69, %c0_70, %c11_71] : memref<2x256x128xbf16, #tpu.memory_space<vmem>>, vector<1x256x110xbf16>
    %80 = vector.shape_cast %79 : vector<1x256x110xbf16> to vector<256x110xbf16>
    %cst_72 = arith.constant dense<0.000000e+00> : vector<16x110xf32>
    %81 = tpu.matmul %78, %80, %cst_72 {dimension_numbers = #tpu.dot_dimension_numbers<[1], [0], [0], [1], [0, 0, 1, 1], [], []>} : vector<16x256xbf16>, vector<256x110xbf16>, vector<16x110xf32> -> vector<16x110xf32>
    %82 = arith.addf %76, %81 : vector<16x110xf32>
    %c15 = arith.constant 15 : index
    %c0_73 = arith.constant 0 : index
    %c0_74 = arith.constant 0 : index
    %83 = vector.load %arg2[%c15, %c0_73, %c0_74] : memref<16x16x256xbf16, #tpu.memory_space<vmem>>, vector<1x16x256xbf16>
    %84 = vector.shape_cast %83 : vector<1x16x256xbf16> to vector<16x256xbf16>
    %c0_75 = arith.constant 0 : index
    %c0_76 = arith.constant 0 : index
    %c12_77 = arith.constant 12 : index
    %85 = vector.load %arg1[%c0_75, %c0_76, %c12_77] : memref<2x256x128xbf16, #tpu.memory_space<vmem>>, vector<1x256x110xbf16>
    %86 = vector.shape_cast %85 : vector<1x256x110xbf16> to vector<256x110xbf16>
    %cst_78 = arith.constant dense<0.000000e+00> : vector<16x110xf32>
    %87 = tpu.matmul %84, %86, %cst_78 {dimension_numbers = #tpu.dot_dimension_numbers<[1], [0], [0], [1], [0, 0, 1, 1], [], []>} : vector<16x256xbf16>, vector<256x110xbf16>, vector<16x110xf32> -> vector<16x110xf32>
    %88 = arith.addf %82, %87 : vector<16x110xf32>
    %c0_79 = arith.constant 0 : index
    %c0_80 = arith.constant 0 : index
    %89 = vector.load %arg3[%c0_79, %c0_80] : memref<16x1xf32, #tpu.memory_space<vmem>>, vector<16x1xf32>
    %90 = vector.broadcast %89 : vector<16x1xf32> to vector<16x110xf32>
    %91 = arith.addf %88, %90 : vector<16x110xf32>
    %cst_81 = arith.constant 0.000000e+00 : f32
    %92 = vector.broadcast %cst_81 : f32 to vector<16x110xf32>
    %93 = arith.maximumf %91, %92 : vector<16x110xf32>
    %94 = arith.truncf %93 : vector<16x110xf32> to vector<16x110xbf16>
    %c0_82 = arith.constant 0 : index
    %c48 = arith.constant 48 : index
    %c0_83 = arith.constant 0 : index
    %95 = vector.load %arg11[%c0_82, %c48, %c0_83] : memref<2x64x128xbf16, #tpu.memory_space<vmem>>, vector<1x16x110xbf16>
    %96 = vector.shape_cast %95 : vector<1x16x110xbf16> to vector<16x110xbf16>
    %97 = vector.shape_cast %94 : vector<16x110xbf16> to vector<1x16x110xbf16>
    tpu.vector_store %arg11[%c0_82, %c48, %c0_83], %97 {strides = array<i32>} : memref<2x64x128xbf16, #tpu.memory_space<vmem>>, vector<1x16x110xbf16>,
    %cst_84 = arith.constant 0.000000e+00 : f32
    %98 = vector.broadcast %cst_84 : f32 to vector<32x99xf32>
    %c0_85 = arith.constant 0 : index
    %c0_86 = arith.constant 0 : index
    %c0_87 = arith.constant 0 : index
    %99 = vector.load %arg4[%c0_85, %c0_86, %c0_87] : memref<4x32x64xbf16, #tpu.memory_space<vmem>>, vector<1x32x64xbf16>
    %100 = vector.shape_cast %99 : vector<1x32x64xbf16> to vector<32x64xbf16>
    %c0_88 = arith.constant 0 : index
    %c0_89 = arith.constant 0 : index
    %c0_90 = arith.constant 0 : index
    %101 = vector.load %arg11[%c0_88, %c0_89, %c0_90] : memref<2x64x128xbf16, #tpu.memory_space<vmem>>, vector<1x64x99xbf16>
    %102 = vector.shape_cast %101 : vector<1x64x99xbf16> to vector<64x99xbf16>
    %cst_91 = arith.constant dense<0.000000e+00> : vector<32x99xf32>
    %103 = tpu.matmul %100, %102, %cst_91 {dimension_numbers = #tpu.dot_dimension_numbers<[1], [0], [0], [1], [0, 0, 1, 1], [], []>} : vector<32x64xbf16>, vector<64x99xbf16>, vector<32x99xf32> -> vector<32x99xf32>
    %104 = arith.addf %98, %103 : vector<32x99xf32>
    %c1_92 = arith.constant 1 : index
    %c0_93 = arith.constant 0 : index
    %c0_94 = arith.constant 0 : index
    %105 = vector.load %arg4[%c1_92, %c0_93, %c0_94] : memref<4x32x64xbf16, #tpu.memory_space<vmem>>, vector<1x32x64xbf16>
    %106 = vector.shape_cast %105 : vector<1x32x64xbf16> to vector<32x64xbf16>
    %c0_95 = arith.constant 0 : index
    %c0_96 = arith.constant 0 : index
    %c1_97 = arith.constant 1 : index
    %107 = vector.load %arg11[%c0_95, %c0_96, %c1_97] : memref<2x64x128xbf16, #tpu.memory_space<vmem>>, vector<1x64x99xbf16>
    %108 = vector.shape_cast %107 : vector<1x64x99xbf16> to vector<64x99xbf16>
    %cst_98 = arith.constant dense<0.000000e+00> : vector<32x99xf32>
    %109 = tpu.matmul %106, %108, %cst_98 {dimension_numbers = #tpu.dot_dimension_numbers<[1], [0], [0], [1], [0, 0, 1, 1], [], []>} : vector<32x64xbf16>, vector<64x99xbf16>, vector<32x99xf32> -> vector<32x99xf32>
    %110 = arith.addf %104, %109 : vector<32x99xf32>
    %c2 = arith.constant 2 : index
    %c0_99 = arith.constant 0 : index
    %c0_100 = arith.constant 0 : index
    %111 = vector.load %arg4[%c2, %c0_99, %c0_100] : memref<4x32x64xbf16, #tpu.memory_space<vmem>>, vector<1x32x64xbf16>
    %112 = vector.shape_cast %111 : vector<1x32x64xbf16> to vector<32x64xbf16>
    %c0_101 = arith.constant 0 : index
    %c0_102 = arith.constant 0 : index
    %c11_103 = arith.constant 11 : index
    %113 = vector.load %arg11[%c0_101, %c0_102, %c11_103] : memref<2x64x128xbf16, #tpu.memory_space<vmem>>, vector<1x64x99xbf16>
    %114 = vector.shape_cast %113 : vector<1x64x99xbf16> to vector<64x99xbf16>
    %cst_104 = arith.constant dense<0.000000e+00> : vector<32x99xf32>
    %115 = tpu.matmul %112, %114, %cst_104 {dimension_numbers = #tpu.dot_dimension_numbers<[1], [0], [0], [1], [0, 0, 1, 1], [], []>} : vector<32x64xbf16>, vector<64x99xbf16>, vector<32x99xf32> -> vector<32x99xf32>
    %116 = arith.addf %110, %115 : vector<32x99xf32>
    %c3 = arith.constant 3 : index
    %c0_105 = arith.constant 0 : index
    %c0_106 = arith.constant 0 : index
    %117 = vector.load %arg4[%c3, %c0_105, %c0_106] : memref<4x32x64xbf16, #tpu.memory_space<vmem>>, vector<1x32x64xbf16>
    %118 = vector.shape_cast %117 : vector<1x32x64xbf16> to vector<32x64xbf16>
    %c0_107 = arith.constant 0 : index
    %c0_108 = arith.constant 0 : index
    %c12_109 = arith.constant 12 : index
    %119 = vector.load %arg11[%c0_107, %c0_108, %c12_109] : memref<2x64x128xbf16, #tpu.memory_space<vmem>>, vector<1x64x99xbf16>
    %120 = vector.shape_cast %119 : vector<1x64x99xbf16> to vector<64x99xbf16>
    %cst_110 = arith.constant dense<0.000000e+00> : vector<32x99xf32>
    %121 = tpu.matmul %118, %120, %cst_110 {dimension_numbers = #tpu.dot_dimension_numbers<[1], [0], [0], [1], [0, 0, 1, 1], [], []>} : vector<32x64xbf16>, vector<64x99xbf16>, vector<32x99xf32> -> vector<32x99xf32>
    %122 = arith.addf %116, %121 : vector<32x99xf32>
    %c0_111 = arith.constant 0 : index
    %c0_112 = arith.constant 0 : index
    %123 = vector.load %arg5[%c0_111, %c0_112] : memref<32x1xf32, #tpu.memory_space<vmem>>, vector<32x1xf32>
    %124 = vector.broadcast %123 : vector<32x1xf32> to vector<32x99xf32>
    %125 = arith.addf %122, %124 : vector<32x99xf32>
    %cst_113 = arith.constant 0.000000e+00 : f32
    %126 = vector.broadcast %cst_113 : f32 to vector<32x99xf32>
    %127 = arith.maximumf %125, %126 : vector<32x99xf32>
    %128 = arith.truncf %127 : vector<32x99xf32> to vector<32x99xbf16>
    %c0_114 = arith.constant 0 : index
    %c0_115 = arith.constant 0 : index
    %c0_116 = arith.constant 0 : index
    %129 = vector.load %arg12[%c0_114, %c0_115, %c0_116] : memref<2x32x128xbf16, #tpu.memory_space<vmem>>, vector<1x32x99xbf16>
    %130 = vector.shape_cast %129 : vector<1x32x99xbf16> to vector<32x99xbf16>
    %131 = vector.shape_cast %128 : vector<32x99xbf16> to vector<1x32x99xbf16>
    tpu.vector_store %arg12[%c0_114, %c0_115, %c0_116], %131 {strides = array<i32>} : memref<2x32x128xbf16, #tpu.memory_space<vmem>>, vector<1x32x99xbf16>,
    %cst_117 = arith.constant 0.000000e+00 : f32
    %132 = vector.broadcast %cst_117 : f32 to vector<1x256xf32>
    %c0_118 = arith.constant 0 : index
    %c0_119 = arith.constant 0 : index
    %c0_120 = arith.constant 0 : index
    %133 = vector.load %arg12[%c0_118, %c0_119, %c0_120] : memref<2x32x128xbf16, #tpu.memory_space<vmem>>, vector<1x1x128xbf16>
    %134 = vector.shape_cast %133 : vector<1x1x128xbf16> to vector<1x128xbf16>
    %c0_121 = arith.constant 0 : index
    %c0_122 = arith.constant 0 : index
    %135 = vector.load %arg6[%c0_121, %c0_122] : memref<4096x256xbf16, #tpu.memory_space<vmem>>, vector<128x256xbf16>
    %cst_123 = arith.constant dense<0.000000e+00> : vector<1x256xf32>
    %136 = tpu.matmul %134, %135, %cst_123 {dimension_numbers = #tpu.dot_dimension_numbers<[1], [0], [0], [1], [0, 0, 1, 1], [], []>} : vector<1x128xbf16>, vector<128x256xbf16>, vector<1x256xf32> -> vector<1x256xf32>
    %137 = arith.addf %132, %136 : vector<1x256xf32>
    %c0_124 = arith.constant 0 : index
    %c1_125 = arith.constant 1 : index
    %c0_126 = arith.constant 0 : index
    %138 = vector.load %arg12[%c0_124, %c1_125, %c0_126] : memref<2x32x128xbf16, #tpu.memory_space<vmem>>, vector<1x1x128xbf16>
    %139 = vector.shape_cast %138 : vector<1x1x128xbf16> to vector<1x128xbf16>
    %c128 = arith.constant 128 : index
    %c0_127 = arith.constant 0 : index
    %140 = vector.load %arg6[%c128, %c0_127] : memref<4096x256xbf16, #tpu.memory_space<vmem>>, vector<128x256xbf16>
    %cst_128 = arith.constant dense<0.000000e+00> : vector<1x256xf32>
    %141 = tpu.matmul %139, %140, %cst_128 {dimension_numbers = #tpu.dot_dimension_numbers<[1], [0], [0], [1], [0, 0, 1, 1], [], []>} : vector<1x128xbf16>, vector<128x256xbf16>, vector<1x256xf32> -> vector<1x256xf32>
    %142 = arith.addf %137, %141 : vector<1x256xf32>
    %c0_129 = arith.constant 0 : index
    %c2_130 = arith.constant 2 : index
    %c0_131 = arith.constant 0 : index
    %143 = vector.load %arg12[%c0_129, %c2_130, %c0_131] : memref<2x32x128xbf16, #tpu.memory_space<vmem>>, vector<1x1x128xbf16>
    %144 = vector.shape_cast %143 : vector<1x1x128xbf16> to vector<1x128xbf16>
    %c256 = arith.constant 256 : index
    %c0_132 = arith.constant 0 : index
    %145 = vector.load %arg6[%c256, %c0_132] : memref<4096x256xbf16, #tpu.memory_space<vmem>>, vector<128x256xbf16>
    %cst_133 = arith.constant dense<0.000000e+00> : vector<1x256xf32>
    %146 = tpu.matmul %144, %145, %cst_133 {dimension_numbers = #tpu.dot_dimension_numbers<[1], [0], [0], [1], [0, 0, 1, 1], [], []>} : vector<1x128xbf16>, vector<128x256xbf16>, vector<1x256xf32> -> vector<1x256xf32>
    %147 = arith.addf %142, %146 : vector<1x256xf32>
    %c0_134 = arith.constant 0 : index
    %c3_135 = arith.constant 3 : index
    %c0_136 = arith.constant 0 : index
    %148 = vector.load %arg12[%c0_134, %c3_135, %c0_136] : memref<2x32x128xbf16, #tpu.memory_space<vmem>>, vector<1x1x128xbf16>
    %149 = vector.shape_cast %148 : vector<1x1x128xbf16> to vector<1x128xbf16>
    %c384 = arith.constant 384 : index
    %c0_137 = arith.constant 0 : index
    %150 = vector.load %arg6[%c384, %c0_137] : memref<4096x256xbf16, #tpu.memory_space<vmem>>, vector<128x256xbf16>
    %cst_138 = arith.constant dense<0.000000e+00> : vector<1x256xf32>
    %151 = tpu.matmul %149, %150, %cst_138 {dimension_numbers = #tpu.dot_dimension_numbers<[1], [0], [0], [1], [0, 0, 1, 1], [], []>} : vector<1x128xbf16>, vector<128x256xbf16>, vector<1x256xf32> -> vector<1x256xf32>
    %152 = arith.addf %147, %151 : vector<1x256xf32>
    %c0_139 = arith.constant 0 : index
    %c4_140 = arith.constant 4 : index
    %c0_141 = arith.constant 0 : index
    %153 = vector.load %arg12[%c0_139, %c4_140, %c0_141] : memref<2x32x128xbf16, #tpu.memory_space<vmem>>, vector<1x1x128xbf16>
    %154 = vector.shape_cast %153 : vector<1x1x128xbf16> to vector<1x128xbf16>
    %c512 = arith.constant 512 : index
    %c0_142 = arith.constant 0 : index
    %155 = vector.load %arg6[%c512, %c0_142] : memref<4096x256xbf16, #tpu.memory_space<vmem>>, vector<128x256xbf16>
    %cst_143 = arith.constant dense<0.000000e+00> : vector<1x256xf32>
    %156 = tpu.matmul %154, %155, %cst_143 {dimension_numbers = #tpu.dot_dimension_numbers<[1], [0], [0], [1], [0, 0, 1, 1], [], []>} : vector<1x128xbf16>, vector<128x256xbf16>, vector<1x256xf32> -> vector<1x256xf32>
    %157 = arith.addf %152, %156 : vector<1x256xf32>
    %c0_144 = arith.constant 0 : index
    %c5_145 = arith.constant 5 : index
    %c0_146 = arith.constant 0 : index
    %158 = vector.load %arg12[%c0_144, %c5_145, %c0_146] : memref<2x32x128xbf16, #tpu.memory_space<vmem>>, vector<1x1x128xbf16>
    %159 = vector.shape_cast %158 : vector<1x1x128xbf16> to vector<1x128xbf16>
    %c640 = arith.constant 640 : index
    %c0_147 = arith.constant 0 : index
    %160 = vector.load %arg6[%c640, %c0_147] : memref<4096x256xbf16, #tpu.memory_space<vmem>>, vector<128x256xbf16>
    %cst_148 = arith.constant dense<0.000000e+00> : vector<1x256xf32>
    %161 = tpu.matmul %159, %160, %cst_148 {dimension_numbers = #tpu.dot_dimension_numbers<[1], [0], [0], [1], [0, 0, 1, 1], [], []>} : vector<1x128xbf16>, vector<128x256xbf16>, vector<1x256xf32> -> vector<1x256xf32>
    %162 = arith.addf %157, %161 : vector<1x256xf32>
    %c0_149 = arith.constant 0 : index
    %c6 = arith.constant 6 : index
    %c0_150 = arith.constant 0 : index
    %163 = vector.load %arg12[%c0_149, %c6, %c0_150] : memref<2x32x128xbf16, #tpu.memory_space<vmem>>, vector<1x1x128xbf16>
    %164 = vector.shape_cast %163 : vector<1x1x128xbf16> to vector<1x128xbf16>
    %c768 = arith.constant 768 : index
    %c0_151 = arith.constant 0 : index
    %165 = vector.load %arg6[%c768, %c0_151] : memref<4096x256xbf16, #tpu.memory_space<vmem>>, vector<128x256xbf16>
    %cst_152 = arith.constant dense<0.000000e+00> : vector<1x256xf32>
    %166 = tpu.matmul %164, %165, %cst_152 {dimension_numbers = #tpu.dot_dimension_numbers<[1], [0], [0], [1], [0, 0, 1, 1], [], []>} : vector<1x128xbf16>, vector<128x256xbf16>, vector<1x256xf32> -> vector<1x256xf32>
    %167 = arith.addf %162, %166 : vector<1x256xf32>
    %c0_153 = arith.constant 0 : index
    %c7 = arith.constant 7 : index
    %c0_154 = arith.constant 0 : index
    %168 = vector.load %arg12[%c0_153, %c7, %c0_154] : memref<2x32x128xbf16, #tpu.memory_space<vmem>>, vector<1x1x128xbf16>
    %169 = vector.shape_cast %168 : vector<1x1x128xbf16> to vector<1x128xbf16>
    %c896 = arith.constant 896 : index
    %c0_155 = arith.constant 0 : index
    %170 = vector.load %arg6[%c896, %c0_155] : memref<4096x256xbf16, #tpu.memory_space<vmem>>, vector<128x256xbf16>
    %cst_156 = arith.constant dense<0.000000e+00> : vector<1x256xf32>
    %171 = tpu.matmul %169, %170, %cst_156 {dimension_numbers = #tpu.dot_dimension_numbers<[1], [0], [0], [1], [0, 0, 1, 1], [], []>} : vector<1x128xbf16>, vector<128x256xbf16>, vector<1x256xf32> -> vector<1x256xf32>
    %172 = arith.addf %167, %171 : vector<1x256xf32>
    %c0_157 = arith.constant 0 : index
    %c8_158 = arith.constant 8 : index
    %c0_159 = arith.constant 0 : index
    %173 = vector.load %arg12[%c0_157, %c8_158, %c0_159] : memref<2x32x128xbf16, #tpu.memory_space<vmem>>, vector<1x1x128xbf16>
    %174 = vector.shape_cast %173 : vector<1x1x128xbf16> to vector<1x128xbf16>
    %c1024 = arith.constant 1024 : index
    %c0_160 = arith.constant 0 : index
    %175 = vector.load %arg6[%c1024, %c0_160] : memref<4096x256xbf16, #tpu.memory_space<vmem>>, vector<128x256xbf16>
    %cst_161 = arith.constant dense<0.000000e+00> : vector<1x256xf32>
    %176 = tpu.matmul %174, %175, %cst_161 {dimension_numbers = #tpu.dot_dimension_numbers<[1], [0], [0], [1], [0, 0, 1, 1], [], []>} : vector<1x128xbf16>, vector<128x256xbf16>, vector<1x256xf32> -> vector<1x256xf32>
    %177 = arith.addf %172, %176 : vector<1x256xf32>
    %c0_162 = arith.constant 0 : index
    %c9 = arith.constant 9 : index
    %c0_163 = arith.constant 0 : index
    %178 = vector.load %arg12[%c0_162, %c9, %c0_163] : memref<2x32x128xbf16, #tpu.memory_space<vmem>>, vector<1x1x128xbf16>
    %179 = vector.shape_cast %178 : vector<1x1x128xbf16> to vector<1x128xbf16>
    %c1152 = arith.constant 1152 : index
    %c0_164 = arith.constant 0 : index
    %180 = vector.load %arg6[%c1152, %c0_164] : memref<4096x256xbf16, #tpu.memory_space<vmem>>, vector<128x256xbf16>
    %cst_165 = arith.constant dense<0.000000e+00> : vector<1x256xf32>
    %181 = tpu.matmul %179, %180, %cst_165 {dimension_numbers = #tpu.dot_dimension_numbers<[1], [0], [0], [1], [0, 0, 1, 1], [], []>} : vector<1x128xbf16>, vector<128x256xbf16>, vector<1x256xf32> -> vector<1x256xf32>
    %182 = arith.addf %177, %181 : vector<1x256xf32>
    %c0_166 = arith.constant 0 : index
    %c10_167 = arith.constant 10 : index
    %c0_168 = arith.constant 0 : index
    %183 = vector.load %arg12[%c0_166, %c10_167, %c0_168] : memref<2x32x128xbf16, #tpu.memory_space<vmem>>, vector<1x1x128xbf16>
    %184 = vector.shape_cast %183 : vector<1x1x128xbf16> to vector<1x128xbf16>
    %c1280 = arith.constant 1280 : index
    %c0_169 = arith.constant 0 : index
    %185 = vector.load %arg6[%c1280, %c0_169] : memref<4096x256xbf16, #tpu.memory_space<vmem>>, vector<128x256xbf16>
    %cst_170 = arith.constant dense<0.000000e+00> : vector<1x256xf32>
    %186 = tpu.matmul %184, %185, %cst_170 {dimension_numbers = #tpu.dot_dimension_numbers<[1], [0], [0], [1], [0, 0, 1, 1], [], []>} : vector<1x128xbf16>, vector<128x256xbf16>, vector<1x256xf32> -> vector<1x256xf32>
    %187 = arith.addf %182, %186 : vector<1x256xf32>
    %c0_171 = arith.constant 0 : index
    %c11_172 = arith.constant 11 : index
    %c0_173 = arith.constant 0 : index
    %188 = vector.load %arg12[%c0_171, %c11_172, %c0_173] : memref<2x32x128xbf16, #tpu.memory_space<vmem>>, vector<1x1x128xbf16>
    %189 = vector.shape_cast %188 : vector<1x1x128xbf16> to vector<1x128xbf16>
    %c1408 = arith.constant 1408 : index
    %c0_174 = arith.constant 0 : index
    %190 = vector.load %arg6[%c1408, %c0_174] : memref<4096x256xbf16, #tpu.memory_space<vmem>>, vector<128x256xbf16>
    %cst_175 = arith.constant dense<0.000000e+00> : vector<1x256xf32>
    %191 = tpu.matmul %189, %190, %cst_175 {dimension_numbers = #tpu.dot_dimension_numbers<[1], [0], [0], [1], [0, 0, 1, 1], [], []>} : vector<1x128xbf16>, vector<128x256xbf16>, vector<1x256xf32> -> vector<1x256xf32>
    %192 = arith.addf %187, %191 : vector<1x256xf32>
    %c0_176 = arith.constant 0 : index
    %c12_177 = arith.constant 12 : index
    %c0_178 = arith.constant 0 : index
    %193 = vector.load %arg12[%c0_176, %c12_177, %c0_178] : memref<2x32x128xbf16, #tpu.memory_space<vmem>>, vector<1x1x128xbf16>
    %194 = vector.shape_cast %193 : vector<1x1x128xbf16> to vector<1x128xbf16>
    %c1536 = arith.constant 1536 : index
    %c0_179 = arith.constant 0 : index
    %195 = vector.load %arg6[%c1536, %c0_179] : memref<4096x256xbf16, #tpu.memory_space<vmem>>, vector<128x256xbf16>
    %cst_180 = arith.constant dense<0.000000e+00> : vector<1x256xf32>
    %196 = tpu.matmul %194, %195, %cst_180 {dimension_numbers = #tpu.dot_dimension_numbers<[1], [0], [0], [1], [0, 0, 1, 1], [], []>} : vector<1x128xbf16>, vector<128x256xbf16>, vector<1x256xf32> -> vector<1x256xf32>
    %197 = arith.addf %192, %196 : vector<1x256xf32>
    %c0_181 = arith.constant 0 : index
    %c13_182 = arith.constant 13 : index
    %c0_183 = arith.constant 0 : index
    %198 = vector.load %arg12[%c0_181, %c13_182, %c0_183] : memref<2x32x128xbf16, #tpu.memory_space<vmem>>, vector<1x1x128xbf16>
    %199 = vector.shape_cast %198 : vector<1x1x128xbf16> to vector<1x128xbf16>
    %c1664 = arith.constant 1664 : index
    %c0_184 = arith.constant 0 : index
    %200 = vector.load %arg6[%c1664, %c0_184] : memref<4096x256xbf16, #tpu.memory_space<vmem>>, vector<128x256xbf16>
    %cst_185 = arith.constant dense<0.000000e+00> : vector<1x256xf32>
    %201 = tpu.matmul %199, %200, %cst_185 {dimension_numbers = #tpu.dot_dimension_numbers<[1], [0], [0], [1], [0, 0, 1, 1], [], []>} : vector<1x128xbf16>, vector<128x256xbf16>, vector<1x256xf32> -> vector<1x256xf32>
    %202 = arith.addf %197, %201 : vector<1x256xf32>
    %c0_186 = arith.constant 0 : index
    %c14_187 = arith.constant 14 : index
    %c0_188 = arith.constant 0 : index
    %203 = vector.load %arg12[%c0_186, %c14_187, %c0_188] : memref<2x32x128xbf16, #tpu.memory_space<vmem>>, vector<1x1x128xbf16>
    %204 = vector.shape_cast %203 : vector<1x1x128xbf16> to vector<1x128xbf16>
    %c1792 = arith.constant 1792 : index
    %c0_189 = arith.constant 0 : index
    %205 = vector.load %arg6[%c1792, %c0_189] : memref<4096x256xbf16, #tpu.memory_space<vmem>>, vector<128x256xbf16>
    %cst_190 = arith.constant dense<0.000000e+00> : vector<1x256xf32>
    %206 = tpu.matmul %204, %205, %cst_190 {dimension_numbers = #tpu.dot_dimension_numbers<[1], [0], [0], [1], [0, 0, 1, 1], [], []>} : vector<1x128xbf16>, vector<128x256xbf16>, vector<1x256xf32> -> vector<1x256xf32>
    %207 = arith.addf %202, %206 : vector<1x256xf32>
    %c0_191 = arith.constant 0 : index
    %c15_192 = arith.constant 15 : index
    %c0_193 = arith.constant 0 : index
    %208 = vector.load %arg12[%c0_191, %c15_192, %c0_193] : memref<2x32x128xbf16, #tpu.memory_space<vmem>>, vector<1x1x128xbf16>
    %209 = vector.shape_cast %208 : vector<1x1x128xbf16> to vector<1x128xbf16>
    %c1920 = arith.constant 1920 : index
    %c0_194 = arith.constant 0 : index
    %210 = vector.load %arg6[%c1920, %c0_194] : memref<4096x256xbf16, #tpu.memory_space<vmem>>, vector<128x256xbf16>
    %cst_195 = arith.constant dense<0.000000e+00> : vector<1x256xf32>
    %211 = tpu.matmul %209, %210, %cst_195 {dimension_numbers = #tpu.dot_dimension_numbers<[1], [0], [0], [1], [0, 0, 1, 1], [], []>} : vector<1x128xbf16>, vector<128x256xbf16>, vector<1x256xf32> -> vector<1x256xf32>
    %212 = arith.addf %207, %211 : vector<1x256xf32>
    %c0_196 = arith.constant 0 : index
    %c16_197 = arith.constant 16 : index
    %c0_198 = arith.constant 0 : index
    %213 = vector.load %arg12[%c0_196, %c16_197, %c0_198] : memref<2x32x128xbf16, #tpu.memory_space<vmem>>, vector<1x1x128xbf16>
    %214 = vector.shape_cast %213 : vector<1x1x128xbf16> to vector<1x128xbf16>
    %c2048 = arith.constant 2048 : index
    %c0_199 = arith.constant 0 : index
    %215 = vector.load %arg6[%c2048, %c0_199] : memref<4096x256xbf16, #tpu.memory_space<vmem>>, vector<128x256xbf16>
    %cst_200 = arith.constant dense<0.000000e+00> : vector<1x256xf32>
    %216 = tpu.matmul %214, %215, %cst_200 {dimension_numbers = #tpu.dot_dimension_numbers<[1], [0], [0], [1], [0, 0, 1, 1], [], []>} : vector<1x128xbf16>, vector<128x256xbf16>, vector<1x256xf32> -> vector<1x256xf32>
    %217 = arith.addf %212, %216 : vector<1x256xf32>
    %c0_201 = arith.constant 0 : index
    %c17 = arith.constant 17 : index
    %c0_202 = arith.constant 0 : index
    %218 = vector.load %arg12[%c0_201, %c17, %c0_202] : memref<2x32x128xbf16, #tpu.memory_space<vmem>>, vector<1x1x128xbf16>
    %219 = vector.shape_cast %218 : vector<1x1x128xbf16> to vector<1x128xbf16>
    %c2176 = arith.constant 2176 : index
    %c0_203 = arith.constant 0 : index
    %220 = vector.load %arg6[%c2176, %c0_203] : memref<4096x256xbf16, #tpu.memory_space<vmem>>, vector<128x256xbf16>
    %cst_204 = arith.constant dense<0.000000e+00> : vector<1x256xf32>
    %221 = tpu.matmul %219, %220, %cst_204 {dimension_numbers = #tpu.dot_dimension_numbers<[1], [0], [0], [1], [0, 0, 1, 1], [], []>} : vector<1x128xbf16>, vector<128x256xbf16>, vector<1x256xf32> -> vector<1x256xf32>
    %222 = arith.addf %217, %221 : vector<1x256xf32>
    %c0_205 = arith.constant 0 : index
    %c18 = arith.constant 18 : index
    %c0_206 = arith.constant 0 : index
    %223 = vector.load %arg12[%c0_205, %c18, %c0_206] : memref<2x32x128xbf16, #tpu.memory_space<vmem>>, vector<1x1x128xbf16>
    %224 = vector.shape_cast %223 : vector<1x1x128xbf16> to vector<1x128xbf16>
    %c2304 = arith.constant 2304 : index
    %c0_207 = arith.constant 0 : index
    %225 = vector.load %arg6[%c2304, %c0_207] : memref<4096x256xbf16, #tpu.memory_space<vmem>>, vector<128x256xbf16>
    %cst_208 = arith.constant dense<0.000000e+00> : vector<1x256xf32>
    %226 = tpu.matmul %224, %225, %cst_208 {dimension_numbers = #tpu.dot_dimension_numbers<[1], [0], [0], [1], [0, 0, 1, 1], [], []>} : vector<1x128xbf16>, vector<128x256xbf16>, vector<1x256xf32> -> vector<1x256xf32>
    %227 = arith.addf %222, %226 : vector<1x256xf32>
    %c0_209 = arith.constant 0 : index
    %c19 = arith.constant 19 : index
    %c0_210 = arith.constant 0 : index
    %228 = vector.load %arg12[%c0_209, %c19, %c0_210] : memref<2x32x128xbf16, #tpu.memory_space<vmem>>, vector<1x1x128xbf16>
    %229 = vector.shape_cast %228 : vector<1x1x128xbf16> to vector<1x128xbf16>
    %c2432 = arith.constant 2432 : index
    %c0_211 = arith.constant 0 : index
    %230 = vector.load %arg6[%c2432, %c0_211] : memref<4096x256xbf16, #tpu.memory_space<vmem>>, vector<128x256xbf16>
    %cst_212 = arith.constant dense<0.000000e+00> : vector<1x256xf32>
    %231 = tpu.matmul %229, %230, %cst_212 {dimension_numbers = #tpu.dot_dimension_numbers<[1], [0], [0], [1], [0, 0, 1, 1], [], []>} : vector<1x128xbf16>, vector<128x256xbf16>, vector<1x256xf32> -> vector<1x256xf32>
    %232 = arith.addf %227, %231 : vector<1x256xf32>
    %c0_213 = arith.constant 0 : index
    %c20 = arith.constant 20 : index
    %c0_214 = arith.constant 0 : index
    %233 = vector.load %arg12[%c0_213, %c20, %c0_214] : memref<2x32x128xbf16, #tpu.memory_space<vmem>>, vector<1x1x128xbf16>
    %234 = vector.shape_cast %233 : vector<1x1x128xbf16> to vector<1x128xbf16>
    %c2560 = arith.constant 2560 : index
    %c0_215 = arith.constant 0 : index
    %235 = vector.load %arg6[%c2560, %c0_215] : memref<4096x256xbf16, #tpu.memory_space<vmem>>, vector<128x256xbf16>
    %cst_216 = arith.constant dense<0.000000e+00> : vector<1x256xf32>
    %236 = tpu.matmul %234, %235, %cst_216 {dimension_numbers = #tpu.dot_dimension_numbers<[1], [0], [0], [1], [0, 0, 1, 1], [], []>} : vector<1x128xbf16>, vector<128x256xbf16>, vector<1x256xf32> -> vector<1x256xf32>
    %237 = arith.addf %232, %236 : vector<1x256xf32>
    %c0_217 = arith.constant 0 : index
    %c21 = arith.constant 21 : index
    %c0_218 = arith.constant 0 : index
    %238 = vector.load %arg12[%c0_217, %c21, %c0_218] : memref<2x32x128xbf16, #tpu.memory_space<vmem>>, vector<1x1x128xbf16>
    %239 = vector.shape_cast %238 : vector<1x1x128xbf16> to vector<1x128xbf16>
    %c2688 = arith.constant 2688 : index
    %c0_219 = arith.constant 0 : index
    %240 = vector.load %arg6[%c2688, %c0_219] : memref<4096x256xbf16, #tpu.memory_space<vmem>>, vector<128x256xbf16>
    %cst_220 = arith.constant dense<0.000000e+00> : vector<1x256xf32>
    %241 = tpu.matmul %239, %240, %cst_220 {dimension_numbers = #tpu.dot_dimension_numbers<[1], [0], [0], [1], [0, 0, 1, 1], [], []>} : vector<1x128xbf16>, vector<128x256xbf16>, vector<1x256xf32> -> vector<1x256xf32>
    %242 = arith.addf %237, %241 : vector<1x256xf32>
    %c0_221 = arith.constant 0 : index
    %c22 = arith.constant 22 : index
    %c0_222 = arith.constant 0 : index
    %243 = vector.load %arg12[%c0_221, %c22, %c0_222] : memref<2x32x128xbf16, #tpu.memory_space<vmem>>, vector<1x1x128xbf16>
    %244 = vector.shape_cast %243 : vector<1x1x128xbf16> to vector<1x128xbf16>
    %c2816 = arith.constant 2816 : index
    %c0_223 = arith.constant 0 : index
    %245 = vector.load %arg6[%c2816, %c0_223] : memref<4096x256xbf16, #tpu.memory_space<vmem>>, vector<128x256xbf16>
    %cst_224 = arith.constant dense<0.000000e+00> : vector<1x256xf32>
    %246 = tpu.matmul %244, %245, %cst_224 {dimension_numbers = #tpu.dot_dimension_numbers<[1], [0], [0], [1], [0, 0, 1, 1], [], []>} : vector<1x128xbf16>, vector<128x256xbf16>, vector<1x256xf32> -> vector<1x256xf32>
    %247 = arith.addf %242, %246 : vector<1x256xf32>
    %c0_225 = arith.constant 0 : index
    %c23 = arith.constant 23 : index
    %c0_226 = arith.constant 0 : index
    %248 = vector.load %arg12[%c0_225, %c23, %c0_226] : memref<2x32x128xbf16, #tpu.memory_space<vmem>>, vector<1x1x128xbf16>
    %249 = vector.shape_cast %248 : vector<1x1x128xbf16> to vector<1x128xbf16>
    %c2944 = arith.constant 2944 : index
    %c0_227 = arith.constant 0 : index
    %250 = vector.load %arg6[%c2944, %c0_227] : memref<4096x256xbf16, #tpu.memory_space<vmem>>, vector<128x256xbf16>
    %cst_228 = arith.constant dense<0.000000e+00> : vector<1x256xf32>
    %251 = tpu.matmul %249, %250, %cst_228 {dimension_numbers = #tpu.dot_dimension_numbers<[1], [0], [0], [1], [0, 0, 1, 1], [], []>} : vector<1x128xbf16>, vector<128x256xbf16>, vector<1x256xf32> -> vector<1x256xf32>
    %252 = arith.addf %247, %251 : vector<1x256xf32>
    %c0_229 = arith.constant 0 : index
    %c24 = arith.constant 24 : index
    %c0_230 = arith.constant 0 : index
    %253 = vector.load %arg12[%c0_229, %c24, %c0_230] : memref<2x32x128xbf16, #tpu.memory_space<vmem>>, vector<1x1x128xbf16>
    %254 = vector.shape_cast %253 : vector<1x1x128xbf16> to vector<1x128xbf16>
    %c3072 = arith.constant 3072 : index
    %c0_231 = arith.constant 0 : index
    %255 = vector.load %arg6[%c3072, %c0_231] : memref<4096x256xbf16, #tpu.memory_space<vmem>>, vector<128x256xbf16>
    %cst_232 = arith.constant dense<0.000000e+00> : vector<1x256xf32>
    %256 = tpu.matmul %254, %255, %cst_232 {dimension_numbers = #tpu.dot_dimension_numbers<[1], [0], [0], [1], [0, 0, 1, 1], [], []>} : vector<1x128xbf16>, vector<128x256xbf16>, vector<1x256xf32> -> vector<1x256xf32>
    %257 = arith.addf %252, %256 : vector<1x256xf32>
    %c0_233 = arith.constant 0 : index
    %c25 = arith.constant 25 : index
    %c0_234 = arith.constant 0 : index
    %258 = vector.load %arg12[%c0_233, %c25, %c0_234] : memref<2x32x128xbf16, #tpu.memory_space<vmem>>, vector<1x1x128xbf16>
    %259 = vector.shape_cast %258 : vector<1x1x128xbf16> to vector<1x128xbf16>
    %c3200 = arith.constant 3200 : index
    %c0_235 = arith.constant 0 : index
    %260 = vector.load %arg6[%c3200, %c0_235] : memref<4096x256xbf16, #tpu.memory_space<vmem>>, vector<128x256xbf16>
    %cst_236 = arith.constant dense<0.000000e+00> : vector<1x256xf32>
    %261 = tpu.matmul %259, %260, %cst_236 {dimension_numbers = #tpu.dot_dimension_numbers<[1], [0], [0], [1], [0, 0, 1, 1], [], []>} : vector<1x128xbf16>, vector<128x256xbf16>, vector<1x256xf32> -> vector<1x256xf32>
    %262 = arith.addf %257, %261 : vector<1x256xf32>
    %c0_237 = arith.constant 0 : index
    %c26 = arith.constant 26 : index
    %c0_238 = arith.constant 0 : index
    %263 = vector.load %arg12[%c0_237, %c26, %c0_238] : memref<2x32x128xbf16, #tpu.memory_space<vmem>>, vector<1x1x128xbf16>
    %264 = vector.shape_cast %263 : vector<1x1x128xbf16> to vector<1x128xbf16>
    %c3328 = arith.constant 3328 : index
    %c0_239 = arith.constant 0 : index
    %265 = vector.load %arg6[%c3328, %c0_239] : memref<4096x256xbf16, #tpu.memory_space<vmem>>, vector<128x256xbf16>
    %cst_240 = arith.constant dense<0.000000e+00> : vector<1x256xf32>
    %266 = tpu.matmul %264, %265, %cst_240 {dimension_numbers = #tpu.dot_dimension_numbers<[1], [0], [0], [1], [0, 0, 1, 1], [], []>} : vector<1x128xbf16>, vector<128x256xbf16>, vector<1x256xf32> -> vector<1x256xf32>
    %267 = arith.addf %262, %266 : vector<1x256xf32>
    %c0_241 = arith.constant 0 : index
    %c27 = arith.constant 27 : index
    %c0_242 = arith.constant 0 : index
    %268 = vector.load %arg12[%c0_241, %c27, %c0_242] : memref<2x32x128xbf16, #tpu.memory_space<vmem>>, vector<1x1x128xbf16>
    %269 = vector.shape_cast %268 : vector<1x1x128xbf16> to vector<1x128xbf16>
    %c3456 = arith.constant 3456 : index
    %c0_243 = arith.constant 0 : index
    %270 = vector.load %arg6[%c3456, %c0_243] : memref<4096x256xbf16, #tpu.memory_space<vmem>>, vector<128x256xbf16>
    %cst_244 = arith.constant dense<0.000000e+00> : vector<1x256xf32>
    %271 = tpu.matmul %269, %270, %cst_244 {dimension_numbers = #tpu.dot_dimension_numbers<[1], [0], [0], [1], [0, 0, 1, 1], [], []>} : vector<1x128xbf16>, vector<128x256xbf16>, vector<1x256xf32> -> vector<1x256xf32>
    %272 = arith.addf %267, %271 : vector<1x256xf32>
    %c0_245 = arith.constant 0 : index
    %c28 = arith.constant 28 : index
    %c0_246 = arith.constant 0 : index
    %273 = vector.load %arg12[%c0_245, %c28, %c0_246] : memref<2x32x128xbf16, #tpu.memory_space<vmem>>, vector<1x1x128xbf16>
    %274 = vector.shape_cast %273 : vector<1x1x128xbf16> to vector<1x128xbf16>
    %c3584 = arith.constant 3584 : index
    %c0_247 = arith.constant 0 : index
    %275 = vector.load %arg6[%c3584, %c0_247] : memref<4096x256xbf16, #tpu.memory_space<vmem>>, vector<128x256xbf16>
    %cst_248 = arith.constant dense<0.000000e+00> : vector<1x256xf32>
    %276 = tpu.matmul %274, %275, %cst_248 {dimension_numbers = #tpu.dot_dimension_numbers<[1], [0], [0], [1], [0, 0, 1, 1], [], []>} : vector<1x128xbf16>, vector<128x256xbf16>, vector<1x256xf32> -> vector<1x256xf32>
    %277 = arith.addf %272, %276 : vector<1x256xf32>
    %c0_249 = arith.constant 0 : index
    %c29 = arith.constant 29 : index
    %c0_250 = arith.constant 0 : index
    %278 = vector.load %arg12[%c0_249, %c29, %c0_250] : memref<2x32x128xbf16, #tpu.memory_space<vmem>>, vector<1x1x128xbf16>
    %279 = vector.shape_cast %278 : vector<1x1x128xbf16> to vector<1x128xbf16>
    %c3712 = arith.constant 3712 : index
    %c0_251 = arith.constant 0 : index
    %280 = vector.load %arg6[%c3712, %c0_251] : memref<4096x256xbf16, #tpu.memory_space<vmem>>, vector<128x256xbf16>
    %cst_252 = arith.constant dense<0.000000e+00> : vector<1x256xf32>
    %281 = tpu.matmul %279, %280, %cst_252 {dimension_numbers = #tpu.dot_dimension_numbers<[1], [0], [0], [1], [0, 0, 1, 1], [], []>} : vector<1x128xbf16>, vector<128x256xbf16>, vector<1x256xf32> -> vector<1x256xf32>
    %282 = arith.addf %277, %281 : vector<1x256xf32>
    %c0_253 = arith.constant 0 : index
    %c30 = arith.constant 30 : index
    %c0_254 = arith.constant 0 : index
    %283 = vector.load %arg12[%c0_253, %c30, %c0_254] : memref<2x32x128xbf16, #tpu.memory_space<vmem>>, vector<1x1x128xbf16>
    %284 = vector.shape_cast %283 : vector<1x1x128xbf16> to vector<1x128xbf16>
    %c3840 = arith.constant 3840 : index
    %c0_255 = arith.constant 0 : index
    %285 = vector.load %arg6[%c3840, %c0_255] : memref<4096x256xbf16, #tpu.memory_space<vmem>>, vector<128x256xbf16>
    %cst_256 = arith.constant dense<0.000000e+00> : vector<1x256xf32>
    %286 = tpu.matmul %284, %285, %cst_256 {dimension_numbers = #tpu.dot_dimension_numbers<[1], [0], [0], [1], [0, 0, 1, 1], [], []>} : vector<1x128xbf16>, vector<128x256xbf16>, vector<1x256xf32> -> vector<1x256xf32>
    %287 = arith.addf %282, %286 : vector<1x256xf32>
    %c0_257 = arith.constant 0 : index
    %c31 = arith.constant 31 : index
    %c0_258 = arith.constant 0 : index
    %288 = vector.load %arg12[%c0_257, %c31, %c0_258] : memref<2x32x128xbf16, #tpu.memory_space<vmem>>, vector<1x1x128xbf16>
    %289 = vector.shape_cast %288 : vector<1x1x128xbf16> to vector<1x128xbf16>
    %c3968 = arith.constant 3968 : index
    %c0_259 = arith.constant 0 : index
    %290 = vector.load %arg6[%c3968, %c0_259] : memref<4096x256xbf16, #tpu.memory_space<vmem>>, vector<128x256xbf16>
    %cst_260 = arith.constant dense<0.000000e+00> : vector<1x256xf32>
    %291 = tpu.matmul %289, %290, %cst_260 {dimension_numbers = #tpu.dot_dimension_numbers<[1], [0], [0], [1], [0, 0, 1, 1], [], []>} : vector<1x128xbf16>, vector<128x256xbf16>, vector<1x256xf32> -> vector<1x256xf32>
    %292 = arith.addf %287, %291 : vector<1x256xf32>
    %c0_261 = arith.constant 0 : index
    %c0_262 = arith.constant 0 : index
    %293 = vector.load %arg7[%c0_261, %c0_262] : memref<1x256xf32, #tpu.memory_space<vmem>>, vector<1x256xf32>
    %294 = arith.addf %292, %293 : vector<1x256xf32>
    %cst_263 = arith.constant 0.000000e+00 : f32
    %295 = vector.broadcast %cst_263 : f32 to vector<1x256xf32>
    %296 = arith.maximumf %294, %295 : vector<1x256xf32>
    %297 = arith.truncf %296 : vector<1x256xf32> to vector<1x256xbf16>
    %c0_264 = arith.constant 0 : index
    %c0_265 = arith.constant 0 : index
    %298 = vector.load %arg13[%c0_264, %c0_265] : memref<2x256xbf16, #tpu.memory_space<vmem>>, vector<1x256xbf16>
    tpu.vector_store %arg13[%c0_264, %c0_265], %297 {strides = array<i32>} : memref<2x256xbf16, #tpu.memory_space<vmem>>, vector<1x256xbf16>,
    %cst_266 = arith.constant 0.000000e+00 : f32
    %299 = vector.broadcast %cst_266 : f32 to vector<16x110xf32>
    %c0_267 = arith.constant 0 : index
    %c0_268 = arith.constant 0 : index
    %c0_269 = arith.constant 0 : index
    %300 = vector.load %arg2[%c0_267, %c0_268, %c0_269] : memref<16x16x256xbf16, #tpu.memory_space<vmem>>, vector<1x16x256xbf16>
    %301 = vector.shape_cast %300 : vector<1x16x256xbf16> to vector<16x256xbf16>
    %c1_270 = arith.constant 1 : index
    %c0_271 = arith.constant 0 : index
    %c0_272 = arith.constant 0 : index
    %302 = vector.load %arg1[%c1_270, %c0_271, %c0_272] : memref<2x256x128xbf16, #tpu.memory_space<vmem>>, vector<1x256x110xbf16>
    %303 = vector.shape_cast %302 : vector<1x256x110xbf16> to vector<256x110xbf16>
    %cst_273 = arith.constant dense<0.000000e+00> : vector<16x110xf32>
    %304 = tpu.matmul %301, %303, %cst_273 {dimension_numbers = #tpu.dot_dimension_numbers<[1], [0], [0], [1], [0, 0, 1, 1], [], []>} : vector<16x256xbf16>, vector<256x110xbf16>, vector<16x110xf32> -> vector<16x110xf32>
    %305 = arith.addf %299, %304 : vector<16x110xf32>
    %c0_274 = arith.constant 0 : index
    %c0_275 = arith.constant 0 : index
    %306 = vector.load %arg3[%c0_274, %c0_275] : memref<16x1xf32, #tpu.memory_space<vmem>>, vector<16x1xf32>
    %307 = vector.broadcast %306 : vector<16x1xf32> to vector<16x110xf32>
    %308 = arith.addf %305, %307 : vector<16x110xf32>
    %cst_276 = arith.constant 0.000000e+00 : f32
    %309 = vector.broadcast %cst_276 : f32 to vector<16x110xf32>
    %310 = arith.maximumf %308, %309 : vector<16x110xf32>
    %311 = arith.truncf %310 : vector<16x110xf32> to vector<16x110xbf16>
    %c1_277 = arith.constant 1 : index
    %c0_278 = arith.constant 0 : index
    %c0_279 = arith.constant 0 : index
    %312 = vector.load %arg11[%c1_277, %c0_278, %c0_279] : memref<2x64x128xbf16, #tpu.memory_space<vmem>>, vector<1x16x110xbf16>
    %313 = vector.shape_cast %312 : vector<1x16x110xbf16> to vector<16x110xbf16>
    %314 = vector.shape_cast %311 : vector<16x110xbf16> to vector<1x16x110xbf16>
    tpu.vector_store %arg11[%c1_277, %c0_278, %c0_279], %314 {strides = array<i32>} : memref<2x64x128xbf16, #tpu.memory_space<vmem>>, vector<1x16x110xbf16>,
    %cst_280 = arith.constant 0.000000e+00 : f32
    %315 = vector.broadcast %cst_280 : f32 to vector<16x110xf32>
    %c4_281 = arith.constant 4 : index
    %c0_282 = arith.constant 0 : index
    %c0_283 = arith.constant 0 : index
    %316 = vector.load %arg2[%c4_281, %c0_282, %c0_283] : memref<16x16x256xbf16, #tpu.memory_space<vmem>>, vector<1x16x256xbf16>
    %317 = vector.shape_cast %316 : vector<1x16x256xbf16> to vector<16x256xbf16>
    %c1_284 = arith.constant 1 : index
    %c0_285 = arith.constant 0 : index
    %c0_286 = arith.constant 0 : index
    %318 = vector.load %arg1[%c1_284, %c0_285, %c0_286] : memref<2x256x128xbf16, #tpu.memory_space<vmem>>, vector<1x256x110xbf16>
    %319 = vector.shape_cast %318 : vector<1x256x110xbf16> to vector<256x110xbf16>
    %cst_287 = arith.constant dense<0.000000e+00> : vector<16x110xf32>
    %320 = tpu.matmul %317, %319, %cst_287 {dimension_numbers = #tpu.dot_dimension_numbers<[1], [0], [0], [1], [0, 0, 1, 1], [], []>} : vector<16x256xbf16>, vector<256x110xbf16>, vector<16x110xf32> -> vector<16x110xf32>
    %321 = arith.addf %315, %320 : vector<16x110xf32>
    %c5_288 = arith.constant 5 : index
    %c0_289 = arith.constant 0 : index
    %c0_290 = arith.constant 0 : index
    %322 = vector.load %arg2[%c5_288, %c0_289, %c0_290] : memref<16x16x256xbf16, #tpu.memory_space<vmem>>, vector<1x16x256xbf16>
    %323 = vector.shape_cast %322 : vector<1x16x256xbf16> to vector<16x256xbf16>
    %c1_291 = arith.constant 1 : index
    %c0_292 = arith.constant 0 : index
    %c1_293 = arith.constant 1 : index
    %324 = vector.load %arg1[%c1_291, %c0_292, %c1_293] : memref<2x256x128xbf16, #tpu.memory_space<vmem>>, vector<1x256x110xbf16>
    %325 = vector.shape_cast %324 : vector<1x256x110xbf16> to vector<256x110xbf16>
    %cst_294 = arith.constant dense<0.000000e+00> : vector<16x110xf32>
    %326 = tpu.matmul %323, %325, %cst_294 {dimension_numbers = #tpu.dot_dimension_numbers<[1], [0], [0], [1], [0, 0, 1, 1], [], []>} : vector<16x256xbf16>, vector<256x110xbf16>, vector<16x110xf32> -> vector<16x110xf32>
    %327 = arith.addf %321, %326 : vector<16x110xf32>
    %c0_295 = arith.constant 0 : index
    %c0_296 = arith.constant 0 : index
    %328 = vector.load %arg3[%c0_295, %c0_296] : memref<16x1xf32, #tpu.memory_space<vmem>>, vector<16x1xf32>
    %329 = vector.broadcast %328 : vector<16x1xf32> to vector<16x110xf32>
    %330 = arith.addf %327, %329 : vector<16x110xf32>
    %cst_297 = arith.constant 0.000000e+00 : f32
    %331 = vector.broadcast %cst_297 : f32 to vector<16x110xf32>
    %332 = arith.maximumf %330, %331 : vector<16x110xf32>
    %333 = arith.truncf %332 : vector<16x110xf32> to vector<16x110xbf16>
    %c1_298 = arith.constant 1 : index
    %c16_299 = arith.constant 16 : index
    %c0_300 = arith.constant 0 : index
    %334 = vector.load %arg11[%c1_298, %c16_299, %c0_300] : memref<2x64x128xbf16, #tpu.memory_space<vmem>>, vector<1x16x110xbf16>
    %335 = vector.shape_cast %334 : vector<1x16x110xbf16> to vector<16x110xbf16>
    %336 = vector.shape_cast %333 : vector<16x110xbf16> to vector<1x16x110xbf16>
    tpu.vector_store %arg11[%c1_298, %c16_299, %c0_300], %336 {strides = array<i32>} : memref<2x64x128xbf16, #tpu.memory_space<vmem>>, vector<1x16x110xbf16>,
    %cst_301 = arith.constant 0.000000e+00 : f32
    %337 = vector.broadcast %cst_301 : f32 to vector<16x110xf32>
    %c8_302 = arith.constant 8 : index
    %c0_303 = arith.constant 0 : index
    %c0_304 = arith.constant 0 : index
    %338 = vector.load %arg2[%c8_302, %c0_303, %c0_304] : memref<16x16x256xbf16, #tpu.memory_space<vmem>>, vector<1x16x256xbf16>
    %339 = vector.shape_cast %338 : vector<1x16x256xbf16> to vector<16x256xbf16>
    %c1_305 = arith.constant 1 : index
    %c0_306 = arith.constant 0 : index
    %c0_307 = arith.constant 0 : index
    %340 = vector.load %arg1[%c1_305, %c0_306, %c0_307] : memref<2x256x128xbf16, #tpu.memory_space<vmem>>, vector<1x256x110xbf16>
    %341 = vector.shape_cast %340 : vector<1x256x110xbf16> to vector<256x110xbf16>
    %cst_308 = arith.constant dense<0.000000e+00> : vector<16x110xf32>
    %342 = tpu.matmul %339, %341, %cst_308 {dimension_numbers = #tpu.dot_dimension_numbers<[1], [0], [0], [1], [0, 0, 1, 1], [], []>} : vector<16x256xbf16>, vector<256x110xbf16>, vector<16x110xf32> -> vector<16x110xf32>
    %343 = arith.addf %337, %342 : vector<16x110xf32>
    %c10_309 = arith.constant 10 : index
    %c0_310 = arith.constant 0 : index
    %c0_311 = arith.constant 0 : index
    %344 = vector.load %arg2[%c10_309, %c0_310, %c0_311] : memref<16x16x256xbf16, #tpu.memory_space<vmem>>, vector<1x16x256xbf16>
    %345 = vector.shape_cast %344 : vector<1x16x256xbf16> to vector<16x256xbf16>
    %c1_312 = arith.constant 1 : index
    %c0_313 = arith.constant 0 : index
    %c11_314 = arith.constant 11 : index
    %346 = vector.load %arg1[%c1_312, %c0_313, %c11_314] : memref<2x256x128xbf16, #tpu.memory_space<vmem>>, vector<1x256x110xbf16>
    %347 = vector.shape_cast %346 : vector<1x256x110xbf16> to vector<256x110xbf16>
    %cst_315 = arith.constant dense<0.000000e+00> : vector<16x110xf32>
    %348 = tpu.matmul %345, %347, %cst_315 {dimension_numbers = #tpu.dot_dimension_numbers<[1], [0], [0], [1], [0, 0, 1, 1], [], []>} : vector<16x256xbf16>, vector<256x110xbf16>, vector<16x110xf32> -> vector<16x110xf32>
    %349 = arith.addf %343, %348 : vector<16x110xf32>
    %c0_316 = arith.constant 0 : index
    %c0_317 = arith.constant 0 : index
    %350 = vector.load %arg3[%c0_316, %c0_317] : memref<16x1xf32, #tpu.memory_space<vmem>>, vector<16x1xf32>
    %351 = vector.broadcast %350 : vector<16x1xf32> to vector<16x110xf32>
    %352 = arith.addf %349, %351 : vector<16x110xf32>
    %cst_318 = arith.constant 0.000000e+00 : f32
    %353 = vector.broadcast %cst_318 : f32 to vector<16x110xf32>
    %354 = arith.maximumf %352, %353 : vector<16x110xf32>
    %355 = arith.truncf %354 : vector<16x110xf32> to vector<16x110xbf16>
    %c1_319 = arith.constant 1 : index
    %c32_320 = arith.constant 32 : index
    %c0_321 = arith.constant 0 : index
    %356 = vector.load %arg11[%c1_319, %c32_320, %c0_321] : memref<2x64x128xbf16, #tpu.memory_space<vmem>>, vector<1x16x110xbf16>
    %357 = vector.shape_cast %356 : vector<1x16x110xbf16> to vector<16x110xbf16>
    %358 = vector.shape_cast %355 : vector<16x110xbf16> to vector<1x16x110xbf16>
    tpu.vector_store %arg11[%c1_319, %c32_320, %c0_321], %358 {strides = array<i32>} : memref<2x64x128xbf16, #tpu.memory_space<vmem>>, vector<1x16x110xbf16>,
    %cst_322 = arith.constant 0.000000e+00 : f32
    %359 = vector.broadcast %cst_322 : f32 to vector<16x110xf32>
    %c12_323 = arith.constant 12 : index
    %c0_324 = arith.constant 0 : index
    %c0_325 = arith.constant 0 : index
    %360 = vector.load %arg2[%c12_323, %c0_324, %c0_325] : memref<16x16x256xbf16, #tpu.memory_space<vmem>>, vector<1x16x256xbf16>
    %361 = vector.shape_cast %360 : vector<1x16x256xbf16> to vector<16x256xbf16>
    %c1_326 = arith.constant 1 : index
    %c0_327 = arith.constant 0 : index
    %c0_328 = arith.constant 0 : index
    %362 = vector.load %arg1[%c1_326, %c0_327, %c0_328] : memref<2x256x128xbf16, #tpu.memory_space<vmem>>, vector<1x256x110xbf16>
    %363 = vector.shape_cast %362 : vector<1x256x110xbf16> to vector<256x110xbf16>
    %cst_329 = arith.constant dense<0.000000e+00> : vector<16x110xf32>
    %364 = tpu.matmul %361, %363, %cst_329 {dimension_numbers = #tpu.dot_dimension_numbers<[1], [0], [0], [1], [0, 0, 1, 1], [], []>} : vector<16x256xbf16>, vector<256x110xbf16>, vector<16x110xf32> -> vector<16x110xf32>
    %365 = arith.addf %359, %364 : vector<16x110xf32>
    %c13_330 = arith.constant 13 : index
    %c0_331 = arith.constant 0 : index
    %c0_332 = arith.constant 0 : index
    %366 = vector.load %arg2[%c13_330, %c0_331, %c0_332] : memref<16x16x256xbf16, #tpu.memory_space<vmem>>, vector<1x16x256xbf16>
    %367 = vector.shape_cast %366 : vector<1x16x256xbf16> to vector<16x256xbf16>
    %c1_333 = arith.constant 1 : index
    %c0_334 = arith.constant 0 : index
    %c1_335 = arith.constant 1 : index
    %368 = vector.load %arg1[%c1_333, %c0_334, %c1_335] : memref<2x256x128xbf16, #tpu.memory_space<vmem>>, vector<1x256x110xbf16>
    %369 = vector.shape_cast %368 : vector<1x256x110xbf16> to vector<256x110xbf16>
    %cst_336 = arith.constant dense<0.000000e+00> : vector<16x110xf32>
    %370 = tpu.matmul %367, %369, %cst_336 {dimension_numbers = #tpu.dot_dimension_numbers<[1], [0], [0], [1], [0, 0, 1, 1], [], []>} : vector<16x256xbf16>, vector<256x110xbf16>, vector<16x110xf32> -> vector<16x110xf32>
    %371 = arith.addf %365, %370 : vector<16x110xf32>
    %c14_337 = arith.constant 14 : index
    %c0_338 = arith.constant 0 : index
    %c0_339 = arith.constant 0 : index
    %372 = vector.load %arg2[%c14_337, %c0_338, %c0_339] : memref<16x16x256xbf16, #tpu.memory_space<vmem>>, vector<1x16x256xbf16>
    %373 = vector.shape_cast %372 : vector<1x16x256xbf16> to vector<16x256xbf16>
    %c1_340 = arith.constant 1 : index
    %c0_341 = arith.constant 0 : index
    %c11_342 = arith.constant 11 : index
    %374 = vector.load %arg1[%c1_340, %c0_341, %c11_342] : memref<2x256x128xbf16, #tpu.memory_space<vmem>>, vector<1x256x110xbf16>
    %375 = vector.shape_cast %374 : vector<1x256x110xbf16> to vector<256x110xbf16>
    %cst_343 = arith.constant dense<0.000000e+00> : vector<16x110xf32>
    %376 = tpu.matmul %373, %375, %cst_343 {dimension_numbers = #tpu.dot_dimension_numbers<[1], [0], [0], [1], [0, 0, 1, 1], [], []>} : vector<16x256xbf16>, vector<256x110xbf16>, vector<16x110xf32> -> vector<16x110xf32>
    %377 = arith.addf %371, %376 : vector<16x110xf32>
    %c15_344 = arith.constant 15 : index
    %c0_345 = arith.constant 0 : index
    %c0_346 = arith.constant 0 : index
    %378 = vector.load %arg2[%c15_344, %c0_345, %c0_346] : memref<16x16x256xbf16, #tpu.memory_space<vmem>>, vector<1x16x256xbf16>
    %379 = vector.shape_cast %378 : vector<1x16x256xbf16> to vector<16x256xbf16>
    %c1_347 = arith.constant 1 : index
    %c0_348 = arith.constant 0 : index
    %c12_349 = arith.constant 12 : index
    %380 = vector.load %arg1[%c1_347, %c0_348, %c12_349] : memref<2x256x128xbf16, #tpu.memory_space<vmem>>, vector<1x256x110xbf16>
    %381 = vector.shape_cast %380 : vector<1x256x110xbf16> to vector<256x110xbf16>
    %cst_350 = arith.constant dense<0.000000e+00> : vector<16x110xf32>
    %382 = tpu.matmul %379, %381, %cst_350 {dimension_numbers = #tpu.dot_dimension_numbers<[1], [0], [0], [1], [0, 0, 1, 1], [], []>} : vector<16x256xbf16>, vector<256x110xbf16>, vector<16x110xf32> -> vector<16x110xf32>
    %383 = arith.addf %377, %382 : vector<16x110xf32>
    %c0_351 = arith.constant 0 : index
    %c0_352 = arith.constant 0 : index
    %384 = vector.load %arg3[%c0_351, %c0_352] : memref<16x1xf32, #tpu.memory_space<vmem>>, vector<16x1xf32>
    %385 = vector.broadcast %384 : vector<16x1xf32> to vector<16x110xf32>
    %386 = arith.addf %383, %385 : vector<16x110xf32>
    %cst_353 = arith.constant 0.000000e+00 : f32
    %387 = vector.broadcast %cst_353 : f32 to vector<16x110xf32>
    %388 = arith.maximumf %386, %387 : vector<16x110xf32>
    %389 = arith.truncf %388 : vector<16x110xf32> to vector<16x110xbf16>
    %c1_354 = arith.constant 1 : index
    %c48_355 = arith.constant 48 : index
    %c0_356 = arith.constant 0 : index
    %390 = vector.load %arg11[%c1_354, %c48_355, %c0_356] : memref<2x64x128xbf16, #tpu.memory_space<vmem>>, vector<1x16x110xbf16>
    %391 = vector.shape_cast %390 : vector<1x16x110xbf16> to vector<16x110xbf16>
    %392 = vector.shape_cast %389 : vector<16x110xbf16> to vector<1x16x110xbf16>
    tpu.vector_store %arg11[%c1_354, %c48_355, %c0_356], %392 {strides = array<i32>} : memref<2x64x128xbf16, #tpu.memory_space<vmem>>, vector<1x16x110xbf16>,
    %cst_357 = arith.constant 0.000000e+00 : f32
    %393 = vector.broadcast %cst_357 : f32 to vector<32x99xf32>
    %c0_358 = arith.constant 0 : index
    %c0_359 = arith.constant 0 : index
    %c0_360 = arith.constant 0 : index
    %394 = vector.load %arg4[%c0_358, %c0_359, %c0_360] : memref<4x32x64xbf16, #tpu.memory_space<vmem>>, vector<1x32x64xbf16>
    %395 = vector.shape_cast %394 : vector<1x32x64xbf16> to vector<32x64xbf16>
    %c1_361 = arith.constant 1 : index
    %c0_362 = arith.constant 0 : index
    %c0_363 = arith.constant 0 : index
    %396 = vector.load %arg11[%c1_361, %c0_362, %c0_363] : memref<2x64x128xbf16, #tpu.memory_space<vmem>>, vector<1x64x99xbf16>
    %397 = vector.shape_cast %396 : vector<1x64x99xbf16> to vector<64x99xbf16>
    %cst_364 = arith.constant dense<0.000000e+00> : vector<32x99xf32>
    %398 = tpu.matmul %395, %397, %cst_364 {dimension_numbers = #tpu.dot_dimension_numbers<[1], [0], [0], [1], [0, 0, 1, 1], [], []>} : vector<32x64xbf16>, vector<64x99xbf16>, vector<32x99xf32> -> vector<32x99xf32>
    %399 = arith.addf %393, %398 : vector<32x99xf32>
    %c1_365 = arith.constant 1 : index
    %c0_366 = arith.constant 0 : index
    %c0_367 = arith.constant 0 : index
    %400 = vector.load %arg4[%c1_365, %c0_366, %c0_367] : memref<4x32x64xbf16, #tpu.memory_space<vmem>>, vector<1x32x64xbf16>
    %401 = vector.shape_cast %400 : vector<1x32x64xbf16> to vector<32x64xbf16>
    %c1_368 = arith.constant 1 : index
    %c0_369 = arith.constant 0 : index
    %c1_370 = arith.constant 1 : index
    %402 = vector.load %arg11[%c1_368, %c0_369, %c1_370] : memref<2x64x128xbf16, #tpu.memory_space<vmem>>, vector<1x64x99xbf16>
    %403 = vector.shape_cast %402 : vector<1x64x99xbf16> to vector<64x99xbf16>
    %cst_371 = arith.constant dense<0.000000e+00> : vector<32x99xf32>
    %404 = tpu.matmul %401, %403, %cst_371 {dimension_numbers = #tpu.dot_dimension_numbers<[1], [0], [0], [1], [0, 0, 1, 1], [], []>} : vector<32x64xbf16>, vector<64x99xbf16>, vector<32x99xf32> -> vector<32x99xf32>
    %405 = arith.addf %399, %404 : vector<32x99xf32>
    %c2_372 = arith.constant 2 : index
    %c0_373 = arith.constant 0 : index
    %c0_374 = arith.constant 0 : index
    %406 = vector.load %arg4[%c2_372, %c0_373, %c0_374] : memref<4x32x64xbf16, #tpu.memory_space<vmem>>, vector<1x32x64xbf16>
    %407 = vector.shape_cast %406 : vector<1x32x64xbf16> to vector<32x64xbf16>
    %c1_375 = arith.constant 1 : index
    %c0_376 = arith.constant 0 : index
    %c11_377 = arith.constant 11 : index
    %408 = vector.load %arg11[%c1_375, %c0_376, %c11_377] : memref<2x64x128xbf16, #tpu.memory_space<vmem>>, vector<1x64x99xbf16>
    %409 = vector.shape_cast %408 : vector<1x64x99xbf16> to vector<64x99xbf16>
    %cst_378 = arith.constant dense<0.000000e+00> : vector<32x99xf32>
    %410 = tpu.matmul %407, %409, %cst_378 {dimension_numbers = #tpu.dot_dimension_numbers<[1], [0], [0], [1], [0, 0, 1, 1], [], []>} : vector<32x64xbf16>, vector<64x99xbf16>, vector<32x99xf32> -> vector<32x99xf32>
    %411 = arith.addf %405, %410 : vector<32x99xf32>
    %c3_379 = arith.constant 3 : index
    %c0_380 = arith.constant 0 : index
    %c0_381 = arith.constant 0 : index
    %412 = vector.load %arg4[%c3_379, %c0_380, %c0_381] : memref<4x32x64xbf16, #tpu.memory_space<vmem>>, vector<1x32x64xbf16>
    %413 = vector.shape_cast %412 : vector<1x32x64xbf16> to vector<32x64xbf16>
    %c1_382 = arith.constant 1 : index
    %c0_383 = arith.constant 0 : index
    %c12_384 = arith.constant 12 : index
    %414 = vector.load %arg11[%c1_382, %c0_383, %c12_384] : memref<2x64x128xbf16, #tpu.memory_space<vmem>>, vector<1x64x99xbf16>
    %415 = vector.shape_cast %414 : vector<1x64x99xbf16> to vector<64x99xbf16>
    %cst_385 = arith.constant dense<0.000000e+00> : vector<32x99xf32>
    %416 = tpu.matmul %413, %415, %cst_385 {dimension_numbers = #tpu.dot_dimension_numbers<[1], [0], [0], [1], [0, 0, 1, 1], [], []>} : vector<32x64xbf16>, vector<64x99xbf16>, vector<32x99xf32> -> vector<32x99xf32>
    %417 = arith.addf %411, %416 : vector<32x99xf32>
    %c0_386 = arith.constant 0 : index
    %c0_387 = arith.constant 0 : index
    %418 = vector.load %arg5[%c0_386, %c0_387] : memref<32x1xf32, #tpu.memory_space<vmem>>, vector<32x1xf32>
    %419 = vector.broadcast %418 : vector<32x1xf32> to vector<32x99xf32>
    %420 = arith.addf %417, %419 : vector<32x99xf32>
    %cst_388 = arith.constant 0.000000e+00 : f32
    %421 = vector.broadcast %cst_388 : f32 to vector<32x99xf32>
    %422 = arith.maximumf %420, %421 : vector<32x99xf32>
    %423 = arith.truncf %422 : vector<32x99xf32> to vector<32x99xbf16>
    %c1_389 = arith.constant 1 : index
    %c0_390 = arith.constant 0 : index
    %c0_391 = arith.constant 0 : index
    %424 = vector.load %arg12[%c1_389, %c0_390, %c0_391] : memref<2x32x128xbf16, #tpu.memory_space<vmem>>, vector<1x32x99xbf16>
    %425 = vector.shape_cast %424 : vector<1x32x99xbf16> to vector<32x99xbf16>
    %426 = vector.shape_cast %423 : vector<32x99xbf16> to vector<1x32x99xbf16>
    tpu.vector_store %arg12[%c1_389, %c0_390, %c0_391], %426 {strides = array<i32>} : memref<2x32x128xbf16, #tpu.memory_space<vmem>>, vector<1x32x99xbf16>,
    %cst_392 = arith.constant 0.000000e+00 : f32
    %427 = vector.broadcast %cst_392 : f32 to vector<1x256xf32>
    %c1_393 = arith.constant 1 : index
    %c0_394 = arith.constant 0 : index
    %c0_395 = arith.constant 0 : index
    %428 = vector.load %arg12[%c1_393, %c0_394, %c0_395] : memref<2x32x128xbf16, #tpu.memory_space<vmem>>, vector<1x1x128xbf16>
    %429 = vector.shape_cast %428 : vector<1x1x128xbf16> to vector<1x128xbf16>
    %c0_396 = arith.constant 0 : index
    %c0_397 = arith.constant 0 : index
    %430 = vector.load %arg6[%c0_396, %c0_397] : memref<4096x256xbf16, #tpu.memory_space<vmem>>, vector<128x256xbf16>
    %cst_398 = arith.constant dense<0.000000e+00> : vector<1x256xf32>
    %431 = tpu.matmul %429, %430, %cst_398 {dimension_numbers = #tpu.dot_dimension_numbers<[1], [0], [0], [1], [0, 0, 1, 1], [], []>} : vector<1x128xbf16>, vector<128x256xbf16>, vector<1x256xf32> -> vector<1x256xf32>
    %432 = arith.addf %427, %431 : vector<1x256xf32>
    %c1_399 = arith.constant 1 : index
    %c1_400 = arith.constant 1 : index
    %c0_401 = arith.constant 0 : index
    %433 = vector.load %arg12[%c1_399, %c1_400, %c0_401] : memref<2x32x128xbf16, #tpu.memory_space<vmem>>, vector<1x1x128xbf16>
    %434 = vector.shape_cast %433 : vector<1x1x128xbf16> to vector<1x128xbf16>
    %c128_402 = arith.constant 128 : index
    %c0_403 = arith.constant 0 : index
    %435 = vector.load %arg6[%c128_402, %c0_403] : memref<4096x256xbf16, #tpu.memory_space<vmem>>, vector<128x256xbf16>
    %cst_404 = arith.constant dense<0.000000e+00> : vector<1x256xf32>
    %436 = tpu.matmul %434, %435, %cst_404 {dimension_numbers = #tpu.dot_dimension_numbers<[1], [0], [0], [1], [0, 0, 1, 1], [], []>} : vector<1x128xbf16>, vector<128x256xbf16>, vector<1x256xf32> -> vector<1x256xf32>
    %437 = arith.addf %432, %436 : vector<1x256xf32>
    %c1_405 = arith.constant 1 : index
    %c2_406 = arith.constant 2 : index
    %c0_407 = arith.constant 0 : index
    %438 = vector.load %arg12[%c1_405, %c2_406, %c0_407] : memref<2x32x128xbf16, #tpu.memory_space<vmem>>, vector<1x1x128xbf16>
    %439 = vector.shape_cast %438 : vector<1x1x128xbf16> to vector<1x128xbf16>
    %c256_408 = arith.constant 256 : index
    %c0_409 = arith.constant 0 : index
    %440 = vector.load %arg6[%c256_408, %c0_409] : memref<4096x256xbf16, #tpu.memory_space<vmem>>, vector<128x256xbf16>
    %cst_410 = arith.constant dense<0.000000e+00> : vector<1x256xf32>
    %441 = tpu.matmul %439, %440, %cst_410 {dimension_numbers = #tpu.dot_dimension_numbers<[1], [0], [0], [1], [0, 0, 1, 1], [], []>} : vector<1x128xbf16>, vector<128x256xbf16>, vector<1x256xf32> -> vector<1x256xf32>
    %442 = arith.addf %437, %441 : vector<1x256xf32>
    %c1_411 = arith.constant 1 : index
    %c3_412 = arith.constant 3 : index
    %c0_413 = arith.constant 0 : index
    %443 = vector.load %arg12[%c1_411, %c3_412, %c0_413] : memref<2x32x128xbf16, #tpu.memory_space<vmem>>, vector<1x1x128xbf16>
    %444 = vector.shape_cast %443 : vector<1x1x128xbf16> to vector<1x128xbf16>
    %c384_414 = arith.constant 384 : index
    %c0_415 = arith.constant 0 : index
    %445 = vector.load %arg6[%c384_414, %c0_415] : memref<4096x256xbf16, #tpu.memory_space<vmem>>, vector<128x256xbf16>
    %cst_416 = arith.constant dense<0.000000e+00> : vector<1x256xf32>
    %446 = tpu.matmul %444, %445, %cst_416 {dimension_numbers = #tpu.dot_dimension_numbers<[1], [0], [0], [1], [0, 0, 1, 1], [], []>} : vector<1x128xbf16>, vector<128x256xbf16>, vector<1x256xf32> -> vector<1x256xf32>
    %447 = arith.addf %442, %446 : vector<1x256xf32>
    %c1_417 = arith.constant 1 : index
    %c4_418 = arith.constant 4 : index
    %c0_419 = arith.constant 0 : index
    %448 = vector.load %arg12[%c1_417, %c4_418, %c0_419] : memref<2x32x128xbf16, #tpu.memory_space<vmem>>, vector<1x1x128xbf16>
    %449 = vector.shape_cast %448 : vector<1x1x128xbf16> to vector<1x128xbf16>
    %c512_420 = arith.constant 512 : index
    %c0_421 = arith.constant 0 : index
    %450 = vector.load %arg6[%c512_420, %c0_421] : memref<4096x256xbf16, #tpu.memory_space<vmem>>, vector<128x256xbf16>
    %cst_422 = arith.constant dense<0.000000e+00> : vector<1x256xf32>
    %451 = tpu.matmul %449, %450, %cst_422 {dimension_numbers = #tpu.dot_dimension_numbers<[1], [0], [0], [1], [0, 0, 1, 1], [], []>} : vector<1x128xbf16>, vector<128x256xbf16>, vector<1x256xf32> -> vector<1x256xf32>
    %452 = arith.addf %447, %451 : vector<1x256xf32>
    %c1_423 = arith.constant 1 : index
    %c5_424 = arith.constant 5 : index
    %c0_425 = arith.constant 0 : index
    %453 = vector.load %arg12[%c1_423, %c5_424, %c0_425] : memref<2x32x128xbf16, #tpu.memory_space<vmem>>, vector<1x1x128xbf16>
    %454 = vector.shape_cast %453 : vector<1x1x128xbf16> to vector<1x128xbf16>
    %c640_426 = arith.constant 640 : index
    %c0_427 = arith.constant 0 : index
    %455 = vector.load %arg6[%c640_426, %c0_427] : memref<4096x256xbf16, #tpu.memory_space<vmem>>, vector<128x256xbf16>
    %cst_428 = arith.constant dense<0.000000e+00> : vector<1x256xf32>
    %456 = tpu.matmul %454, %455, %cst_428 {dimension_numbers = #tpu.dot_dimension_numbers<[1], [0], [0], [1], [0, 0, 1, 1], [], []>} : vector<1x128xbf16>, vector<128x256xbf16>, vector<1x256xf32> -> vector<1x256xf32>
    %457 = arith.addf %452, %456 : vector<1x256xf32>
    %c1_429 = arith.constant 1 : index
    %c6_430 = arith.constant 6 : index
    %c0_431 = arith.constant 0 : index
    %458 = vector.load %arg12[%c1_429, %c6_430, %c0_431] : memref<2x32x128xbf16, #tpu.memory_space<vmem>>, vector<1x1x128xbf16>
    %459 = vector.shape_cast %458 : vector<1x1x128xbf16> to vector<1x128xbf16>
    %c768_432 = arith.constant 768 : index
    %c0_433 = arith.constant 0 : index
    %460 = vector.load %arg6[%c768_432, %c0_433] : memref<4096x256xbf16, #tpu.memory_space<vmem>>, vector<128x256xbf16>
    %cst_434 = arith.constant dense<0.000000e+00> : vector<1x256xf32>
    %461 = tpu.matmul %459, %460, %cst_434 {dimension_numbers = #tpu.dot_dimension_numbers<[1], [0], [0], [1], [0, 0, 1, 1], [], []>} : vector<1x128xbf16>, vector<128x256xbf16>, vector<1x256xf32> -> vector<1x256xf32>
    %462 = arith.addf %457, %461 : vector<1x256xf32>
    %c1_435 = arith.constant 1 : index
    %c7_436 = arith.constant 7 : index
    %c0_437 = arith.constant 0 : index
    %463 = vector.load %arg12[%c1_435, %c7_436, %c0_437] : memref<2x32x128xbf16, #tpu.memory_space<vmem>>, vector<1x1x128xbf16>
    %464 = vector.shape_cast %463 : vector<1x1x128xbf16> to vector<1x128xbf16>
    %c896_438 = arith.constant 896 : index
    %c0_439 = arith.constant 0 : index
    %465 = vector.load %arg6[%c896_438, %c0_439] : memref<4096x256xbf16, #tpu.memory_space<vmem>>, vector<128x256xbf16>
    %cst_440 = arith.constant dense<0.000000e+00> : vector<1x256xf32>
    %466 = tpu.matmul %464, %465, %cst_440 {dimension_numbers = #tpu.dot_dimension_numbers<[1], [0], [0], [1], [0, 0, 1, 1], [], []>} : vector<1x128xbf16>, vector<128x256xbf16>, vector<1x256xf32> -> vector<1x256xf32>
    %467 = arith.addf %462, %466 : vector<1x256xf32>
    %c1_441 = arith.constant 1 : index
    %c8_442 = arith.constant 8 : index
    %c0_443 = arith.constant 0 : index
    %468 = vector.load %arg12[%c1_441, %c8_442, %c0_443] : memref<2x32x128xbf16, #tpu.memory_space<vmem>>, vector<1x1x128xbf16>
    %469 = vector.shape_cast %468 : vector<1x1x128xbf16> to vector<1x128xbf16>
    %c1024_444 = arith.constant 1024 : index
    %c0_445 = arith.constant 0 : index
    %470 = vector.load %arg6[%c1024_444, %c0_445] : memref<4096x256xbf16, #tpu.memory_space<vmem>>, vector<128x256xbf16>
    %cst_446 = arith.constant dense<0.000000e+00> : vector<1x256xf32>
    %471 = tpu.matmul %469, %470, %cst_446 {dimension_numbers = #tpu.dot_dimension_numbers<[1], [0], [0], [1], [0, 0, 1, 1], [], []>} : vector<1x128xbf16>, vector<128x256xbf16>, vector<1x256xf32> -> vector<1x256xf32>
    %472 = arith.addf %467, %471 : vector<1x256xf32>
    %c1_447 = arith.constant 1 : index
    %c9_448 = arith.constant 9 : index
    %c0_449 = arith.constant 0 : index
    %473 = vector.load %arg12[%c1_447, %c9_448, %c0_449] : memref<2x32x128xbf16, #tpu.memory_space<vmem>>, vector<1x1x128xbf16>
    %474 = vector.shape_cast %473 : vector<1x1x128xbf16> to vector<1x128xbf16>
    %c1152_450 = arith.constant 1152 : index
    %c0_451 = arith.constant 0 : index
    %475 = vector.load %arg6[%c1152_450, %c0_451] : memref<4096x256xbf16, #tpu.memory_space<vmem>>, vector<128x256xbf16>
    %cst_452 = arith.constant dense<0.000000e+00> : vector<1x256xf32>
    %476 = tpu.matmul %474, %475, %cst_452 {dimension_numbers = #tpu.dot_dimension_numbers<[1], [0], [0], [1], [0, 0, 1, 1], [], []>} : vector<1x128xbf16>, vector<128x256xbf16>, vector<1x256xf32> -> vector<1x256xf32>
    %477 = arith.addf %472, %476 : vector<1x256xf32>
    %c1_453 = arith.constant 1 : index
    %c10_454 = arith.constant 10 : index
    %c0_455 = arith.constant 0 : index
    %478 = vector.load %arg12[%c1_453, %c10_454, %c0_455] : memref<2x32x128xbf16, #tpu.memory_space<vmem>>, vector<1x1x128xbf16>
    %479 = vector.shape_cast %478 : vector<1x1x128xbf16> to vector<1x128xbf16>
    %c1280_456 = arith.constant 1280 : index
    %c0_457 = arith.constant 0 : index
    %480 = vector.load %arg6[%c1280_456, %c0_457] : memref<4096x256xbf16, #tpu.memory_space<vmem>>, vector<128x256xbf16>
    %cst_458 = arith.constant dense<0.000000e+00> : vector<1x256xf32>
    %481 = tpu.matmul %479, %480, %cst_458 {dimension_numbers = #tpu.dot_dimension_numbers<[1], [0], [0], [1], [0, 0, 1, 1], [], []>} : vector<1x128xbf16>, vector<128x256xbf16>, vector<1x256xf32> -> vector<1x256xf32>
    %482 = arith.addf %477, %481 : vector<1x256xf32>
    %c1_459 = arith.constant 1 : index
    %c11_460 = arith.constant 11 : index
    %c0_461 = arith.constant 0 : index
    %483 = vector.load %arg12[%c1_459, %c11_460, %c0_461] : memref<2x32x128xbf16, #tpu.memory_space<vmem>>, vector<1x1x128xbf16>
    %484 = vector.shape_cast %483 : vector<1x1x128xbf16> to vector<1x128xbf16>
    %c1408_462 = arith.constant 1408 : index
    %c0_463 = arith.constant 0 : index
    %485 = vector.load %arg6[%c1408_462, %c0_463] : memref<4096x256xbf16, #tpu.memory_space<vmem>>, vector<128x256xbf16>
    %cst_464 = arith.constant dense<0.000000e+00> : vector<1x256xf32>
    %486 = tpu.matmul %484, %485, %cst_464 {dimension_numbers = #tpu.dot_dimension_numbers<[1], [0], [0], [1], [0, 0, 1, 1], [], []>} : vector<1x128xbf16>, vector<128x256xbf16>, vector<1x256xf32> -> vector<1x256xf32>
    %487 = arith.addf %482, %486 : vector<1x256xf32>
    %c1_465 = arith.constant 1 : index
    %c12_466 = arith.constant 12 : index
    %c0_467 = arith.constant 0 : index
    %488 = vector.load %arg12[%c1_465, %c12_466, %c0_467] : memref<2x32x128xbf16, #tpu.memory_space<vmem>>, vector<1x1x128xbf16>
    %489 = vector.shape_cast %488 : vector<1x1x128xbf16> to vector<1x128xbf16>
    %c1536_468 = arith.constant 1536 : index
    %c0_469 = arith.constant 0 : index
    %490 = vector.load %arg6[%c1536_468, %c0_469] : memref<4096x256xbf16, #tpu.memory_space<vmem>>, vector<128x256xbf16>
    %cst_470 = arith.constant dense<0.000000e+00> : vector<1x256xf32>
    %491 = tpu.matmul %489, %490, %cst_470 {dimension_numbers = #tpu.dot_dimension_numbers<[1], [0], [0], [1], [0, 0, 1, 1], [], []>} : vector<1x128xbf16>, vector<128x256xbf16>, vector<1x256xf32> -> vector<1x256xf32>
    %492 = arith.addf %487, %491 : vector<1x256xf32>
    %c1_471 = arith.constant 1 : index
    %c13_472 = arith.constant 13 : index
    %c0_473 = arith.constant 0 : index
    %493 = vector.load %arg12[%c1_471, %c13_472, %c0_473] : memref<2x32x128xbf16, #tpu.memory_space<vmem>>, vector<1x1x128xbf16>
    %494 = vector.shape_cast %493 : vector<1x1x128xbf16> to vector<1x128xbf16>
    %c1664_474 = arith.constant 1664 : index
    %c0_475 = arith.constant 0 : index
    %495 = vector.load %arg6[%c1664_474, %c0_475] : memref<4096x256xbf16, #tpu.memory_space<vmem>>, vector<128x256xbf16>
    %cst_476 = arith.constant dense<0.000000e+00> : vector<1x256xf32>
    %496 = tpu.matmul %494, %495, %cst_476 {dimension_numbers = #tpu.dot_dimension_numbers<[1], [0], [0], [1], [0, 0, 1, 1], [], []>} : vector<1x128xbf16>, vector<128x256xbf16>, vector<1x256xf32> -> vector<1x256xf32>
    %497 = arith.addf %492, %496 : vector<1x256xf32>
    %c1_477 = arith.constant 1 : index
    %c14_478 = arith.constant 14 : index
    %c0_479 = arith.constant 0 : index
    %498 = vector.load %arg12[%c1_477, %c14_478, %c0_479] : memref<2x32x128xbf16, #tpu.memory_space<vmem>>, vector<1x1x128xbf16>
    %499 = vector.shape_cast %498 : vector<1x1x128xbf16> to vector<1x128xbf16>
    %c1792_480 = arith.constant 1792 : index
    %c0_481 = arith.constant 0 : index
    %500 = vector.load %arg6[%c1792_480, %c0_481] : memref<4096x256xbf16, #tpu.memory_space<vmem>>, vector<128x256xbf16>
    %cst_482 = arith.constant dense<0.000000e+00> : vector<1x256xf32>
    %501 = tpu.matmul %499, %500, %cst_482 {dimension_numbers = #tpu.dot_dimension_numbers<[1], [0], [0], [1], [0, 0, 1, 1], [], []>} : vector<1x128xbf16>, vector<128x256xbf16>, vector<1x256xf32> -> vector<1x256xf32>
    %502 = arith.addf %497, %501 : vector<1x256xf32>
    %c1_483 = arith.constant 1 : index
    %c15_484 = arith.constant 15 : index
    %c0_485 = arith.constant 0 : index
    %503 = vector.load %arg12[%c1_483, %c15_484, %c0_485] : memref<2x32x128xbf16, #tpu.memory_space<vmem>>, vector<1x1x128xbf16>
    %504 = vector.shape_cast %503 : vector<1x1x128xbf16> to vector<1x128xbf16>
    %c1920_486 = arith.constant 1920 : index
    %c0_487 = arith.constant 0 : index
    %505 = vector.load %arg6[%c1920_486, %c0_487] : memref<4096x256xbf16, #tpu.memory_space<vmem>>, vector<128x256xbf16>
    %cst_488 = arith.constant dense<0.000000e+00> : vector<1x256xf32>
    %506 = tpu.matmul %504, %505, %cst_488 {dimension_numbers = #tpu.dot_dimension_numbers<[1], [0], [0], [1], [0, 0, 1, 1], [], []>} : vector<1x128xbf16>, vector<128x256xbf16>, vector<1x256xf32> -> vector<1x256xf32>
    %507 = arith.addf %502, %506 : vector<1x256xf32>
    %c1_489 = arith.constant 1 : index
    %c16_490 = arith.constant 16 : index
    %c0_491 = arith.constant 0 : index
    %508 = vector.load %arg12[%c1_489, %c16_490, %c0_491] : memref<2x32x128xbf16, #tpu.memory_space<vmem>>, vector<1x1x128xbf16>
    %509 = vector.shape_cast %508 : vector<1x1x128xbf16> to vector<1x128xbf16>
    %c2048_492 = arith.constant 2048 : index
    %c0_493 = arith.constant 0 : index
    %510 = vector.load %arg6[%c2048_492, %c0_493] : memref<4096x256xbf16, #tpu.memory_space<vmem>>, vector<128x256xbf16>
    %cst_494 = arith.constant dense<0.000000e+00> : vector<1x256xf32>
    %511 = tpu.matmul %509, %510, %cst_494 {dimension_numbers = #tpu.dot_dimension_numbers<[1], [0], [0], [1], [0, 0, 1, 1], [], []>} : vector<1x128xbf16>, vector<128x256xbf16>, vector<1x256xf32> -> vector<1x256xf32>
    %512 = arith.addf %507, %511 : vector<1x256xf32>
    %c1_495 = arith.constant 1 : index
    %c17_496 = arith.constant 17 : index
    %c0_497 = arith.constant 0 : index
    %513 = vector.load %arg12[%c1_495, %c17_496, %c0_497] : memref<2x32x128xbf16, #tpu.memory_space<vmem>>, vector<1x1x128xbf16>
    %514 = vector.shape_cast %513 : vector<1x1x128xbf16> to vector<1x128xbf16>
    %c2176_498 = arith.constant 2176 : index
    %c0_499 = arith.constant 0 : index
    %515 = vector.load %arg6[%c2176_498, %c0_499] : memref<4096x256xbf16, #tpu.memory_space<vmem>>, vector<128x256xbf16>
    %cst_500 = arith.constant dense<0.000000e+00> : vector<1x256xf32>
    %516 = tpu.matmul %514, %515, %cst_500 {dimension_numbers = #tpu.dot_dimension_numbers<[1], [0], [0], [1], [0, 0, 1, 1], [], []>} : vector<1x128xbf16>, vector<128x256xbf16>, vector<1x256xf32> -> vector<1x256xf32>
    %517 = arith.addf %512, %516 : vector<1x256xf32>
    %c1_501 = arith.constant 1 : index
    %c18_502 = arith.constant 18 : index
    %c0_503 = arith.constant 0 : index
    %518 = vector.load %arg12[%c1_501, %c18_502, %c0_503] : memref<2x32x128xbf16, #tpu.memory_space<vmem>>, vector<1x1x128xbf16>
    %519 = vector.shape_cast %518 : vector<1x1x128xbf16> to vector<1x128xbf16>
    %c2304_504 = arith.constant 2304 : index
    %c0_505 = arith.constant 0 : index
    %520 = vector.load %arg6[%c2304_504, %c0_505] : memref<4096x256xbf16, #tpu.memory_space<vmem>>, vector<128x256xbf16>
    %cst_506 = arith.constant dense<0.000000e+00> : vector<1x256xf32>
    %521 = tpu.matmul %519, %520, %cst_506 {dimension_numbers = #tpu.dot_dimension_numbers<[1], [0], [0], [1], [0, 0, 1, 1], [], []>} : vector<1x128xbf16>, vector<128x256xbf16>, vector<1x256xf32> -> vector<1x256xf32>
    %522 = arith.addf %517, %521 : vector<1x256xf32>
    %c1_507 = arith.constant 1 : index
    %c19_508 = arith.constant 19 : index
    %c0_509 = arith.constant 0 : index
    %523 = vector.load %arg12[%c1_507, %c19_508, %c0_509] : memref<2x32x128xbf16, #tpu.memory_space<vmem>>, vector<1x1x128xbf16>
    %524 = vector.shape_cast %523 : vector<1x1x128xbf16> to vector<1x128xbf16>
    %c2432_510 = arith.constant 2432 : index
    %c0_511 = arith.constant 0 : index
    %525 = vector.load %arg6[%c2432_510, %c0_511] : memref<4096x256xbf16, #tpu.memory_space<vmem>>, vector<128x256xbf16>
    %cst_512 = arith.constant dense<0.000000e+00> : vector<1x256xf32>
    %526 = tpu.matmul %524, %525, %cst_512 {dimension_numbers = #tpu.dot_dimension_numbers<[1], [0], [0], [1], [0, 0, 1, 1], [], []>} : vector<1x128xbf16>, vector<128x256xbf16>, vector<1x256xf32> -> vector<1x256xf32>
    %527 = arith.addf %522, %526 : vector<1x256xf32>
    %c1_513 = arith.constant 1 : index
    %c20_514 = arith.constant 20 : index
    %c0_515 = arith.constant 0 : index
    %528 = vector.load %arg12[%c1_513, %c20_514, %c0_515] : memref<2x32x128xbf16, #tpu.memory_space<vmem>>, vector<1x1x128xbf16>
    %529 = vector.shape_cast %528 : vector<1x1x128xbf16> to vector<1x128xbf16>
    %c2560_516 = arith.constant 2560 : index
    %c0_517 = arith.constant 0 : index
    %530 = vector.load %arg6[%c2560_516, %c0_517] : memref<4096x256xbf16, #tpu.memory_space<vmem>>, vector<128x256xbf16>
    %cst_518 = arith.constant dense<0.000000e+00> : vector<1x256xf32>
    %531 = tpu.matmul %529, %530, %cst_518 {dimension_numbers = #tpu.dot_dimension_numbers<[1], [0], [0], [1], [0, 0, 1, 1], [], []>} : vector<1x128xbf16>, vector<128x256xbf16>, vector<1x256xf32> -> vector<1x256xf32>
    %532 = arith.addf %527, %531 : vector<1x256xf32>
    %c1_519 = arith.constant 1 : index
    %c21_520 = arith.constant 21 : index
    %c0_521 = arith.constant 0 : index
    %533 = vector.load %arg12[%c1_519, %c21_520, %c0_521] : memref<2x32x128xbf16, #tpu.memory_space<vmem>>, vector<1x1x128xbf16>
    %534 = vector.shape_cast %533 : vector<1x1x128xbf16> to vector<1x128xbf16>
    %c2688_522 = arith.constant 2688 : index
    %c0_523 = arith.constant 0 : index
    %535 = vector.load %arg6[%c2688_522, %c0_523] : memref<4096x256xbf16, #tpu.memory_space<vmem>>, vector<128x256xbf16>
    %cst_524 = arith.constant dense<0.000000e+00> : vector<1x256xf32>
    %536 = tpu.matmul %534, %535, %cst_524 {dimension_numbers = #tpu.dot_dimension_numbers<[1], [0], [0], [1], [0, 0, 1, 1], [], []>} : vector<1x128xbf16>, vector<128x256xbf16>, vector<1x256xf32> -> vector<1x256xf32>
    %537 = arith.addf %532, %536 : vector<1x256xf32>
    %c1_525 = arith.constant 1 : index
    %c22_526 = arith.constant 22 : index
    %c0_527 = arith.constant 0 : index
    %538 = vector.load %arg12[%c1_525, %c22_526, %c0_527] : memref<2x32x128xbf16, #tpu.memory_space<vmem>>, vector<1x1x128xbf16>
    %539 = vector.shape_cast %538 : vector<1x1x128xbf16> to vector<1x128xbf16>
    %c2816_528 = arith.constant 2816 : index
    %c0_529 = arith.constant 0 : index
    %540 = vector.load %arg6[%c2816_528, %c0_529] : memref<4096x256xbf16, #tpu.memory_space<vmem>>, vector<128x256xbf16>
    %cst_530 = arith.constant dense<0.000000e+00> : vector<1x256xf32>
    %541 = tpu.matmul %539, %540, %cst_530 {dimension_numbers = #tpu.dot_dimension_numbers<[1], [0], [0], [1], [0, 0, 1, 1], [], []>} : vector<1x128xbf16>, vector<128x256xbf16>, vector<1x256xf32> -> vector<1x256xf32>
    %542 = arith.addf %537, %541 : vector<1x256xf32>
    %c1_531 = arith.constant 1 : index
    %c23_532 = arith.constant 23 : index
    %c0_533 = arith.constant 0 : index
    %543 = vector.load %arg12[%c1_531, %c23_532, %c0_533] : memref<2x32x128xbf16, #tpu.memory_space<vmem>>, vector<1x1x128xbf16>
    %544 = vector.shape_cast %543 : vector<1x1x128xbf16> to vector<1x128xbf16>
    %c2944_534 = arith.constant 2944 : index
    %c0_535 = arith.constant 0 : index
    %545 = vector.load %arg6[%c2944_534, %c0_535] : memref<4096x256xbf16, #tpu.memory_space<vmem>>, vector<128x256xbf16>
    %cst_536 = arith.constant dense<0.000000e+00> : vector<1x256xf32>
    %546 = tpu.matmul %544, %545, %cst_536 {dimension_numbers = #tpu.dot_dimension_numbers<[1], [0], [0], [1], [0, 0, 1, 1], [], []>} : vector<1x128xbf16>, vector<128x256xbf16>, vector<1x256xf32> -> vector<1x256xf32>
    %547 = arith.addf %542, %546 : vector<1x256xf32>
    %c1_537 = arith.constant 1 : index
    %c24_538 = arith.constant 24 : index
    %c0_539 = arith.constant 0 : index
    %548 = vector.load %arg12[%c1_537, %c24_538, %c0_539] : memref<2x32x128xbf16, #tpu.memory_space<vmem>>, vector<1x1x128xbf16>
    %549 = vector.shape_cast %548 : vector<1x1x128xbf16> to vector<1x128xbf16>
    %c3072_540 = arith.constant 3072 : index
    %c0_541 = arith.constant 0 : index
    %550 = vector.load %arg6[%c3072_540, %c0_541] : memref<4096x256xbf16, #tpu.memory_space<vmem>>, vector<128x256xbf16>
    %cst_542 = arith.constant dense<0.000000e+00> : vector<1x256xf32>
    %551 = tpu.matmul %549, %550, %cst_542 {dimension_numbers = #tpu.dot_dimension_numbers<[1], [0], [0], [1], [0, 0, 1, 1], [], []>} : vector<1x128xbf16>, vector<128x256xbf16>, vector<1x256xf32> -> vector<1x256xf32>
    %552 = arith.addf %547, %551 : vector<1x256xf32>
    %c1_543 = arith.constant 1 : index
    %c25_544 = arith.constant 25 : index
    %c0_545 = arith.constant 0 : index
    %553 = vector.load %arg12[%c1_543, %c25_544, %c0_545] : memref<2x32x128xbf16, #tpu.memory_space<vmem>>, vector<1x1x128xbf16>
    %554 = vector.shape_cast %553 : vector<1x1x128xbf16> to vector<1x128xbf16>
    %c3200_546 = arith.constant 3200 : index
    %c0_547 = arith.constant 0 : index
    %555 = vector.load %arg6[%c3200_546, %c0_547] : memref<4096x256xbf16, #tpu.memory_space<vmem>>, vector<128x256xbf16>
    %cst_548 = arith.constant dense<0.000000e+00> : vector<1x256xf32>
    %556 = tpu.matmul %554, %555, %cst_548 {dimension_numbers = #tpu.dot_dimension_numbers<[1], [0], [0], [1], [0, 0, 1, 1], [], []>} : vector<1x128xbf16>, vector<128x256xbf16>, vector<1x256xf32> -> vector<1x256xf32>
    %557 = arith.addf %552, %556 : vector<1x256xf32>
    %c1_549 = arith.constant 1 : index
    %c26_550 = arith.constant 26 : index
    %c0_551 = arith.constant 0 : index
    %558 = vector.load %arg12[%c1_549, %c26_550, %c0_551] : memref<2x32x128xbf16, #tpu.memory_space<vmem>>, vector<1x1x128xbf16>
    %559 = vector.shape_cast %558 : vector<1x1x128xbf16> to vector<1x128xbf16>
    %c3328_552 = arith.constant 3328 : index
    %c0_553 = arith.constant 0 : index
    %560 = vector.load %arg6[%c3328_552, %c0_553] : memref<4096x256xbf16, #tpu.memory_space<vmem>>, vector<128x256xbf16>
    %cst_554 = arith.constant dense<0.000000e+00> : vector<1x256xf32>
    %561 = tpu.matmul %559, %560, %cst_554 {dimension_numbers = #tpu.dot_dimension_numbers<[1], [0], [0], [1], [0, 0, 1, 1], [], []>} : vector<1x128xbf16>, vector<128x256xbf16>, vector<1x256xf32> -> vector<1x256xf32>
    %562 = arith.addf %557, %561 : vector<1x256xf32>
    %c1_555 = arith.constant 1 : index
    %c27_556 = arith.constant 27 : index
    %c0_557 = arith.constant 0 : index
    %563 = vector.load %arg12[%c1_555, %c27_556, %c0_557] : memref<2x32x128xbf16, #tpu.memory_space<vmem>>, vector<1x1x128xbf16>
    %564 = vector.shape_cast %563 : vector<1x1x128xbf16> to vector<1x128xbf16>
    %c3456_558 = arith.constant 3456 : index
    %c0_559 = arith.constant 0 : index
    %565 = vector.load %arg6[%c3456_558, %c0_559] : memref<4096x256xbf16, #tpu.memory_space<vmem>>, vector<128x256xbf16>
    %cst_560 = arith.constant dense<0.000000e+00> : vector<1x256xf32>
    %566 = tpu.matmul %564, %565, %cst_560 {dimension_numbers = #tpu.dot_dimension_numbers<[1], [0], [0], [1], [0, 0, 1, 1], [], []>} : vector<1x128xbf16>, vector<128x256xbf16>, vector<1x256xf32> -> vector<1x256xf32>
    %567 = arith.addf %562, %566 : vector<1x256xf32>
    %c1_561 = arith.constant 1 : index
    %c28_562 = arith.constant 28 : index
    %c0_563 = arith.constant 0 : index
    %568 = vector.load %arg12[%c1_561, %c28_562, %c0_563] : memref<2x32x128xbf16, #tpu.memory_space<vmem>>, vector<1x1x128xbf16>
    %569 = vector.shape_cast %568 : vector<1x1x128xbf16> to vector<1x128xbf16>
    %c3584_564 = arith.constant 3584 : index
    %c0_565 = arith.constant 0 : index
    %570 = vector.load %arg6[%c3584_564, %c0_565] : memref<4096x256xbf16, #tpu.memory_space<vmem>>, vector<128x256xbf16>
    %cst_566 = arith.constant dense<0.000000e+00> : vector<1x256xf32>
    %571 = tpu.matmul %569, %570, %cst_566 {dimension_numbers = #tpu.dot_dimension_numbers<[1], [0], [0], [1], [0, 0, 1, 1], [], []>} : vector<1x128xbf16>, vector<128x256xbf16>, vector<1x256xf32> -> vector<1x256xf32>
    %572 = arith.addf %567, %571 : vector<1x256xf32>
    %c1_567 = arith.constant 1 : index
    %c29_568 = arith.constant 29 : index
    %c0_569 = arith.constant 0 : index
    %573 = vector.load %arg12[%c1_567, %c29_568, %c0_569] : memref<2x32x128xbf16, #tpu.memory_space<vmem>>, vector<1x1x128xbf16>
    %574 = vector.shape_cast %573 : vector<1x1x128xbf16> to vector<1x128xbf16>
    %c3712_570 = arith.constant 3712 : index
    %c0_571 = arith.constant 0 : index
    %575 = vector.load %arg6[%c3712_570, %c0_571] : memref<4096x256xbf16, #tpu.memory_space<vmem>>, vector<128x256xbf16>
    %cst_572 = arith.constant dense<0.000000e+00> : vector<1x256xf32>
    %576 = tpu.matmul %574, %575, %cst_572 {dimension_numbers = #tpu.dot_dimension_numbers<[1], [0], [0], [1], [0, 0, 1, 1], [], []>} : vector<1x128xbf16>, vector<128x256xbf16>, vector<1x256xf32> -> vector<1x256xf32>
    %577 = arith.addf %572, %576 : vector<1x256xf32>
    %c1_573 = arith.constant 1 : index
    %c30_574 = arith.constant 30 : index
    %c0_575 = arith.constant 0 : index
    %578 = vector.load %arg12[%c1_573, %c30_574, %c0_575] : memref<2x32x128xbf16, #tpu.memory_space<vmem>>, vector<1x1x128xbf16>
    %579 = vector.shape_cast %578 : vector<1x1x128xbf16> to vector<1x128xbf16>
    %c3840_576 = arith.constant 3840 : index
    %c0_577 = arith.constant 0 : index
    %580 = vector.load %arg6[%c3840_576, %c0_577] : memref<4096x256xbf16, #tpu.memory_space<vmem>>, vector<128x256xbf16>
    %cst_578 = arith.constant dense<0.000000e+00> : vector<1x256xf32>
    %581 = tpu.matmul %579, %580, %cst_578 {dimension_numbers = #tpu.dot_dimension_numbers<[1], [0], [0], [1], [0, 0, 1, 1], [], []>} : vector<1x128xbf16>, vector<128x256xbf16>, vector<1x256xf32> -> vector<1x256xf32>
    %582 = arith.addf %577, %581 : vector<1x256xf32>
    %c1_579 = arith.constant 1 : index
    %c31_580 = arith.constant 31 : index
    %c0_581 = arith.constant 0 : index
    %583 = vector.load %arg12[%c1_579, %c31_580, %c0_581] : memref<2x32x128xbf16, #tpu.memory_space<vmem>>, vector<1x1x128xbf16>
    %584 = vector.shape_cast %583 : vector<1x1x128xbf16> to vector<1x128xbf16>
    %c3968_582 = arith.constant 3968 : index
    %c0_583 = arith.constant 0 : index
    %585 = vector.load %arg6[%c3968_582, %c0_583] : memref<4096x256xbf16, #tpu.memory_space<vmem>>, vector<128x256xbf16>
    %cst_584 = arith.constant dense<0.000000e+00> : vector<1x256xf32>
    %586 = tpu.matmul %584, %585, %cst_584 {dimension_numbers = #tpu.dot_dimension_numbers<[1], [0], [0], [1], [0, 0, 1, 1], [], []>} : vector<1x128xbf16>, vector<128x256xbf16>, vector<1x256xf32> -> vector<1x256xf32>
    %587 = arith.addf %582, %586 : vector<1x256xf32>
    %c0_585 = arith.constant 0 : index
    %c0_586 = arith.constant 0 : index
    %588 = vector.load %arg7[%c0_585, %c0_586] : memref<1x256xf32, #tpu.memory_space<vmem>>, vector<1x256xf32>
    %589 = arith.addf %587, %588 : vector<1x256xf32>
    %cst_587 = arith.constant 0.000000e+00 : f32
    %590 = vector.broadcast %cst_587 : f32 to vector<1x256xf32>
    %591 = arith.maximumf %589, %590 : vector<1x256xf32>
    %592 = arith.truncf %591 : vector<1x256xf32> to vector<1x256xbf16>
    %c1_588 = arith.constant 1 : index
    %c0_589 = arith.constant 0 : index
    %593 = vector.load %arg13[%c1_588, %c0_589] : memref<2x256xbf16, #tpu.memory_space<vmem>>, vector<1x256xbf16>
    tpu.vector_store %arg13[%c1_588, %c0_589], %592 {strides = array<i32>} : memref<2x256xbf16, #tpu.memory_space<vmem>>, vector<1x256xbf16>,
    %c0_590 = arith.constant 0 : index
    %c0_591 = arith.constant 0 : index
    %594 = vector.load %arg13[%c0_590, %c0_591] : memref<2x256xbf16, #tpu.memory_space<vmem>>, vector<2x256xbf16>
    %c0_592 = arith.constant 0 : index
    %c0_593 = arith.constant 0 : index
    %595 = vector.load %arg8[%c0_592, %c0_593] : memref<256x128xbf16, #tpu.memory_space<vmem>>, vector<256x128xbf16>
    %cst_594 = arith.constant dense<0.000000e+00> : vector<2x128xf32>
    %596 = tpu.matmul %594, %595, %cst_594 {dimension_numbers = #tpu.dot_dimension_numbers<[1], [0], [0], [1], [0, 0, 1, 1], [], []>} : vector<2x256xbf16>, vector<256x128xbf16>, vector<2x128xf32> -> vector<2x128xf32>
    %c0_595 = arith.constant 0 : index
    %c0_596 = arith.constant 0 : index
    %597 = vector.load %arg9[%c0_595, %c0_596] : memref<1x128xf32, #tpu.memory_space<vmem>>, vector<1x128xf32>
    %598 = vector.broadcast %597 : vector<1x128xf32> to vector<2x128xf32>
    %599 = arith.addf %596, %598 : vector<2x128xf32>
    %600 = tpu.iota {dimensions = array<i32: 1>} : vector<2x128xi32>
    %c4_i32 = arith.constant 4 : i32
    %601 = vector.broadcast %c4_i32 : i32 to vector<2x128xi32>
    %602 = arith.cmpi slt, %600, %601 : vector<2x128xi32>
    %cst_597 = arith.constant -1.000000e+30 : f32
    %603 = vector.broadcast %cst_597 : f32 to vector<2x128xf32>
    %604 = arith.select %602, %599, %603 : vector<2x128xi1>, vector<2x128xf32>
    %cst_598 = arith.constant dense<0xFF800000> : vector<2xf32>
    %605 = vector.multi_reduction <maximumf>, %604, %cst_598 [1] : vector<2x128xf32> to vector<2xf32>
    %606 = vector.shape_cast %605 : vector<2xf32> to vector<2x1xf32>
    %607 = vector.broadcast %606 : vector<2x1xf32> to vector<2x128xf32>
    %608 = arith.subf %604, %607 : vector<2x128xf32>
    %609 = math.exp %608 : vector<2x128xf32>
    %cst_599 = arith.constant dense<0.000000e+00> : vector<2xf32>
    %610 = vector.multi_reduction <add>, %609, %cst_599 [1] : vector<2x128xf32> to vector<2xf32>
    %611 = vector.shape_cast %610 : vector<2xf32> to vector<2x1xf32>
    %612 = tpu.reciprocal %611 {approx = true} : vector<2x1xf32> -> vector<2x1xf32>
    %613 = vector.broadcast %612 : vector<2x1xf32> to vector<2x128xf32>
    %614 = arith.mulf %609, %613 : vector<2x128xf32>
    %c4_i32_600 = arith.constant 4 : i32
    %615 = vector.broadcast %c4_i32_600 : i32 to vector<2x128xi32>
    %616 = arith.cmpi eq, %600, %615 : vector<2x128xi32>
    %cst_601 = arith.constant 0.000000e+00 : f32
    %617 = vector.broadcast %cst_601 : f32 to vector<2x128xf32>
    %618 = arith.select %616, %599, %617 : vector<2x128xi1>, vector<2x128xf32>
    %619 = arith.select %602, %614, %618 : vector<2x128xi1>, vector<2x128xf32>
    %c0_602 = arith.constant 0 : index
    %c0_603 = arith.constant 0 : index
    %620 = vector.load %arg10[%c0_602, %c0_603] : memref<2x128xf32, #tpu.memory_space<vmem>>, vector<2x128xf32>
    tpu.vector_store %arg10[%c0_602, %c0_603], %619 {strides = array<i32>} : memref<2x128xf32, #tpu.memory_space<vmem>>, vector<2x128xf32>,
    return
  }
  func.func @transform_0(%arg0: i32) -> (i32, i32, i32) {
    %c0_i32 = arith.constant 0 : i32
    %c0_i32_0 = arith.constant 0 : i32
    %c0_i32_1 = arith.constant 0 : i32
    return %arg0, %c0_i32, %c0_i32_0 : i32, i32, i32
  }
  func.func @transform_1(%arg0: i32) -> (i32, i32, i32) {
    %c0_i32 = arith.constant 0 : i32
    %c0_i32_0 = arith.constant 0 : i32
    %c0_i32_1 = arith.constant 0 : i32
    %c0_i32_2 = arith.constant 0 : i32
    return %c0_i32, %c0_i32_0, %c0_i32_1 : i32, i32, i32
  }
  func.func @transform_2(%arg0: i32) -> (i32, i32) {
    %c0_i32 = arith.constant 0 : i32
    %c0_i32_0 = arith.constant 0 : i32
    %c0_i32_1 = arith.constant 0 : i32
    return %c0_i32, %c0_i32_0 : i32, i32
  }
  func.func @transform_3(%arg0: i32) -> (i32, i32, i32) {
    %c0_i32 = arith.constant 0 : i32
    %c0_i32_0 = arith.constant 0 : i32
    %c0_i32_1 = arith.constant 0 : i32
    %c0_i32_2 = arith.constant 0 : i32
    return %c0_i32, %c0_i32_0, %c0_i32_1 : i32, i32, i32
  }
  func.func @transform_4(%arg0: i32) -> (i32, i32) {
    %c0_i32 = arith.constant 0 : i32
    %c0_i32_0 = arith.constant 0 : i32
    %c0_i32_1 = arith.constant 0 : i32
    return %c0_i32, %c0_i32_0 : i32, i32
  }
  func.func @transform_5(%arg0: i32) -> (i32, i32) {
    %c0_i32 = arith.constant 0 : i32
    %c0_i32_0 = arith.constant 0 : i32
    %c0_i32_1 = arith.constant 0 : i32
    return %c0_i32, %c0_i32_0 : i32, i32
  }
  func.func @transform_6(%arg0: i32) -> (i32, i32) {
    %c0_i32 = arith.constant 0 : i32
    %c0_i32_0 = arith.constant 0 : i32
    %c0_i32_1 = arith.constant 0 : i32
    return %c0_i32, %c0_i32_0 : i32, i32
  }
  func.func @transform_7(%arg0: i32) -> (i32, i32) {
    %c0_i32 = arith.constant 0 : i32
    %c0_i32_0 = arith.constant 0 : i32
    %c0_i32_1 = arith.constant 0 : i32
    return %c0_i32, %c0_i32_0 : i32, i32
  }
  func.func @transform_8(%arg0: i32) -> (i32, i32) {
    %c0_i32 = arith.constant 0 : i32
    %c0_i32_0 = arith.constant 0 : i32
    %c0_i32_1 = arith.constant 0 : i32
    return %c0_i32, %c0_i32_0 : i32, i32
  }
  func.func @transform_9(%arg0: i32) -> (i32, i32) {
    %c0_i32 = arith.constant 0 : i32
    %c0_i32_0 = arith.constant 0 : i32
    return %arg0, %c0_i32 : i32, i32
  }
}

</mosaic_0001>

<bundles_post_ra>
// kernel: actor_critic_forward.1
= control target key start
LH: loop header
LB: loop body
LE: loop exit
PB: predicated region body
PF: predicated region fallthrough
CT: control target
= control target key end

     0   :  { %s17009_s13 = smov 127   ;;  %s17010_s26 = smov 117   ;;  %v17011_v62 = vmov 0   ;;  %vm260_vm0 = vcmask 896000   ;;  %vm1460_vm1 = vcmask 523264   ;;  %vm1805_vm2 = vcmask 805888   ;;  %s21892_s0 = inlined_call_operand.vmem [shape: bf16[2,256,128], index: 0, kind: input, shape index: {}]   ;;  %s21893_s1 = inlined_call_operand.vmem [shape: bf16[16,16,256], index: 1, kind: input, shape index: {}]   ;;  %s21894_s2 = inlined_call_operand.vmem [shape: f32[16,1], index: 2, kind: input, shape index: {}]   ;;  %s21895_s4 = inlined_call_operand.vmem [shape: f32[32,1], index: 4, kind: input, shape index: {}]   ;;  %s21896_s3 = inlined_call_operand.vmem [shape: bf16[4,32,64], index: 3, kind: input, shape index: {}]   ;;  %s21897_s5 = inlined_call_operand.vmem [shape: bf16[4096,256], index: 5, kind: input, shape index: {}]   ;;  %s21898_s6 = inlined_call_operand.vmem [shape: f32[1,256], index: 6, kind: input, shape index: {}]   ;;  %s21899_s7 = inlined_call_operand.vmem [shape: bf16[256,128], index: 7, kind: input, shape index: {}]   ;;  %s21900_s8 = inlined_call_operand.vmem [shape: f32[1,128], index: 8, kind: input, shape index: {}]   ;;  %s21901_s9 = inlined_call_operand.vmem [shape: f32[2,128], index: 9, kind: output, shape index: {}]  }
   0x1   :  { %v17067_v0 = vld [vmem:[%s21892_s0 + $0x78] sm:$0xff]   ;;  %v17072_v1 = vld [vmem:[%s21892_s0 + $0x70] sm:$0xff]   ;;  %v17093_v4 = vld [vmem:[%s21892_s0 + $0x68] sm:$0xff]   ;;  %33 = vst [vmem:[#allocation2] sm:$0xf] %v17011_v62  ;;  %15166 = vset.pattern.permute.xlu1 %v17011_v62  ;;  %15165 = vset.pattern.permute.xlu0 %v17011_v62  ;;  %s17012_s11 = smov 116  }
   0x2   :  { %421 = vrot.lane.b32.xlu0 %v17067_v0, %s17009_s13  ;;  %v17079_v2 = vld [vmem:[%s21892_s0 + $0x38] sm:$0xff]   ;;  %419 = vrot.lane.b32.xlu1 %v17072_v1, %s17009_s13  ;;  %v17086_v3 = vld [vmem:[%s21892_s0 + $0x30] sm:$0xff]   ;;  %34 = vst [vmem:[#allocation2 + $0x4] sm:$0xf] %v17011_v62  ;;  %35 = vst [vmem:[#allocation2 + $0x8] sm:$0xf] %v17011_v62 }
   0x3   :  { %v17100_v5 = vld [vmem:[%s21892_s0 + $0x28] sm:$0xff]   ;;  %v17107_v6 = vld [vmem:[%s21892_s0 + $0x60] sm:$0xff]   ;;  %v17121_v8 = vld [vmem:[%s21892_s0 + $0x58] sm:$0xff]   ;;  %36 = vst [vmem:[#allocation2 + $0xc] sm:$0xf] %v17011_v62  ;;  %vm6454_vm3 = vcmask 1040384  }
   0x4   :  { %v17114_v7 = vld [vmem:[%s21892_s0 + $0x20] sm:$0xff]   ;;  %v17128_v9 = vld [vmem:[%s21892_s0 + $0x18] sm:$0xff]   ;;  %v17135_v10 = vld [vmem:[%s21892_s0 + $0x50] sm:$0xff]   ;;  %37 = vst [vmem:[#allocation2 + $0x10] sm:$0xf] %v17011_v62  ;;  %vm6457_vm5 = vcmask 1041409  }
   0x5   :  { %v17142_v11 = vld [vmem:[%s21892_s0 + $0x10] sm:$0xff]   ;;  %v17149_v12 = vld [vmem:[%s21892_s0 + $0x48] sm:$0xff]   ;;  %v17163_v14 = vld [vmem:[%s21892_s0 + $0x40] sm:$0xff]   ;;  %38 = vst [vmem:[#allocation2 + $0x14] sm:$0xf] %v17011_v62 }
   0x6   :  { %405 = vrot.lane.b32.xlu0 %v17079_v2, %s17009_s13  ;;  %403 = vrot.lane.b32.xlu1 %v17086_v3, %s17009_s13  ;;  %v17156_v13 = vld [vmem:[%s21892_s0 + $0x8] sm:$0xff]   ;;  %v17170_v15 = vld [vmem:[%s21892_s0] sm:$0xff]   ;;  %39 = vst [vmem:[#allocation2 + $0x18] sm:$0xf] %v17011_v62  ;;  %40 = vst [vmem:[#allocation2 + $0x1c] sm:$0xf] %v17011_v62 }
   0x7   :  { %v17177_v16 = vld [vmem:[%s21892_s0 + $0x78] sm:$0xff]   ;;  %v17191_v18 = vld [vmem:[%s21892_s0 + $0x70] sm:$0xff]   ;;  %v17205_v20 = vld [vmem:[%s21892_s0 + $0x68] sm:$0xff]   ;;  %41 = vst [vmem:[#allocation2 + $0x20] sm:$0xf] %v17011_v62 }
   0x8   :  { %v17184_v17 = vld [vmem:[%s21892_s0 + $0x38] sm:$0xff]   ;;  %v17198_v19 = vld [vmem:[%s21892_s0 + $0x30] sm:$0xff]   ;;  %v17212_v21 = vld [vmem:[%s21892_s0 + $0x28] sm:$0xff]   ;;  %42 = vst [vmem:[#allocation2 + $0x24] sm:$0xf] %v17011_v62 }
   0x9   :  { %v17219_v22 = vld [vmem:[%s21892_s0 + $0x60] sm:$0xff]   ;;  %v15211_v24 = vld [vmem:[%s21892_s0 + $0x78] sm:$0xff]   ;;  %v15215_v28 = vld [vmem:[%s21892_s0 + $0x70] sm:$0xff]   ;;  %43 = vst [vmem:[#allocation2 + $0x28] sm:$0xf] %v17011_v62 }
   0xa   :  { %417 = vrot.lane.b32.xlu0 %v17093_v4, %s17009_s13  ;;  %401 = vrot.lane.b32.xlu1 %v17100_v5, %s17009_s13  ;;  %v17226_v23 = vld [vmem:[%s21892_s0 + $0x20] sm:$0xff]   ;;  %v15212_v25 = vld [vmem:[%s21892_s0 + $0x38] sm:$0xff]   ;;  %44 = vst [vmem:[#allocation2 + $0x2c] sm:$0xf] %v17011_v62  ;;  %45 = vst [vmem:[#allocation2 + $0x30] sm:$0xf] %v17011_v62 }
   0xb   :  { %v17239_v26 = vld [vmem:[%s21892_s0 + $0x58] sm:$0xff]   ;;  %14598 = vmatprep.subr.bf16.mxu0 %v15211_v24  ;;  %v15216_v29 = vld [vmem:[%s21892_s0 + $0x30] sm:$0xff]   ;;  %v17271_v32 = vld [vmem:[%s21892_s0 + $0x48] sm:$0xff]   ;;  %46 = vst [vmem:[#allocation2 + $0x34] sm:$0xf] %v17011_v62 }
   0xc   :  { %v17246_v27 = vld [vmem:[%s21892_s0 + $0x18] sm:$0xff]   ;;  %14599 = vmatpush3.bf16.msra.mxu0 %v15212_v25  ;;  %v17259_v30 = vld [vmem:[%s21892_s0 + $0x50] sm:$0xff]   ;;  %v15219_v33 = vld [vmem:[%s21892_s0 + $0x68] sm:$0xff]   ;;  %47 = vst [vmem:[#allocation2 + $0x38] sm:$0xf] %v17011_v62 }
   0xd   :  { %14600 = vmatprep.subr.bf16.mxu0 %v15215_v28  ;;  %v17266_v31 = vld [vmem:[%s21892_s0 + $0x10] sm:$0xff]   ;;  %v17279_v34 = vld [vmem:[%s21892_s0 + $0x8] sm:$0xff]   ;;  %v15221_v36 = vld [vmem:[%s21892_s0 + $0x60] sm:$0xff]   ;;  %48 = vst [vmem:[#allocation2 + $0x3c] sm:$0xf] %v17011_v62 }
   0xe   :  { %415 = vrot.lane.b32.xlu0 %v17107_v6, %s17009_s13  ;;  %399 = vrot.lane.b32.xlu1 %v17114_v7, %s17009_s13  ;;  %v15220_v35 = vld [vmem:[%s21892_s0 + $0x28] sm:$0xff]   ;;  %v15222_v37 = vld [vmem:[%s21892_s0 + $0x20] sm:$0xff]   ;;  %49 = vst [vmem:[#allocation3] sm:$0xf] %v17011_v62  ;;  %50 = vst [vmem:[#allocation3 + $0x4] sm:$0xf] %v17011_v62 }
   0xf   :  { %v15223_v38 = vld [vmem:[%s21892_s0 + $0x58] sm:$0xff]   ;;  %v17300_v39 = vld [vmem:[%s21892_s0 + $0x40] sm:$0xff]   ;;  %v15225_v42 = vld [vmem:[%s21892_s0 + $0x50] sm:$0xff]   ;;  %51 = vst [vmem:[#allocation3 + $0x8] sm:$0xf] %v17011_v62 }
  0x10   :  { %14601 = vmatpush3.bf16.msra.mxu0 %v15216_v29  ;;  %v17307_v40 = vld [vmem:[%s21892_s0] sm:$0xff]   ;;  %v15224_v41 = vld [vmem:[%s21892_s0 + $0x18] sm:$0xff]   ;;  %v15226_v45 = vld [vmem:[%s21892_s0 + $0x10] sm:$0xff]   ;;  %52 = vst [vmem:[#allocation3 + $0xc] sm:$0xf] %v17011_v62 }
  0x11   :  { %14602 = vmatprep.subr.bf16.mxu0 %v15219_v33  ;;  %v17320_v43 = vld [vmem:[%s21892_s0 + $0x78] sm:$0xff]   ;;  %v15227_v46 = vld [vmem:[%s21892_s0 + $0x48] sm:$0xff]   ;;  %v17345_v48 = vld [vmem:[%s21892_s0 + $0x70] sm:$0xff]   ;;  %53 = vst [vmem:[#allocation3 + $0x10] sm:$0xf] %v17011_v62 }
  0x12   :  { %413 = vrot.lane.b32.xlu0 %v17121_v8, %s17009_s13  ;;  %397 = vrot.lane.b32.xlu1 %v17128_v9, %s17009_s13  ;;  %v17327_v44 = vld [vmem:[%s21892_s0 + $0x38] sm:$0xff]   ;;  %v15233_v47 = vld [vmem:[%s21893_s1 + $0x4] ss:$8 sps:$4 sm:$0xff]   ;;  %54 = vst [vmem:[#allocation3 + $0x14] sm:$0xf] %v17011_v62 }
  0x13   :  { %v15236_v49 = vld [vmem:[%s21893_s1 + $0x54] ss:$8 sps:$4 sm:$0xff]   ;;  %v15228_v51 = vld [vmem:[%s21892_s0 + $0x8] sm:$0xff]   ;;  %v15229_v52 = vld [vmem:[%s21892_s0 + $0x40] sm:$0xff]   ;;  %241 = vmatprep.mubr.bf16.mxu0 %v15233_v47  ;;  %55 = vst [vmem:[#allocation3 + $0x18] sm:$0xf] %v17011_v62 }
  0x14   :  { %14603 = vmatpush3.bf16.msra.mxu0 %v15220_v35  ;;  %v17355_v50 = vld [vmem:[%s21892_s0 + $0x30] sm:$0xff]   ;;  %v17366_v53 = vld [vmem:[%s21892_s0 + $0x68] sm:$0xff]   ;;  %471 = vmatprep.mubr.bf16.mxu1 %v15236_v49  ;;  %v15230_v55 = vld [vmem:[%s21892_s0] sm:$0xff]   ;;  %56 = vst [vmem:[#allocation3 + $0x1c] sm:$0xf] %v17011_v62 }
  0x15   :  { %14604 = vmatprep.subr.bf16.mxu0 %v15221_v36  ;;  %v17373_v54 = vld [vmem:[%s21892_s0 + $0x28] sm:$0xff]   ;;  %v17383_v56 = vld [vmem:[%s21892_s0 + $0x60] sm:$0xff]   ;;  %v17403_v60 = vld [vmem:[%s21892_s0 + $0x58] sm:$0xff]   ;;  %vm6455_vm4 = vsmask.f32 256 }
  0x16   :  { %411 = vrot.lane.b32.xlu0 %v17135_v10, %s17009_s13  ;;  %395 = vrot.lane.b32.xlu1 %v17142_v11, %s17009_s13  ;;  %v15231_v57 = vld [vmem:[%s21893_s1] ss:$8 sps:$4 sm:$0xff]   ;;  %v15239_v59 = vld [vmem:[%s21893_s1 + $0x44] ss:$8 sps:$4 sm:$0xff]   ;;  %vm6458_vm6 = vsmask.f32 1280  ;;  %vm6456_vm7 = vmand %vm6454_vm3, %vm6455_vm4 }
  0x17   :  { %v17391_v58 = vld [vmem:[%s21892_s0 + $0x20] sm:$0xff]   ;;  %v17409_v61 = vld [vmem:[%s21892_s0 + $0x18] sm:$0xff]   ;;  %v17443_v63 = vld [vmem:[%s21892_s0 + $0x50] sm:$0xff]   ;;  %vm12853_vm10 = vsmask.f32 7938 }
  0x18   :  { %14605 = vmatpush3.bf16.msra.mxu0 %v15222_v37  ;;  %v15242_v28 = vld [vmem:[%s21893_s1 + $0xa4] ss:$8 sps:$4 sm:$0xff]   ;;  %vm6459_vm8 = vmand %vm6457_vm5, %vm6458_vm6  ;;  %vm12855_vm11 = vsmask.f32 7942 }
  0x19   :  { %14606 = vmatprep.subr.bf16.mxu0 %v15223_v38  ;;  %v1375_v33 = vld [vmem:[%s21894_s2] sm:$0xff]  ;;  %v17616_v35 = vld [vmem:[%s21894_s2 + $0x8] sm:$0xff]  ;;  %vm6460_vm9 = vmor %vm6459_vm8, %vm6456_vm7 }
  0x1a   :  { %409 = vrot.lane.b32.xlu0 %v17149_v12, %s17009_s13  ;;  %393 = vrot.lane.b32.xlu1 %v17156_v13, %s17009_s13  ;;  %vm12854_vm12 = vmand %vm6454_vm3, %vm12853_vm10 }
  0x1b   :  { %vm12856_vm13 = vmand %vm6457_vm5, %vm12855_vm11 }
  0x1c   :  { %14607 = vmatpush3.bf16.msra.mxu0 %v15224_v41  ;;  %v15249_v41 = vld [vmem:[%s21893_s1 + $0xc0] ss:$8 sps:$4 sm:$0xff]   ;;  %vm12857_vm14 = vmor %vm12856_vm13, %vm12854_vm12 }
  0x1d   :  { %14608 = vmatprep.subr.bf16.mxu0 %v15225_v42 }
  0x1e   :  { %407 = vrot.lane.b32.xlu0 %v17163_v14, %s17009_s13  ;;  %391 = vrot.lane.b32.xlu1 %v17170_v15, %s17009_s13 }
  0x20   :  { %14609 = vmatpush3.bf16.msra.mxu0 %v15226_v45 }
  0x21   :  { %14610 = vmatprep.subr.bf16.mxu0 %v15227_v46 }
  0x22   :  { %731 = vrot.lane.b32.xlu0 %v17177_v16, %s17010_s26  ;;  %715 = vrot.lane.b32.xlu1 %v17184_v17, %s17010_s26 }
  0x24   :  { %14611 = vmatpush3.bf16.msra.mxu0 %v15228_v51 }
  0x25   :  { %14612 = vmatprep.subr.bf16.mxu0 %v15229_v52 }
  0x26   :  { %729 = vrot.lane.b32.xlu0 %v17191_v18, %s17010_s26  ;;  %713 = vrot.lane.b32.xlu1 %v17198_v19, %s17010_s26 }
  0x28   :  { %14613 = vmatpush3.bf16.msra.mxu0 %v15230_v55 }
  0x29   :  { %14642 = vmatprep.subr.bf16.mxu0 %v17067_v0  ;;  %v17449_v0 = vld [vmem:[%s21892_s0 + $0x10] sm:$0xff]  }
  0x2a   :  { %727 = vrot.lane.b32.xlu0 %v17205_v20, %s17010_s26  ;;  %711 = vrot.lane.b32.xlu1 %v17212_v21, %s17010_s26 }
  0x2b   :  { %242 = vmatmul.mubr.bf16.vlgmr.msra.gmra.mxu0 %v15231_v57 }
  0x2c   :  { %14643 = vmatpush3.bf16.msra.mxu0 %v17079_v2  ;;  %538 = vmatprep.mubr.bf16.mxu0 %v15239_v59  ;;  %v17471_v2 = vld [vmem:[%s21892_s0 + $0x8] sm:$0xff]  }
  0x2d   :  { %14644 = vmatprep.subr.bf16.mxu0 %v17072_v1  ;;  %v17464_v1 = vld [vmem:[%s21892_s0 + $0x48] sm:$0xff]  }
  0x2e   :  { %725 = vrot.lane.b32.xlu0 %v17219_v22, %s17010_s26  ;;  %709 = vrot.lane.b32.xlu1 %v17226_v23, %s17010_s26 }
  0x30   :  { %14645 = vmatpush3.bf16.msra.mxu0 %v17086_v3  ;;  %v17477_v3 = vld [vmem:[%s21892_s0 + $0x40] sm:$0xff]  }
  0x31   :  { %14646 = vmatprep.subr.bf16.mxu0 %v17093_v4  ;;  %v17483_v4 = vld [vmem:[%s21892_s0] sm:$0xff]  }
  0x32   :  { %723 = vrot.lane.b32.xlu0 %v17239_v26, %s17010_s26  ;;  %707 = vrot.lane.b32.xlu1 %v17246_v27, %s17010_s26 }
  0x34   :  { %14647 = vmatpush3.bf16.msra.mxu0 %v17100_v5  ;;  %v15237_v5 = vld [vmem:[%s21893_s1 + $0x40] ss:$8 sps:$4 sm:$0xff]  }
  0x35   :  { %14648 = vmatprep.subr.bf16.mxu0 %v17107_v6  ;;  %v15245_v6 = vld [vmem:[%s21893_s1 + $0x84] ss:$8 sps:$4 sm:$0xff]  }
  0x36   :  { %721 = vrot.lane.b32.xlu0 %v17259_v30, %s17010_s26  ;;  %705 = vrot.lane.b32.xlu1 %v17266_v31, %s17010_s26 }
  0x38   :  { %14649 = vmatpush3.bf16.msra.mxu0 %v17114_v7 }
  0x39   :  { %14650 = vmatprep.subr.bf16.mxu0 %v17121_v8 }
  0x3a   :  { %719 = vrot.lane.b32.xlu0 %v17271_v32, %s17010_s26  ;;  %703 = vrot.lane.b32.xlu1 %v17279_v34, %s17010_s26 }
  0x3c   :  { %14651 = vmatpush3.bf16.msra.mxu0 %v17128_v9 }
  0x3d   :  { %14652 = vmatprep.subr.bf16.mxu0 %v17135_v10 }
  0x3e   :  { %717 = vrot.lane.b32.xlu0 %v17300_v39, %s17010_s26  ;;  %701 = vrot.lane.b32.xlu1 %v17307_v40, %s17010_s26 }
  0x40   :  { %14653 = vmatpush3.bf16.msra.mxu0 %v17142_v11 }
  0x41   :  { %14654 = vmatprep.subr.bf16.mxu0 %v17149_v12 }
  0x42   :  { %1041 = vrot.lane.b32.xlu0 %v17320_v43, %s17009_s13  ;;  %1025 = vrot.lane.b32.xlu1 %v17327_v44, %s17009_s13 }
  0x44   :  { %14655 = vmatpush3.bf16.msra.mxu0 %v17156_v13 }
  0x45   :  { %14656 = vmatprep.subr.bf16.mxu0 %v17163_v14 }
  0x46   :  { %1039 = vrot.lane.b32.xlu0 %v17345_v48, %s17009_s13  ;;  %1023 = vrot.lane.b32.xlu1 %v17355_v50, %s17009_s13 }
  0x48   :  { %14657 = vmatpush3.bf16.msra.mxu0 %v17170_v15 }
  0x49   :  { %14686 = vmatprep.subr.bf16.mxu0 %v17177_v16 }
  0x4a   :  { %1037 = vrot.lane.b32.xlu0 %v17366_v53, %s17009_s13  ;;  %1021 = vrot.lane.b32.xlu1 %v17373_v54, %s17009_s13 }
  0x4b   :  { %539 = vmatmul.mubr.bf16.vlgmr.msra.gmra.mxu0 %v15237_v5  ;;  %v15254_v5 = vld [vmem:[%s21893_s1 + $0xe4] ss:$8 sps:$4 sm:$0xff]  }
  0x4c   :  { %14687 = vmatpush3.bf16.msra.mxu0 %v17184_v17  ;;  %848 = vmatprep.mubr.bf16.mxu0 %v15245_v6 }
  0x4d   :  { %14688 = vmatprep.subr.bf16.mxu0 %v17191_v18 }
  0x4e   :  { %1035 = vrot.lane.b32.xlu0 %v17383_v56, %s17009_s13  ;;  %1019 = vrot.lane.b32.xlu1 %v17391_v58, %s17009_s13 }
  0x50   :  { %14689 = vmatpush3.bf16.msra.mxu0 %v17198_v19  ;;  %v15243_v19 = vld [vmem:[%s21893_s1 + $0x80] ss:$8 sps:$4 sm:$0xff]  }
  0x51   :  { %14690 = vmatprep.subr.bf16.mxu0 %v17205_v20 }
  0x52   :  { %1033 = vrot.lane.b32.xlu0 %v17403_v60, %s17009_s13  ;;  %1017 = vrot.lane.b32.xlu1 %v17409_v61, %s17009_s13 }
  0x54   :  { %14691 = vmatpush3.bf16.msra.mxu0 %v17212_v21  ;;  %v15251_v21 = vld [vmem:[%s21893_s1 + $0xc4] ss:$8 sps:$4 sm:$0xff]  }
  0x55   :  { %14692 = vmatprep.subr.bf16.mxu0 %v17219_v22 }
  0x56   :  { %1031 = vrot.lane.b32.xlu0 %v17443_v63, %s17009_s13  ;;  %1015 = vrot.lane.b32.xlu1 %v17449_v0, %s17009_s13 }
  0x58   :  { %14693 = vmatpush3.bf16.msra.mxu0 %v17226_v23 }
  0x59   :  { %14694 = vmatprep.subr.bf16.mxu0 %v17239_v26  ;;  %v15234_v26 = vld [vmem:[%s21893_s1 + $0x50] ss:$8 sps:$4 sm:$0xff]  }
  0x5a   :  { %1029 = vrot.lane.b32.xlu0 %v17464_v1, %s17009_s13  ;;  %1013 = vrot.lane.b32.xlu1 %v17471_v2, %s17009_s13 }
  0x5c   :  { %14695 = vmatpush3.bf16.msra.mxu0 %v17246_v27 }
  0x5d   :  { %14696 = vmatprep.subr.bf16.mxu0 %v17259_v30 }
  0x5e   :  { %1027 = vrot.lane.b32.xlu0 %v17477_v3, %s17009_s13  ;;  %1011 = vrot.lane.b32.xlu1 %v17483_v4, %s17009_s13 }
  0x60   :  { %14697 = vmatpush3.bf16.msra.mxu0 %v17266_v31 }
  0x61   :  { %14698 = vmatprep.subr.bf16.mxu0 %v17271_v32 }
  0x62   :  { %1210 = vrot.lane.b32.xlu0 %v17320_v43, %s17010_s26  ;;  %1194 = vrot.lane.b32.xlu1 %v17327_v44, %s17010_s26 }
  0x64   :  { %14699 = vmatpush3.bf16.msra.mxu0 %v17279_v34 }
  0x65   :  { %14700 = vmatprep.subr.bf16.mxu0 %v17300_v39 }
  0x66   :  { %1314 = vrot.lane.b32.xlu0 %v17320_v43, %s17012_s11  ;;  %1298 = vrot.lane.b32.xlu1 %v17327_v44, %s17012_s11 }
  0x68   :  { %14701 = vmatpush3.bf16.msra.mxu0 %v17307_v40 }
  0x69   :  { %14730 = vmatprep.subr.bf16.mxu0 %v17320_v43  ;;  %v15257_v43 = vld [vmem:[%s21893_s1 + $0xf4] ss:$8 sps:$4 sm:$0xff]  }
  0x6a   :  { %1208 = vrot.lane.b32.xlu0 %v17345_v48, %s17010_s26  ;;  %1192 = vrot.lane.b32.xlu1 %v17355_v50, %s17010_s26 }
  0x6b   :  { %849 = vmatmul.mubr.bf16.vlgmr.msra.gmra.mxu0 %v15243_v19 }
  0x6c   :  { %14731 = vmatpush3.bf16.msra.mxu0 %v17327_v44  ;;  %1158 = vmatprep.mubr.bf16.mxu0 %v15251_v21 }
  0x6d   :  { %14732 = vmatprep.subr.bf16.mxu0 %v17345_v48 }
  0x6e   :  { %1312 = vrot.lane.b32.xlu0 %v17345_v48, %s17012_s11  ;;  %1296 = vrot.lane.b32.xlu1 %v17355_v50, %s17012_s11  ;;  %v15240_v48 = vld [vmem:[%s21893_s1 + $0xa0] ss:$8 sps:$4 sm:$0xff]  }
  0x70   :  { %14733 = vmatpush3.bf16.msra.mxu0 %v17355_v50  ;;  %v15248_v50 = vld [vmem:[%s21893_s1 + $0xd4] ss:$8 sps:$4 sm:$0xff]  }
  0x71   :  { %14734 = vmatprep.subr.bf16.mxu0 %v17366_v53 }
  0x72   :  { %1206 = vrot.lane.b32.xlu0 %v17366_v53, %s17010_s26  ;;  %1190 = vrot.lane.b32.xlu1 %v17373_v54, %s17010_s26 }
  0x74   :  { %v422_v7 = vpop.permute.xlu0 %421  ;;  %v420_v8 = vpop.permute.xlu1 %419  ;;  %14735 = vmatpush3.bf16.msra.mxu0 %v17373_v54 }
  0x75   :  { %14620 = vmatprep.subr.bf16.mxu1 %v422_v7  ;;  %14736 = vmatprep.subr.bf16.mxu0 %v17383_v56 }
  0x76   :  { %1310 = vrot.lane.b32.xlu0 %v17366_v53, %s17012_s11  ;;  %1294 = vrot.lane.b32.xlu1 %v17373_v54, %s17012_s11 }
  0x78   :  { %v406_v9 = vpop.permute.xlu0 %405  ;;  %v404_v10 = vpop.permute.xlu1 %403  ;;  %14737 = vmatpush3.bf16.msra.mxu0 %v17391_v58 }
  0x79   :  { %14621 = vmatpush3.bf16.msra.mxu1 %v406_v9  ;;  %14738 = vmatprep.subr.bf16.mxu0 %v17403_v60 }
  0x7a   :  { %1204 = vrot.lane.b32.xlu0 %v17383_v56, %s17010_s26  ;;  %14622 = vmatprep.subr.bf16.mxu1 %v420_v8 }
  0x7b   :  { %1188 = vrot.lane.b32.xlu1 %v17391_v58, %s17010_s26 }
  0x7c   :  { %v418_v11 = vpop.permute.xlu0 %417  ;;  %v402_v12 = vpop.permute.xlu1 %401  ;;  %14739 = vmatpush3.bf16.msra.mxu0 %v17409_v61 }
  0x7d   :  { %14623 = vmatpush3.bf16.msra.mxu1 %v404_v10  ;;  %14740 = vmatprep.subr.bf16.mxu0 %v17443_v63 }
  0x7e   :  { %1308 = vrot.lane.b32.xlu0 %v17383_v56, %s17012_s11  ;;  %14624 = vmatprep.subr.bf16.mxu1 %v418_v11 }
  0x7f   :  { %1292 = vrot.lane.b32.xlu1 %v17391_v58, %s17012_s11 }
  0x80   :  { %v416_v13 = vpop.permute.xlu0 %415  ;;  %v400_v14 = vpop.permute.xlu1 %399  ;;  %14741 = vmatpush3.bf16.msra.mxu0 %v17449_v0 }
  0x81   :  { %14625 = vmatpush3.bf16.msra.mxu1 %v402_v12  ;;  %14742 = vmatprep.subr.bf16.mxu0 %v17464_v1 }
  0x82   :  { %1202 = vrot.lane.b32.xlu0 %v17403_v60, %s17010_s26  ;;  %14626 = vmatprep.subr.bf16.mxu1 %v416_v13 }
  0x83   :  { %1186 = vrot.lane.b32.xlu1 %v17409_v61, %s17010_s26 }
  0x84   :  { %v414_v15 = vpop.permute.xlu0 %413  ;;  %v398_v16 = vpop.permute.xlu1 %397  ;;  %14743 = vmatpush3.bf16.msra.mxu0 %v17471_v2 }
  0x85   :  { %14627 = vmatpush3.bf16.msra.mxu1 %v400_v14  ;;  %14744 = vmatprep.subr.bf16.mxu0 %v17477_v3 }
  0x86   :  { %1306 = vrot.lane.b32.xlu0 %v17403_v60, %s17012_s11  ;;  %14628 = vmatprep.subr.bf16.mxu1 %v414_v15 }
  0x87   :  { %1290 = vrot.lane.b32.xlu1 %v17409_v61, %s17012_s11 }
  0x88   :  { %v412_v17 = vpop.permute.xlu0 %411  ;;  %v396_v18 = vpop.permute.xlu1 %395  ;;  %14745 = vmatpush3.bf16.msra.mxu0 %v17483_v4 }
  0x89   :  { %14629 = vmatpush3.bf16.msra.mxu1 %v398_v16 }
  0x8a   :  { %1200 = vrot.lane.b32.xlu0 %v17443_v63, %s17010_s26  ;;  %14630 = vmatprep.subr.bf16.mxu1 %v412_v17 }
  0x8b   :  { %1184 = vrot.lane.b32.xlu1 %v17449_v0, %s17010_s26  ;;  %1159 = vmatmul.mubr.bf16.vlgmr.msra.gmra.mxu0 %v15249_v41 }
  0x8c   :  { %v410_v20 = vpop.permute.xlu0 %409  ;;  %v394_v22 = vpop.permute.xlu1 %393  ;;  %1364 = vmatprep.mubr.bf16.mxu0 %v15257_v43 }
  0x8d   :  { %14631 = vmatpush3.bf16.msra.mxu1 %v396_v18 }
  0x8e   :  { %1304 = vrot.lane.b32.xlu0 %v17443_v63, %s17012_s11  ;;  %14632 = vmatprep.subr.bf16.mxu1 %v410_v20 }
  0x8f   :  { %1288 = vrot.lane.b32.xlu1 %v17449_v0, %s17012_s11 }
  0x90   :  { %v408_v23 = vpop.permute.xlu0 %407  ;;  %v392_v24 = vpop.permute.xlu1 %391 }
  0x91   :  { %14633 = vmatpush3.bf16.msra.mxu1 %v394_v22 }
  0x92   :  { %1198 = vrot.lane.b32.xlu0 %v17464_v1, %s17010_s26  ;;  %14634 = vmatprep.subr.bf16.mxu1 %v408_v23 }
  0x93   :  { %1182 = vrot.lane.b32.xlu1 %v17471_v2, %s17010_s26 }
  0x94   :  { %v732_v25 = vpop.permute.xlu0 %731  ;;  %v716_v27 = vpop.permute.xlu1 %715 }
  0x95   :  { %14635 = vmatpush3.bf16.msra.mxu1 %v392_v24 }
  0x96   :  { %1302 = vrot.lane.b32.xlu0 %v17464_v1, %s17012_s11  ;;  %14664 = vmatprep.subr.bf16.mxu1 %v732_v25 }
  0x97   :  { %1286 = vrot.lane.b32.xlu1 %v17471_v2, %s17012_s11 }
  0x98   :  { %v730_v29 = vpop.permute.xlu0 %729  ;;  %472 = vmatmul.mubr.bf16.vlgmr.msra.gmra.mxu1 %v15234_v26  ;;  %v714_v30 = vpop.permute.xlu1 %713 }
  0x99   :  { %14665 = vmatpush3.bf16.msra.mxu1 %v716_v27  ;;  %781 = vmatprep.mubr.bf16.mxu1 %v15242_v28 }
  0x9a   :  { %1196 = vrot.lane.b32.xlu0 %v17477_v3, %s17010_s26  ;;  %14666 = vmatprep.subr.bf16.mxu1 %v730_v29 }
  0x9b   :  { %1180 = vrot.lane.b32.xlu1 %v17483_v4, %s17010_s26 }
  0x9c   :  { %v728_v31 = vpop.permute.xlu0 %727  ;;  %v712_v32 = vpop.permute.xlu1 %711 }
  0x9d   :  { %14667 = vmatpush3.bf16.msra.mxu1 %v714_v30 }
  0x9e   :  { %1300 = vrot.lane.b32.xlu0 %v17477_v3, %s17012_s11  ;;  %14668 = vmatprep.subr.bf16.mxu1 %v728_v31  ;;  %v15246_v3 = vld [vmem:[%s21893_s1 + $0xd0] ss:$8 sps:$4 sm:$0xff]  }
  0x9f   :  { %1284 = vrot.lane.b32.xlu1 %v17483_v4, %s17012_s11 }
  0xa0   :  { %v726_v34 = vpop.permute.xlu0 %725  ;;  %v710_v36 = vpop.permute.xlu1 %709 }
  0xa1   :  { %14669 = vmatpush3.bf16.msra.mxu1 %v712_v32 }
  0xa2   :  { %14670 = vmatprep.subr.bf16.mxu1 %v726_v34  ;;  %1379 = vperm.xlu0 %15165, %v1375_v33   ;;  %v15252_v34 = vld [vmem:[%s21893_s1 + $0xe0] ss:$8 sps:$4 sm:$0xff]  }
  0xa3   :  { %1384 = vperm.xlu1 %15166, %v17616_v35  }
  0xa4   :  { %v724_v37 = vpop.permute.xlu0 %723  ;;  %v708_v38 = vpop.permute.xlu1 %707 }
  0xa5   :  { %14671 = vmatpush3.bf16.msra.mxu1 %v710_v36 }
  0xa6   :  { %14672 = vmatprep.subr.bf16.mxu1 %v724_v37  ;;  %866 = vperm.xlu0 %15165, %v17616_v35  }
  0xa7   :  { %861 = vperm.xlu1 %15166, %v1375_v33  }
  0xa8   :  { %v722_v39 = vpop.permute.xlu0 %721  ;;  %v706_v40 = vpop.permute.xlu1 %705 }
  0xa9   :  { %14673 = vmatpush3.bf16.msra.mxu1 %v708_v38  ;;  %v15255_v38 = vld [vmem:[%s21893_s1 + $0xf0] ss:$8 sps:$4 sm:$0xff]  }
  0xaa   :  { %14674 = vmatprep.subr.bf16.mxu1 %v722_v39  ;;  %556 = vperm.xlu0 %15165, %v17616_v35  }
  0xab   :  { %551 = vperm.xlu1 %15166, %v1375_v33  }
  0xac   :  { %v720_v42 = vpop.permute.xlu0 %719  ;;  %v704_v44 = vpop.permute.xlu1 %703 }
  0xad   :  { %14675 = vmatpush3.bf16.msra.mxu1 %v706_v40 }
  0xae   :  { %14676 = vmatprep.subr.bf16.mxu1 %v720_v42  ;;  %100 = vperm.xlu0 %15165, %v17616_v35  }
  0xaf   :  { %95 = vperm.xlu1 %15166, %v1375_v33  }
  0xb0   :  { %v718_v45 = vpop.permute.xlu0 %717  ;;  %v702_v46 = vpop.permute.xlu1 %701 }
  0xb1   :  { %14677 = vmatpush3.bf16.msra.mxu1 %v704_v44 }
  0xb2   :  { %14678 = vmatprep.subr.bf16.mxu1 %v718_v45 }
  0xb4   :  { %v1042_v47 = vpop.permute.xlu0 %1041  ;;  %v1026_v49 = vpop.permute.xlu1 %1025 }
  0xb5   :  { %14679 = vmatpush3.bf16.msra.mxu1 %v702_v46 }
  0xb6   :  { %14708 = vmatprep.subr.bf16.mxu1 %v1042_v47 }
  0xb8   :  { %v1040_v51 = vpop.permute.xlu0 %1039  ;;  %782 = vmatmul.mubr.bf16.vlgmr.msra.gmra.mxu1 %v15240_v48  ;;  %v1024_v52 = vpop.permute.xlu1 %1023 }
  0xb9   :  { %14709 = vmatpush3.bf16.msra.mxu1 %v1026_v49  ;;  %1091 = vmatprep.mubr.bf16.mxu1 %v15248_v50 }
  0xba   :  { %14710 = vmatprep.subr.bf16.mxu1 %v1040_v51 }
  0xbc   :  { %v1038_v53 = vpop.permute.xlu0 %1037  ;;  %v1022_v54 = vpop.permute.xlu1 %1021 }
  0xbd   :  { %14711 = vmatpush3.bf16.msra.mxu1 %v1024_v52 }
  0xbe   :  { %14712 = vmatprep.subr.bf16.mxu1 %v1038_v53 }
  0xc0   :  { %v1036_v55 = vpop.permute.xlu0 %1035  ;;  %v1020_v56 = vpop.permute.xlu1 %1019 }
  0xc1   :  { %14713 = vmatpush3.bf16.msra.mxu1 %v1022_v54 }
  0xc2   :  { %14714 = vmatprep.subr.bf16.mxu1 %v1036_v55 }
  0xc4   :  { %v1034_v57 = vpop.permute.xlu0 %1033  ;;  %v1018_v58 = vpop.permute.xlu1 %1017 }
  0xc5   :  { %14715 = vmatpush3.bf16.msra.mxu1 %v1020_v56 }
  0xc6   :  { %14716 = vmatprep.subr.bf16.mxu1 %v1034_v57 }
  0xc8   :  { %v1032_v59 = vpop.permute.xlu0 %1031  ;;  %v1016_v60 = vpop.permute.xlu1 %1015 }
  0xc9   :  { %14717 = vmatpush3.bf16.msra.mxu1 %v1018_v58 }
  0xca   :  { %14718 = vmatprep.subr.bf16.mxu1 %v1032_v59 }
  0xcc   :  { %v1030_v61 = vpop.permute.xlu0 %1029  ;;  %v1014_v63 = vpop.permute.xlu1 %1013 }
  0xcd   :  { %14719 = vmatpush3.bf16.msra.mxu1 %v1016_v60 }
  0xce   :  { %14720 = vmatprep.subr.bf16.mxu1 %v1030_v61 }
  0xd0   :  { %v1028_v0 = vpop.permute.xlu0 %1027  ;;  %v1012_v1 = vpop.permute.xlu1 %1011 }
  0xd1   :  { %14721 = vmatpush3.bf16.msra.mxu1 %v1014_v63 }
  0xd2   :  { %14722 = vmatprep.subr.bf16.mxu1 %v1028_v0 }
  0xd4   :  { %v1211_v2 = vpop.permute.xlu0 %1210  ;;  %v1195_v4 = vpop.permute.xlu1 %1194 }
  0xd5   :  { %14723 = vmatpush3.bf16.msra.mxu1 %v1012_v1 }
  0xd6   :  { %14752 = vmatprep.subr.bf16.mxu1 %v1211_v2 }
  0xd8   :  { %v1315_v6 = vpop.permute.xlu0 %1314  ;;  %1092 = vmatmul.mubr.bf16.vlgmr.msra.gmra.mxu1 %v15246_v3  ;;  %v1299_v7 = vpop.permute.xlu1 %1298 }
  0xd9   :  { %14753 = vmatpush3.bf16.msra.mxu1 %v1195_v4  ;;  %14774 = vmatprep.subr.bf16.mxu0 %v1315_v6 }
  0xda   :  { %14775 = vmatpush3.bf16.msra.mxu0 %v1299_v7  ;;  %1260 = vmatprep.mubr.bf16.mxu1 %v15254_v5 }
  0xdc   :  { %v1209_v8 = vpop.permute.xlu0 %1208  ;;  %v1193_v9 = vpop.permute.xlu1 %1192 }
  0xdd   :  { %14754 = vmatprep.subr.bf16.mxu1 %v1209_v8 }
  0xde   :  { %14755 = vmatpush3.bf16.msra.mxu1 %v1193_v9 }
  0xe0   :  { %v1313_v10 = vpop.permute.xlu0 %1312  ;;  %v1297_v11 = vpop.permute.xlu1 %1296 }
  0xe1   :  { %14776 = vmatprep.subr.bf16.mxu0 %v1313_v10 }
  0xe2   :  { %14777 = vmatpush3.bf16.msra.mxu0 %v1297_v11 }
  0xe4   :  { %v1207_v12 = vpop.permute.xlu0 %1206  ;;  %v1191_v13 = vpop.permute.xlu1 %1190 }
  0xe5   :  { %14756 = vmatprep.subr.bf16.mxu1 %v1207_v12 }
  0xe6   :  { %14757 = vmatpush3.bf16.msra.mxu1 %v1191_v13 }
  0xe8   :  { %v1311_v14 = vpop.permute.xlu0 %1310  ;;  %v1295_v15 = vpop.permute.xlu1 %1294 }
  0xe9   :  { %14778 = vmatprep.subr.bf16.mxu0 %v1311_v14 }
  0xea   :  { %14779 = vmatpush3.bf16.msra.mxu0 %v1295_v15 }
  0xeb   :  { %v14614_v39 = vpop.f32.mrf.mxu0 }
  0xec   :  { %v1205_v16 = vpop.permute.xlu0 %1204 }
  0xed   :  { %14758 = vmatprep.subr.bf16.mxu1 %v1205_v16  ;;  %v1189_v17 = vpop.permute.xlu1 %1188  ;;  %v14615_v40 = vpop.f32.mrf.mxu0 }
  0xee   :  { %14759 = vmatpush3.bf16.msra.mxu1 %v1189_v17  ;;  %v14616_v50 = vadd.f32 %v14615_v40, %v14614_v39  ;;  %v1758_v39 = vld [vmem:[%s21895_s4 + $0x8] sm:$0xff]  ;;  %v1760_v40 = vld [vmem:[%s21895_s4 + $0x18] sm:$0xff] }
  0xef   :  { %v14617_v43 = vpop.f32.mrf.mxu0 }
  0xf0   :  { %v1309_v18 = vpop.permute.xlu0 %1308 }
  0xf1   :  { %v1293_v19 = vpop.permute.xlu1 %1292  ;;  %14780 = vmatprep.subr.bf16.mxu0 %v1309_v18  ;;  %v14618_v46 = vpop.f32.mrf.mxu0 }
  0xf2   :  { %14781 = vmatpush3.bf16.msra.mxu0 %v1293_v19  ;;  %v14619_v49 = vadd.f32 %v14618_v46, %v14617_v43  ;;  %v15260_v43 = vld [vmem:[%s21892_s0 + $0xb8] sm:$0xff]   ;;  %v15263_v46 = vld [vmem:[%s21892_s0 + $0xa0] sm:$0xff]  }
  0xf4   :  { %v1203_v20 = vpop.permute.xlu0 %1202 }
  0xf5   :  { %14760 = vmatprep.subr.bf16.mxu1 %v1203_v20  ;;  %v1187_v21 = vpop.permute.xlu1 %1186 }
  0xf6   :  { %14761 = vmatpush3.bf16.msra.mxu1 %v1187_v21 }
  0xf8   :  { %v1307_v22 = vpop.permute.xlu0 %1306 }
  0xf9   :  { %v1291_v23 = vpop.permute.xlu1 %1290  ;;  %14782 = vmatprep.subr.bf16.mxu0 %v1307_v22 }
  0xfa   :  { %14783 = vmatpush3.bf16.msra.mxu0 %v1291_v23 }
  0xfc   :  { %v1201_v24 = vpop.permute.xlu0 %1200 }
  0xfd   :  { %14762 = vmatprep.subr.bf16.mxu1 %v1201_v24  ;;  %v1185_v25 = vpop.permute.xlu1 %1184 }
  0xfe   :  { %14763 = vmatpush3.bf16.msra.mxu1 %v1185_v25 }
 0x100   :  { %v1305_v26 = vpop.permute.xlu0 %1304 }
 0x101   :  { %v1289_v27 = vpop.permute.xlu1 %1288  ;;  %14784 = vmatprep.subr.bf16.mxu0 %v1305_v26 }
 0x102   :  { %14785 = vmatpush3.bf16.msra.mxu0 %v1289_v27 }
 0x104   :  { %v1199_v28 = vpop.permute.xlu0 %1198 }
 0x105   :  { %14764 = vmatprep.subr.bf16.mxu1 %v1199_v28  ;;  %v1183_v29 = vpop.permute.xlu1 %1182 }
 0x106   :  { %14765 = vmatpush3.bf16.msra.mxu1 %v1183_v29 }
 0x108   :  { %v1303_v30 = vpop.permute.xlu0 %1302 }
 0x109   :  { %v1287_v31 = vpop.permute.xlu1 %1286  ;;  %14786 = vmatprep.subr.bf16.mxu0 %v1303_v30 }
 0x10a   :  { %14787 = vmatpush3.bf16.msra.mxu0 %v1287_v31 }
 0x10b   :  { %v14658_v59 = vpop.f32.mrf.mxu0 }
 0x10c   :  { %v1197_v32 = vpop.permute.xlu0 %1196 }
 0x10d   :  { %14766 = vmatprep.subr.bf16.mxu1 %v1197_v32  ;;  %v1181_v33 = vpop.permute.xlu1 %1180  ;;  %v14659_v60 = vpop.f32.mrf.mxu0 }
 0x10e   :  { %14767 = vmatpush3.bf16.msra.mxu1 %v1181_v33  ;;  %v14660_v0 = vadd.f32 %v14659_v60, %v14658_v59 }
 0x10f   :  { %v14661_v61 = vpop.f32.mrf.mxu0 }
 0x110   :  { %v1301_v36 = vpop.permute.xlu0 %1300 }
 0x111   :  { %1261 = vmatmul.mubr.bf16.vlgmr.msra.gmra.mxu1 %v15252_v34  ;;  %v1285_v37 = vpop.permute.xlu1 %1284  ;;  %14788 = vmatprep.subr.bf16.mxu0 %v1301_v36  ;;  %v14662_v2 = vpop.f32.mrf.mxu0 }
 0x112   :  { %14789 = vmatpush3.bf16.msra.mxu0 %v1285_v37  ;;  %v14663_v6 = vadd.f32 %v14662_v2, %v14661_v61 }
 0x115   :  { %1365 = vmatmul.mubr.bf16.vlgmr.msra.gmra.mxu0 %v15255_v38 }
 0x116   :  { %1962 = vmatprep.mubr.bf16.mxu0 %v17011_v62 }
 0x11d   :  { %v17653_v41 = vpop.permute.xlu0 %1379 }
 0x11e   :  { %v17655_v42 = vpop.permute.xlu1 %1384 }
 0x121   :  { %v867_v44 = vpop.permute.xlu0 %866 }
 0x122   :  { %v862_v45 = vpop.permute.xlu1 %861 }
 0x125   :  { %v557_v47 = vpop.permute.xlu0 %556 }
 0x126   :  { %v552_v48 = vpop.permute.xlu1 %551 }
 0x129   :  { %v101_v51 = vpop.permute.xlu0 %100 }
 0x12a   :  { %v247_v52 = vadd.f32 %v14619_v49, %v101_v51  ;;  %v96_v53 = vpop.permute.xlu1 %95 }
 0x12b   :  { %v244_v54 = vadd.f32 %v14616_v50, %v96_v53  ;;  %v14702_v16 = vpop.f32.mrf.mxu0  ;;  %v15266_v50 = vld [vmem:[%s21892_s0 + $0x88] sm:$0xff]   ;;  %v15267_v53 = vld [vmem:[%s21892_s0 + $0x80] sm:$0xff]  }
 0x12c   :  { %v251_v55 = vmax.f32 %v247_v52, 0.0 }
 0x12d   :  { %v250_v56 = vmax.f32 %v244_v54, 0.0  ;;  %v14703_v17 = vpop.f32.mrf.mxu0 }
 0x12e   :  { %v14575_v57 = vpack.c.bf16 %v251_v55, %v251_v55  ;;  %v14704_v20 = vadd.f32 %v14703_v17, %v14702_v16  ;;  %v15271_v17 = vld [vmem:[%s21892_s0 + $0xa0] sm:$0xff]  }
 0x12f   :  { %v14574_v58 = vpack.c.bf16 %v250_v56, %v250_v56  ;;  %v14705_v18 = vpop.f32.mrf.mxu0  ;;  %v15268_v56 = vld [vmem:[%s21892_s0 + $0xb8] sm:$0xff]  }
 0x130   :  { %262 = vst.msk [vmem:[#allocation2 + $0x4] sm:$0xf] %vm260_vm0, %v14575_v57 }
 0x131   :  { %261 = vst.msk [vmem:[#allocation2] sm:$0xf] %vm260_vm0, %v14574_v58  ;;  %v14706_v22 = vpop.f32.mrf.mxu0 }
 0x132   :  { %v14707_v26 = vadd.f32 %v14706_v22, %v14705_v18 }
 0x138   :  { %v17667_v38 = vld [vmem:[#allocation2] sm:$0xff]  }
 0x14b   :  { %v14746_v51 = vpop.f32.mrf.mxu0 }
 0x14d   :  { %v14747_v54 = vpop.f32.mrf.mxu0 }
 0x14e   :  { %v14748_v61 = vadd.f32 %v14747_v54, %v14746_v51  ;;  %v15289_v51 = vld [vmem:[%s21892_s0 + $0xe0] sm:$0xff]   ;;  %v15292_v54 = vld [vmem:[%s21892_s0 + $0xc8] sm:$0xff]  }
 0x14f   :  { %v14749_v57 = vpop.f32.mrf.mxu0 }
 0x158   :  { %v14636_v63 = vpop.f32.mrf.mxu1 }
 0x15a   :  { %v14637_v1 = vpop.f32.mrf.mxu1 }
 0x15b   :  { %v14638_v3 = vadd.f32 %v14637_v1, %v14636_v63  ;;  %v15269_v63 = vld [vmem:[%s21892_s0 + $0xb0] sm:$0xff]  }
 0x15c   :  { %v14639_v4 = vpop.f32.mrf.mxu1 }
 0x15d   :  { %v541_v5 = vadd.f32 %v14660_v0, %v14638_v3  ;;  %v14750_v0 = vpop.f32.mrf.mxu0 }
 0x15e   :  { %v14640_v7 = vpop.f32.mrf.mxu1 }
 0x15f   :  { %v559_v8 = vadd.f32 %v552_v48, %v541_v5  ;;  %v14641_v9 = vadd.f32 %v14640_v7, %v14639_v4  ;;  %v15265_v48 = vld [vmem:[%s21892_s0 + $0x90] sm:$0xff]   ;;  %v14751_v7 = vadd.f32 %v14750_v0, %v14749_v57  ;;  %v15301_v0 = vld [vmem:[%s21892_s0 + $0xc0] sm:$0xff]  }
 0x160   :  { %v15295_v57 = vld [vmem:[%s21892_s0 + $0xf0] sm:$0xff]  }
 0x161   :  { %v561_v10 = vmax.f32 %v559_v8, 0.0  ;;  %v544_v11 = vadd.f32 %v14663_v6, %v14641_v9  ;;  %v15270_v8 = vld [vmem:[%s21892_s0 + $0xa8] sm:$0xff]  }
 0x163   :  { %v14576_v12 = vpack.c.bf16 %v561_v10, %v561_v10  ;;  %v560_v13 = vadd.f32 %v557_v47, %v544_v11  ;;  %v15264_v47 = vld [vmem:[%s21892_s0 + $0x98] sm:$0xff]  }
 0x165   :  { %571 = vst.msk [vmem:[#allocation2 + $0x8] sm:$0xf] %vm260_vm0, %v14576_v12  ;;  %v562_v14 = vmax.f32 %v560_v13, 0.0 }
 0x167   :  { %v14577_v15 = vpack.c.bf16 %v562_v14, %v562_v14 }
 0x169   :  { %572 = vst.msk [vmem:[#allocation2 + $0xc] sm:$0xf] %vm260_vm0, %v14577_v15 }
 0x178   :  { %v14680_v19 = vpop.f32.mrf.mxu1 }
 0x17a   :  { %v14681_v21 = vpop.f32.mrf.mxu1 }
 0x17b   :  { %v14682_v23 = vadd.f32 %v14681_v21, %v14680_v19 }
 0x17c   :  { %v14683_v24 = vpop.f32.mrf.mxu1 }
 0x17d   :  { %v851_v25 = vadd.f32 %v14704_v20, %v14682_v23 }
 0x17e   :  { %v14684_v27 = vpop.f32.mrf.mxu1 }
 0x17f   :  { %v869_v28 = vadd.f32 %v862_v45, %v851_v25  ;;  %v14685_v29 = vadd.f32 %v14684_v27, %v14683_v24  ;;  %v15262_v45 = vld [vmem:[%s21892_s0 + $0xa8] sm:$0xff]   ;;  %v15272_v24 = vld [vmem:[%s21892_s0 + $0x98] sm:$0xff]  }
 0x181   :  { %v871_v30 = vmax.f32 %v869_v28, 0.0  ;;  %v854_v31 = vadd.f32 %v14707_v26, %v14685_v29  ;;  %v15274_v29 = vld [vmem:[%s21892_s0 + $0x88] sm:$0xff]  }
 0x183   :  { %v14578_v32 = vpack.c.bf16 %v871_v30, %v871_v30  ;;  %v870_v33 = vadd.f32 %v867_v44, %v854_v31  ;;  %v15261_v44 = vld [vmem:[%s21892_s0 + $0xb0] sm:$0xff]   ;;  %v15277_v31 = vld [vmem:[%s21892_s0 + $0xb8] sm:$0xff]  }
 0x185   :  { %881 = vst.msk [vmem:[#allocation2 + $0x10] sm:$0xf] %vm260_vm0, %v14578_v32  ;;  %v872_v34 = vmax.f32 %v870_v33, 0.0  ;;  %v17760_v32 = vld [vmem:[#allocation2 + $0x8] sm:$0xff]   ;;  %v15310_v33 = vld [vmem:[%s21896_s3 + $0x10] sm:$0xff]  }
 0x186   :  { %15072 = vmatprep.mubr.msk.bf16.mxu1 %vm1460_vm1, %v15310_v33  ;;  %v15332_v33 = vld [vmem:[%s21897_s5 + $0x54] ss:$8 sps:$4 sm:$0xff]  }
 0x187   :  { %v14579_v36 = vpack.c.bf16 %v872_v34, %v872_v34  ;;  %v15279_v34 = vld [vmem:[%s21892_s0 + $0xb0] sm:$0xff]  }
 0x189   :  { %882 = vst.msk [vmem:[#allocation2 + $0x14] sm:$0xf] %vm260_vm0, %v14579_v36  ;;  %v15280_v36 = vld [vmem:[%s21892_s0 + $0xa8] sm:$0xff]  }
 0x190   :  { %v17663_v37 = vld [vmem:[#allocation2 + $0x10] sm:$0xff]  }
 0x191   :  { %1452 = vrot.lane.b32.xlu0 %v17663_v37, %s17009_s13 }
 0x195   :  { %1448 = vrot.lane.b32.xlu0 %v17667_v38, %s17009_s13 }
 0x198   :  { %v14724_v49 = vpop.f32.mrf.mxu1 }
 0x199   :  { %1604 = vrot.lane.b32.xlu0 %v17663_v37, %s17010_s26 }
 0x19a   :  { %v14725_v52 = vpop.f32.mrf.mxu1 }
 0x19b   :  { %v14726_v60 = vadd.f32 %v14725_v52, %v14724_v49  ;;  %v15287_v49 = vld [vmem:[%s21892_s0 + $0xf0] sm:$0xff]   ;;  %v15290_v52 = vld [vmem:[%s21892_s0 + $0xd8] sm:$0xff]  }
 0x19c   :  { %v14727_v55 = vpop.f32.mrf.mxu1 }
 0x19d   :  { %1600 = vrot.lane.b32.xlu0 %v17667_v38, %s17010_s26  ;;  %v1161_v5 = vadd.f32 %v14748_v61, %v14726_v60  ;;  %v15298_v60 = vld [vmem:[%s21892_s0 + $0xd8] sm:$0xff]   ;;  %v15299_v61 = vld [vmem:[%s21892_s0 + $0xd0] sm:$0xff]  }
 0x19e   :  { %v14728_v58 = vpop.f32.mrf.mxu1 }
 0x19f   :  { %v14729_v6 = vadd.f32 %v14728_v58, %v14727_v55  ;;  %v15293_v55 = vld [vmem:[%s21892_s0 + $0xc0] sm:$0xff]   ;;  %v15296_v58 = vld [vmem:[%s21892_s0 + $0xe8] sm:$0xff]  }
 0x1a1   :  { %1690 = vrot.lane.b32.xlu0 %v17663_v37, %s17012_s11  ;;  %v1164_v15 = vadd.f32 %v14751_v7, %v14729_v6  ;;  %v15306_v7 = vld [vmem:[%s21892_s0 + $0xd8] sm:$0xff]  }
 0x1a5   :  { %1686 = vrot.lane.b32.xlu0 %v17667_v38, %s17012_s11 }
 0x1a9   :  { %1768 = vperm.xlu0 %15165, %v1758_v39   ;;  %v15281_v39 = vld [vmem:[%s21892_s0 + $0xa0] sm:$0xff]  }
 0x1ad   :  { %1778 = vperm.xlu0 %15165, %v1760_v40   ;;  %v15282_v40 = vld [vmem:[%s21892_s0 + $0x98] sm:$0xff]  }
 0x1b1   :  { %6811 = vrot.lane.b32.xlu0 %v15260_v43, %s17009_s13  ;;  %v15283_v43 = vld [vmem:[%s21892_s0 + $0x90] sm:$0xff]  }
 0x1b5   :  { %6809 = vrot.lane.b32.xlu0 %v15261_v44, %s17009_s13  ;;  %v1757_v44 = vld [vmem:[%s21895_s4] sm:$0xff] }
 0x1b9   :  { %6807 = vrot.lane.b32.xlu0 %v15262_v45, %s17009_s13  ;;  %v15284_v45 = vld [vmem:[%s21892_s0 + $0x88] sm:$0xff]  }
 0x1bd   :  { %6805 = vrot.lane.b32.xlu0 %v15263_v46, %s17009_s13  ;;  %v1759_v46 = vld [vmem:[%s21895_s4 + $0x10] sm:$0xff] }
 0x1c1   :  { %6803 = vrot.lane.b32.xlu0 %v15264_v47, %s17009_s13  ;;  %v15285_v47 = vld [vmem:[%s21892_s0 + $0x80] sm:$0xff]  }
 0x1c5   :  { %6801 = vrot.lane.b32.xlu0 %v15265_v48, %s17009_s13  ;;  %v15286_v48 = vld [vmem:[%s21892_s0 + $0xf8] sm:$0xff]  }
 0x1c9   :  { %6799 = vrot.lane.b32.xlu0 %v15266_v50, %s17009_s13  ;;  %v15288_v50 = vld [vmem:[%s21892_s0 + $0xe8] sm:$0xff]  }
 0x1cd   :  { %6797 = vrot.lane.b32.xlu0 %v15267_v53, %s17009_s13  ;;  %v15291_v53 = vld [vmem:[%s21892_s0 + $0xd0] sm:$0xff]  }
 0x1d1   :  { %v14768_v59 = vpop.f32.mrf.mxu1  ;;  %7119 = vrot.lane.b32.xlu0 %v15268_v56, %s17010_s26  ;;  %v15294_v56 = vld [vmem:[%s21892_s0 + $0xf8] sm:$0xff]  }
 0x1d3   :  { %v14769_v1 = vpop.f32.mrf.mxu1 }
 0x1d4   :  { %v14770_v2 = vadd.f32 %v14769_v1, %v14768_v59  ;;  %v15297_v59 = vld [vmem:[%s21892_s0 + $0xe0] sm:$0xff]   ;;  %v15302_v1 = vld [vmem:[%s21892_s0 + $0xf8] sm:$0xff]  }
 0x1d5   :  { %v14771_v3 = vpop.f32.mrf.mxu1  ;;  %v14790_v4 = vpop.f32.mrf.mxu0  ;;  %7117 = vrot.lane.b32.xlu0 %v15269_v63, %s17010_s26  ;;  %v15300_v63 = vld [vmem:[%s21892_s0 + $0xc8] sm:$0xff]  }
 0x1d6   :  { %v1269_v11 = vadd.f32 %v14770_v2, %v1161_v5  ;;  %v15303_v2 = vld [vmem:[%s21892_s0 + $0xf0] sm:$0xff]   ;;  %v15305_v5 = vld [vmem:[%s21892_s0 + $0xe0] sm:$0xff]  }
 0x1d7   :  { %v14772_v9 = vpop.f32.mrf.mxu1  ;;  %v14791_v10 = vpop.f32.mrf.mxu0 }
 0x1d8   :  { %v14773_v12 = vadd.f32 %v14772_v9, %v14771_v3  ;;  %v14792_v13 = vadd.f32 %v14791_v10, %v14790_v4  ;;  %v15304_v4 = vld [vmem:[%s21892_s0 + $0xe8] sm:$0xff]   ;;  %v17918_v9 = vld [vmem:[%s21892_s0 + $0xd0] sm:$0xff]  }
 0x1d9   :  { %v14793_v14 = vpop.f32.mrf.mxu0  ;;  %7115 = vrot.lane.b32.xlu0 %v15270_v8, %s17010_s26 }
 0x1da   :  { %v1373_v16 = vadd.f32 %v14792_v13, %v1269_v11  ;;  %v1270_v19 = vadd.f32 %v14773_v12, %v1164_v15  ;;  %v17925_v11 = vld [vmem:[%s21892_s0 + $0xc8] sm:$0xff]   ;;  %v17932_v12 = vld [vmem:[%s21892_s0 + $0xc0] sm:$0xff]   ;;  %v15311_v13 = vld [vmem:[%s21896_s3 + $0x18] sm:$0xff]  }
 0x1db   :  { %v14794_v18 = vpop.f32.mrf.mxu0  ;;  %v15313_v15 = vld [vmem:[%s21896_s3 + $0x8] sm:$0xff]  }
 0x1dc   :  { %v1387_v20 = vadd.f32 %v17653_v41, %v1373_v16  ;;  %v14795_v21 = vadd.f32 %v14794_v18, %v14793_v14  ;;  %v15273_v41 = vld [vmem:[%s21892_s0 + $0x90] sm:$0xff]   ;;  %v15312_v14 = vld [vmem:[%s21896_s3] sm:$0xff]  }
 0x1dd   :  { %7113 = vrot.lane.b32.xlu0 %v15271_v17, %s17010_s26 }
 0x1de   :  { %v1389_v22 = vmax.f32 %v1387_v20, 0.0  ;;  %v1374_v23 = vadd.f32 %v14795_v21, %v1270_v19  ;;  %v15316_v20 = vld [vmem:[%s21896_s3 + $0x30] sm:$0xff]  }
 0x1e0   :  { %v14580_v25 = vpack.c.bf16 %v1389_v22, %v1389_v22  ;;  %v1388_v26 = vadd.f32 %v17655_v42, %v1374_v23  ;;  %v15275_v42 = vld [vmem:[%s21892_s0 + $0x80] sm:$0xff]  }
 0x1e1   :  { %7111 = vrot.lane.b32.xlu0 %v15272_v24, %s17010_s26  ;;  %v15317_v24 = vld [vmem:[%s21896_s3 + $0x38] sm:$0xff]  }
 0x1e2   :  { %1399 = vst.msk [vmem:[#allocation2 + $0x18] sm:$0xf] %vm260_vm0, %v14580_v25  ;;  %v1390_v27 = vmax.f32 %v1388_v26, 0.0  ;;  %v7775_v25 = vld [vmem:[%s21894_s2] sm:$0xff]  ;;  %v15320_v26 = vld [vmem:[%s21897_s5 + $0x74] ss:$8 sps:$4 sm:$0xff]  }
 0x1e4   :  { %v14581_v28 = vpack.c.bf16 %v1390_v27, %v1390_v27  ;;  %v15318_v27 = vld [vmem:[%s21897_s5 + $0x70] ss:$8 sps:$4 sm:$0xff]  }
 0x1e5   :  { %7109 = vrot.lane.b32.xlu0 %v15273_v41, %s17010_s26  ;;  %v15323_v41 = vld [vmem:[%s21897_s5 + $0xf4] ss:$8 sps:$4 sm:$0xff]  }
 0x1e6   :  { %1400 = vst.msk [vmem:[#allocation2 + $0x1c] sm:$0xf] %vm260_vm0, %v14581_v28  ;;  %v15326_v28 = vld [vmem:[%s21897_s5 + $0x64] ss:$8 sps:$4 sm:$0xff]   ;;  %1930 = vmatprep.subr.bf16.mxu0 %v15323_v41 }
 0x1e9   :  { %7107 = vrot.lane.b32.xlu0 %v15274_v29, %s17010_s26  ;;  %v15321_v29 = vld [vmem:[%s21897_s5 + $0xf0] ss:$8 sps:$4 sm:$0xff]  }
 0x1ea   :  { %1931 = vmatpush1.bf16.msra.mxu0 %v15321_v29 }
 0x1ed   :  { %v17752_v30 = vld [vmem:[#allocation2 + $0x18] sm:$0xff]   ;;  %7105 = vrot.lane.b32.xlu0 %v15275_v42, %s17010_s26  ;;  %v15324_v42 = vld [vmem:[%s21897_s5 + $0x60] ss:$8 sps:$4 sm:$0xff]  }
 0x1ee   :  { %1454 = vrot.lane.b32.xlu1 %v17752_v30, %s17009_s13 }
 0x1f1   :  { %7427 = vrot.lane.b32.xlu0 %v15277_v31, %s17009_s13 }
 0x1f2   :  { %1450 = vrot.lane.b32.xlu1 %v17760_v32, %s17009_s13 }
 0x1f5   :  { %7425 = vrot.lane.b32.xlu0 %v15279_v34, %s17009_s13 }
 0x1f6   :  { %1606 = vrot.lane.b32.xlu1 %v17752_v30, %s17010_s26 }
 0x1f9   :  { %7423 = vrot.lane.b32.xlu0 %v15280_v36, %s17009_s13 }
 0x1fa   :  { %1602 = vrot.lane.b32.xlu1 %v17760_v32, %s17010_s26 }
 0x1fd   :  { %7421 = vrot.lane.b32.xlu0 %v15281_v39, %s17009_s13 }
 0x1fe   :  { %1692 = vrot.lane.b32.xlu1 %v17752_v30, %s17012_s11 }
 0x201   :  { %7419 = vrot.lane.b32.xlu0 %v15282_v40, %s17009_s13 }
 0x202   :  { %1688 = vrot.lane.b32.xlu1 %v17760_v32, %s17012_s11 }
 0x203   :  { %v1453_v3 = vpop.permute.xlu0 %1452 }
 0x205   :  { %7417 = vrot.lane.b32.xlu0 %v15283_v43, %s17009_s13 }
 0x206   :  { %1763 = vperm.xlu1 %15166, %v1757_v44   ;;  %v15344_v44 = vld [vmem:[%s21897_s5 + $0x34] ss:$8 sps:$4 sm:$0xff]  }
 0x207   :  { %v1449_v6 = vpop.permute.xlu0 %1448 }
 0x209   :  { %7415 = vrot.lane.b32.xlu0 %v15284_v45, %s17009_s13 }
 0x20a   :  { %1773 = vperm.xlu1 %15166, %v1759_v46   ;;  %v15342_v46 = vld [vmem:[%s21897_s5 + $0x30] ss:$8 sps:$4 sm:$0xff]  }
 0x20b   :  { %v1605_v8 = vpop.permute.xlu0 %1604 }
 0x20d   :  { %7413 = vrot.lane.b32.xlu0 %v15285_v47, %s17009_s13 }
 0x20e   :  { %6827 = vrot.lane.b32.xlu1 %v15286_v48, %s17009_s13  ;;  %v15350_v48 = vld [vmem:[%s21897_s5 + $0x24] ss:$8 sps:$4 sm:$0xff]  }
 0x20f   :  { %v1601_v18 = vpop.permute.xlu0 %1600 }
 0x211   :  { %7595 = vrot.lane.b32.xlu0 %v15277_v31, %s17010_s26 }
 0x212   :  { %6825 = vrot.lane.b32.xlu1 %v15287_v49, %s17009_s13  ;;  %v15345_v49 = vld [vmem:[%s21897_s5 + $0xb0] ss:$8 sps:$4 sm:$0xff]  }
 0x213   :  { %v1691_v21 = vpop.permute.xlu0 %1690 }
 0x215   :  { %7698 = vrot.lane.b32.xlu0 %v15277_v31, %s17012_s11  ;;  %v15329_v31 = vld [vmem:[%s21897_s5 + $0xe4] ss:$8 sps:$4 sm:$0xff]  }
 0x216   :  { %6823 = vrot.lane.b32.xlu1 %v15288_v50, %s17009_s13  ;;  %1932 = vmatprep.subr.bf16.mxu0 %v15329_v31  ;;  %v15348_v50 = vld [vmem:[%s21897_s5 + $0x20] ss:$8 sps:$4 sm:$0xff]  }
 0x217   :  { %v1687_v23 = vpop.permute.xlu0 %1686 }
 0x219   :  { %7593 = vrot.lane.b32.xlu0 %v15279_v34, %s17010_s26 }
 0x21a   :  { %6821 = vrot.lane.b32.xlu1 %v15289_v51, %s17009_s13  ;;  %v15353_v51 = vld [vmem:[%s21897_s5 + $0xa4] ss:$8 sps:$4 sm:$0xff]  }
 0x21d   :  { %7696 = vrot.lane.b32.xlu0 %v15279_v34, %s17012_s11  ;;  %v15335_v34 = vld [vmem:[%s21897_s5 + $0xd4] ss:$8 sps:$4 sm:$0xff]  }
 0x21e   :  { %6819 = vrot.lane.b32.xlu1 %v15290_v52, %s17009_s13  ;;  %v15356_v52 = vld [vmem:[%s21897_s5 + $0x14] ss:$8 sps:$4 sm:$0xff]  }
 0x221   :  { %7591 = vrot.lane.b32.xlu0 %v15280_v36, %s17010_s26 }
 0x222   :  { %6817 = vrot.lane.b32.xlu1 %v15291_v53, %s17009_s13  ;;  %v15351_v53 = vld [vmem:[%s21897_s5 + $0xa0] ss:$8 sps:$4 sm:$0xff]  }
 0x225   :  { %7694 = vrot.lane.b32.xlu0 %v15280_v36, %s17012_s11  ;;  %v15333_v36 = vld [vmem:[%s21897_s5 + $0xd0] ss:$8 sps:$4 sm:$0xff]  }
 0x226   :  { %6815 = vrot.lane.b32.xlu1 %v15292_v54, %s17009_s13  ;;  %v15354_v54 = vld [vmem:[%s21897_s5 + $0x10] ss:$8 sps:$4 sm:$0xff]  }
 0x229   :  { %7589 = vrot.lane.b32.xlu0 %v15281_v39, %s17010_s26 }
 0x22a   :  { %6813 = vrot.lane.b32.xlu1 %v15293_v55, %s17009_s13  ;;  %v15359_v55 = vld [vmem:[%s21897_s5 + $0x94] ss:$8 sps:$4 sm:$0xff]  }
 0x22d   :  { %7692 = vrot.lane.b32.xlu0 %v15281_v39, %s17012_s11  ;;  %v15336_v39 = vld [vmem:[%s21897_s5 + $0x40] ss:$8 sps:$4 sm:$0xff]  }
 0x22e   :  { %7135 = vrot.lane.b32.xlu1 %v15294_v56, %s17010_s26  ;;  %v15362_v56 = vld [vmem:[%s21897_s5 + $0x4] ss:$8 sps:$4 sm:$0xff]  }
 0x231   :  { %7587 = vrot.lane.b32.xlu0 %v15282_v40, %s17010_s26 }
 0x232   :  { %7133 = vrot.lane.b32.xlu1 %v15295_v57, %s17010_s26  ;;  %v15357_v57 = vld [vmem:[%s21897_s5 + $0x90] ss:$8 sps:$4 sm:$0xff]  }
 0x235   :  { %7690 = vrot.lane.b32.xlu0 %v15282_v40, %s17012_s11  ;;  %v15338_v40 = vld [vmem:[%s21897_s5 + $0x44] ss:$8 sps:$4 sm:$0xff]  }
 0x236   :  { %7131 = vrot.lane.b32.xlu1 %v15296_v58, %s17010_s26  ;;  %v15360_v58 = vld [vmem:[%s21897_s5] ss:$8 sps:$4 sm:$0xff]  }
 0x239   :  { %7585 = vrot.lane.b32.xlu0 %v15283_v43, %s17010_s26 }
 0x23a   :  { %7129 = vrot.lane.b32.xlu1 %v15297_v59, %s17010_s26  ;;  %v15363_v59 = vld [vmem:[%s21897_s5 + $0x80] ss:$8 sps:$4 sm:$0xff]  }
 0x23d   :  { %7688 = vrot.lane.b32.xlu0 %v15283_v43, %s17012_s11  ;;  %v15341_v43 = vld [vmem:[%s21897_s5 + $0xc4] ss:$8 sps:$4 sm:$0xff]  }
 0x23e   :  { %7127 = vrot.lane.b32.xlu1 %v15298_v60, %s17010_s26  ;;  %v15365_v60 = vld [vmem:[%s21897_s5 + $0x84] ss:$8 sps:$4 sm:$0xff]  }
 0x241   :  { %7583 = vrot.lane.b32.xlu0 %v15284_v45, %s17010_s26 }
 0x242   :  { %7125 = vrot.lane.b32.xlu1 %v15299_v61, %s17010_s26  ;;  %v15368_v61 = vld [vmem:[%s21897_s5 + $0x1f4] ss:$8 sps:$4 sm:$0xff]  }
 0x245   :  { %7686 = vrot.lane.b32.xlu0 %v15284_v45, %s17012_s11  ;;  %v15339_v45 = vld [vmem:[%s21897_s5 + $0xc0] ss:$8 sps:$4 sm:$0xff]  }
 0x246   :  { %7123 = vrot.lane.b32.xlu1 %v15300_v63, %s17010_s26  ;;  %v15372_v63 = vld [vmem:[%s21897_s5 + $0x174] ss:$8 sps:$4 sm:$0xff]  }
 0x249   :  { %7581 = vrot.lane.b32.xlu0 %v15285_v47, %s17010_s26 }
 0x24a   :  { %7121 = vrot.lane.b32.xlu1 %v15301_v0, %s17010_s26 }
 0x24d   :  { %7684 = vrot.lane.b32.xlu0 %v15285_v47, %s17012_s11  ;;  %v15347_v47 = vld [vmem:[%s21897_s5 + $0xb4] ss:$8 sps:$4 sm:$0xff]  }
 0x24e   :  { %7443 = vrot.lane.b32.xlu1 %v15302_v1, %s17009_s13 }
 0x251   :  { %7784 = vperm.xlu0 %15165, %v17616_v35  }
 0x252   :  { %7441 = vrot.lane.b32.xlu1 %v15303_v2, %s17009_s13 }
 0x255   :  { %7270 = vperm.xlu0 %15165, %v17616_v35  }
 0x256   :  { %7439 = vrot.lane.b32.xlu1 %v15304_v4, %s17009_s13 }
 0x259   :  { %6962 = vperm.xlu0 %15165, %v17616_v35  }
 0x25a   :  { %7437 = vrot.lane.b32.xlu1 %v15305_v5, %s17009_s13 }
 0x25d   :  { %6508 = vperm.xlu0 %15165, %v17616_v35  }
 0x25e   :  { %7435 = vrot.lane.b32.xlu1 %v15306_v7, %s17009_s13 }
 0x260   :  { %v1455_v10 = vpop.permute.xlu1 %1454 }
 0x261   :  { %15064 = vmatprep.subr.bf16.mxu1 %v1455_v10 }
 0x262   :  { %15065 = vmatpush3.bf16.msra.mxu1 %v1455_v10  ;;  %7433 = vrot.lane.b32.xlu1 %v17918_v9, %s17009_s13 }
 0x263   :  { %15066 = vmatprep.subr.bf16.mxu1 %v1453_v3 }
 0x264   :  { %v1451_v35 = vpop.permute.xlu1 %1450 }
 0x266   :  { %15067 = vmatpush3.bf16.msra.mxu1 %v1453_v3  ;;  %7431 = vrot.lane.b32.xlu1 %v17925_v11, %s17009_s13 }
 0x267   :  { %15068 = vmatprep.subr.bf16.mxu1 %v1451_v35 }
 0x268   :  { %v1607_v16 = vpop.permute.xlu1 %1606 }
 0x26a   :  { %7429 = vrot.lane.b32.xlu1 %v17932_v12, %s17009_s13  ;;  %15069 = vmatpush3.bf16.msra.mxu1 %v1451_v35 }
 0x26b   :  { %15070 = vmatprep.subr.bf16.mxu1 %v1449_v6 }
 0x26c   :  { %v1603_v17 = vpop.permute.xlu1 %1602 }
 0x26e   :  { %7611 = vrot.lane.b32.xlu1 %v15302_v1, %s17010_s26  ;;  %15071 = vmatpush3.bf16.msra.mxu1 %v1449_v6 }
 0x26f   :  { %15076 = vmatprep.subr.bf16.mxu1 %v17752_v30 }
 0x270   :  { %v1693_v19 = vpop.permute.xlu1 %1692 }
 0x271   :  { %15073 = vmatmul.mubr.msk.bf16.vlgmr.msra.gmra.mxu1 %vm1460_vm1, %v15311_v13 }
 0x272   :  { %7714 = vrot.lane.b32.xlu1 %v15302_v1, %s17012_s11  ;;  %15077 = vmatpush3.bf16.msra.mxu1 %v17752_v30  ;;  %v15327_v30 = vld [vmem:[%s21897_s5 + $0xe0] ss:$8 sps:$4 sm:$0xff]  }
 0x273   :  { %15078 = vmatprep.subr.bf16.mxu1 %v17663_v37  ;;  %15084 = vmatprep.mubr.msk.bf16.mxu1 %vm1460_vm1, %v15312_v14 }
 0x274   :  { %v1689_v22 = vpop.permute.xlu1 %1688  ;;  %1933 = vmatpush1.bf16.msra.mxu0 %v15327_v30 }
 0x275   :  { %1934 = vmatprep.subr.bf16.mxu0 %v15335_v34 }
 0x276   :  { %7609 = vrot.lane.b32.xlu1 %v15303_v2, %s17010_s26  ;;  %15079 = vmatpush3.bf16.msra.mxu1 %v17663_v37  ;;  %v15314_v37 = vld [vmem:[%s21896_s3 + $0x20] sm:$0xff]  }
 0x277   :  { %15080 = vmatprep.subr.bf16.mxu1 %v17760_v32 }
 0x278   :  { %1935 = vmatpush1.bf16.msra.mxu0 %v15333_v36 }
 0x279   :  { %1936 = vmatprep.subr.bf16.mxu0 %v15341_v43 }
 0x27a   :  { %7712 = vrot.lane.b32.xlu1 %v15303_v2, %s17012_s11  ;;  %15081 = vmatpush3.bf16.msra.mxu1 %v17760_v32  ;;  %v15330_v32 = vld [vmem:[%s21897_s5 + $0x50] ss:$8 sps:$4 sm:$0xff]  }
 0x27b   :  { %15082 = vmatprep.subr.bf16.mxu1 %v17667_v38 }
 0x27c   :  { %1937 = vmatpush1.bf16.msra.mxu0 %v15339_v45  ;;  %v15375_v45 = vld [vmem:[%s21897_s5 + $0x1e4] ss:$8 sps:$4 sm:$0xff]  }
 0x27d   :  { %1938 = vmatprep.subr.bf16.mxu0 %v15347_v47 }
 0x27e   :  { %7607 = vrot.lane.b32.xlu1 %v15304_v4, %s17010_s26  ;;  %15083 = vmatpush3.bf16.msra.mxu1 %v17667_v38  ;;  %v15315_v38 = vld [vmem:[%s21896_s3 + $0x28] sm:$0xff]  }
 0x27f   :  { %15088 = vmatprep.subr.bf16.mxu1 %v1607_v16 }
 0x280   :  { %1939 = vmatpush1.bf16.msra.mxu0 %v15345_v49  ;;  %v15373_v49 = vld [vmem:[%s21897_s5 + $0x1e0] ss:$8 sps:$4 sm:$0xff]  }
 0x281   :  { %15085 = vmatmul.mubr.msk.bf16.vlgmr.msra.gmra.mxu1 %vm1460_vm1, %v15313_v15  ;;  %1940 = vmatprep.subr.bf16.mxu0 %v15353_v51  ;;  %v1769_v15 = vpop.permute.xlu0 %1768  ;;  %v15378_v51 = vld [vmem:[%s21897_s5 + $0x164] ss:$8 sps:$4 sm:$0xff]  }
 0x282   :  { %7710 = vrot.lane.b32.xlu1 %v15304_v4, %s17012_s11  ;;  %15089 = vmatpush3.bf16.msra.mxu1 %v1607_v16 }
 0x283   :  { %15090 = vmatprep.subr.bf16.mxu1 %v1605_v8  ;;  %15096 = vmatprep.mubr.msk.bf16.mxu1 %vm1460_vm1, %v15314_v37 }
 0x284   :  { %1941 = vmatpush1.bf16.msra.mxu0 %v15351_v53  ;;  %v15376_v53 = vld [vmem:[%s21897_s5 + $0x160] ss:$8 sps:$4 sm:$0xff]  }
 0x285   :  { %1942 = vmatprep.subr.bf16.mxu0 %v15359_v55  ;;  %v15384_v55 = vld [vmem:[%s21897_s5 + $0x154] ss:$8 sps:$4 sm:$0xff]  }
 0x286   :  { %7605 = vrot.lane.b32.xlu1 %v15305_v5, %s17010_s26  ;;  %15091 = vmatpush3.bf16.msra.mxu1 %v1605_v8 }
 0x287   :  { %15092 = vmatprep.subr.bf16.mxu1 %v1603_v17 }
 0x288   :  { %1943 = vmatpush1.bf16.msra.mxu0 %v15357_v57  ;;  %v15382_v57 = vld [vmem:[%s21897_s5 + $0x150] ss:$8 sps:$4 sm:$0xff]  }
 0x289   :  { %1944 = vmatprep.subr.bf16.mxu0 %v15365_v60  ;;  %v15393_v60 = vld [vmem:[%s21897_s5 + $0x1b4] ss:$8 sps:$4 sm:$0xff]  }
 0x28a   :  { %7708 = vrot.lane.b32.xlu1 %v15305_v5, %s17012_s11  ;;  %15093 = vmatpush3.bf16.msra.mxu1 %v1603_v17 }
 0x28b   :  { %15094 = vmatprep.subr.bf16.mxu1 %v1601_v18 }
 0x28c   :  { %1945 = vmatpush1.bf16.msra.mxu0 %v15363_v59  ;;  %v15390_v59 = vld [vmem:[%s21897_s5 + $0x144] ss:$8 sps:$4 sm:$0xff]  }
 0x28d   :  { %2194 = vmatprep.subr.bf16.mxu0 %v15372_v63  ;;  %v15391_v63 = vld [vmem:[%s21897_s5 + $0x1b0] ss:$8 sps:$4 sm:$0xff]  }
 0x28e   :  { %7603 = vrot.lane.b32.xlu1 %v15306_v7, %s17010_s26  ;;  %15095 = vmatpush3.bf16.msra.mxu1 %v1601_v18 }
 0x28f   :  { %15100 = vmatprep.subr.bf16.mxu1 %v1693_v19 }
 0x291   :  { %15097 = vmatmul.mubr.msk.bf16.vlgmr.msra.gmra.mxu1 %vm1460_vm1, %v15315_v38 }
 0x292   :  { %7706 = vrot.lane.b32.xlu1 %v15306_v7, %s17012_s11  ;;  %15101 = vmatpush3.bf16.msra.mxu1 %v1693_v19 }
 0x293   :  { %15102 = vmatprep.subr.bf16.mxu1 %v1691_v21  ;;  %15108 = vmatprep.mubr.msk.bf16.mxu1 %vm1460_vm1, %v15316_v20 }
 0x296   :  { %7601 = vrot.lane.b32.xlu1 %v17918_v9, %s17010_s26  ;;  %15103 = vmatpush3.bf16.msra.mxu1 %v1691_v21 }
 0x297   :  { %15104 = vmatprep.subr.bf16.mxu1 %v1689_v22 }
 0x29a   :  { %7704 = vrot.lane.b32.xlu1 %v17918_v9, %s17012_s11  ;;  %15105 = vmatpush3.bf16.msra.mxu1 %v1689_v22 }
 0x29b   :  { %15106 = vmatprep.subr.bf16.mxu1 %v1687_v23 }
 0x29e   :  { %7599 = vrot.lane.b32.xlu1 %v17925_v11, %s17010_s26  ;;  %15107 = vmatpush3.bf16.msra.mxu1 %v1687_v23 }
 0x29f   :  { %2051 = vmatprep.subr.bf16.mxu1 %v15320_v26 }
 0x2a1   :  { %15109 = vmatmul.mubr.msk.bf16.vlgmr.msra.gmra.mxu1 %vm1460_vm1, %v15317_v24 }
 0x2a2   :  { %7702 = vrot.lane.b32.xlu1 %v17925_v11, %s17012_s11  ;;  %2083 = vmatprep.mubr.bf16.mxu1 %v17011_v62  ;;  %v1764_v11 = vpop.permute.xlu1 %1763 }
 0x2a3   :  { %2052 = vmatpush1.bf16.msra.mxu1 %v15318_v27 }
 0x2a4   :  { %2053 = vmatprep.subr.bf16.mxu1 %v15326_v28  ;;  %v1779_v28 = vpop.permute.xlu0 %1778 }
 0x2a6   :  { %7597 = vrot.lane.b32.xlu1 %v17932_v12, %s17010_s26  ;;  %v1774_v38 = vpop.permute.xlu1 %1773 }
 0x2a7   :  { %2054 = vmatpush1.bf16.msra.mxu1 %v15324_v42 }
 0x2a8   :  { %2055 = vmatprep.subr.bf16.mxu1 %v15332_v33 }
 0x2aa   :  { %7700 = vrot.lane.b32.xlu1 %v17932_v12, %s17012_s11 }
 0x2ab   :  { %2056 = vmatpush1.bf16.msra.mxu1 %v15330_v32 }
 0x2ac   :  { %2057 = vmatprep.subr.bf16.mxu1 %v15338_v40 }
 0x2ae   :  { %7779 = vperm.xlu1 %15166, %v7775_v25  }
 0x2af   :  { %2058 = vmatpush1.bf16.msra.mxu1 %v15336_v39 }
 0x2b0   :  { %2059 = vmatprep.subr.bf16.mxu1 %v15344_v44  ;;  %v15366_v44 = vld [vmem:[%s21897_s5 + $0x1f0] ss:$8 sps:$4 sm:$0xff]  }
 0x2b2   :  { %7265 = vperm.xlu1 %15166, %v7775_v25  }
 0x2b3   :  { %2060 = vmatpush1.bf16.msra.mxu1 %v15342_v46 }
 0x2b4   :  { %2061 = vmatprep.subr.bf16.mxu1 %v15350_v48  ;;  %v15370_v48 = vld [vmem:[%s21897_s5 + $0x170] ss:$8 sps:$4 sm:$0xff]  }
 0x2b6   :  { %6957 = vperm.xlu1 %15166, %v7775_v25  }
 0x2b7   :  { %2062 = vmatpush1.bf16.msra.mxu1 %v15348_v50 }
 0x2b8   :  { %2063 = vmatprep.subr.bf16.mxu1 %v15356_v52  ;;  %v15381_v52 = vld [vmem:[%s21897_s5 + $0x1d4] ss:$8 sps:$4 sm:$0xff]  }
 0x2ba   :  { %6503 = vperm.xlu1 %15166, %v7775_v25  }
 0x2bb   :  { %2064 = vmatpush1.bf16.msra.mxu1 %v15354_v54  ;;  %v15379_v54 = vld [vmem:[%s21897_s5 + $0x1d0] ss:$8 sps:$4 sm:$0xff]  }
 0x2bc   :  { %2065 = vmatprep.subr.bf16.mxu1 %v15362_v56  ;;  %v15387_v56 = vld [vmem:[%s21897_s5 + $0x1c4] ss:$8 sps:$4 sm:$0xff]  }
 0x2bf   :  { %2066 = vmatpush1.bf16.msra.mxu1 %v15360_v58  ;;  %v15385_v58 = vld [vmem:[%s21897_s5 + $0x1c0] ss:$8 sps:$4 sm:$0xff]  }
 0x2c0   :  { %2338 = vmatprep.subr.bf16.mxu1 %v15368_v61  ;;  %v15388_v61 = vld [vmem:[%s21897_s5 + $0x140] ss:$8 sps:$4 sm:$0xff]  }
 0x331   :  { %v15074_v0 = vpop.f32.mrf.mxu1 }
 0x333   :  { %v1501_v1 = vpop.f32.mrf.mxu1 }
 0x335   :  { %v15075_v2 = vpop.f32.mrf.mxu1 }
 0x337   :  { %v1504_v3 = vpop.f32.mrf.mxu1 }
 0x341   :  { %v15086_v4 = vpop.f32.mrf.mxu1 }
 0x342   :  { %v1579_v35 = vadd.f32 %v15086_v4, %v15074_v0  ;;  %v15396_v0 = vld [vmem:[%s21897_s5 + $0x134] ss:$8 sps:$4 sm:$0xff]   ;;  %v15402_v4 = vld [vmem:[%s21897_s5 + $0x124] ss:$8 sps:$4 sm:$0xff]  }
 0x343   :  { %v1570_v5 = vpop.f32.mrf.mxu1 }
 0x344   :  { %v1571_v13 = vadd.f32 %v1570_v5, %v1501_v1  ;;  %v15399_v1 = vld [vmem:[%s21897_s5 + $0x1a4] ss:$8 sps:$4 sm:$0xff]   ;;  %v15405_v5 = vld [vmem:[%s21897_s5 + $0x194] ss:$8 sps:$4 sm:$0xff]  }
 0x345   :  { %v15087_v6 = vpop.f32.mrf.mxu1 }
 0x346   :  { %v1582_v37 = vadd.f32 %v15087_v6, %v15075_v2  ;;  %v15394_v2 = vld [vmem:[%s21897_s5 + $0x130] ss:$8 sps:$4 sm:$0xff]   ;;  %v15400_v6 = vld [vmem:[%s21897_s5 + $0x120] ss:$8 sps:$4 sm:$0xff]  }
 0x347   :  { %v1573_v7 = vpop.f32.mrf.mxu1 }
 0x348   :  { %v1574_v20 = vadd.f32 %v1573_v7, %v1504_v3  ;;  %v15397_v3 = vld [vmem:[%s21897_s5 + $0x1a0] ss:$8 sps:$4 sm:$0xff]   ;;  %v15403_v7 = vld [vmem:[%s21897_s5 + $0x190] ss:$8 sps:$4 sm:$0xff]  }
 0x351   :  { %v15098_v8 = vpop.f32.mrf.mxu1 }
 0x352   :  { %v1669_v14 = vadd.f32 %v15098_v8, %v1579_v35  ;;  %v15408_v8 = vld [vmem:[%s21897_s5 + $0x114] ss:$8 sps:$4 sm:$0xff]   ;;  %v15409_v35 = vld [vmem:[%s21897_s5 + $0x180] ss:$8 sps:$4 sm:$0xff]  }
 0x353   :  { %v1652_v9 = vpop.f32.mrf.mxu1 }
 0x354   :  { %v1667_v17 = vadd.f32 %v1652_v9, %v1571_v13  ;;  %v15411_v9 = vld [vmem:[%s21897_s5 + $0x184] ss:$8 sps:$4 sm:$0xff]  }
 0x355   :  { %v15099_v10 = vpop.f32.mrf.mxu1 }
 0x356   :  { %v1670_v21 = vadd.f32 %v15099_v10, %v1582_v37  ;;  %v15421_v37 = vld [vmem:[%s21897_s5 + $0x274] ss:$8 sps:$4 sm:$0xff]  }
 0x357   :  { %v1655_v12 = vpop.f32.mrf.mxu1 }
 0x358   :  { %v1668_v25 = vadd.f32 %v1655_v12, %v1574_v20  ;;  %v15414_v12 = vld [vmem:[%s21897_s5 + $0x104] ss:$8 sps:$4 sm:$0xff]  }
 0x359   :  { %v15427_v20 = vld [vmem:[%s21897_s5 + $0x264] ss:$8 sps:$4 sm:$0xff]  }
 0x361   :  { %v15110_v16 = vpop.f32.mrf.mxu1 }
 0x362   :  { %v1755_v18 = vadd.f32 %v15110_v16, %v1669_v14  ;;  %v15418_v14 = vld [vmem:[%s21897_s5 + $0x2f4] ss:$8 sps:$4 sm:$0xff]   ;;  %v15416_v16 = vld [vmem:[%s21897_s5 + $0x2f0] ss:$8 sps:$4 sm:$0xff]  }
 0x363   :  { %v1738_v19 = vpop.f32.mrf.mxu1 }
 0x364   :  { %v1783_v22 = vadd.f32 %v1774_v38, %v1755_v18  ;;  %v1753_v23 = vadd.f32 %v1738_v19, %v1667_v17  ;;  %v15424_v17 = vld [vmem:[%s21897_s5 + $0x2e4] ss:$8 sps:$4 sm:$0xff]   ;;  %v15419_v38 = vld [vmem:[%s21897_s5 + $0x270] ss:$8 sps:$4 sm:$0xff]   ;;  %v15422_v19 = vld [vmem:[%s21897_s5 + $0x2e0] ss:$8 sps:$4 sm:$0xff]  }
 0x365   :  { %v15111_v24 = vpop.f32.mrf.mxu1 }
 0x366   :  { %v1787_v26 = vmax.f32 %v1783_v22, 0.0  ;;  %v1781_v27 = vadd.f32 %v1764_v11, %v1753_v23  ;;  %v1756_v41 = vadd.f32 %v15111_v24, %v1670_v21  ;;  %v15406_v11 = vld [vmem:[%s21897_s5 + $0x110] ss:$8 sps:$4 sm:$0xff]   ;;  %v15430_v21 = vld [vmem:[%s21897_s5 + $0x2d4] ss:$8 sps:$4 sm:$0xff]  }
 0x367   :  { %v1741_v29 = vpop.f32.mrf.mxu1  ;;  %v15425_v23 = vld [vmem:[%s21897_s5 + $0x260] ss:$8 sps:$4 sm:$0xff]   ;;  %v15428_v24 = vld [vmem:[%s21897_s5 + $0x2d0] ss:$8 sps:$4 sm:$0xff]  }
 0x368   :  { %v14584_v42 = vpack.c.bf16 %v1787_v26, %v1787_v26  ;;  %v1785_v30 = vmax.f32 %v1781_v27, 0.0  ;;  %v1784_v31 = vadd.f32 %v1779_v28, %v1756_v41  ;;  %v1754_v32 = vadd.f32 %v1741_v29, %v1668_v25  ;;  %v15433_v25 = vld [vmem:[%s21897_s5 + $0x254] ss:$8 sps:$4 sm:$0xff]   ;;  %v15436_v26 = vld [vmem:[%s21897_s5 + $0x2c4] ss:$8 sps:$4 sm:$0xff]  }
 0x369   :  { %v15431_v27 = vld [vmem:[%s21897_s5 + $0x250] ss:$8 sps:$4 sm:$0xff]   ;;  %v15434_v41 = vld [vmem:[%s21897_s5 + $0x2c0] ss:$8 sps:$4 sm:$0xff]   ;;  %v15439_v28 = vld [vmem:[%s21897_s5 + $0x244] ss:$8 sps:$4 sm:$0xff]  }
 0x36a   :  { %1808 = vst.msk [vmem:[#allocation3 + $0x8] sm:$0xf] %vm1805_vm2, %v14584_v42  ;;  %v14582_v33 = vpack.c.bf16 %v1785_v30, %v1785_v30  ;;  %v1788_v34 = vmax.f32 %v1784_v31, 0.0  ;;  %v1782_v36 = vadd.f32 %v1769_v15, %v1754_v32  ;;  %v15412_v15 = vld [vmem:[%s21897_s5 + $0x100] ss:$8 sps:$4 sm:$0xff]  }
 0x36b   :  { %v15442_v29 = vld [vmem:[%s21897_s5 + $0x2b4] ss:$8 sps:$4 sm:$0xff]   ;;  %v15437_v42 = vld [vmem:[%s21897_s5 + $0x240] ss:$8 sps:$4 sm:$0xff]   ;;  %v15440_v30 = vld [vmem:[%s21897_s5 + $0x2b0] ss:$8 sps:$4 sm:$0xff]  }
 0x36c   :  { %1806 = vst.msk [vmem:[#allocation3] sm:$0xf] %vm1805_vm2, %v14582_v33  ;;  %v14585_v39 = vpack.c.bf16 %v1788_v34, %v1788_v34  ;;  %v1786_v40 = vmax.f32 %v1782_v36, 0.0  ;;  %v15445_v31 = vld [vmem:[%s21897_s5 + $0x234] ss:$8 sps:$4 sm:$0xff]  }
 0x36d   :  { %v15448_v32 = vld [vmem:[%s21897_s5 + $0x2a4] ss:$8 sps:$4 sm:$0xff]   ;;  %v15443_v33 = vld [vmem:[%s21897_s5 + $0x230] ss:$8 sps:$4 sm:$0xff]   ;;  %v15446_v34 = vld [vmem:[%s21897_s5 + $0x2a0] ss:$8 sps:$4 sm:$0xff]  }
 0x36e   :  { %1809 = vst.msk [vmem:[#allocation3 + $0xc] sm:$0xf] %vm1805_vm2, %v14585_v39  ;;  %v14583_v43 = vpack.c.bf16 %v1786_v40, %v1786_v40  ;;  %v15451_v36 = vld [vmem:[%s21897_s5 + $0x224] ss:$8 sps:$4 sm:$0xff]   ;;  %v15454_v39 = vld [vmem:[%s21897_s5 + $0x294] ss:$8 sps:$4 sm:$0xff]  }
 0x36f   :  { %v15449_v40 = vld [vmem:[%s21897_s5 + $0x220] ss:$8 sps:$4 sm:$0xff]  }
 0x370   :  { %1807 = vst.msk [vmem:[#allocation3 + $0x4] sm:$0xf] %vm1805_vm2, %v14583_v43  ;;  %v15452_v43 = vld [vmem:[%s21897_s5 + $0x290] ss:$8 sps:$4 sm:$0xff]  }
 0x373   :  { %v1810_v46 = vld [vmem:[#allocation3] sm:$0x1] }
 0x374   :  { %v13228_v47 = vcombine.low %v1810_v46, %v1810_v46  ;;  %2084 = vmatmul.mubr.bf16.vlgmr.msra.gmra.mxu1 %v1810_v46  ;;  %v15415_v10 = vld [vmem:[#allocation3] ss:$0 sps:$4 sm:$0x22]  }
 0x375   :  { %2339 = vmatpush1.bf16.msra.mxu1 %v15366_v44  ;;  %2370 = vmatprep.mubr.bf16.mxu1 %v17011_v62  ;;  %v2254_v13 = vshrl.u32 %v15415_v10, 16  ;;  %v2112_v22 = vrot.slane %v15415_v10, 1  ;;  %v15457_v44 = vld [vmem:[%s21897_s5 + $0x214] ss:$8 sps:$4 sm:$0xff]   ;;  %v15497_v10 = vld [vmem:[%s21897_s5 + $0x3a4] ss:$8 sps:$4 sm:$0xff]  }
 0x376   :  { %v1847_v50 = vshrl.u32 %v13228_v47, 16  ;;  %2340 = vmatprep.subr.bf16.mxu1 %v15375_v45  ;;  %v15460_v45 = vld [vmem:[%s21897_s5 + $0x284] ss:$8 sps:$4 sm:$0xff]   ;;  %v15464_v46 = vld [vmem:[#allocation3] ss:$0 sps:$4 sm:$0x44]  }
 0x377   :  { %v2256_v18 = vrot.slane %v2254_v13, 1  ;;  %v15455_v47 = vld [vmem:[%s21897_s5 + $0x210] ss:$8 sps:$4 sm:$0xff]   ;;  %v15503_v13 = vld [vmem:[%s21897_s5 + $0x394] ss:$8 sps:$4 sm:$0xff]  }
 0x378   :  { %1963 = vmatmul.mubr.bf16.vlgmr.msra.gmra.mxu0 %v1847_v50  ;;  %v2543_v50 = vshrl.u32 %v15464_v46, 16 }
 0x379   :  { %2195 = vmatpush1.bf16.msra.mxu0 %v15370_v48  ;;  %2341 = vmatpush1.bf16.msra.mxu1 %v15373_v49  ;;  %v15458_v48 = vld [vmem:[%s21897_s5 + $0x280] ss:$8 sps:$4 sm:$0xff]   ;;  %v15463_v49 = vld [vmem:[%s21897_s5 + $0x204] ss:$8 sps:$4 sm:$0xff]  }
 0x37a   :  { %2196 = vmatprep.subr.bf16.mxu0 %v15378_v51  ;;  %2342 = vmatprep.subr.bf16.mxu1 %v15381_v52  ;;  %v15467_v51 = vld [vmem:[%s21897_s5 + $0x3f4] ss:$8 sps:$4 sm:$0xff]   ;;  %v15461_v52 = vld [vmem:[%s21897_s5 + $0x200] ss:$8 sps:$4 sm:$0xff]  }
 0x37b   :  { %2226 = vmatprep.mubr.bf16.mxu0 %v17011_v62 }
 0x37d   :  { %2197 = vmatpush1.bf16.msra.mxu0 %v15376_v53  ;;  %2343 = vmatpush1.bf16.msra.mxu1 %v15379_v54  ;;  %v15465_v53 = vld [vmem:[%s21897_s5 + $0x3f0] ss:$8 sps:$4 sm:$0xff]   ;;  %v15470_v54 = vld [vmem:[%s21897_s5 + $0x374] ss:$8 sps:$4 sm:$0xff]  }
 0x37e   :  { %2198 = vmatprep.subr.bf16.mxu0 %v15384_v55  ;;  %2344 = vmatprep.subr.bf16.mxu1 %v15387_v56  ;;  %v15473_v55 = vld [vmem:[%s21897_s5 + $0x3e4] ss:$8 sps:$4 sm:$0xff]   ;;  %v2545_v56 = vrot.slane %v2543_v50, 2  ;;  %v15552_v50 = vld [vmem:[%s21897_s5 + $0x494] ss:$8 sps:$4 sm:$0xff]  }
 0x381   :  { %2199 = vmatpush1.bf16.msra.mxu0 %v15382_v57  ;;  %2345 = vmatpush1.bf16.msra.mxu1 %v15385_v58  ;;  %v15468_v57 = vld [vmem:[%s21897_s5 + $0x370] ss:$8 sps:$4 sm:$0xff]   ;;  %v15471_v58 = vld [vmem:[%s21897_s5 + $0x3e0] ss:$8 sps:$4 sm:$0xff]  }
 0x382   :  { %2200 = vmatprep.subr.bf16.mxu0 %v15390_v59  ;;  %2346 = vmatprep.subr.bf16.mxu1 %v15393_v60  ;;  %v15476_v59 = vld [vmem:[%s21897_s5 + $0x364] ss:$8 sps:$4 sm:$0xff]   ;;  %v15479_v60 = vld [vmem:[%s21897_s5 + $0x3d4] ss:$8 sps:$4 sm:$0xff]  }
 0x385   :  { %2201 = vmatpush1.bf16.msra.mxu0 %v15388_v61  ;;  %2347 = vmatpush1.bf16.msra.mxu1 %v15391_v63  ;;  %v2401_v61 = vrot.slane %v15464_v46, 2  ;;  %v15474_v63 = vld [vmem:[%s21897_s5 + $0x360] ss:$8 sps:$4 sm:$0xff]   ;;  %v15546_v46 = vld [vmem:[%s21897_s5 + $0x4a4] ss:$8 sps:$4 sm:$0xff]  }
 0x386   :  { %2202 = vmatprep.subr.bf16.mxu0 %v15396_v0  ;;  %2348 = vmatprep.subr.bf16.mxu1 %v15399_v1  ;;  %v15477_v0 = vld [vmem:[%s21897_s5 + $0x3d0] ss:$8 sps:$4 sm:$0xff]   ;;  %v15482_v1 = vld [vmem:[%s21897_s5 + $0x354] ss:$8 sps:$4 sm:$0xff]  }
 0x389   :  { %2203 = vmatpush1.bf16.msra.mxu0 %v15394_v2  ;;  %2349 = vmatpush1.bf16.msra.mxu1 %v15397_v3  ;;  %v15485_v2 = vld [vmem:[%s21897_s5 + $0x3c4] ss:$8 sps:$4 sm:$0xff]   ;;  %v15480_v3 = vld [vmem:[%s21897_s5 + $0x350] ss:$8 sps:$4 sm:$0xff]  }
 0x38a   :  { %2204 = vmatprep.subr.bf16.mxu0 %v15402_v4  ;;  %2350 = vmatprep.subr.bf16.mxu1 %v15405_v5  ;;  %v15483_v4 = vld [vmem:[%s21897_s5 + $0x3c0] ss:$8 sps:$4 sm:$0xff]   ;;  %v15488_v5 = vld [vmem:[%s21897_s5 + $0x344] ss:$8 sps:$4 sm:$0xff]  }
 0x38d   :  { %2205 = vmatpush1.bf16.msra.mxu0 %v15400_v6  ;;  %2351 = vmatpush1.bf16.msra.mxu1 %v15403_v7  ;;  %v15491_v6 = vld [vmem:[%s21897_s5 + $0x3b4] ss:$8 sps:$4 sm:$0xff]   ;;  %v15486_v7 = vld [vmem:[%s21897_s5 + $0x340] ss:$8 sps:$4 sm:$0xff]  }
 0x38e   :  { %2206 = vmatprep.subr.bf16.mxu0 %v15408_v8  ;;  %2352 = vmatprep.subr.bf16.mxu1 %v15411_v9  ;;  %v15489_v8 = vld [vmem:[%s21897_s5 + $0x3b0] ss:$8 sps:$4 sm:$0xff]   ;;  %v15494_v9 = vld [vmem:[%s21897_s5 + $0x334] ss:$8 sps:$4 sm:$0xff]  }
 0x391   :  { %2207 = vmatpush1.bf16.msra.mxu0 %v15406_v11  ;;  %2353 = vmatpush1.bf16.msra.mxu1 %v15409_v35  ;;  %v15492_v11 = vld [vmem:[%s21897_s5 + $0x330] ss:$8 sps:$4 sm:$0xff]   ;;  %v15495_v35 = vld [vmem:[%s21897_s5 + $0x3a0] ss:$8 sps:$4 sm:$0xff]  }
 0x392   :  { %2208 = vmatprep.subr.bf16.mxu0 %v15414_v12  ;;  %2627 = vmatprep.subr.bf16.mxu1 %v15418_v14  ;;  %v15500_v12 = vld [vmem:[%s21897_s5 + $0x324] ss:$8 sps:$4 sm:$0xff]   ;;  %v15498_v14 = vld [vmem:[%s21897_s5 + $0x320] ss:$8 sps:$4 sm:$0xff]  }
 0x394   :  { %2371 = vmatmul.mubr.bf16.vlgmr.msra.gmra.mxu1 %v2256_v18  ;;  %v15504_v18 = vld [vmem:[%s21897_s5 + $0x310] ss:$8 sps:$4 sm:$0xff]  }
 0x395   :  { %2209 = vmatpush1.bf16.msra.mxu0 %v15412_v15  ;;  %2628 = vmatpush1.bf16.msra.mxu1 %v15416_v16  ;;  %v15501_v15 = vld [vmem:[%s21897_s5 + $0x390] ss:$8 sps:$4 sm:$0xff]   ;;  %v15506_v16 = vld [vmem:[%s21897_s5 + $0x314] ss:$8 sps:$4 sm:$0xff]  }
 0x396   :  { %2483 = vmatprep.subr.bf16.mxu0 %v15421_v37  ;;  %2629 = vmatprep.subr.bf16.mxu1 %v15424_v17  ;;  %v15509_v37 = vld [vmem:[%s21897_s5 + $0x384] ss:$8 sps:$4 sm:$0xff]   ;;  %v15513_v17 = vld [vmem:[#allocation3] ss:$0 sps:$4 sm:$0x88]  }
 0x397   :  { %2659 = vmatprep.mubr.bf16.mxu1 %v17011_v62 }
 0x398   :  { %2227 = vmatmul.mubr.bf16.vlgmr.msra.gmra.mxu0 %v2112_v22  ;;  %v15510_v22 = vld [vmem:[%s21897_s5 + $0x300] ss:$8 sps:$4 sm:$0xff]  }
 0x399   :  { %2484 = vmatpush1.bf16.msra.mxu0 %v15419_v38  ;;  %2630 = vmatpush1.bf16.msra.mxu1 %v15422_v19  ;;  %v15507_v38 = vld [vmem:[%s21897_s5 + $0x380] ss:$8 sps:$4 sm:$0xff]   ;;  %v15512_v19 = vld [vmem:[%s21897_s5 + $0x304] ss:$8 sps:$4 sm:$0xff]  }
 0x39a   :  { %2485 = vmatprep.subr.bf16.mxu0 %v15427_v20  ;;  %2631 = vmatprep.subr.bf16.mxu1 %v15430_v21  ;;  %v2832_v20 = vshrl.u32 %v15513_v17, 16  ;;  %v15516_v21 = vld [vmem:[%s21897_s5 + $0x4f4] ss:$8 sps:$4 sm:$0xff]  }
 0x39b   :  { %2515 = vmatprep.mubr.bf16.mxu0 %v17011_v62 }
 0x39d   :  { %2486 = vmatpush1.bf16.msra.mxu0 %v15425_v23  ;;  %2632 = vmatpush1.bf16.msra.mxu1 %v15428_v24  ;;  %v15514_v23 = vld [vmem:[%s21897_s5 + $0x4f0] ss:$8 sps:$4 sm:$0xff]   ;;  %v15519_v24 = vld [vmem:[%s21897_s5 + $0x474] ss:$8 sps:$4 sm:$0xff]  }
 0x39e   :  { %2487 = vmatprep.subr.bf16.mxu0 %v15433_v25  ;;  %2633 = vmatprep.subr.bf16.mxu1 %v15436_v26  ;;  %v2834_v25 = vrot.slane %v2832_v20, 3  ;;  %v15522_v26 = vld [vmem:[%s21897_s5 + $0x4e4] ss:$8 sps:$4 sm:$0xff]  }
 0x39f   :  { %v15611_v20 = vld [vmem:[#allocation3 + $0x4] ss:$0 sps:$4 sm:$0x22]  }
 0x3a1   :  { %2488 = vmatpush1.bf16.msra.mxu0 %v15431_v27  ;;  %2634 = vmatpush1.bf16.msra.mxu1 %v15434_v41  ;;  %v15517_v27 = vld [vmem:[%s21897_s5 + $0x470] ss:$8 sps:$4 sm:$0xff]   ;;  %v15520_v41 = vld [vmem:[%s21897_s5 + $0x4e0] ss:$8 sps:$4 sm:$0xff]  }
 0x3a2   :  { %2489 = vmatprep.subr.bf16.mxu0 %v15439_v28  ;;  %2635 = vmatprep.subr.bf16.mxu1 %v15442_v29  ;;  %v15525_v28 = vld [vmem:[%s21897_s5 + $0x464] ss:$8 sps:$4 sm:$0xff]   ;;  %v15528_v29 = vld [vmem:[%s21897_s5 + $0x4d4] ss:$8 sps:$4 sm:$0xff]  }
 0x3a5   :  { %2490 = vmatpush1.bf16.msra.mxu0 %v15437_v42  ;;  %2636 = vmatpush1.bf16.msra.mxu1 %v15440_v30  ;;  %v2690_v42 = vrot.slane %v15513_v17, 3  ;;  %v15523_v30 = vld [vmem:[%s21897_s5 + $0x460] ss:$8 sps:$4 sm:$0xff]   ;;  %v15590_v17 = vld [vmem:[%s21897_s5 + $0x530] ss:$8 sps:$4 sm:$0xff]  }
 0x3a6   :  { %2491 = vmatprep.subr.bf16.mxu0 %v15445_v31  ;;  %2637 = vmatprep.subr.bf16.mxu1 %v15448_v32  ;;  %v15526_v31 = vld [vmem:[%s21897_s5 + $0x4d0] ss:$8 sps:$4 sm:$0xff]   ;;  %v15531_v32 = vld [vmem:[%s21897_s5 + $0x454] ss:$8 sps:$4 sm:$0xff]  }
 0x3a9   :  { %2492 = vmatpush1.bf16.msra.mxu0 %v15443_v33  ;;  %2638 = vmatpush1.bf16.msra.mxu1 %v15446_v34  ;;  %v15534_v33 = vld [vmem:[%s21897_s5 + $0x4c4] ss:$8 sps:$4 sm:$0xff]   ;;  %v15529_v34 = vld [vmem:[%s21897_s5 + $0x450] ss:$8 sps:$4 sm:$0xff]  }
 0x3aa   :  { %2493 = vmatprep.subr.bf16.mxu0 %v15451_v36  ;;  %2639 = vmatprep.subr.bf16.mxu1 %v15454_v39  ;;  %v15532_v36 = vld [vmem:[%s21897_s5 + $0x4c0] ss:$8 sps:$4 sm:$0xff]   ;;  %v15537_v39 = vld [vmem:[%s21897_s5 + $0x444] ss:$8 sps:$4 sm:$0xff]  }
 0x3ad   :  { %2494 = vmatpush1.bf16.msra.mxu0 %v15449_v40  ;;  %2640 = vmatpush1.bf16.msra.mxu1 %v15452_v43  ;;  %v15540_v40 = vld [vmem:[%s21897_s5 + $0x4b4] ss:$8 sps:$4 sm:$0xff]   ;;  %v15535_v43 = vld [vmem:[%s21897_s5 + $0x440] ss:$8 sps:$4 sm:$0xff]  }
 0x3ae   :  { %2495 = vmatprep.subr.bf16.mxu0 %v15457_v44  ;;  %2641 = vmatprep.subr.bf16.mxu1 %v15460_v45  ;;  %v15538_v44 = vld [vmem:[%s21897_s5 + $0x4b0] ss:$8 sps:$4 sm:$0xff]   ;;  %v15543_v45 = vld [vmem:[%s21897_s5 + $0x434] ss:$8 sps:$4 sm:$0xff]  }
 0x3b1   :  { %2496 = vmatpush1.bf16.msra.mxu0 %v15455_v47  ;;  %2642 = vmatpush1.bf16.msra.mxu1 %v15458_v48  ;;  %v15541_v47 = vld [vmem:[%s21897_s5 + $0x430] ss:$8 sps:$4 sm:$0xff]   ;;  %v15544_v48 = vld [vmem:[%s21897_s5 + $0x4a0] ss:$8 sps:$4 sm:$0xff]  }
 0x3b2   :  { %2497 = vmatprep.subr.bf16.mxu0 %v15463_v49  ;;  %2916 = vmatprep.subr.bf16.mxu1 %v15467_v51  ;;  %v15549_v49 = vld [vmem:[%s21897_s5 + $0x424] ss:$8 sps:$4 sm:$0xff]   ;;  %v15547_v51 = vld [vmem:[%s21897_s5 + $0x420] ss:$8 sps:$4 sm:$0xff]  }
 0x3b4   :  { %2660 = vmatmul.mubr.bf16.vlgmr.msra.gmra.mxu1 %v2545_v56  ;;  %v15553_v56 = vld [vmem:[%s21897_s5 + $0x410] ss:$8 sps:$4 sm:$0xff]  }
 0x3b5   :  { %2498 = vmatpush1.bf16.msra.mxu0 %v15461_v52  ;;  %2917 = vmatpush1.bf16.msra.mxu1 %v15465_v53  ;;  %v15550_v52 = vld [vmem:[%s21897_s5 + $0x490] ss:$8 sps:$4 sm:$0xff]   ;;  %v15555_v53 = vld [vmem:[%s21897_s5 + $0x414] ss:$8 sps:$4 sm:$0xff]  }
 0x3b6   :  { %2772 = vmatprep.subr.bf16.mxu0 %v15470_v54  ;;  %2918 = vmatprep.subr.bf16.mxu1 %v15473_v55  ;;  %v15558_v54 = vld [vmem:[%s21897_s5 + $0x484] ss:$8 sps:$4 sm:$0xff]  }
 0x3b7   :  { %2948 = vmatprep.mubr.bf16.mxu1 %v17011_v62  ;;  %v2959_v55 = vld [vmem:[#allocation3 + $0x4] sm:$0x1] }
 0x3b8   :  { %2516 = vmatmul.mubr.bf16.vlgmr.msra.gmra.mxu0 %v2401_v61  ;;  %v15559_v61 = vld [vmem:[%s21897_s5 + $0x400] ss:$8 sps:$4 sm:$0xff]  }
 0x3b9   :  { %2773 = vmatpush1.bf16.msra.mxu0 %v15468_v57  ;;  %2919 = vmatpush1.bf16.msra.mxu1 %v15471_v58  ;;  %v15556_v57 = vld [vmem:[%s21897_s5 + $0x480] ss:$8 sps:$4 sm:$0xff]   ;;  %v15561_v58 = vld [vmem:[%s21897_s5 + $0x404] ss:$8 sps:$4 sm:$0xff]  }
 0x3ba   :  { %2774 = vmatprep.subr.bf16.mxu0 %v15476_v59  ;;  %2920 = vmatprep.subr.bf16.mxu1 %v15479_v60  ;;  %v13376_v59 = vcombine.low %v2959_v55, %v2959_v55  ;;  %v15565_v60 = vld [vmem:[%s21897_s5 + $0x5f4] ss:$8 sps:$4 sm:$0xff]  }
 0x3bb   :  { %2804 = vmatprep.mubr.bf16.mxu0 %v17011_v62 }
 0x3bd   :  { %2775 = vmatpush1.bf16.msra.mxu0 %v15474_v63  ;;  %2921 = vmatpush1.bf16.msra.mxu1 %v15477_v0  ;;  %v15563_v63 = vld [vmem:[%s21897_s5 + $0x5f0] ss:$8 sps:$4 sm:$0xff]   ;;  %v15568_v0 = vld [vmem:[%s21897_s5 + $0x574] ss:$8 sps:$4 sm:$0xff]  }
 0x3be   :  { %2776 = vmatprep.subr.bf16.mxu0 %v15482_v1  ;;  %2922 = vmatprep.subr.bf16.mxu1 %v15485_v2  ;;  %v15571_v1 = vld [vmem:[%s21897_s5 + $0x5e4] ss:$8 sps:$4 sm:$0xff]   ;;  %v3119_v2 = vshrl.u32 %v13376_v59, 16 }
 0x3bf   :  { %v15660_v59 = vld [vmem:[#allocation3 + $0x4] ss:$0 sps:$4 sm:$0x44]  }
 0x3c1   :  { %2777 = vmatpush1.bf16.msra.mxu0 %v15480_v3  ;;  %2923 = vmatpush1.bf16.msra.mxu1 %v15483_v4  ;;  %v15566_v3 = vld [vmem:[%s21897_s5 + $0x570] ss:$8 sps:$4 sm:$0xff]   ;;  %v15569_v4 = vld [vmem:[%s21897_s5 + $0x5e0] ss:$8 sps:$4 sm:$0xff]  }
 0x3c2   :  { %2778 = vmatprep.subr.bf16.mxu0 %v15488_v5  ;;  %2924 = vmatprep.subr.bf16.mxu1 %v15491_v6  ;;  %v15574_v5 = vld [vmem:[%s21897_s5 + $0x564] ss:$8 sps:$4 sm:$0xff]   ;;  %v15577_v6 = vld [vmem:[%s21897_s5 + $0x5d4] ss:$8 sps:$4 sm:$0xff]  }
 0x3c5   :  { %2779 = vmatpush1.bf16.msra.mxu0 %v15486_v7  ;;  %2925 = vmatpush1.bf16.msra.mxu1 %v15489_v8  ;;  %v15572_v7 = vld [vmem:[%s21897_s5 + $0x560] ss:$8 sps:$4 sm:$0xff]   ;;  %v15575_v8 = vld [vmem:[%s21897_s5 + $0x5d0] ss:$8 sps:$4 sm:$0xff]  }
 0x3c6   :  { %2780 = vmatprep.subr.bf16.mxu0 %v15494_v9  ;;  %2926 = vmatprep.subr.bf16.mxu1 %v15497_v10  ;;  %v15580_v9 = vld [vmem:[%s21897_s5 + $0x554] ss:$8 sps:$4 sm:$0xff]   ;;  %v15583_v10 = vld [vmem:[%s21897_s5 + $0x5c4] ss:$8 sps:$4 sm:$0xff]  }
 0x3c9   :  { %2781 = vmatpush1.bf16.msra.mxu0 %v15492_v11  ;;  %2927 = vmatpush1.bf16.msra.mxu1 %v15495_v35  ;;  %v15578_v11 = vld [vmem:[%s21897_s5 + $0x550] ss:$8 sps:$4 sm:$0xff]   ;;  %v15581_v35 = vld [vmem:[%s21897_s5 + $0x5c0] ss:$8 sps:$4 sm:$0xff]  }
 0x3ca   :  { %2782 = vmatprep.subr.bf16.mxu0 %v15500_v12  ;;  %2928 = vmatprep.subr.bf16.mxu1 %v15503_v13  ;;  %v15586_v12 = vld [vmem:[%s21897_s5 + $0x544] ss:$8 sps:$4 sm:$0xff]   ;;  %v15589_v13 = vld [vmem:[%s21897_s5 + $0x5b4] ss:$8 sps:$4 sm:$0xff]  }
 0x3cd   :  { %2783 = vmatpush1.bf16.msra.mxu0 %v15498_v14  ;;  %2929 = vmatpush1.bf16.msra.mxu1 %v15501_v15  ;;  %v15584_v14 = vld [vmem:[%s21897_s5 + $0x540] ss:$8 sps:$4 sm:$0xff]   ;;  %v15587_v15 = vld [vmem:[%s21897_s5 + $0x5b0] ss:$8 sps:$4 sm:$0xff]  }
 0x3ce   :  { %2784 = vmatprep.subr.bf16.mxu0 %v15506_v16  ;;  %2930 = vmatprep.subr.bf16.mxu1 %v15509_v37  ;;  %v15592_v16 = vld [vmem:[%s21897_s5 + $0x534] ss:$8 sps:$4 sm:$0xff]   ;;  %v15595_v37 = vld [vmem:[%s21897_s5 + $0x5a4] ss:$8 sps:$4 sm:$0xff]  }
 0x3d1   :  { %2785 = vmatpush1.bf16.msra.mxu0 %v15504_v18  ;;  %2931 = vmatpush1.bf16.msra.mxu1 %v15507_v38  ;;  %v15593_v18 = vld [vmem:[%s21897_s5 + $0x5a0] ss:$8 sps:$4 sm:$0xff]   ;;  %v15598_v38 = vld [vmem:[%s21897_s5 + $0x524] ss:$8 sps:$4 sm:$0xff]  }
 0x3d2   :  { %2786 = vmatprep.subr.bf16.mxu0 %v15512_v19  ;;  %3202 = vmatprep.subr.bf16.mxu1 %v15516_v21  ;;  %v15601_v19 = vld [vmem:[%s21897_s5 + $0x594] ss:$8 sps:$4 sm:$0xff]   ;;  %v15596_v21 = vld [vmem:[%s21897_s5 + $0x520] ss:$8 sps:$4 sm:$0xff]  }
 0x3d4   :  { %2949 = vmatmul.mubr.bf16.vlgmr.msra.gmra.mxu1 %v2834_v25  ;;  %v15602_v25 = vld [vmem:[%s21897_s5 + $0x510] ss:$8 sps:$4 sm:$0xff]  }
 0x3d5   :  { %2787 = vmatpush1.bf16.msra.mxu0 %v15510_v22  ;;  %3203 = vmatpush1.bf16.msra.mxu1 %v15514_v23  ;;  %v15599_v22 = vld [vmem:[%s21897_s5 + $0x590] ss:$8 sps:$4 sm:$0xff]   ;;  %v15604_v23 = vld [vmem:[%s21897_s5 + $0x514] ss:$8 sps:$4 sm:$0xff]  }
 0x3d6   :  { %3056 = vmatprep.subr.bf16.mxu0 %v15519_v24  ;;  %3204 = vmatprep.subr.bf16.mxu1 %v15522_v26  ;;  %v15607_v24 = vld [vmem:[%s21897_s5 + $0x584] ss:$8 sps:$4 sm:$0xff]   ;;  %v15605_v26 = vld [vmem:[%s21897_s5 + $0x580] ss:$8 sps:$4 sm:$0xff]  }
 0x3d7   :  { %3234 = vmatprep.mubr.bf16.mxu1 %v17011_v62 }
 0x3d8   :  { %2805 = vmatmul.mubr.bf16.vlgmr.msra.gmra.mxu0 %v2690_v42  ;;  %v15612_v42 = vld [vmem:[%s21897_s5 + $0x6f0] ss:$8 sps:$4 sm:$0xff]  }
 0x3d9   :  { %3057 = vmatpush1.bf16.msra.mxu0 %v15517_v27  ;;  %3205 = vmatpush1.bf16.msra.mxu1 %v15520_v41  ;;  %v15610_v27 = vld [vmem:[%s21897_s5 + $0x504] ss:$8 sps:$4 sm:$0xff]   ;;  %v3407_v41 = vshrl.u32 %v15611_v20, 16 }
 0x3da   :  { %3058 = vmatprep.subr.bf16.mxu0 %v15525_v28  ;;  %3206 = vmatprep.subr.bf16.mxu1 %v15528_v29  ;;  %v15614_v28 = vld [vmem:[%s21897_s5 + $0x6f4] ss:$8 sps:$4 sm:$0xff]   ;;  %v15608_v29 = vld [vmem:[%s21897_s5 + $0x500] ss:$8 sps:$4 sm:$0xff]  }
 0x3db   :  { %3088 = vmatprep.mubr.bf16.mxu0 %v17011_v62 }
 0x3dd   :  { %3059 = vmatpush1.bf16.msra.mxu0 %v15523_v30  ;;  %3207 = vmatpush1.bf16.msra.mxu1 %v15526_v31  ;;  %v15617_v30 = vld [vmem:[%s21897_s5 + $0x674] ss:$8 sps:$4 sm:$0xff]   ;;  %v15620_v31 = vld [vmem:[%s21897_s5 + $0x6e4] ss:$8 sps:$4 sm:$0xff]  }
 0x3de   :  { %3060 = vmatprep.subr.bf16.mxu0 %v15531_v32  ;;  %3208 = vmatprep.subr.bf16.mxu1 %v15534_v33  ;;  %v3409_v32 = vrot.slane %v3407_v41, 1  ;;  %v15615_v33 = vld [vmem:[%s21897_s5 + $0x670] ss:$8 sps:$4 sm:$0xff]  }
 0x3e1   :  { %3061 = vmatpush1.bf16.msra.mxu0 %v15529_v34  ;;  %3209 = vmatpush1.bf16.msra.mxu1 %v15532_v36  ;;  %v15618_v34 = vld [vmem:[%s21897_s5 + $0x6e0] ss:$8 sps:$4 sm:$0xff]   ;;  %v15623_v36 = vld [vmem:[%s21897_s5 + $0x664] ss:$8 sps:$4 sm:$0xff]  }
 0x3e2   :  { %3062 = vmatprep.subr.bf16.mxu0 %v15537_v39  ;;  %3210 = vmatprep.subr.bf16.mxu1 %v15540_v40  ;;  %v15626_v39 = vld [vmem:[%s21897_s5 + $0x6d4] ss:$8 sps:$4 sm:$0xff]   ;;  %v3265_v40 = vrot.slane %v15611_v20, 1 }
 0x3e3   :  { %v15678_v20 = vld [vmem:[%s21897_s5 + $0x754] ss:$8 sps:$4 sm:$0xff]  }
 0x3e5   :  { %3063 = vmatpush1.bf16.msra.mxu0 %v15535_v43  ;;  %3211 = vmatpush1.bf16.msra.mxu1 %v15538_v44  ;;  %v15621_v43 = vld [vmem:[%s21897_s5 + $0x660] ss:$8 sps:$4 sm:$0xff]   ;;  %v15624_v44 = vld [vmem:[%s21897_s5 + $0x6d0] ss:$8 sps:$4 sm:$0xff]  }
 0x3e6   :  { %3064 = vmatprep.subr.bf16.mxu0 %v15543_v45  ;;  %3212 = vmatprep.subr.bf16.mxu1 %v15546_v46  ;;  %v15629_v45 = vld [vmem:[%s21897_s5 + $0x654] ss:$8 sps:$4 sm:$0xff]   ;;  %v15632_v46 = vld [vmem:[%s21897_s5 + $0x6c4] ss:$8 sps:$4 sm:$0xff]  }
 0x3e9   :  { %3065 = vmatpush1.bf16.msra.mxu0 %v15541_v47  ;;  %3213 = vmatpush1.bf16.msra.mxu1 %v15544_v48  ;;  %v15627_v47 = vld [vmem:[%s21897_s5 + $0x650] ss:$8 sps:$4 sm:$0xff]   ;;  %v15630_v48 = vld [vmem:[%s21897_s5 + $0x6c0] ss:$8 sps:$4 sm:$0xff]  }
 0x3ea   :  { %3066 = vmatprep.subr.bf16.mxu0 %v15549_v49  ;;  %3214 = vmatprep.subr.bf16.mxu1 %v15552_v50  ;;  %v15635_v49 = vld [vmem:[%s21897_s5 + $0x644] ss:$8 sps:$4 sm:$0xff]   ;;  %v15638_v50 = vld [vmem:[%s21897_s5 + $0x6b4] ss:$8 sps:$4 sm:$0xff]  }
 0x3ed   :  { %3067 = vmatpush1.bf16.msra.mxu0 %v15547_v51  ;;  %3215 = vmatpush1.bf16.msra.mxu1 %v15550_v52  ;;  %v15633_v51 = vld [vmem:[%s21897_s5 + $0x640] ss:$8 sps:$4 sm:$0xff]   ;;  %v15636_v52 = vld [vmem:[%s21897_s5 + $0x6b0] ss:$8 sps:$4 sm:$0xff]  }
 0x3ee   :  { %3068 = vmatprep.subr.bf16.mxu0 %v15555_v53  ;;  %3216 = vmatprep.subr.bf16.mxu1 %v15558_v54  ;;  %v15641_v53 = vld [vmem:[%s21897_s5 + $0x634] ss:$8 sps:$4 sm:$0xff]   ;;  %v15644_v54 = vld [vmem:[%s21897_s5 + $0x6a4] ss:$8 sps:$4 sm:$0xff]  }
 0x3f1   :  { %3069 = vmatpush1.bf16.msra.mxu0 %v15553_v56  ;;  %3217 = vmatpush1.bf16.msra.mxu1 %v15556_v57  ;;  %v15642_v56 = vld [vmem:[%s21897_s5 + $0x6a0] ss:$8 sps:$4 sm:$0xff]   ;;  %v15647_v57 = vld [vmem:[%s21897_s5 + $0x624] ss:$8 sps:$4 sm:$0xff]  }
 0x3f2   :  { %3070 = vmatprep.subr.bf16.mxu0 %v15561_v58  ;;  %3491 = vmatprep.subr.bf16.mxu1 %v15565_v60  ;;  %v15650_v58 = vld [vmem:[%s21897_s5 + $0x694] ss:$8 sps:$4 sm:$0xff]   ;;  %v15645_v60 = vld [vmem:[%s21897_s5 + $0x620] ss:$8 sps:$4 sm:$0xff]  }
 0x3f4   :  { %3235 = vmatmul.mubr.bf16.vlgmr.msra.gmra.mxu1 %v3119_v2  ;;  %v15654_v2 = vld [vmem:[%s21897_s5 + $0x680] ss:$8 sps:$4 sm:$0xff]  }
 0x3f5   :  { %3071 = vmatpush1.bf16.msra.mxu0 %v15559_v61  ;;  %3492 = vmatpush1.bf16.msra.mxu1 %v15563_v63  ;;  %v15648_v61 = vld [vmem:[%s21897_s5 + $0x690] ss:$8 sps:$4 sm:$0xff]   ;;  %v15653_v63 = vld [vmem:[%s21897_s5 + $0x614] ss:$8 sps:$4 sm:$0xff]  }
 0x3f6   :  { %3347 = vmatprep.subr.bf16.mxu0 %v15568_v0  ;;  %3493 = vmatprep.subr.bf16.mxu1 %v15571_v1  ;;  %v15656_v0 = vld [vmem:[%s21897_s5 + $0x684] ss:$8 sps:$4 sm:$0xff]   ;;  %v15651_v1 = vld [vmem:[%s21897_s5 + $0x610] ss:$8 sps:$4 sm:$0xff]  }
 0x3f7   :  { %3523 = vmatprep.mubr.bf16.mxu1 %v17011_v62 }
 0x3f8   :  { %3089 = vmatmul.mubr.bf16.vlgmr.msra.gmra.mxu0 %v2959_v55  ;;  %v15639_v55 = vld [vmem:[%s21897_s5 + $0x630] ss:$8 sps:$4 sm:$0xff]  }
 0x3f9   :  { %3348 = vmatpush1.bf16.msra.mxu0 %v15566_v3  ;;  %3494 = vmatpush1.bf16.msra.mxu1 %v15569_v4  ;;  %v15659_v3 = vld [vmem:[%s21897_s5 + $0x604] ss:$8 sps:$4 sm:$0xff]   ;;  %v3696_v4 = vshrl.u32 %v15660_v59, 16 }
 0x3fa   :  { %3349 = vmatprep.subr.bf16.mxu0 %v15574_v5  ;;  %3495 = vmatprep.subr.bf16.mxu1 %v15577_v6  ;;  %v15663_v5 = vld [vmem:[%s21897_s5 + $0x7f4] ss:$8 sps:$4 sm:$0xff]   ;;  %v15657_v6 = vld [vmem:[%s21897_s5 + $0x600] ss:$8 sps:$4 sm:$0xff]  }
 0x3fb   :  { %3379 = vmatprep.mubr.bf16.mxu0 %v17011_v62 }
 0x3fd   :  { %3350 = vmatpush1.bf16.msra.mxu0 %v15572_v7  ;;  %3496 = vmatpush1.bf16.msra.mxu1 %v15575_v8  ;;  %v15661_v7 = vld [vmem:[%s21897_s5 + $0x7f0] ss:$8 sps:$4 sm:$0xff]   ;;  %v15666_v8 = vld [vmem:[%s21897_s5 + $0x774] ss:$8 sps:$4 sm:$0xff]  }
 0x3fe   :  { %3351 = vmatprep.subr.bf16.mxu0 %v15580_v9  ;;  %3497 = vmatprep.subr.bf16.mxu1 %v15583_v10  ;;  %v15669_v9 = vld [vmem:[%s21897_s5 + $0x7e4] ss:$8 sps:$4 sm:$0xff]   ;;  %v3698_v10 = vrot.slane %v3696_v4, 2  ;;  %v15719_v4 = vld [vmem:[%s21897_s5 + $0x860] ss:$8 sps:$4 sm:$0xff]  }
 0x401   :  { %3352 = vmatpush1.bf16.msra.mxu0 %v15578_v11  ;;  %3498 = vmatpush1.bf16.msra.mxu1 %v15581_v35  ;;  %v15664_v35 = vld [vmem:[%s21897_s5 + $0x770] ss:$8 sps:$4 sm:$0xff]  }
 0x402   :  { %3353 = vmatprep.subr.bf16.mxu0 %v15586_v12  ;;  %3499 = vmatprep.subr.bf16.mxu1 %v15589_v13  ;;  %v15667_v12 = vld [vmem:[%s21897_s5 + $0x7e0] ss:$8 sps:$4 sm:$0xff]   ;;  %v15672_v13 = vld [vmem:[%s21897_s5 + $0x764] ss:$8 sps:$4 sm:$0xff]  }
 0x405   :  { %3354 = vmatpush1.bf16.msra.mxu0 %v15584_v14  ;;  %3500 = vmatpush1.bf16.msra.mxu1 %v15587_v15  ;;  %v15675_v14 = vld [vmem:[%s21897_s5 + $0x7d4] ss:$8 sps:$4 sm:$0xff]  }
 0x406   :  { %3355 = vmatprep.subr.bf16.mxu0 %v15592_v16  ;;  %3501 = vmatprep.subr.bf16.mxu1 %v15595_v37  ;;  %v3554_v16 = vrot.slane %v15660_v59, 2  ;;  %v15716_v59 = vld [vmem:[%s21897_s5 + $0x8e0] ss:$8 sps:$4 sm:$0xff]  }
 0x409   :  { %3356 = vmatpush1.bf16.msra.mxu0 %v15590_v17  ;;  %3502 = vmatpush1.bf16.msra.mxu1 %v15593_v18 }
 0x40a   :  { %3357 = vmatprep.subr.bf16.mxu0 %v15598_v38  ;;  %3503 = vmatprep.subr.bf16.mxu1 %v15601_v19  ;;  %v15670_v38 = vld [vmem:[%s21897_s5 + $0x760] ss:$8 sps:$4 sm:$0xff]   ;;  %v15673_v19 = vld [vmem:[%s21897_s5 + $0x7d0] ss:$8 sps:$4 sm:$0xff]  }
 0x40d   :  { %3358 = vmatpush1.bf16.msra.mxu0 %v15596_v21  ;;  %3504 = vmatpush1.bf16.msra.mxu1 %v15599_v22 }
 0x40e   :  { %3359 = vmatprep.subr.bf16.mxu0 %v15604_v23  ;;  %3505 = vmatprep.subr.bf16.mxu1 %v15607_v24  ;;  %v15681_v23 = vld [vmem:[%s21897_s5 + $0x7c4] ss:$8 sps:$4 sm:$0xff]  }
 0x411   :  { %3360 = vmatpush1.bf16.msra.mxu0 %v15602_v25  ;;  %3506 = vmatpush1.bf16.msra.mxu1 %v15605_v26  ;;  %v15676_v26 = vld [vmem:[%s21897_s5 + $0x750] ss:$8 sps:$4 sm:$0xff]  }
 0x412   :  { %3361 = vmatprep.subr.bf16.mxu0 %v15610_v27  ;;  %3780 = vmatprep.subr.bf16.mxu1 %v15614_v28  ;;  %v15679_v27 = vld [vmem:[%s21897_s5 + $0x7c0] ss:$8 sps:$4 sm:$0xff]   ;;  %v15684_v28 = vld [vmem:[%s21897_s5 + $0x744] ss:$8 sps:$4 sm:$0xff]  }
 0x414   :  { %3524 = vmatmul.mubr.bf16.vlgmr.msra.gmra.mxu1 %v3409_v32  ;;  %v15693_v32 = vld [vmem:[%s21897_s5 + $0x7a4] ss:$8 sps:$4 sm:$0xff]  }
 0x415   :  { %3362 = vmatpush1.bf16.msra.mxu0 %v15608_v29  ;;  %3781 = vmatpush1.bf16.msra.mxu1 %v15612_v42  ;;  %v15687_v29 = vld [vmem:[%s21897_s5 + $0x7b4] ss:$8 sps:$4 sm:$0xff]   ;;  %v15682_v42 = vld [vmem:[%s21897_s5 + $0x740] ss:$8 sps:$4 sm:$0xff]  }
 0x416   :  { %3636 = vmatprep.subr.bf16.mxu0 %v15617_v30  ;;  %3782 = vmatprep.subr.bf16.mxu1 %v15620_v31  ;;  %v15685_v30 = vld [vmem:[%s21897_s5 + $0x7b0] ss:$8 sps:$4 sm:$0xff]   ;;  %v15690_v31 = vld [vmem:[%s21897_s5 + $0x734] ss:$8 sps:$4 sm:$0xff]  }
 0x417   :  { %3812 = vmatprep.mubr.bf16.mxu1 %v17011_v62 }
 0x418   :  { %3380 = vmatmul.mubr.bf16.vlgmr.msra.gmra.mxu0 %v3265_v40  ;;  %v15709_v40 = vld [vmem:[#allocation3 + $0x4] ss:$0 sps:$4 sm:$0x88]  }
 0x419   :  { %3637 = vmatpush1.bf16.msra.mxu0 %v15615_v33  ;;  %3783 = vmatpush1.bf16.msra.mxu1 %v15618_v34  ;;  %v15688_v33 = vld [vmem:[%s21897_s5 + $0x730] ss:$8 sps:$4 sm:$0xff]   ;;  %v15691_v34 = vld [vmem:[%s21897_s5 + $0x7a0] ss:$8 sps:$4 sm:$0xff]  }
 0x41a   :  { %3638 = vmatprep.subr.bf16.mxu0 %v15623_v36  ;;  %3784 = vmatprep.subr.bf16.mxu1 %v15626_v39  ;;  %v15696_v36 = vld [vmem:[%s21897_s5 + $0x724] ss:$8 sps:$4 sm:$0xff]   ;;  %v15699_v39 = vld [vmem:[%s21897_s5 + $0x794] ss:$8 sps:$4 sm:$0xff]  }
 0x41b   :  { %3668 = vmatprep.mubr.bf16.mxu0 %v17011_v62 }
 0x41d   :  { %3639 = vmatpush1.bf16.msra.mxu0 %v15621_v43  ;;  %3785 = vmatpush1.bf16.msra.mxu1 %v15624_v44  ;;  %v15694_v43 = vld [vmem:[%s21897_s5 + $0x720] ss:$8 sps:$4 sm:$0xff]   ;;  %v15697_v44 = vld [vmem:[%s21897_s5 + $0x790] ss:$8 sps:$4 sm:$0xff]  }
 0x41e   :  { %3640 = vmatprep.subr.bf16.mxu0 %v15629_v45  ;;  %3786 = vmatprep.subr.bf16.mxu1 %v15632_v46  ;;  %v15702_v45 = vld [vmem:[%s21897_s5 + $0x714] ss:$8 sps:$4 sm:$0xff]   ;;  %v15705_v46 = vld [vmem:[%s21897_s5 + $0x784] ss:$8 sps:$4 sm:$0xff]  }
 0x421   :  { %3641 = vmatpush1.bf16.msra.mxu0 %v15627_v47  ;;  %3787 = vmatpush1.bf16.msra.mxu1 %v15630_v48  ;;  %v15700_v47 = vld [vmem:[%s21897_s5 + $0x710] ss:$8 sps:$4 sm:$0xff]   ;;  %v15703_v48 = vld [vmem:[%s21897_s5 + $0x780] ss:$8 sps:$4 sm:$0xff]  }
 0x422   :  { %3642 = vmatprep.subr.bf16.mxu0 %v15635_v49  ;;  %3788 = vmatprep.subr.bf16.mxu1 %v15638_v50  ;;  %v15708_v49 = vld [vmem:[%s21897_s5 + $0x704] ss:$8 sps:$4 sm:$0xff]   ;;  %v3985_v50 = vshrl.u32 %v15709_v40, 16 }
 0x425   :  { %3643 = vmatpush1.bf16.msra.mxu0 %v15633_v51  ;;  %3789 = vmatpush1.bf16.msra.mxu1 %v15636_v52  ;;  %v15712_v51 = vld [vmem:[%s21897_s5 + $0x8f4] ss:$8 sps:$4 sm:$0xff]   ;;  %v15706_v52 = vld [vmem:[%s21897_s5 + $0x700] ss:$8 sps:$4 sm:$0xff]  }
 0x426   :  { %3644 = vmatprep.subr.bf16.mxu0 %v15641_v53  ;;  %3790 = vmatprep.subr.bf16.mxu1 %v15644_v54  ;;  %v15710_v53 = vld [vmem:[%s21897_s5 + $0x8f0] ss:$8 sps:$4 sm:$0xff]   ;;  %v15715_v54 = vld [vmem:[%s21897_s5 + $0x874] ss:$8 sps:$4 sm:$0xff]  }
 0x429   :  { %3645 = vmatpush1.bf16.msra.mxu0 %v15639_v55  ;;  %3791 = vmatpush1.bf16.msra.mxu1 %v15642_v56  ;;  %v15718_v55 = vld [vmem:[%s21897_s5 + $0x8e4] ss:$8 sps:$4 sm:$0xff]   ;;  %v3987_v56 = vrot.slane %v3985_v50, 3 }
 0x42a   :  { %3646 = vmatprep.subr.bf16.mxu0 %v15647_v57  ;;  %3792 = vmatprep.subr.bf16.mxu1 %v15650_v58  ;;  %v15713_v58 = vld [vmem:[%s21897_s5 + $0x870] ss:$8 sps:$4 sm:$0xff]  }
 0x42d   :  { %3647 = vmatpush1.bf16.msra.mxu0 %v15645_v60  ;;  %3793 = vmatpush1.bf16.msra.mxu1 %v15648_v61  ;;  %v15721_v60 = vld [vmem:[%s21897_s5 + $0x864] ss:$8 sps:$4 sm:$0xff]   ;;  %v15724_v61 = vld [vmem:[%s21897_s5 + $0x8d4] ss:$8 sps:$4 sm:$0xff]  }
 0x42e   :  { %3648 = vmatprep.subr.bf16.mxu0 %v15653_v63  ;;  %3794 = vmatprep.subr.bf16.mxu1 %v15656_v0  ;;  %v3843_v0 = vrot.slane %v15709_v40, 3 }
 0x431   :  { %3649 = vmatpush1.bf16.msra.mxu0 %v15651_v1  ;;  %3795 = vmatpush1.bf16.msra.mxu1 %v15654_v2 }
 0x432   :  { %3650 = vmatprep.subr.bf16.mxu0 %v15659_v3  ;;  %4069 = vmatprep.subr.bf16.mxu1 %v15663_v5  ;;  %v15722_v5 = vld [vmem:[%s21897_s5 + $0x8d0] ss:$8 sps:$4 sm:$0xff]  }
 0x434   :  { %3813 = vmatmul.mubr.bf16.vlgmr.msra.gmra.mxu1 %v3698_v10  ;;  %v2085_v11 = vpop.f32.mrf.mxu1 }
 0x435   :  { %3651 = vmatpush1.bf16.msra.mxu0 %v15657_v6  ;;  %4070 = vmatpush1.bf16.msra.mxu1 %v15661_v7  ;;  %v15727_v6 = vld [vmem:[%s21897_s5 + $0x854] ss:$8 sps:$4 sm:$0xff]  }
 0x436   :  { %v2087_v15 = vpop.f32.mrf.mxu1  ;;  %3925 = vmatprep.subr.bf16.mxu0 %v15666_v8  ;;  %4071 = vmatprep.subr.bf16.mxu1 %v15669_v9  ;;  %v15730_v9 = vld [vmem:[%s21897_s5 + $0x8c4] ss:$8 sps:$4 sm:$0xff]  }
 0x437   :  { %4101 = vmatprep.mubr.bf16.mxu1 %v17011_v62 }
 0x438   :  { %3669 = vmatmul.mubr.bf16.vlgmr.msra.gmra.mxu0 %v3554_v16  ;;  %v1964_v37 = vpop.f32.mrf.mxu0  ;;  %v2089_v17 = vpop.f32.mrf.mxu1  ;;  %v15733_v16 = vld [vmem:[%s21897_s5 + $0x844] ss:$8 sps:$4 sm:$0xff]  }
 0x439   :  { %v18711_v18 = vadd.f32 %v2085_v11, %v1964_v37  ;;  %3926 = vmatpush1.bf16.msra.mxu0 %v15664_v35  ;;  %4072 = vmatpush1.bf16.msra.mxu1 %v15667_v12  ;;  %v15725_v12 = vld [vmem:[%s21897_s5 + $0x850] ss:$8 sps:$4 sm:$0xff]   ;;  %v15736_v37 = vld [vmem:[%s21897_s5 + $0x8b4] ss:$8 sps:$4 sm:$0xff]   ;;  %v15731_v17 = vld [vmem:[%s21897_s5 + $0x840] ss:$8 sps:$4 sm:$0xff]  }
 0x43a   :  { %v1966_v21 = vpop.f32.mrf.mxu0  ;;  %v2090_v22 = vpop.f32.mrf.mxu1  ;;  %3927 = vmatprep.subr.bf16.mxu0 %v15672_v13  ;;  %4073 = vmatprep.subr.bf16.mxu1 %v15675_v14  ;;  %v15728_v13 = vld [vmem:[%s21897_s5 + $0x8c0] ss:$8 sps:$4 sm:$0xff]  }
 0x43b   :  { %v18725_v24 = vadd.f32 %v2087_v15, %v1966_v21  ;;  %3957 = vmatprep.mubr.bf16.mxu0 %v17011_v62  ;;  %v15740_v21 = vld [vmem:[%s21897_s5 + $0x8a0] ss:$8 sps:$4 sm:$0xff]   ;;  %v15745_v22 = vld [vmem:[%s21897_s5 + $0x824] ss:$8 sps:$4 sm:$0xff]  }
 0x43c   :  { %v1968_v25 = vpop.f32.mrf.mxu0 }
 0x43d   :  { %3928 = vmatpush1.bf16.msra.mxu0 %v15670_v38  ;;  %4074 = vmatpush1.bf16.msra.mxu1 %v15673_v19  ;;  %v15739_v38 = vld [vmem:[%s21897_s5 + $0x834] ss:$8 sps:$4 sm:$0xff]   ;;  %v15742_v19 = vld [vmem:[%s21897_s5 + $0x8a4] ss:$8 sps:$4 sm:$0xff]   ;;  %v15746_v25 = vld [vmem:[%s21897_s5 + $0x890] ss:$8 sps:$4 sm:$0xff]  }
 0x43e   :  { %v1969_v41 = vpop.f32.mrf.mxu0  ;;  %3929 = vmatprep.subr.bf16.mxu0 %v15678_v20  ;;  %4075 = vmatprep.subr.bf16.mxu1 %v15681_v23  ;;  %v15737_v20 = vld [vmem:[%s21897_s5 + $0x830] ss:$8 sps:$4 sm:$0xff]   ;;  %v15748_v23 = vld [vmem:[%s21897_s5 + $0x894] ss:$8 sps:$4 sm:$0xff]  }
 0x43f   :  { %v15754_v41 = vld [vmem:[%s21897_s5 + $0x884] ss:$8 sps:$4 sm:$0xff]  }
 0x441   :  { %3930 = vmatpush1.bf16.msra.mxu0 %v15676_v26  ;;  %4076 = vmatpush1.bf16.msra.mxu1 %v15679_v27  ;;  %v4112_v26 = vld [vmem:[#allocation3 + $0x8] sm:$0x1]  ;;  %v15751_v27 = vld [vmem:[%s21897_s5 + $0x814] ss:$8 sps:$4 sm:$0xff]  }
 0x442   :  { %3931 = vmatprep.subr.bf16.mxu0 %v15684_v28  ;;  %4077 = vmatprep.subr.bf16.mxu1 %v15687_v29  ;;  %v15749_v28 = vld [vmem:[%s21897_s5 + $0x810] ss:$8 sps:$4 sm:$0xff]   ;;  %v15752_v29 = vld [vmem:[%s21897_s5 + $0x880] ss:$8 sps:$4 sm:$0xff]  }
 0x445   :  { %3932 = vmatpush1.bf16.msra.mxu0 %v15682_v42  ;;  %4078 = vmatpush1.bf16.msra.mxu1 %v15685_v30  ;;  %v15757_v42 = vld [vmem:[%s21897_s5 + $0x804] ss:$8 sps:$4 sm:$0xff]   ;;  %v13508_v30 = vcombine.low %v4112_v26, %v4112_v26 }
 0x446   :  { %3933 = vmatprep.subr.bf16.mxu0 %v15690_v31  ;;  %4079 = vmatprep.subr.bf16.mxu1 %v15693_v32  ;;  %v15761_v31 = vld [vmem:[%s21897_s5 + $0x9f4] ss:$8 sps:$4 sm:$0xff]   ;;  %v15755_v32 = vld [vmem:[%s21897_s5 + $0x800] ss:$8 sps:$4 sm:$0xff]  }
 0x449   :  { %3934 = vmatpush1.bf16.msra.mxu0 %v15688_v33  ;;  %4080 = vmatpush1.bf16.msra.mxu1 %v15691_v34  ;;  %v15759_v33 = vld [vmem:[%s21897_s5 + $0x9f0] ss:$8 sps:$4 sm:$0xff]   ;;  %v15764_v34 = vld [vmem:[%s21897_s5 + $0x974] ss:$8 sps:$4 sm:$0xff]  }
 0x44a   :  { %3935 = vmatprep.subr.bf16.mxu0 %v15696_v36  ;;  %4081 = vmatprep.subr.bf16.mxu1 %v15699_v39  ;;  %v15767_v36 = vld [vmem:[%s21897_s5 + $0x9e4] ss:$8 sps:$4 sm:$0xff]   ;;  %v4272_v39 = vshrl.u32 %v13508_v30, 16 }
 0x44d   :  { %3936 = vmatpush1.bf16.msra.mxu0 %v15694_v43  ;;  %4082 = vmatpush1.bf16.msra.mxu1 %v15697_v44  ;;  %v15762_v43 = vld [vmem:[%s21897_s5 + $0x970] ss:$8 sps:$4 sm:$0xff]   ;;  %v15765_v44 = vld [vmem:[%s21897_s5 + $0x9e0] ss:$8 sps:$4 sm:$0xff]  }
 0x44e   :  { %3937 = vmatprep.subr.bf16.mxu0 %v15702_v45  ;;  %4083 = vmatprep.subr.bf16.mxu1 %v15705_v46  ;;  %v15770_v45 = vld [vmem:[%s21897_s5 + $0x964] ss:$8 sps:$4 sm:$0xff]   ;;  %v15773_v46 = vld [vmem:[%s21897_s5 + $0x9d4] ss:$8 sps:$4 sm:$0xff]  }
 0x451   :  { %3938 = vmatpush1.bf16.msra.mxu0 %v15700_v47  ;;  %4084 = vmatpush1.bf16.msra.mxu1 %v15703_v48 }
 0x452   :  { %3939 = vmatprep.subr.bf16.mxu0 %v15708_v49  ;;  %4355 = vmatprep.subr.bf16.mxu1 %v15712_v51  ;;  %v15768_v51 = vld [vmem:[%s21897_s5 + $0x960] ss:$8 sps:$4 sm:$0xff]  }
 0x454   :  { %v2372_v57 = vpop.f32.mrf.mxu1  ;;  %4102 = vmatmul.mubr.bf16.vlgmr.msra.gmra.mxu1 %v3987_v56  ;;  %v15779_v56 = vld [vmem:[%s21897_s5 + $0x9c4] ss:$8 sps:$4 sm:$0xff]  }
 0x455   :  { %3940 = vmatpush1.bf16.msra.mxu0 %v15706_v52  ;;  %4356 = vmatpush1.bf16.msra.mxu1 %v15710_v53  ;;  %v15771_v52 = vld [vmem:[%s21897_s5 + $0x9d0] ss:$8 sps:$4 sm:$0xff]   ;;  %v15776_v53 = vld [vmem:[%s21897_s5 + $0x954] ss:$8 sps:$4 sm:$0xff]  }
 0x456   :  { %v2374_v63 = vpop.f32.mrf.mxu1  ;;  %4209 = vmatprep.subr.bf16.mxu0 %v15715_v54  ;;  %4357 = vmatprep.subr.bf16.mxu1 %v15718_v55 }
 0x457   :  { %4387 = vmatprep.mubr.bf16.mxu1 %v17011_v62 }
 0x458   :  { %v2228_v1 = vpop.f32.mrf.mxu0  ;;  %v2376_v2 = vpop.f32.mrf.mxu1  ;;  %3958 = vmatmul.mubr.bf16.vlgmr.msra.gmra.mxu0 %v3843_v0 }
 0x459   :  { %v2235_v3 = vadd.f32 %v2228_v1, %v18711_v18  ;;  %4210 = vmatpush1.bf16.msra.mxu0 %v15713_v58  ;;  %4358 = vmatpush1.bf16.msra.mxu1 %v15716_v59  ;;  %v15734_v18 = vld [vmem:[%s21897_s5 + $0x8b0] ss:$8 sps:$4 sm:$0xff]   ;;  %v15782_v1 = vld [vmem:[%s21897_s5 + $0x944] ss:$8 sps:$4 sm:$0xff]   ;;  %v15785_v2 = vld [vmem:[%s21897_s5 + $0x9b4] ss:$8 sps:$4 sm:$0xff]  }
 0x45a   :  { %v2230_v7 = vpop.f32.mrf.mxu0  ;;  %v2377_v8 = vpop.f32.mrf.mxu1  ;;  %4211 = vmatprep.subr.bf16.mxu0 %v15721_v60  ;;  %4359 = vmatprep.subr.bf16.mxu1 %v15724_v61  ;;  %v15774_v60 = vld [vmem:[%s21897_s5 + $0x950] ss:$8 sps:$4 sm:$0xff]   ;;  %v15777_v61 = vld [vmem:[%s21897_s5 + $0x9c0] ss:$8 sps:$4 sm:$0xff]  }
 0x45b   :  { %v2236_v10 = vadd.f32 %v2230_v7, %v18725_v24  ;;  %4241 = vmatprep.mubr.bf16.mxu0 %v17011_v62  ;;  %v18828_v11 = vadd.f32 %v2372_v57, %v2235_v3  ;;  %v15743_v24 = vld [vmem:[%s21897_s5 + $0x820] ss:$8 sps:$4 sm:$0xff]   ;;  %v15786_v7 = vld [vmem:[%s21897_s5 + $0x930] ss:$8 sps:$4 sm:$0xff]  }
 0x45c   :  { %v2232_v35 = vpop.f32.mrf.mxu0  ;;  %v15780_v3 = vld [vmem:[%s21897_s5 + $0x940] ss:$8 sps:$4 sm:$0xff]  }
 0x45d   :  { %4212 = vmatpush1.bf16.msra.mxu0 %v15719_v4  ;;  %4360 = vmatpush1.bf16.msra.mxu1 %v15722_v5  ;;  %v18836_v14 = vadd.f32 %v2374_v63, %v2236_v10  ;;  %v15783_v4 = vld [vmem:[%s21897_s5 + $0x9b0] ss:$8 sps:$4 sm:$0xff]   ;;  %v15788_v5 = vld [vmem:[%s21897_s5 + $0x934] ss:$8 sps:$4 sm:$0xff]   ;;  %v15789_v8 = vld [vmem:[%s21897_s5 + $0x9a0] ss:$8 sps:$4 sm:$0xff]  }
 0x45e   :  { %v2233_v15 = vpop.f32.mrf.mxu0  ;;  %4213 = vmatprep.subr.bf16.mxu0 %v15727_v6  ;;  %4361 = vmatprep.subr.bf16.mxu1 %v15730_v9  ;;  %v15791_v6 = vld [vmem:[%s21897_s5 + $0x9a4] ss:$8 sps:$4 sm:$0xff]   ;;  %v15797_v10 = vld [vmem:[%s21897_s5 + $0x994] ss:$8 sps:$4 sm:$0xff]   ;;  %v15792_v35 = vld [vmem:[%s21897_s5 + $0x920] ss:$8 sps:$4 sm:$0xff]  }
 0x45f   :  { %v15794_v9 = vld [vmem:[%s21897_s5 + $0x924] ss:$8 sps:$4 sm:$0xff]   ;;  %v15798_v15 = vld [vmem:[%s21897_s5 + $0x910] ss:$8 sps:$4 sm:$0xff]  }
 0x461   :  { %4214 = vmatpush1.bf16.msra.mxu0 %v15725_v12  ;;  %4362 = vmatpush1.bf16.msra.mxu1 %v15728_v13  ;;  %v15795_v12 = vld [vmem:[%s21897_s5 + $0x990] ss:$8 sps:$4 sm:$0xff]   ;;  %v15800_v13 = vld [vmem:[%s21897_s5 + $0x914] ss:$8 sps:$4 sm:$0xff]  }
 0x462   :  { %4215 = vmatprep.subr.bf16.mxu0 %v15733_v16  ;;  %4363 = vmatprep.subr.bf16.mxu1 %v15736_v37  ;;  %v15801_v16 = vld [vmem:[%s21897_s5 + $0x980] ss:$8 sps:$4 sm:$0xff]   ;;  %v15806_v37 = vld [vmem:[%s21897_s5 + $0x904] ss:$8 sps:$4 sm:$0xff]  }
 0x465   :  { %4216 = vmatpush1.bf16.msra.mxu0 %v15731_v17  ;;  %4364 = vmatpush1.bf16.msra.mxu1 %v15734_v18  ;;  %v15810_v18 = vld [vmem:[%s21897_s5 + $0xaf4] ss:$8 sps:$4 sm:$0xff]  }
 0x466   :  { %4217 = vmatprep.subr.bf16.mxu0 %v15739_v38  ;;  %4365 = vmatprep.subr.bf16.mxu1 %v15742_v19  ;;  %v15804_v38 = vld [vmem:[%s21897_s5 + $0x900] ss:$8 sps:$4 sm:$0xff]   ;;  %v15808_v19 = vld [vmem:[%s21897_s5 + $0xaf0] ss:$8 sps:$4 sm:$0xff]  }
 0x469   :  { %4218 = vmatpush1.bf16.msra.mxu0 %v15737_v20  ;;  %4366 = vmatpush1.bf16.msra.mxu1 %v15740_v21  ;;  %v15813_v20 = vld [vmem:[%s21897_s5 + $0xa74] ss:$8 sps:$4 sm:$0xff]   ;;  %v15816_v21 = vld [vmem:[%s21897_s5 + $0xae4] ss:$8 sps:$4 sm:$0xff]  }
 0x46a   :  { %4219 = vmatprep.subr.bf16.mxu0 %v15745_v22  ;;  %4367 = vmatprep.subr.bf16.mxu1 %v15748_v23 }
 0x46d   :  { %4220 = vmatpush1.bf16.msra.mxu0 %v15743_v24  ;;  %4368 = vmatpush1.bf16.msra.mxu1 %v15746_v25  ;;  %v15811_v24 = vld [vmem:[%s21897_s5 + $0xa70] ss:$8 sps:$4 sm:$0xff]   ;;  %v15814_v25 = vld [vmem:[%s21897_s5 + $0xae0] ss:$8 sps:$4 sm:$0xff]  }
 0x46e   :  { %4221 = vmatprep.subr.bf16.mxu0 %v15751_v27  ;;  %4369 = vmatprep.subr.bf16.mxu1 %v15754_v41  ;;  %v15822_v27 = vld [vmem:[%s21897_s5 + $0xad4] ss:$8 sps:$4 sm:$0xff]  }
 0x471   :  { %4222 = vmatpush1.bf16.msra.mxu0 %v15749_v28  ;;  %4370 = vmatpush1.bf16.msra.mxu1 %v15752_v29 }
 0x472   :  { %4223 = vmatprep.subr.bf16.mxu0 %v15757_v42  ;;  %4644 = vmatprep.subr.bf16.mxu1 %v15761_v31  ;;  %v15817_v31 = vld [vmem:[%s21897_s5 + $0xa60] ss:$8 sps:$4 sm:$0xff]  }
 0x474   :  { %v2661_v40 = vpop.f32.mrf.mxu1  ;;  %4388 = vmatmul.mubr.bf16.vlgmr.msra.gmra.mxu1 %v4272_v39  ;;  %v15828_v39 = vld [vmem:[%s21897_s5 + $0xac4] ss:$8 sps:$4 sm:$0xff]  }
 0x475   :  { %4224 = vmatpush1.bf16.msra.mxu0 %v15755_v32  ;;  %4645 = vmatpush1.bf16.msra.mxu1 %v15759_v33  ;;  %v15820_v32 = vld [vmem:[%s21897_s5 + $0xad0] ss:$8 sps:$4 sm:$0xff]   ;;  %v15825_v33 = vld [vmem:[%s21897_s5 + $0xa54] ss:$8 sps:$4 sm:$0xff]  }
 0x476   :  { %v2663_v47 = vpop.f32.mrf.mxu1  ;;  %4500 = vmatprep.subr.bf16.mxu0 %v15764_v34  ;;  %4646 = vmatprep.subr.bf16.mxu1 %v15767_v36 }
 0x477   :  { %4676 = vmatprep.mubr.bf16.mxu1 %v17011_v62 }
 0x478   :  { %v2517_v48 = vpop.f32.mrf.mxu0  ;;  %v2665_v49 = vpop.f32.mrf.mxu1  ;;  %4242 = vmatmul.mubr.bf16.vlgmr.msra.gmra.mxu0 %v4112_v26  ;;  %v15819_v26 = vld [vmem:[%s21897_s5 + $0xa64] ss:$8 sps:$4 sm:$0xff]  }
 0x479   :  { %v2524_v50 = vadd.f32 %v2517_v48, %v18828_v11  ;;  %4501 = vmatpush1.bf16.msra.mxu0 %v15762_v43  ;;  %4647 = vmatpush1.bf16.msra.mxu1 %v15765_v44  ;;  %v15807_v11 = vld [vmem:[#allocation3 + $0x8] ss:$0 sps:$4 sm:$0x22]   ;;  %v15831_v49 = vld [vmem:[%s21897_s5 + $0xa44] ss:$8 sps:$4 sm:$0xff]  }
 0x47a   :  { %v2519_v54 = vpop.f32.mrf.mxu0  ;;  %v2666_v55 = vpop.f32.mrf.mxu1  ;;  %4502 = vmatprep.subr.bf16.mxu0 %v15770_v45  ;;  %4648 = vmatprep.subr.bf16.mxu1 %v15773_v46  ;;  %v4560_v17 = vshrl.u32 %v15807_v11, 16  ;;  %v4418_v28 = vrot.slane %v15807_v11, 1  ;;  %v15823_v45 = vld [vmem:[%s21897_s5 + $0xa50] ss:$8 sps:$4 sm:$0xff]   ;;  %v15826_v46 = vld [vmem:[%s21897_s5 + $0xac0] ss:$8 sps:$4 sm:$0xff]  }
 0x47b   :  { %v2525_v57 = vadd.f32 %v2519_v54, %v18836_v14  ;;  %4532 = vmatprep.mubr.bf16.mxu0 %v17011_v62  ;;  %v18932_v58 = vadd.f32 %v2661_v40, %v2524_v50  ;;  %v15803_v14 = vld [vmem:[%s21897_s5 + $0x984] ss:$8 sps:$4 sm:$0xff]   ;;  %v15834_v50 = vld [vmem:[%s21897_s5 + $0xab4] ss:$8 sps:$4 sm:$0xff]   ;;  %v15835_v55 = vld [vmem:[%s21897_s5 + $0xa30] ss:$8 sps:$4 sm:$0xff]  }
 0x47c   :  { %v2521_v59 = vpop.f32.mrf.mxu0  ;;  %v4562_v22 = vrot.slane %v4560_v17, 1  ;;  %v15840_v54 = vld [vmem:[%s21897_s5 + $0xaa4] ss:$8 sps:$4 sm:$0xff]  }
 0x47d   :  { %4503 = vmatpush1.bf16.msra.mxu0 %v15768_v51  ;;  %4649 = vmatpush1.bf16.msra.mxu1 %v15771_v52  ;;  %v18940_v63 = vadd.f32 %v2663_v47, %v2525_v57  ;;  %v15829_v51 = vld [vmem:[%s21897_s5 + $0xa40] ss:$8 sps:$4 sm:$0xff]   ;;  %v15832_v52 = vld [vmem:[%s21897_s5 + $0xab0] ss:$8 sps:$4 sm:$0xff]   ;;  %v15843_v57 = vld [vmem:[%s21897_s5 + $0xa24] ss:$8 sps:$4 sm:$0xff]  }
 0x47e   :  { %v2522_v0 = vpop.f32.mrf.mxu0  ;;  %4504 = vmatprep.subr.bf16.mxu0 %v15776_v53  ;;  %4650 = vmatprep.subr.bf16.mxu1 %v15779_v56  ;;  %v15837_v53 = vld [vmem:[%s21897_s5 + $0xa34] ss:$8 sps:$4 sm:$0xff]   ;;  %v15838_v56 = vld [vmem:[%s21897_s5 + $0xaa0] ss:$8 sps:$4 sm:$0xff]  }
 0x47f   :  { %v15856_v59 = vld [vmem:[#allocation3 + $0x8] ss:$0 sps:$4 sm:$0x44]   ;;  %v15852_v0 = vld [vmem:[%s21897_s5 + $0xa84] ss:$8 sps:$4 sm:$0xff]  }
 0x481   :  { %4505 = vmatpush1.bf16.msra.mxu0 %v15774_v60  ;;  %4651 = vmatpush1.bf16.msra.mxu1 %v15777_v61  ;;  %v15841_v60 = vld [vmem:[%s21897_s5 + $0xa20] ss:$8 sps:$4 sm:$0xff]   ;;  %v15844_v61 = vld [vmem:[%s21897_s5 + $0xa90] ss:$8 sps:$4 sm:$0xff]  }
 0x482   :  { %4506 = vmatprep.subr.bf16.mxu0 %v15782_v1  ;;  %4652 = vmatprep.subr.bf16.mxu1 %v15785_v2  ;;  %v15847_v1 = vld [vmem:[%s21897_s5 + $0xa10] ss:$8 sps:$4 sm:$0xff]   ;;  %v15850_v2 = vld [vmem:[%s21897_s5 + $0xa80] ss:$8 sps:$4 sm:$0xff]  }
 0x485   :  { %4507 = vmatpush1.bf16.msra.mxu0 %v15780_v3  ;;  %4653 = vmatpush1.bf16.msra.mxu1 %v15783_v4  ;;  %v15855_v3 = vld [vmem:[%s21897_s5 + $0xa04] ss:$8 sps:$4 sm:$0xff]   ;;  %v4849_v4 = vshrl.u32 %v15856_v59, 16 }
 0x486   :  { %4508 = vmatprep.subr.bf16.mxu0 %v15788_v5  ;;  %4654 = vmatprep.subr.bf16.mxu1 %v15791_v6  ;;  %v15859_v5 = vld [vmem:[%s21897_s5 + $0xbf4] ss:$8 sps:$4 sm:$0xff]   ;;  %v15853_v6 = vld [vmem:[%s21897_s5 + $0xa00] ss:$8 sps:$4 sm:$0xff]  }
 0x489   :  { %4509 = vmatpush1.bf16.msra.mxu0 %v15786_v7  ;;  %4655 = vmatpush1.bf16.msra.mxu1 %v15789_v8  ;;  %v15857_v7 = vld [vmem:[%s21897_s5 + $0xbf0] ss:$8 sps:$4 sm:$0xff]   ;;  %v15862_v8 = vld [vmem:[%s21897_s5 + $0xb74] ss:$8 sps:$4 sm:$0xff]  }
 0x48a   :  { %4510 = vmatprep.subr.bf16.mxu0 %v15794_v9  ;;  %4656 = vmatprep.subr.bf16.mxu1 %v15797_v10  ;;  %v15865_v9 = vld [vmem:[%s21897_s5 + $0xbe4] ss:$8 sps:$4 sm:$0xff]   ;;  %v4851_v10 = vrot.slane %v4849_v4, 2  ;;  %v15918_v4 = vld [vmem:[%s21897_s5 + $0xcd0] ss:$8 sps:$4 sm:$0xff]  }
 0x48d   :  { %4511 = vmatpush1.bf16.msra.mxu0 %v15792_v35  ;;  %4657 = vmatpush1.bf16.msra.mxu1 %v15795_v12  ;;  %v15860_v35 = vld [vmem:[%s21897_s5 + $0xb70] ss:$8 sps:$4 sm:$0xff]   ;;  %v15863_v12 = vld [vmem:[%s21897_s5 + $0xbe0] ss:$8 sps:$4 sm:$0xff]  }
 0x48e   :  { %4512 = vmatprep.subr.bf16.mxu0 %v15800_v13  ;;  %4658 = vmatprep.subr.bf16.mxu1 %v15803_v14  ;;  %v15868_v13 = vld [vmem:[%s21897_s5 + $0xb64] ss:$8 sps:$4 sm:$0xff]   ;;  %v15871_v14 = vld [vmem:[%s21897_s5 + $0xbd4] ss:$8 sps:$4 sm:$0xff]  }
 0x491   :  { %4513 = vmatpush1.bf16.msra.mxu0 %v15798_v15  ;;  %4659 = vmatpush1.bf16.msra.mxu1 %v15801_v16  ;;  %v4707_v16 = vrot.slane %v15856_v59, 2  ;;  %v15909_v59 = vld [vmem:[%s21897_s5 + $0xc70] ss:$8 sps:$4 sm:$0xff]  }
 0x492   :  { %4514 = vmatprep.subr.bf16.mxu0 %v15806_v37  ;;  %4933 = vmatprep.subr.bf16.mxu1 %v15810_v18 }
 0x494   :  { %v2950_v23 = vpop.f32.mrf.mxu1  ;;  %4677 = vmatmul.mubr.bf16.vlgmr.msra.gmra.mxu1 %v4562_v22 }
 0x495   :  { %4515 = vmatpush1.bf16.msra.mxu0 %v15804_v38  ;;  %4934 = vmatpush1.bf16.msra.mxu1 %v15808_v19  ;;  %v15866_v38 = vld [vmem:[%s21897_s5 + $0xb60] ss:$8 sps:$4 sm:$0xff]   ;;  %v15869_v19 = vld [vmem:[%s21897_s5 + $0xbd0] ss:$8 sps:$4 sm:$0xff]  }
 0x496   :  { %v2952_v41 = vpop.f32.mrf.mxu1  ;;  %4789 = vmatprep.subr.bf16.mxu0 %v15813_v20  ;;  %4935 = vmatprep.subr.bf16.mxu1 %v15816_v21  ;;  %v15874_v20 = vld [vmem:[%s21897_s5 + $0xb54] ss:$8 sps:$4 sm:$0xff]  }
 0x497   :  { %4965 = vmatprep.mubr.bf16.mxu1 %v17011_v62 }
 0x498   :  { %v2806_v29 = vpop.f32.mrf.mxu0  ;;  %v2954_v42 = vpop.f32.mrf.mxu1  ;;  %4533 = vmatmul.mubr.bf16.vlgmr.msra.gmra.mxu0 %v4418_v28 }
 0x499   :  { %v2813_v30 = vadd.f32 %v2806_v29, %v18932_v58  ;;  %4790 = vmatpush1.bf16.msra.mxu0 %v15811_v24  ;;  %4936 = vmatpush1.bf16.msra.mxu1 %v15814_v25  ;;  %v15846_v58 = vld [vmem:[%s21897_s5 + $0xa94] ss:$8 sps:$4 sm:$0xff]   ;;  %v15880_v42 = vld [vmem:[%s21897_s5 + $0xb44] ss:$8 sps:$4 sm:$0xff]  }
 0x49a   :  { %v2808_v34 = vpop.f32.mrf.mxu0  ;;  %v2955_v36 = vpop.f32.mrf.mxu1  ;;  %4791 = vmatprep.subr.bf16.mxu0 %v15819_v26  ;;  %4937 = vmatprep.subr.bf16.mxu1 %v15822_v27  ;;  %v15872_v27 = vld [vmem:[%s21897_s5 + $0xb50] ss:$8 sps:$4 sm:$0xff]  }
 0x49b   :  { %v2814_v40 = vadd.f32 %v2808_v34, %v18940_v63  ;;  %4821 = vmatprep.mubr.bf16.mxu0 %v17011_v62  ;;  %v19036_v43 = vadd.f32 %v2950_v23, %v2813_v30  ;;  %v15849_v63 = vld [vmem:[%s21897_s5 + $0xa14] ss:$8 sps:$4 sm:$0xff]   ;;  %v15877_v23 = vld [vmem:[%s21897_s5 + $0xbc4] ss:$8 sps:$4 sm:$0xff]   ;;  %v15884_v36 = vld [vmem:[%s21897_s5 + $0xb30] ss:$8 sps:$4 sm:$0xff]  }
 0x49c   :  { %v2810_v44 = vpop.f32.mrf.mxu0  ;;  %v15883_v30 = vld [vmem:[%s21897_s5 + $0xbb4] ss:$8 sps:$4 sm:$0xff]   ;;  %v15889_v34 = vld [vmem:[%s21897_s5 + $0xba4] ss:$8 sps:$4 sm:$0xff]  }
 0x49d   :  { %4792 = vmatpush1.bf16.msra.mxu0 %v15817_v31  ;;  %4938 = vmatpush1.bf16.msra.mxu1 %v15820_v32  ;;  %v19044_v47 = vadd.f32 %v2952_v41, %v2814_v40  ;;  %v15875_v41 = vld [vmem:[%s21897_s5 + $0xbc0] ss:$8 sps:$4 sm:$0xff]   ;;  %v15881_v32 = vld [vmem:[%s21897_s5 + $0xbb0] ss:$8 sps:$4 sm:$0xff]   ;;  %v15892_v40 = vld [vmem:[%s21897_s5 + $0xb24] ss:$8 sps:$4 sm:$0xff]  }
 0x49e   :  { %v2811_v48 = vpop.f32.mrf.mxu0  ;;  %4793 = vmatprep.subr.bf16.mxu0 %v15825_v33  ;;  %4939 = vmatprep.subr.bf16.mxu1 %v15828_v39  ;;  %v15878_v31 = vld [vmem:[%s21897_s5 + $0xb40] ss:$8 sps:$4 sm:$0xff]   ;;  %v15886_v33 = vld [vmem:[%s21897_s5 + $0xb34] ss:$8 sps:$4 sm:$0xff]  }
 0x49f   :  { %v15887_v39 = vld [vmem:[%s21897_s5 + $0xba0] ss:$8 sps:$4 sm:$0xff]   ;;  %v15901_v48 = vld [vmem:[%s21897_s5 + $0xb84] ss:$8 sps:$4 sm:$0xff]  }
 0x4a0   :  { %v15905_v44 = vld [vmem:[#allocation3 + $0x8] ss:$0 sps:$4 sm:$0x88]  }
 0x4a1   :  { %4794 = vmatpush1.bf16.msra.mxu0 %v15823_v45  ;;  %4940 = vmatpush1.bf16.msra.mxu1 %v15826_v46  ;;  %v15890_v45 = vld [vmem:[%s21897_s5 + $0xb20] ss:$8 sps:$4 sm:$0xff]   ;;  %v15893_v46 = vld [vmem:[%s21897_s5 + $0xb90] ss:$8 sps:$4 sm:$0xff]  }
 0x4a2   :  { %4795 = vmatprep.subr.bf16.mxu0 %v15831_v49  ;;  %4941 = vmatprep.subr.bf16.mxu1 %v15834_v50  ;;  %v15896_v49 = vld [vmem:[%s21897_s5 + $0xb10] ss:$8 sps:$4 sm:$0xff]   ;;  %v15899_v50 = vld [vmem:[%s21897_s5 + $0xb80] ss:$8 sps:$4 sm:$0xff]  }
 0x4a5   :  { %4796 = vmatpush1.bf16.msra.mxu0 %v15829_v51  ;;  %4942 = vmatpush1.bf16.msra.mxu1 %v15832_v52  ;;  %v15904_v51 = vld [vmem:[%s21897_s5 + $0xb04] ss:$8 sps:$4 sm:$0xff]   ;;  %v5138_v52 = vshrl.u32 %v15905_v44, 16 }
 0x4a6   :  { %4797 = vmatprep.subr.bf16.mxu0 %v15837_v53  ;;  %4943 = vmatprep.subr.bf16.mxu1 %v15840_v54  ;;  %v15908_v53 = vld [vmem:[%s21897_s5 + $0xcf4] ss:$8 sps:$4 sm:$0xff]   ;;  %v15902_v54 = vld [vmem:[%s21897_s5 + $0xb00] ss:$8 sps:$4 sm:$0xff]  }
 0x4a9   :  { %4798 = vmatpush1.bf16.msra.mxu0 %v15835_v55  ;;  %4944 = vmatpush1.bf16.msra.mxu1 %v15838_v56  ;;  %v15906_v55 = vld [vmem:[%s21897_s5 + $0xcf0] ss:$8 sps:$4 sm:$0xff]   ;;  %v15911_v56 = vld [vmem:[%s21897_s5 + $0xc74] ss:$8 sps:$4 sm:$0xff]  }
 0x4aa   :  { %4799 = vmatprep.subr.bf16.mxu0 %v15843_v57  ;;  %4945 = vmatprep.subr.bf16.mxu1 %v15846_v58  ;;  %v15914_v57 = vld [vmem:[%s21897_s5 + $0xce4] ss:$8 sps:$4 sm:$0xff]   ;;  %v5140_v58 = vrot.slane %v5138_v52, 3 }
 0x4ad   :  { %4800 = vmatpush1.bf16.msra.mxu0 %v15841_v60  ;;  %4946 = vmatpush1.bf16.msra.mxu1 %v15844_v61  ;;  %v15912_v60 = vld [vmem:[%s21897_s5 + $0xce0] ss:$8 sps:$4 sm:$0xff]  }
 0x4ae   :  { %4801 = vmatprep.subr.bf16.mxu0 %v15849_v63  ;;  %4947 = vmatprep.subr.bf16.mxu1 %v15852_v0  ;;  %v15917_v63 = vld [vmem:[%s21897_s5 + $0xc64] ss:$8 sps:$4 sm:$0xff]   ;;  %v15920_v0 = vld [vmem:[%s21897_s5 + $0xcd4] ss:$8 sps:$4 sm:$0xff]  }
 0x4b1   :  { %4802 = vmatpush1.bf16.msra.mxu0 %v15847_v1  ;;  %4948 = vmatpush1.bf16.msra.mxu1 %v15850_v2  ;;  %v4996_v2 = vrot.slane %v15905_v44, 3  ;;  %v15955_v44 = vld [vmem:[%s21897_s5 + $0xdf0] ss:$8 sps:$4 sm:$0xff]  }
 0x4b2   :  { %4803 = vmatprep.subr.bf16.mxu0 %v15855_v3  ;;  %5222 = vmatprep.subr.bf16.mxu1 %v15859_v5  ;;  %v15915_v3 = vld [vmem:[%s21897_s5 + $0xc60] ss:$8 sps:$4 sm:$0xff]  }
 0x4b4   :  { %v3236_v11 = vpop.f32.mrf.mxu1  ;;  %4966 = vmatmul.mubr.bf16.vlgmr.msra.gmra.mxu1 %v4851_v10 }
 0x4b5   :  { %4804 = vmatpush1.bf16.msra.mxu0 %v15853_v6  ;;  %5223 = vmatpush1.bf16.msra.mxu1 %v15857_v7 }
 0x4b6   :  { %v3238_v15 = vpop.f32.mrf.mxu1  ;;  %5078 = vmatprep.subr.bf16.mxu0 %v15862_v8  ;;  %5224 = vmatprep.subr.bf16.mxu1 %v15865_v9  ;;  %v15923_v8 = vld [vmem:[%s21897_s5 + $0xc54] ss:$8 sps:$4 sm:$0xff]   ;;  %v15926_v9 = vld [vmem:[%s21897_s5 + $0xcc4] ss:$8 sps:$4 sm:$0xff]  }
 0x4b7   :  { %5254 = vmatprep.mubr.bf16.mxu1 %v17011_v62 }
 0x4b8   :  { %v3090_v37 = vpop.f32.mrf.mxu0  ;;  %v3240_v17 = vpop.f32.mrf.mxu1  ;;  %4822 = vmatmul.mubr.bf16.vlgmr.msra.gmra.mxu0 %v4707_v16 }
 0x4b9   :  { %v3097_v18 = vadd.f32 %v3090_v37, %v19036_v43  ;;  %5079 = vmatpush1.bf16.msra.mxu0 %v15860_v35  ;;  %5225 = vmatpush1.bf16.msra.mxu1 %v15863_v12  ;;  %v15895_v43 = vld [vmem:[%s21897_s5 + $0xb94] ss:$8 sps:$4 sm:$0xff]   ;;  %v15929_v17 = vld [vmem:[%s21897_s5 + $0xc44] ss:$8 sps:$4 sm:$0xff]  }
 0x4ba   :  { %v3092_v21 = vpop.f32.mrf.mxu0  ;;  %v3241_v22 = vpop.f32.mrf.mxu1  ;;  %5080 = vmatprep.subr.bf16.mxu0 %v15868_v13  ;;  %5226 = vmatprep.subr.bf16.mxu1 %v15871_v14  ;;  %v15921_v14 = vld [vmem:[%s21897_s5 + $0xc50] ss:$8 sps:$4 sm:$0xff]  }
 0x4bb   :  { %v3098_v24 = vadd.f32 %v3092_v21, %v19044_v47  ;;  %5110 = vmatprep.mubr.bf16.mxu0 %v17011_v62  ;;  %v19140_v25 = vadd.f32 %v3236_v11, %v3097_v18  ;;  %v15898_v47 = vld [vmem:[%s21897_s5 + $0xb14] ss:$8 sps:$4 sm:$0xff]   ;;  %v15938_v21 = vld [vmem:[%s21897_s5 + $0xca4] ss:$8 sps:$4 sm:$0xff]   ;;  %v15933_v22 = vld [vmem:[%s21897_s5 + $0xc30] ss:$8 sps:$4 sm:$0xff]  }
 0x4bc   :  { %v3094_v26 = vpop.f32.mrf.mxu0  ;;  %v15932_v18 = vld [vmem:[%s21897_s5 + $0xcb4] ss:$8 sps:$4 sm:$0xff]  }
 0x4bd   :  { %5081 = vmatpush1.bf16.msra.mxu0 %v15866_v38  ;;  %5227 = vmatpush1.bf16.msra.mxu1 %v15869_v19  ;;  %v19148_v28 = vadd.f32 %v3238_v15, %v3098_v24  ;;  %v15924_v15 = vld [vmem:[%s21897_s5 + $0xcc0] ss:$8 sps:$4 sm:$0xff]   ;;  %v15930_v19 = vld [vmem:[%s21897_s5 + $0xcb0] ss:$8 sps:$4 sm:$0xff]   ;;  %v15941_v24 = vld [vmem:[%s21897_s5 + $0xc24] ss:$8 sps:$4 sm:$0xff]   ;;  %v19284_v26 = vpop.permute.xlu1 %6827 }
 0x4be   :  { %v3095_v29 = vpop.f32.mrf.mxu0  ;;  %5082 = vmatprep.subr.bf16.mxu0 %v15874_v20  ;;  %5228 = vmatprep.subr.bf16.mxu1 %v15877_v23  ;;  %v15927_v38 = vld [vmem:[%s21897_s5 + $0xc40] ss:$8 sps:$4 sm:$0xff]   ;;  %v15935_v20 = vld [vmem:[%s21897_s5 + $0xc34] ss:$8 sps:$4 sm:$0xff]  }
 0x4bf   :  { %v15936_v23 = vld [vmem:[%s21897_s5 + $0xca0] ss:$8 sps:$4 sm:$0xff]   ;;  %v15950_v29 = vld [vmem:[%s21897_s5 + $0xc84] ss:$8 sps:$4 sm:$0xff]  }
 0x4c1   :  { %5083 = vmatpush1.bf16.msra.mxu0 %v15872_v27  ;;  %5229 = vmatpush1.bf16.msra.mxu1 %v15875_v41  ;;  %v15939_v27 = vld [vmem:[%s21897_s5 + $0xc20] ss:$8 sps:$4 sm:$0xff]   ;;  %v15942_v41 = vld [vmem:[%s21897_s5 + $0xc90] ss:$8 sps:$4 sm:$0xff]  }
 0x4c2   :  { %5084 = vmatprep.subr.bf16.mxu0 %v15880_v42  ;;  %5230 = vmatprep.subr.bf16.mxu1 %v15883_v30  ;;  %v19298_v42 = vpop.permute.xlu0 %6811  ;;  %v5265_v30 = vld [vmem:[#allocation3 + $0xc] sm:$0x1] }
 0x4c5   :  { %5085 = vmatpush1.bf16.msra.mxu0 %v15878_v31  ;;  %5231 = vmatpush1.bf16.msra.mxu1 %v15881_v32  ;;  %v15945_v31 = vld [vmem:[%s21897_s5 + $0xc10] ss:$8 sps:$4 sm:$0xff]   ;;  %v15948_v32 = vld [vmem:[%s21897_s5 + $0xc80] ss:$8 sps:$4 sm:$0xff]  }
 0x4c6   :  { %5086 = vmatprep.subr.bf16.mxu0 %v15886_v33  ;;  %5232 = vmatprep.subr.bf16.mxu1 %v15889_v34  ;;  %v15953_v33 = vld [vmem:[%s21897_s5 + $0xc04] ss:$8 sps:$4 sm:$0xff]   ;;  %v13640_v34 = vcombine.low %v5265_v30, %v5265_v30 }
 0x4c9   :  { %5087 = vmatpush1.bf16.msra.mxu0 %v15884_v36  ;;  %5233 = vmatpush1.bf16.msra.mxu1 %v15887_v39  ;;  %v15957_v36 = vld [vmem:[%s21897_s5 + $0xdf4] ss:$8 sps:$4 sm:$0xff]   ;;  %v19312_v39 = vpop.permute.xlu1 %6825 }
 0x4ca   :  { %5088 = vmatprep.subr.bf16.mxu0 %v15892_v40  ;;  %5234 = vmatprep.subr.bf16.mxu1 %v15895_v43  ;;  %v19314_v40 = vpop.permute.xlu0 %6809  ;;  %v15951_v43 = vld [vmem:[%s21897_s5 + $0xc00] ss:$8 sps:$4 sm:$0xff]  }
 0x4cd   :  { %5089 = vmatpush1.bf16.msra.mxu0 %v15890_v45  ;;  %5235 = vmatpush1.bf16.msra.mxu1 %v15893_v46  ;;  %v5425_v45 = vshrl.u32 %v13640_v34, 16  ;;  %v15960_v46 = vld [vmem:[%s21897_s5 + $0xd74] ss:$8 sps:$4 sm:$0xff]   ;;  %v16000_v34 = vld [vmem:[%s21897_s5 + $0xd00] ss:$8 sps:$4 sm:$0xff]  }
 0x4ce   :  { %5090 = vmatprep.subr.bf16.mxu0 %v15898_v47  ;;  %5236 = vmatprep.subr.bf16.mxu1 %v15901_v48  ;;  %v15963_v47 = vld [vmem:[%s21897_s5 + $0xde4] ss:$8 sps:$4 sm:$0xff]  }
 0x4d1   :  { %5091 = vmatpush1.bf16.msra.mxu0 %v15896_v49  ;;  %5237 = vmatpush1.bf16.msra.mxu1 %v15899_v50  ;;  %v19328_v49 = vpop.permute.xlu1 %6823  ;;  %v15958_v50 = vld [vmem:[%s21897_s5 + $0xd70] ss:$8 sps:$4 sm:$0xff]  }
 0x4d2   :  { %5092 = vmatprep.subr.bf16.mxu0 %v15904_v51  ;;  %5508 = vmatprep.subr.bf16.mxu1 %v15908_v53  ;;  %v15961_v51 = vld [vmem:[%s21897_s5 + $0xde0] ss:$8 sps:$4 sm:$0xff]   ;;  %v15966_v53 = vld [vmem:[%s21897_s5 + $0xd64] ss:$8 sps:$4 sm:$0xff]  }
 0x4d4   :  { %v3525_v61 = vpop.f32.mrf.mxu1  ;;  %5255 = vmatmul.mubr.bf16.vlgmr.msra.gmra.mxu1 %v5140_v58 }
 0x4d5   :  { %5093 = vmatpush1.bf16.msra.mxu0 %v15902_v54  ;;  %5509 = vmatpush1.bf16.msra.mxu1 %v15906_v55  ;;  %v15969_v54 = vld [vmem:[%s21897_s5 + $0xdd4] ss:$8 sps:$4 sm:$0xff]   ;;  %v19342_v55 = vpop.permute.xlu0 %6807 }
 0x4d6   :  { %v3527_v1 = vpop.f32.mrf.mxu1  ;;  %5362 = vmatprep.subr.bf16.mxu0 %v15911_v56  ;;  %5510 = vmatprep.subr.bf16.mxu1 %v15914_v57 }
 0x4d7   :  { %5540 = vmatprep.mubr.bf16.mxu1 %v17011_v62 }
 0x4d8   :  { %v3381_v5 = vpop.f32.mrf.mxu0  ;;  %v3529_v6 = vpop.f32.mrf.mxu1  ;;  %5111 = vmatmul.mubr.bf16.vlgmr.msra.gmra.mxu0 %v4996_v2 }
 0x4d9   :  { %v3388_v7 = vadd.f32 %v3381_v5, %v19140_v25  ;;  %5363 = vmatpush1.bf16.msra.mxu0 %v15909_v59  ;;  %5511 = vmatpush1.bf16.msra.mxu1 %v15912_v60  ;;  %v15944_v25 = vld [vmem:[%s21897_s5 + $0xc94] ss:$8 sps:$4 sm:$0xff]   ;;  %v15964_v59 = vld [vmem:[%s21897_s5 + $0xd60] ss:$8 sps:$4 sm:$0xff]   ;;  %v15967_v60 = vld [vmem:[%s21897_s5 + $0xdd0] ss:$8 sps:$4 sm:$0xff]   ;;  %v19358_v2 = vpop.permute.xlu1 %6821  ;;  %v19364_v6 = vpop.permute.xlu0 %6805 }
 0x4da   :  { %v3383_v10 = vpop.f32.mrf.mxu0  ;;  %v3530_v11 = vpop.f32.mrf.mxu1  ;;  %5364 = vmatprep.subr.bf16.mxu0 %v15917_v63  ;;  %5512 = vmatprep.subr.bf16.mxu1 %v15920_v0  ;;  %v15972_v0 = vld [vmem:[%s21897_s5 + $0xd54] ss:$8 sps:$4 sm:$0xff]  }
 0x4db   :  { %v3389_v35 = vadd.f32 %v3383_v10, %v19148_v28  ;;  %5394 = vmatprep.mubr.bf16.mxu0 %v17011_v62  ;;  %v19244_v12 = vadd.f32 %v3525_v61, %v3388_v7  ;;  %v15947_v28 = vld [vmem:[%s21897_s5 + $0xc14] ss:$8 sps:$4 sm:$0xff]   ;;  %v15970_v7 = vld [vmem:[%s21897_s5 + $0xd50] ss:$8 sps:$4 sm:$0xff]   ;;  %v15978_v11 = vld [vmem:[%s21897_s5 + $0xd44] ss:$8 sps:$4 sm:$0xff]  }
 0x4dc   :  { %v3385_v13 = vpop.f32.mrf.mxu0 }
 0x4dd   :  { %5365 = vmatpush1.bf16.msra.mxu0 %v15915_v3  ;;  %5513 = vmatpush1.bf16.msra.mxu1 %v15918_v4  ;;  %v19252_v16 = vadd.f32 %v3527_v1, %v3389_v35  ;;  %v15975_v1 = vld [vmem:[%s21897_s5 + $0xdc4] ss:$8 sps:$4 sm:$0xff]   ;;  %v15981_v35 = vld [vmem:[%s21897_s5 + $0xdb4] ss:$8 sps:$4 sm:$0xff]   ;;  %v15976_v13 = vld [vmem:[%s21897_s5 + $0xd40] ss:$8 sps:$4 sm:$0xff]  }
 0x4de   :  { %v3386_v37 = vpop.f32.mrf.mxu0  ;;  %5366 = vmatprep.subr.bf16.mxu0 %v15923_v8  ;;  %5514 = vmatprep.subr.bf16.mxu1 %v15926_v9  ;;  %v15973_v8 = vld [vmem:[%s21897_s5 + $0xdc0] ss:$8 sps:$4 sm:$0xff]  }
 0x4df   :  { %v19394_v37 = vpop.permute.xlu0 %6803 }
 0x4e1   :  { %5367 = vmatpush1.bf16.msra.mxu0 %v15921_v14  ;;  %5515 = vmatpush1.bf16.msra.mxu1 %v15924_v15  ;;  %v15979_v14 = vld [vmem:[%s21897_s5 + $0xdb0] ss:$8 sps:$4 sm:$0xff]   ;;  %v15984_v15 = vld [vmem:[%s21897_s5 + $0xd34] ss:$8 sps:$4 sm:$0xff]  }
 0x4e2   :  { %5368 = vmatprep.subr.bf16.mxu0 %v15929_v17  ;;  %5516 = vmatprep.subr.bf16.mxu1 %v15932_v18  ;;  %v15982_v17 = vld [vmem:[%s21897_s5 + $0xd30] ss:$8 sps:$4 sm:$0xff]   ;;  %v15985_v18 = vld [vmem:[%s21897_s5 + $0xda0] ss:$8 sps:$4 sm:$0xff]  }
 0x4e5   :  { %5369 = vmatpush1.bf16.msra.mxu0 %v15927_v38  ;;  %5517 = vmatpush1.bf16.msra.mxu1 %v15930_v19  ;;  %v15990_v38 = vld [vmem:[%s21897_s5 + $0xd24] ss:$8 sps:$4 sm:$0xff]   ;;  %v15993_v19 = vld [vmem:[%s21897_s5 + $0xd94] ss:$8 sps:$4 sm:$0xff]  }
 0x4e6   :  { %5370 = vmatprep.subr.bf16.mxu0 %v15935_v20  ;;  %5518 = vmatprep.subr.bf16.mxu1 %v15938_v21  ;;  %v16003_v21 = vld [vmem:[#allocation3 + $0xc] ss:$0 sps:$4 sm:$0x22]  }
 0x4e9   :  { %5371 = vmatpush1.bf16.msra.mxu0 %v15933_v22  ;;  %5519 = vmatpush1.bf16.msra.mxu1 %v15936_v23  ;;  %v19410_v22 = vpop.permute.xlu0 %6801  ;;  %v15988_v23 = vld [vmem:[%s21897_s5 + $0xd20] ss:$8 sps:$4 sm:$0xff]  }
 0x4ea   :  { %5372 = vmatprep.subr.bf16.mxu0 %v15941_v24  ;;  %5520 = vmatprep.subr.bf16.mxu1 %v15944_v25  ;;  %v15991_v24 = vld [vmem:[%s21897_s5 + $0xd90] ss:$8 sps:$4 sm:$0xff]   ;;  %v15996_v25 = vld [vmem:[%s21897_s5 + $0xd14] ss:$8 sps:$4 sm:$0xff]  }
 0x4ed   :  { %5373 = vmatpush1.bf16.msra.mxu0 %v15939_v27  ;;  %5521 = vmatpush1.bf16.msra.mxu1 %v15942_v41  ;;  %v15999_v27 = vld [vmem:[%s21897_s5 + $0xd84] ss:$8 sps:$4 sm:$0xff]  }
 0x4ee   :  { %5374 = vmatprep.subr.bf16.mxu0 %v15947_v28  ;;  %5522 = vmatprep.subr.bf16.mxu1 %v15950_v29  ;;  %v15994_v28 = vld [vmem:[%s21897_s5 + $0xd10] ss:$8 sps:$4 sm:$0xff]   ;;  %v15997_v29 = vld [vmem:[%s21897_s5 + $0xd80] ss:$8 sps:$4 sm:$0xff]  }
 0x4f1   :  { %5375 = vmatpush1.bf16.msra.mxu0 %v15945_v31  ;;  %5523 = vmatpush1.bf16.msra.mxu1 %v15948_v32  ;;  %v5713_v31 = vshrl.u32 %v16003_v21, 16  ;;  %v16006_v32 = vld [vmem:[%s21897_s5 + $0xef4] ss:$8 sps:$4 sm:$0xff]  }
 0x4f2   :  { %5376 = vmatprep.subr.bf16.mxu0 %v15953_v33  ;;  %5797 = vmatprep.subr.bf16.mxu1 %v15957_v36  ;;  %v19438_v33 = vpop.permute.xlu0 %6799  ;;  %v16004_v36 = vld [vmem:[%s21897_s5 + $0xef0] ss:$8 sps:$4 sm:$0xff]  }
 0x4f4   :  { %v3814_v48 = vpop.f32.mrf.mxu1  ;;  %5541 = vmatmul.mubr.bf16.vlgmr.msra.gmra.mxu1 %v5425_v45  ;;  %v16012_v45 = vld [vmem:[%s21897_s5 + $0xee4] ss:$8 sps:$4 sm:$0xff]  }
 0x4f5   :  { %5377 = vmatpush1.bf16.msra.mxu0 %v15951_v43  ;;  %5798 = vmatpush1.bf16.msra.mxu1 %v15955_v44  ;;  %v5715_v43 = vrot.slane %v5713_v31, 1  ;;  %v16009_v44 = vld [vmem:[%s21897_s5 + $0xe74] ss:$8 sps:$4 sm:$0xff]   ;;  %v16037_v31 = vld [vmem:[%s21897_s5 + $0xe20] ss:$8 sps:$4 sm:$0xff]  }
 0x4f6   :  { %v3816_v52 = vpop.f32.mrf.mxu1  ;;  %5653 = vmatprep.subr.bf16.mxu0 %v15960_v46  ;;  %5799 = vmatprep.subr.bf16.mxu1 %v15963_v47 }
 0x4f7   :  { %5829 = vmatprep.mubr.bf16.mxu1 %v17011_v62 }
 0x4f8   :  { %v3670_v56 = vpop.f32.mrf.mxu0  ;;  %v3818_v57 = vpop.f32.mrf.mxu1  ;;  %5395 = vmatmul.mubr.bf16.vlgmr.msra.gmra.mxu0 %v5265_v30  ;;  %v16002_v30 = vld [vmem:[%s21897_s5 + $0xd04] ss:$8 sps:$4 sm:$0xff]  }
 0x4f9   :  { %v3677_v58 = vadd.f32 %v3670_v56, %v19244_v12  ;;  %5654 = vmatpush1.bf16.msra.mxu0 %v15958_v50  ;;  %5800 = vmatpush1.bf16.msra.mxu1 %v15961_v51  ;;  %v19380_v12 = vpop.permute.xlu1 %6819  ;;  %v16007_v50 = vld [vmem:[%s21897_s5 + $0xe70] ss:$8 sps:$4 sm:$0xff]   ;;  %v16010_v51 = vld [vmem:[%s21897_s5 + $0xee0] ss:$8 sps:$4 sm:$0xff]   ;;  %v16018_v56 = vld [vmem:[%s21897_s5 + $0xed4] ss:$8 sps:$4 sm:$0xff]  }
 0x4fa   :  { %v3672_v61 = vpop.f32.mrf.mxu0  ;;  %v3819_v63 = vpop.f32.mrf.mxu1  ;;  %5655 = vmatprep.subr.bf16.mxu0 %v15966_v53  ;;  %5801 = vmatprep.subr.bf16.mxu1 %v15969_v54  ;;  %v5571_v53 = vrot.slane %v16003_v21, 1  ;;  %v16015_v54 = vld [vmem:[%s21897_s5 + $0xe64] ss:$8 sps:$4 sm:$0xff]  }
 0x4fb   :  { %v3678_v3 = vadd.f32 %v3672_v61, %v19252_v16  ;;  %5685 = vmatprep.mubr.bf16.mxu0 %v17011_v62  ;;  %v19362_v4 = vadd.f32 %v3814_v48, %v3677_v58  ;;  %v15987_v16 = vld [vmem:[%s21897_s5 + $0xda4] ss:$8 sps:$4 sm:$0xff]   ;;  %v19454_v48 = vpop.permute.xlu0 %6797  ;;  %v16013_v61 = vld [vmem:[%s21897_s5 + $0xe60] ss:$8 sps:$4 sm:$0xff]   ;;  %v16016_v63 = vld [vmem:[%s21897_s5 + $0xed0] ss:$8 sps:$4 sm:$0xff]  }
 0x4fc   :  { %v3674_v5 = vpop.f32.mrf.mxu0  ;;  %v16036_v21 = vld [vmem:[%s21897_s5 + $0xea4] ss:$8 sps:$4 sm:$0xff]  }
 0x4fd   :  { %5656 = vmatpush1.bf16.msra.mxu0 %v15964_v59  ;;  %5802 = vmatpush1.bf16.msra.mxu1 %v15967_v60  ;;  %v19372_v9 = vadd.f32 %v3816_v52, %v3678_v3  ;;  %v19408_v20 = vpop.permute.xlu1 %6817  ;;  %v16021_v3 = vld [vmem:[%s21897_s5 + $0xe54] ss:$8 sps:$4 sm:$0xff]  }
 0x4fe   :  { %v3675_v10 = vpop.f32.mrf.mxu0  ;;  %5657 = vmatprep.subr.bf16.mxu0 %v15972_v0  ;;  %5803 = vmatprep.subr.bf16.mxu1 %v15975_v1 }
 0x4ff   :  { %v19484_v5 = vpop.permute.xlu0 %7119 }
 0x501   :  { %5658 = vmatpush1.bf16.msra.mxu0 %v15970_v7  ;;  %5804 = vmatpush1.bf16.msra.mxu1 %v15973_v8  ;;  %v19424_v41 = vpop.permute.xlu1 %6815 }
 0x502   :  { %5659 = vmatprep.subr.bf16.mxu0 %v15978_v11  ;;  %5805 = vmatprep.subr.bf16.mxu1 %v15981_v35  ;;  %v16019_v11 = vld [vmem:[%s21897_s5 + $0xe50] ss:$8 sps:$4 sm:$0xff]   ;;  %v16022_v35 = vld [vmem:[%s21897_s5 + $0xec0] ss:$8 sps:$4 sm:$0xff]  }
 0x505   :  { %5660 = vmatpush1.bf16.msra.mxu0 %v15976_v13  ;;  %5806 = vmatpush1.bf16.msra.mxu1 %v15979_v14  ;;  %v19452_v46 = vpop.permute.xlu1 %6813 }
 0x506   :  { %5661 = vmatprep.subr.bf16.mxu0 %v15984_v15  ;;  %5807 = vmatprep.subr.bf16.mxu1 %v15987_v16  ;;  %v16030_v15 = vld [vmem:[%s21897_s5 + $0xeb4] ss:$8 sps:$4 sm:$0xff]  }
 0x509   :  { %5662 = vmatpush1.bf16.msra.mxu0 %v15982_v17  ;;  %5808 = vmatpush1.bf16.msra.mxu1 %v15985_v18  ;;  %v19469_v59 = vpop.permute.xlu1 %7135  ;;  %v19506_v17 = vpop.permute.xlu0 %7117  ;;  %v16025_v18 = vld [vmem:[%s21897_s5 + $0xe40] ss:$8 sps:$4 sm:$0xff]  }
 0x50a   :  { %5663 = vmatprep.subr.bf16.mxu0 %v15990_v38  ;;  %5809 = vmatprep.subr.bf16.mxu1 %v15993_v19  ;;  %v16028_v38 = vld [vmem:[%s21897_s5 + $0xeb0] ss:$8 sps:$4 sm:$0xff]   ;;  %v16033_v19 = vld [vmem:[%s21897_s5 + $0xe34] ss:$8 sps:$4 sm:$0xff]  }
 0x50d   :  { %5664 = vmatpush1.bf16.msra.mxu0 %v15988_v23  ;;  %5810 = vmatpush1.bf16.msra.mxu1 %v15991_v24  ;;  %v19504_v16 = vpop.permute.xlu1 %7133  ;;  %v16031_v24 = vld [vmem:[%s21897_s5 + $0xe30] ss:$8 sps:$4 sm:$0xff]  }
 0x50e   :  { %5665 = vmatprep.subr.bf16.mxu0 %v15996_v25  ;;  %5811 = vmatprep.subr.bf16.mxu1 %v15999_v27  ;;  %v16034_v25 = vld [vmem:[%s21897_s5 + $0xea0] ss:$8 sps:$4 sm:$0xff]   ;;  %v16039_v27 = vld [vmem:[%s21897_s5 + $0xe24] ss:$8 sps:$4 sm:$0xff]  }
 0x511   :  { %5666 = vmatpush1.bf16.msra.mxu0 %v15994_v28  ;;  %5812 = vmatpush1.bf16.msra.mxu1 %v15997_v29  ;;  %v19520_v23 = vpop.permute.xlu1 %7131  ;;  %v16042_v28 = vld [vmem:[%s21897_s5 + $0xe94] ss:$8 sps:$4 sm:$0xff]   ;;  %v19534_v29 = vpop.permute.xlu0 %7115 }
 0x512   :  { %5667 = vmatprep.subr.bf16.mxu0 %v16002_v30  ;;  %6086 = vmatprep.subr.bf16.mxu1 %v16006_v32  ;;  %v16052_v30 = vld [vmem:[#allocation3 + $0xc] ss:$0 sps:$4 sm:$0x44]   ;;  %v16040_v32 = vld [vmem:[%s21897_s5 + $0xe90] ss:$8 sps:$4 sm:$0xff]  }
 0x514   :  { %v4103_v47 = vpop.f32.mrf.mxu1  ;;  %5830 = vmatmul.mubr.bf16.vlgmr.msra.gmra.mxu1 %v5715_v43 }
 0x515   :  { %5668 = vmatpush1.bf16.msra.mxu0 %v16000_v34  ;;  %6087 = vmatpush1.bf16.msra.mxu1 %v16004_v36  ;;  %v16045_v34 = vld [vmem:[%s21897_s5 + $0xe14] ss:$8 sps:$4 sm:$0xff]   ;;  %v16048_v36 = vld [vmem:[%s21897_s5 + $0xe84] ss:$8 sps:$4 sm:$0xff]   ;;  %v19548_v43 = vpop.permute.xlu1 %7129 }
 0x516   :  { %v4105_v52 = vpop.f32.mrf.mxu1  ;;  %5942 = vmatprep.subr.bf16.mxu0 %v16009_v44  ;;  %6088 = vmatprep.subr.bf16.mxu1 %v16012_v45  ;;  %v19550_v44 = vpop.permute.xlu0 %7113  ;;  %v16043_v45 = vld [vmem:[%s21897_s5 + $0xe10] ss:$8 sps:$4 sm:$0xff]  }
 0x517   :  { %6118 = vmatprep.mubr.bf16.mxu1 %v17011_v62 }
 0x518   :  { %v3959_v57 = vpop.f32.mrf.mxu0  ;;  %v4107_v58 = vpop.f32.mrf.mxu1  ;;  %5686 = vmatmul.mubr.bf16.vlgmr.msra.gmra.mxu0 %v5571_v53 }
 0x519   :  { %v3966_v60 = vadd.f32 %v3959_v57, %v19362_v4  ;;  %5943 = vmatpush1.bf16.msra.mxu0 %v16007_v50  ;;  %6089 = vmatpush1.bf16.msra.mxu1 %v16010_v51  ;;  %v16024_v4 = vld [vmem:[%s21897_s5 + $0xec4] ss:$8 sps:$4 sm:$0xff]   ;;  %v6002_v51 = vshrl.u32 %v16052_v30, 16  ;;  %v19564_v53 = vpop.permute.xlu1 %7127  ;;  %v16058_v58 = vld [vmem:[%s21897_s5 + $0xf74] ss:$8 sps:$4 sm:$0xff]  }
 0x51a   :  { %v3961_v0 = vpop.f32.mrf.mxu0  ;;  %v4108_v1 = vpop.f32.mrf.mxu1  ;;  %5944 = vmatprep.subr.bf16.mxu0 %v16015_v54  ;;  %6090 = vmatprep.subr.bf16.mxu1 %v16018_v56  ;;  %v16051_v50 = vld [vmem:[%s21897_s5 + $0xe04] ss:$8 sps:$4 sm:$0xff]   ;;  %v16049_v54 = vld [vmem:[%s21897_s5 + $0xe00] ss:$8 sps:$4 sm:$0xff]   ;;  %v16053_v56 = vld [vmem:[%s21897_s5 + $0xff0] ss:$8 sps:$4 sm:$0xff]  }
 0x51b   :  { %v3967_v7 = vadd.f32 %v3961_v0, %v19372_v9  ;;  %5974 = vmatprep.mubr.bf16.mxu0 %v17011_v62  ;;  %v19488_v8 = vadd.f32 %v4103_v47, %v3966_v60  ;;  %v16027_v9 = vld [vmem:[%s21897_s5 + $0xe44] ss:$8 sps:$4 sm:$0xff]   ;;  %v16046_v47 = vld [vmem:[%s21897_s5 + $0xe80] ss:$8 sps:$4 sm:$0xff]   ;;  %v6004_v57 = vrot.slane %v6002_v51, 2 }
 0x51c   :  { %v3963_v10 = vpop.f32.mrf.mxu0  ;;  %v16061_v60 = vld [vmem:[%s21897_s5 + $0xfe4] ss:$8 sps:$4 sm:$0xff]   ;;  %v16056_v0 = vld [vmem:[%s21897_s5 + $0xf70] ss:$8 sps:$4 sm:$0xff]   ;;  %v16059_v1 = vld [vmem:[%s21897_s5 + $0xfe0] ss:$8 sps:$4 sm:$0xff]  }
 0x51d   :  { %5945 = vmatpush1.bf16.msra.mxu0 %v16013_v61  ;;  %6091 = vmatpush1.bf16.msra.mxu1 %v16016_v63  ;;  %v19496_v13 = vadd.f32 %v4105_v52, %v3967_v7  ;;  %v16055_v52 = vld [vmem:[%s21897_s5 + $0xff4] ss:$8 sps:$4 sm:$0xff]   ;;  %v19578_v61 = vpop.permute.xlu0 %7111  ;;  %v16064_v7 = vld [vmem:[%s21897_s5 + $0xf64] ss:$8 sps:$4 sm:$0xff]   ;;  %v16077_v51 = vld [vmem:[%s21897_s5 + $0xfb0] ss:$8 sps:$4 sm:$0xff]  }
 0x51e   :  { %v3964_v14 = vpop.f32.mrf.mxu0  ;;  %5946 = vmatprep.subr.bf16.mxu0 %v16021_v3  ;;  %6092 = vmatprep.subr.bf16.mxu1 %v16024_v4  ;;  %v5860_v4 = vrot.slane %v16052_v30, 2  ;;  %v16067_v10 = vld [vmem:[%s21897_s5 + $0xfd4] ss:$8 sps:$4 sm:$0xff]  }
 0x521   :  { %5947 = vmatpush1.bf16.msra.mxu0 %v16019_v11  ;;  %6093 = vmatpush1.bf16.msra.mxu1 %v16022_v35  ;;  %v19592_v11 = vpop.permute.xlu1 %7125 }
 0x522   :  { %5948 = vmatprep.subr.bf16.mxu0 %v16027_v9  ;;  %6094 = vmatprep.subr.bf16.mxu1 %v16030_v15  ;;  %v19595_v9 = vpop.permute.xlu0 %7109 }
 0x525   :  { %5949 = vmatpush1.bf16.msra.mxu0 %v16025_v18  ;;  %6095 = vmatpush1.bf16.msra.mxu1 %v16028_v38  ;;  %v16062_v18 = vld [vmem:[%s21897_s5 + $0xf60] ss:$8 sps:$4 sm:$0xff]   ;;  %v16065_v38 = vld [vmem:[%s21897_s5 + $0xfd0] ss:$8 sps:$4 sm:$0xff]   ;;  %v19614_v30 = vpop.permute.xlu1 %7123 }
 0x526   :  { %5950 = vmatprep.subr.bf16.mxu0 %v16033_v19  ;;  %6096 = vmatprep.subr.bf16.mxu1 %v16036_v21 }
 0x529   :  { %5951 = vmatpush1.bf16.msra.mxu0 %v16031_v24  ;;  %6097 = vmatpush1.bf16.msra.mxu1 %v16034_v25  ;;  %v16070_v24 = vld [vmem:[%s21897_s5 + $0xf54] ss:$8 sps:$4 sm:$0xff]  }
 0x52a   :  { %5952 = vmatprep.subr.bf16.mxu0 %v16039_v27  ;;  %6098 = vmatprep.subr.bf16.mxu1 %v16042_v28 }
 0x52d   :  { %5953 = vmatpush1.bf16.msra.mxu0 %v16037_v31  ;;  %6099 = vmatpush1.bf16.msra.mxu1 %v16040_v32  ;;  %v16068_v31 = vld [vmem:[%s21897_s5 + $0xf50] ss:$8 sps:$4 sm:$0xff]   ;;  %v16071_v32 = vld [vmem:[%s21897_s5 + $0xfc0] ss:$8 sps:$4 sm:$0xff]  }
 0x52e   :  { %5954 = vmatprep.subr.bf16.mxu0 %v16045_v34  ;;  %6100 = vmatprep.subr.bf16.mxu1 %v16048_v36  ;;  %v16076_v36 = vld [vmem:[%s21897_s5 + $0xf44] ss:$8 sps:$4 sm:$0xff]  }
 0x531   :  { %5955 = vmatpush1.bf16.msra.mxu0 %v16043_v45  ;;  %6101 = vmatpush1.bf16.msra.mxu1 %v16046_v47  ;;  %v16079_v45 = vld [vmem:[%s21897_s5 + $0xfb4] ss:$8 sps:$4 sm:$0xff]   ;;  %v19630_v47 = vpop.permute.xlu0 %7107 }
 0x532   :  { %5956 = vmatprep.subr.bf16.mxu0 %v16051_v50  ;;  %6375 = vmatprep.subr.bf16.mxu1 %v16055_v52  ;;  %v16074_v50 = vld [vmem:[%s21897_s5 + $0xf40] ss:$8 sps:$4 sm:$0xff]   ;;  %v16082_v52 = vld [vmem:[%s21897_s5 + $0xf34] ss:$8 sps:$4 sm:$0xff]  }
 0x534   :  { %v4389_v63 = vpop.f32.mrf.mxu1  ;;  %6119 = vmatmul.mubr.bf16.vlgmr.msra.gmra.mxu1 %v6004_v57 }
 0x535   :  { %5957 = vmatpush1.bf16.msra.mxu0 %v16049_v54  ;;  %6376 = vmatpush1.bf16.msra.mxu1 %v16053_v56  ;;  %v16085_v54 = vld [vmem:[%s21897_s5 + $0xfa4] ss:$8 sps:$4 sm:$0xff]   ;;  %v19644_v56 = vpop.permute.xlu1 %7121  ;;  %v19646_v57 = vpop.permute.xlu0 %7105 }
 0x536   :  { %v4391_v3 = vpop.f32.mrf.mxu1  ;;  %6231 = vmatprep.subr.bf16.mxu0 %v16058_v58  ;;  %6377 = vmatprep.subr.bf16.mxu1 %v16061_v60  ;;  %v16080_v58 = vld [vmem:[%s21897_s5 + $0xf30] ss:$8 sps:$4 sm:$0xff]   ;;  %v16083_v60 = vld [vmem:[%s21897_s5 + $0xfa0] ss:$8 sps:$4 sm:$0xff]  }
 0x537   :  { %6407 = vmatprep.mubr.bf16.mxu1 %v17011_v62 }
 0x538   :  { %v4243_v35 = vpop.f32.mrf.mxu0  ;;  %v4393_v14 = vpop.f32.mrf.mxu1  ;;  %5975 = vmatmul.mubr.bf16.vlgmr.msra.gmra.mxu0 %v5860_v4  ;;  %v16086_v4 = vld [vmem:[%s21897_s5 + $0xf20] ss:$8 sps:$4 sm:$0xff]  }
 0x539   :  { %v4250_v15 = vadd.f32 %v4243_v35, %v19488_v8  ;;  %6232 = vmatpush1.bf16.msra.mxu0 %v16056_v0  ;;  %6378 = vmatpush1.bf16.msra.mxu1 %v16059_v1  ;;  %v16073_v8 = vld [vmem:[%s21897_s5 + $0xfc4] ss:$8 sps:$4 sm:$0xff]   ;;  %v16091_v0 = vld [vmem:[%s21897_s5 + $0xf94] ss:$8 sps:$4 sm:$0xff]   ;;  %v19674_v14 = vpop.permute.xlu0 %7427 }
 0x53a   :  { %v4245_v19 = vpop.f32.mrf.mxu0  ;;  %v4394_v21 = vpop.f32.mrf.mxu1  ;;  %6233 = vmatprep.subr.bf16.mxu0 %v16064_v7  ;;  %6379 = vmatprep.subr.bf16.mxu1 %v16067_v10  ;;  %v16101_v1 = vld [vmem:[#allocation3 + $0xc] ss:$0 sps:$4 sm:$0x88]   ;;  %v16089_v7 = vld [vmem:[%s21897_s5 + $0xf90] ss:$8 sps:$4 sm:$0xff]  }
 0x53b   :  { %v4251_v25 = vadd.f32 %v4245_v19, %v19496_v13  ;;  %6263 = vmatprep.mubr.bf16.mxu0 %v17011_v62  ;;  %v19612_v27 = vadd.f32 %v4389_v63, %v4250_v15  ;;  %v16088_v63 = vld [vmem:[%s21897_s5 + $0xf24] ss:$8 sps:$4 sm:$0xff]   ;;  %v16094_v10 = vld [vmem:[%s21897_s5 + $0xf14] ss:$8 sps:$4 sm:$0xff]   ;;  %v16092_v15 = vld [vmem:[%s21897_s5 + $0xf10] ss:$8 sps:$4 sm:$0xff]  }
 0x53c   :  { %v4247_v28 = vpop.f32.mrf.mxu0  ;;  %v16097_v35 = vld [vmem:[%s21897_s5 + $0xf84] ss:$8 sps:$4 sm:$0xff]   ;;  %v6291_v19 = vshrl.u32 %v16101_v1, 16 }
 0x53d   :  { %6234 = vmatpush1.bf16.msra.mxu0 %v16062_v18  ;;  %6380 = vmatpush1.bf16.msra.mxu1 %v16065_v38  ;;  %v19622_v34 = vadd.f32 %v4391_v3, %v4251_v25  ;;  %v19660_v3 = vpop.permute.xlu1 %7443  ;;  %v16095_v18 = vld [vmem:[%s21897_s5 + $0xf80] ss:$8 sps:$4 sm:$0xff]   ;;  %v16100_v38 = vld [vmem:[%s21897_s5 + $0xf04] ss:$8 sps:$4 sm:$0xff]   ;;  %v16102_v28 = vld [vmem:[%s21892_s0 + $0xf8] sm:$0xff]  }
 0x53e   :  { %v4248_v13 = vpop.f32.mrf.mxu0  ;;  %6235 = vmatprep.subr.bf16.mxu0 %v16070_v24  ;;  %6381 = vmatprep.subr.bf16.mxu1 %v16073_v8  ;;  %v19687_v24 = vpop.permute.xlu0 %7425  ;;  %v16098_v8 = vld [vmem:[%s21897_s5 + $0xf00] ss:$8 sps:$4 sm:$0xff]   ;;  %v6293_v25 = vrot.slane %v6291_v19, 3 }
 0x541   :  { %6236 = vmatpush1.bf16.msra.mxu0 %v16068_v31  ;;  %6382 = vmatpush1.bf16.msra.mxu1 %v16071_v32  ;;  %v19685_v21 = vpop.permute.xlu1 %7441  ;;  %v16123_v31 = vld [vmem:[%s21893_s1 + $0x54] ss:$8 sps:$4 sm:$0xff]  }
 0x542   :  { %6237 = vmatprep.subr.bf16.mxu0 %v16076_v36  ;;  %6383 = vmatprep.subr.bf16.mxu1 %v16079_v45  ;;  %v16103_v36 = vld [vmem:[%s21892_s0 + $0xb8] sm:$0xff]  }
 0x545   :  { %6238 = vmatpush1.bf16.msra.mxu0 %v16074_v50  ;;  %6384 = vmatpush1.bf16.msra.mxu1 %v16077_v51  ;;  %v19699_v13 = vpop.permute.xlu1 %7439  ;;  %v6149_v50 = vrot.slane %v16101_v1, 3  ;;  %v19709_v51 = vpop.permute.xlu0 %7423 }
 0x546   :  { %6239 = vmatprep.subr.bf16.mxu0 %v16082_v52  ;;  %6385 = vmatprep.subr.bf16.mxu1 %v16085_v54  ;;  %v16120_v52 = vld [vmem:[%s21893_s1 + $0x4] ss:$8 sps:$4 sm:$0xff]  }
 0x549   :  { %6240 = vmatpush1.bf16.msra.mxu0 %v16080_v58  ;;  %6386 = vmatpush1.bf16.msra.mxu1 %v16083_v60  ;;  %v16105_v60 = vld [vmem:[%s21892_s0 + $0xb0] sm:$0xff]   ;;  %v19723_v1 = vpop.permute.xlu1 %7437 }
 0x54a   :  { %6241 = vmatprep.subr.bf16.mxu0 %v16088_v63  ;;  %6387 = vmatprep.subr.bf16.mxu1 %v16091_v0  ;;  %v16106_v0 = vld [vmem:[%s21892_s0 + $0xe8] sm:$0xff]  }
 0x54d   :  { %6242 = vmatpush1.bf16.msra.mxu0 %v16086_v4  ;;  %6388 = vmatpush1.bf16.msra.mxu1 %v16089_v7 }
 0x54e   :  { %6243 = vmatprep.subr.bf16.mxu0 %v16094_v10  ;;  %6389 = vmatprep.subr.bf16.mxu1 %v16097_v35  ;;  %v19728_v10 = vpop.permute.xlu0 %7421 }
 0x551   :  { %6244 = vmatpush1.bf16.msra.mxu0 %v16092_v15  ;;  %6390 = vmatpush1.bf16.msra.mxu1 %v16095_v18  ;;  %v19740_v15 = vpop.permute.xlu1 %7435  ;;  %v16109_v18 = vld [vmem:[%s21892_s0 + $0xa0] sm:$0xff]  }
 0x552   :  { %6245 = vmatprep.subr.bf16.mxu0 %v16100_v38  ;;  %14842 = vmatprep.subr.bf16.mxu1 %v19284_v26  ;;  %v16104_v26 = vld [vmem:[%s21892_s0 + $0xf0] sm:$0xff]   ;;  %v19750_v38 = vpop.permute.xlu0 %7419 }
 0x554   :  { %v4678_v32 = vpop.f32.mrf.mxu1  ;;  %6408 = vmatmul.mubr.bf16.vlgmr.msra.gmra.mxu1 %v6293_v25 }
 0x555   :  { %6246 = vmatpush1.bf16.msra.mxu0 %v16098_v8  ;;  %14843 = vmatpush3.bf16.msra.mxu1 %v19298_v42  ;;  %v19760_v19 = vpop.permute.xlu1 %7433 }
 0x556   :  { %v4680_v45 = vpop.f32.mrf.mxu1  ;;  %14820 = vmatprep.subr.bf16.mxu0 %v16102_v28  ;;  %14844 = vmatprep.subr.bf16.mxu1 %v19312_v39  ;;  %v19762_v8 = vpop.permute.xlu0 %7417 }
 0x557   :  { %6877 = vmatprep.mubr.bf16.mxu1 %v16123_v31  ;;  %v16117_v31 = vld [vmem:[%s21892_s0 + $0x80] sm:$0xff]  }
 0x558   :  { %v4534_v54 = vpop.f32.mrf.mxu0  ;;  %v4682_v58 = vpop.f32.mrf.mxu1  ;;  %6264 = vmatmul.mubr.bf16.vlgmr.msra.gmra.mxu0 %v6149_v50  ;;  %v16126_v50 = vld [vmem:[%s21893_s1 + $0x44] ss:$8 sps:$4 sm:$0xff]  }
 0x559   :  { %v4541_v42 = vadd.f32 %v4534_v54, %v19612_v27  ;;  %14821 = vmatpush3.bf16.msra.mxu0 %v16103_v36  ;;  %14845 = vmatpush3.bf16.msra.mxu1 %v19314_v40  ;;  %v16107_v40 = vld [vmem:[%s21892_s0 + $0xa8] sm:$0xff]   ;;  %v19772_v25 = vpop.permute.xlu1 %7431  ;;  %v16962_v58 = vld [vmem:[%s21892_s0 + $0xb8] sm:$0xff]  }
 0x55a   :  { %v4536_v39 = vpop.f32.mrf.mxu0  ;;  %v4683_v63 = vpop.f32.mrf.mxu1  ;;  %14822 = vmatprep.subr.bf16.mxu0 %v16104_v26  ;;  %14846 = vmatprep.subr.bf16.mxu1 %v19328_v49  ;;  %v16118_v36 = vld [vmem:[%s21893_s1] ss:$8 sps:$4 sm:$0xff]  }
 0x55b   :  { %v4542_v27 = vadd.f32 %v4536_v39, %v19622_v34  ;;  %6649 = vmatprep.mubr.bf16.mxu0 %v16120_v52  ;;  %v19726_v4 = vadd.f32 %v4678_v32, %v4541_v42  ;;  %v16108_v34 = vld [vmem:[%s21892_s0 + $0xe0] sm:$0xff]   ;;  %v19782_v28 = vpop.permute.xlu0 %7415 }
 0x55c   :  { %v4538_v7 = vpop.f32.mrf.mxu0 }
 0x55d   :  { %14823 = vmatpush3.bf16.msra.mxu0 %v16105_v60  ;;  %14847 = vmatpush3.bf16.msra.mxu1 %v19342_v55  ;;  %v19734_v35 = vadd.f32 %v4680_v45, %v4542_v27  ;;  %v16110_v55 = vld [vmem:[%s21892_s0 + $0xd8] sm:$0xff]   ;;  %v16963_v60 = vld [vmem:[%s21892_s0 + $0xf0] sm:$0xff]  }
 0x55e   :  { %v4539_v49 = vpop.f32.mrf.mxu0  ;;  %14824 = vmatprep.subr.bf16.mxu0 %v16106_v0  ;;  %14848 = vmatprep.subr.bf16.mxu1 %v19358_v2  ;;  %v16111_v2 = vld [vmem:[%s21892_s0 + $0x98] sm:$0xff]  }
 0x55f   :  { %v19800_v45 = vpop.permute.xlu0 %7413  ;;  %v16966_v49 = vld [vmem:[%s21892_s0 + $0xa8] sm:$0xff]  }
 0x561   :  { %14825 = vmatpush3.bf16.msra.mxu0 %v16107_v40  ;;  %14849 = vmatpush3.bf16.msra.mxu1 %v19364_v6  ;;  %v16112_v6 = vld [vmem:[%s21892_s0 + $0xd0] sm:$0xff]  }
 0x562   :  { %14826 = vmatprep.subr.bf16.mxu0 %v16108_v34  ;;  %14850 = vmatprep.subr.bf16.mxu1 %v19380_v12  ;;  %v16113_v12 = vld [vmem:[%s21892_s0 + $0x90] sm:$0xff]  }
 0x563   :  { %v19821_v39 = vpop.permute.xlu0 %7595 }
 0x565   :  { %14827 = vmatpush3.bf16.msra.mxu0 %v16109_v18  ;;  %14851 = vmatpush3.bf16.msra.mxu1 %v19394_v37  ;;  %v16114_v37 = vld [vmem:[%s21892_s0 + $0xc8] sm:$0xff]  }
 0x566   :  { %14828 = vmatprep.subr.bf16.mxu0 %v16110_v55  ;;  %14852 = vmatprep.subr.bf16.mxu1 %v19408_v20  ;;  %v16115_v20 = vld [vmem:[%s21892_s0 + $0x88] sm:$0xff]  }
 0x569   :  { %14829 = vmatpush3.bf16.msra.mxu0 %v16111_v2  ;;  %14853 = vmatpush3.bf16.msra.mxu1 %v19410_v22  ;;  %v16116_v22 = vld [vmem:[%s21892_s0 + $0xc0] sm:$0xff]  }
 0x56a   :  { %14830 = vmatprep.subr.bf16.mxu0 %v16112_v6  ;;  %14854 = vmatprep.subr.bf16.mxu1 %v19424_v41  ;;  %v16121_v41 = vld [vmem:[%s21893_s1 + $0x50] ss:$8 sps:$4 sm:$0xff]  }
 0x56d   :  { %14831 = vmatpush3.bf16.msra.mxu0 %v16113_v12  ;;  %14855 = vmatpush3.bf16.msra.mxu1 %v19438_v33  ;;  %v19792_v33 = vpop.permute.xlu1 %7429  ;;  %v16974_v12 = vld [vmem:[%s21892_s0 + $0x88] sm:$0xff]  }
 0x56e   :  { %14832 = vmatprep.subr.bf16.mxu0 %v16114_v37  ;;  %14856 = vmatprep.subr.bf16.mxu1 %v19452_v46  ;;  %v16129_v46 = vld [vmem:[%s21893_s1 + $0xa4] ss:$8 sps:$4 sm:$0xff]   ;;  %v16135_v37 = vld [vmem:[%s21893_s1 + $0xd4] ss:$8 sps:$4 sm:$0xff]  }
 0x571   :  { %14833 = vmatpush3.bf16.msra.mxu0 %v16115_v20  ;;  %14857 = vmatpush3.bf16.msra.mxu1 %v19454_v48  ;;  %v19810_v54 = vpop.permute.xlu1 %7611 }
 0x572   :  { %14834 = vmatprep.subr.bf16.mxu0 %v16116_v22  ;;  %14886 = vmatprep.subr.bf16.mxu1 %v19469_v59  ;;  %v16961_v59 = vld [vmem:[%s21892_s0 + $0xf8] sm:$0xff]   ;;  %v16124_v22 = vld [vmem:[%s21893_s1 + $0x40] ss:$8 sps:$4 sm:$0xff]  }
 0x574   :  { %v4967_v32 = vpop.f32.mrf.mxu1  ;;  %6878 = vmatmul.mubr.bf16.vlgmr.msra.gmra.mxu1 %v16121_v41  ;;  %v16977_v41 = vld [vmem:[%s21892_s0 + $0xf8] sm:$0xff]  }
 0x575   :  { %14835 = vmatpush3.bf16.msra.mxu0 %v16117_v31  ;;  %14887 = vmatpush3.bf16.msra.mxu1 %v19484_v5  ;;  %v19836_v40 = vpop.permute.xlu1 %7714 }
 0x576   :  { %v4969_v48 = vpop.f32.mrf.mxu1  ;;  %14864 = vmatprep.subr.bf16.mxu0 %v16961_v59  ;;  %14888 = vmatprep.subr.bf16.mxu1 %v19504_v16  ;;  %v16978_v59 = vld [vmem:[%s21892_s0 + $0xb8] sm:$0xff]  }
 0x577   :  { %7185 = vmatprep.mubr.bf16.mxu1 %v16129_v46  ;;  %v16132_v46 = vld [vmem:[%s21893_s1 + $0x84] ss:$8 sps:$4 sm:$0xff]  }
 0x578   :  { %v4823_v26 = vpop.f32.mrf.mxu0  ;;  %v4971_v52 = vpop.f32.mrf.mxu1  ;;  %6650 = vmatmul.mubr.bf16.vlgmr.msra.gmra.mxu0 %v16118_v36 }
 0x579   :  { %v4830_v5 = vadd.f32 %v4823_v26, %v19726_v4  ;;  %14865 = vmatpush3.bf16.msra.mxu0 %v16962_v58  ;;  %14889 = vmatpush3.bf16.msra.mxu1 %v19506_v17  ;;  %v16964_v17 = vld [vmem:[%s21892_s0 + $0xb0] sm:$0xff]   ;;  %v19848_v34 = vpop.permute.xlu1 %7609 }
 0x57a   :  { %v4825_v16 = vpop.f32.mrf.mxu0  ;;  %v4972_v42 = vpop.f32.mrf.mxu1  ;;  %14866 = vmatprep.subr.bf16.mxu0 %v16963_v60  ;;  %14890 = vmatprep.subr.bf16.mxu1 %v19520_v23  ;;  %v16965_v23 = vld [vmem:[%s21892_s0 + $0xe8] sm:$0xff]   ;;  %v16979_v26 = vld [vmem:[%s21892_s0 + $0xf0] sm:$0xff]  }
 0x57b   :  { %v4831_v63 = vadd.f32 %v4825_v16, %v19734_v35  ;;  %6944 = vmatprep.mubr.bf16.mxu0 %v16126_v50  ;;  %v19824_v0 = vadd.f32 %v4967_v32, %v4830_v5  ;;  %v19838_v35 = vpop.permute.xlu0 %7698 }
 0x57c   :  { %v4827_v27 = vpop.f32.mrf.mxu0 }
 0x57d   :  { %14867 = vmatpush3.bf16.msra.mxu0 %v16964_v17  ;;  %14891 = vmatpush3.bf16.msra.mxu1 %v19534_v29  ;;  %v19830_v4 = vadd.f32 %v4969_v48, %v4831_v63  ;;  %v16967_v29 = vld [vmem:[%s21892_s0 + $0xe0] sm:$0xff]   ;;  %v19868_v55 = vpop.permute.xlu1 %7712 }
 0x57e   :  { %v4828_v7 = vpop.f32.mrf.mxu0  ;;  %14868 = vmatprep.subr.bf16.mxu0 %v16965_v23  ;;  %14892 = vmatprep.subr.bf16.mxu1 %v19548_v43  ;;  %v16968_v43 = vld [vmem:[%s21892_s0 + $0xa0] sm:$0xff]  }
 0x57f   :  { %v19858_v18 = vpop.permute.xlu0 %7593 }
 0x581   :  { %14869 = vmatpush3.bf16.msra.mxu0 %v16966_v49  ;;  %14893 = vmatpush3.bf16.msra.mxu1 %v19550_v44  ;;  %v16969_v44 = vld [vmem:[%s21892_s0 + $0xd8] sm:$0xff]   ;;  %v19883_v6 = vpop.permute.xlu1 %7607 }
 0x582   :  { %14870 = vmatprep.subr.bf16.mxu0 %v16967_v29  ;;  %14894 = vmatprep.subr.bf16.mxu1 %v19564_v53  ;;  %v16970_v53 = vld [vmem:[%s21892_s0 + $0x98] sm:$0xff]   ;;  %v16990_v29 = vld [vmem:[%s21892_s0 + $0x88] sm:$0xff]  }
 0x583   :  { %v19870_v2 = vpop.permute.xlu0 %7696 }
 0x585   :  { %14871 = vmatpush3.bf16.msra.mxu0 %v16968_v43  ;;  %14895 = vmatpush3.bf16.msra.mxu1 %v19578_v61  ;;  %v16971_v61 = vld [vmem:[%s21892_s0 + $0xd0] sm:$0xff]   ;;  %v19909_v31 = vpop.permute.xlu1 %7710 }
 0x586   :  { %14872 = vmatprep.subr.bf16.mxu0 %v16969_v44  ;;  %14896 = vmatprep.subr.bf16.mxu1 %v19592_v11  ;;  %v16972_v11 = vld [vmem:[%s21892_s0 + $0x90] sm:$0xff]   ;;  %v16130_v44 = vld [vmem:[%s21893_s1 + $0x80] ss:$8 sps:$4 sm:$0xff]  }
 0x589   :  { %14873 = vmatpush3.bf16.msra.mxu0 %v16970_v53  ;;  %14897 = vmatpush3.bf16.msra.mxu1 %v19595_v9  ;;  %v16973_v9 = vld [vmem:[%s21892_s0 + $0xc8] sm:$0xff]   ;;  %v19928_v16 = vpop.permute.xlu1 %7605 }
 0x58a   :  { %14874 = vmatprep.subr.bf16.mxu0 %v16971_v61  ;;  %14898 = vmatprep.subr.bf16.mxu1 %v19614_v30  ;;  %v16127_v30 = vld [vmem:[%s21893_s1 + $0xa0] ss:$8 sps:$4 sm:$0xff]  }
 0x58d   :  { %14875 = vmatpush3.bf16.msra.mxu0 %v16972_v11  ;;  %14899 = vmatpush3.bf16.msra.mxu1 %v19630_v47  ;;  %v16975_v47 = vld [vmem:[%s21892_s0 + $0xc0] sm:$0xff]   ;;  %v19950_v27 = vpop.permute.xlu1 %7708 }
 0x58e   :  { %14876 = vmatprep.subr.bf16.mxu0 %v16973_v9  ;;  %14900 = vmatprep.subr.bf16.mxu1 %v19644_v56  ;;  %v19893_v56 = vpop.permute.xlu0 %7591  ;;  %v16138_v9 = vld [vmem:[%s21893_s1 + $0xc4] ss:$8 sps:$4 sm:$0xff]  }
 0x591   :  { %14877 = vmatpush3.bf16.msra.mxu0 %v16974_v12  ;;  %14901 = vmatpush3.bf16.msra.mxu1 %v19646_v57  ;;  %v16976_v57 = vld [vmem:[%s21892_s0 + $0x80] sm:$0xff]  }
 0x592   :  { %14878 = vmatprep.subr.bf16.mxu0 %v16975_v47  ;;  %14930 = vmatprep.subr.bf16.mxu1 %v19660_v3  ;;  %v19914_v48 = vpop.permute.xlu0 %7694 }
 0x594   :  { %v5256_v20 = vpop.f32.mrf.mxu1  ;;  %7186 = vmatmul.mubr.bf16.vlgmr.msra.gmra.mxu1 %v16127_v30 }
 0x595   :  { %14879 = vmatpush3.bf16.msra.mxu0 %v16976_v57  ;;  %14931 = vmatpush3.bf16.msra.mxu1 %v19674_v14 }
 0x596   :  { %v5258_v3 = vpop.f32.mrf.mxu1  ;;  %14908 = vmatprep.subr.bf16.mxu0 %v16977_v41  ;;  %14932 = vmatprep.subr.bf16.mxu1 %v19685_v21  ;;  %v19940_v63 = vpop.permute.xlu0 %7589 }
 0x597   :  { %7493 = vmatprep.mubr.bf16.mxu1 %v16135_v37 }
 0x598   :  { %v5112_v32 = vpop.f32.mrf.mxu0  ;;  %v5260_v36 = vpop.f32.mrf.mxu1  ;;  %6945 = vmatmul.mubr.bf16.vlgmr.msra.gmra.mxu0 %v16124_v22 }
 0x599   :  { %v5119_v14 = vadd.f32 %v5112_v32, %v19824_v0  ;;  %14909 = vmatpush3.bf16.msra.mxu0 %v16978_v59  ;;  %14933 = vmatpush3.bf16.msra.mxu1 %v19687_v24  ;;  %v16980_v24 = vld [vmem:[%s21892_s0 + $0xb0] sm:$0xff]   ;;  %v16982_v0 = vld [vmem:[%s21892_s0 + $0xa8] sm:$0xff]  }
 0x59a   :  { %v5114_v21 = vpop.f32.mrf.mxu0  ;;  %v5261_v50 = vpop.f32.mrf.mxu1  ;;  %14910 = vmatprep.subr.bf16.mxu0 %v16979_v26  ;;  %14934 = vmatprep.subr.bf16.mxu1 %v19699_v13  ;;  %v16981_v13 = vld [vmem:[%s21892_s0 + $0xe8] sm:$0xff]   ;;  %v17001_v26 = vld [vmem:[%s21892_s0 + $0xd8] sm:$0xff]  }
 0x59b   :  { %v5120_v52 = vadd.f32 %v5114_v21, %v19830_v4  ;;  %7252 = vmatprep.mubr.bf16.mxu0 %v16132_v46  ;;  %v19926_v5 = vadd.f32 %v5256_v20, %v5119_v14  ;;  %v19952_v17 = vpop.permute.xlu0 %7692  ;;  %v19962_v4 = vpop.permute.xlu1 %7603  ;;  %v16995_v20 = vld [vmem:[%s21892_s0 + $0xf0] sm:$0xff]   ;;  %v16998_v59 = vld [vmem:[%s21892_s0 + $0xa8] sm:$0xff]   ;;  %v17000_v50 = vld [vmem:[%s21892_s0 + $0xa0] sm:$0xff]  }
 0x59c   :  { %v5116_v58 = vpop.f32.mrf.mxu0 }
 0x59d   :  { %14911 = vmatpush3.bf16.msra.mxu0 %v16980_v24  ;;  %14935 = vmatpush3.bf16.msra.mxu1 %v19709_v51  ;;  %v19934_v42 = vadd.f32 %v5258_v3, %v5120_v52  ;;  %v16983_v51 = vld [vmem:[%s21892_s0 + $0xe0] sm:$0xff]  }
 0x59e   :  { %v5117_v60 = vpop.f32.mrf.mxu0  ;;  %14912 = vmatprep.subr.bf16.mxu0 %v16981_v13  ;;  %14936 = vmatprep.subr.bf16.mxu1 %v19723_v1  ;;  %v16984_v1 = vld [vmem:[%s21892_s0 + $0xa0] sm:$0xff]  }
 0x59f   :  { %v19972_v7 = vpop.permute.xlu0 %7587  ;;  %v19982_v23 = vpop.permute.xlu1 %7706  ;;  %v17005_v60 = vld [vmem:[%s21892_s0 + $0xc8] sm:$0xff]  }
 0x5a1   :  { %14913 = vmatpush3.bf16.msra.mxu0 %v16982_v0  ;;  %14937 = vmatpush3.bf16.msra.mxu1 %v19728_v10  ;;  %v16985_v10 = vld [vmem:[%s21892_s0 + $0xd8] sm:$0xff]   ;;  %v17006_v0 = vld [vmem:[%s21892_s0 + $0x88] sm:$0xff]  }
 0x5a2   :  { %14914 = vmatprep.subr.bf16.mxu0 %v16983_v51  ;;  %14938 = vmatprep.subr.bf16.mxu1 %v19740_v15  ;;  %v16986_v15 = vld [vmem:[%s21892_s0 + $0x98] sm:$0xff]   ;;  %v17007_v51 = vld [vmem:[%s21892_s0 + $0xc0] sm:$0xff]  }
 0x5a3   :  { %v19987_v49 = vpop.permute.xlu0 %7690  ;;  %v7602_v53 = vpop.permute.xlu1 %7601 }
 0x5a5   :  { %14915 = vmatpush3.bf16.msra.mxu0 %v16984_v1  ;;  %14939 = vmatpush3.bf16.msra.mxu1 %v19750_v38  ;;  %v16987_v38 = vld [vmem:[%s21892_s0 + $0xd0] sm:$0xff]  }
 0x5a6   :  { %14916 = vmatprep.subr.bf16.mxu0 %v16985_v10  ;;  %14940 = vmatprep.subr.bf16.mxu1 %v19760_v19  ;;  %v16988_v19 = vld [vmem:[%s21892_s0 + $0x90] sm:$0xff]   ;;  %v16136_v10 = vld [vmem:[%s21893_s1 + $0xc0] ss:$8 sps:$4 sm:$0xff]  }
 0x5a7   :  { %v7586_v11 = vpop.permute.xlu0 %7585  ;;  %v20023_v22 = vpop.permute.xlu1 %7704 }
 0x5a9   :  { %14917 = vmatpush3.bf16.msra.mxu0 %v16986_v15  ;;  %14941 = vmatpush3.bf16.msra.mxu1 %v19762_v8  ;;  %v16989_v8 = vld [vmem:[%s21892_s0 + $0xc8] sm:$0xff]   ;;  %v16144_v15 = vld [vmem:[%s21893_s1 + $0xf4] ss:$8 sps:$4 sm:$0xff]  }
 0x5aa   :  { %14918 = vmatprep.subr.bf16.mxu0 %v16987_v38  ;;  %14942 = vmatprep.subr.bf16.mxu1 %v19772_v25  ;;  %v16133_v25 = vld [vmem:[%s21893_s1 + $0xd0] ss:$8 sps:$4 sm:$0xff]  }
 0x5ab   :  { %v20032_v32 = vpop.permute.xlu0 %7688  ;;  %v7600_v14 = vpop.permute.xlu1 %7599 }
 0x5ad   :  { %14919 = vmatpush3.bf16.msra.mxu0 %v16988_v19  ;;  %14943 = vmatpush3.bf16.msra.mxu1 %v19782_v28  ;;  %v16991_v28 = vld [vmem:[%s21892_s0 + $0xc0] sm:$0xff]  }
 0x5ae   :  { %14920 = vmatprep.subr.bf16.mxu0 %v16989_v8  ;;  %14944 = vmatprep.subr.bf16.mxu1 %v19792_v33  ;;  %v16141_v33 = vld [vmem:[%s21893_s1 + $0xe4] ss:$8 sps:$4 sm:$0xff]  }
 0x5af   :  { %v7584_v21 = vpop.permute.xlu0 %7583  ;;  %v7703_v52 = vpop.permute.xlu1 %7702 }
 0x5b1   :  { %14921 = vmatpush3.bf16.msra.mxu0 %v16990_v29  ;;  %14945 = vmatpush3.bf16.msra.mxu1 %v19800_v45  ;;  %v16992_v45 = vld [vmem:[%s21892_s0 + $0x80] sm:$0xff]  }
 0x5b2   :  { %14922 = vmatprep.subr.bf16.mxu0 %v16991_v28  ;;  %14974 = vmatprep.subr.bf16.mxu1 %v19810_v54  ;;  %v16993_v54 = vld [vmem:[%s21892_s0 + $0xf8] sm:$0xff]  }
 0x5b3   :  { %v7687_v58 = vpop.permute.xlu0 %7686  ;;  %v7598_v24 = vpop.permute.xlu1 %7597 }
 0x5b4   :  { %v5542_v43 = vpop.f32.mrf.mxu1  ;;  %7494 = vmatmul.mubr.bf16.vlgmr.msra.gmra.mxu1 %v16133_v25 }
 0x5b5   :  { %14923 = vmatpush3.bf16.msra.mxu0 %v16992_v45  ;;  %14975 = vmatpush3.bf16.msra.mxu1 %v19821_v39  ;;  %v16994_v39 = vld [vmem:[%s21892_s0 + $0xb8] sm:$0xff]  }
 0x5b6   :  { %v5544_v61 = vpop.f32.mrf.mxu1  ;;  %14952 = vmatprep.subr.bf16.mxu0 %v16993_v54  ;;  %14976 = vmatprep.subr.bf16.mxu1 %v19848_v34 }
 0x5b7   :  { %7661 = vmatprep.mubr.bf16.mxu1 %v16141_v33  ;;  %v7582_v13 = vpop.permute.xlu0 %7581 }
 0x5b8   :  { %v5396_v30 = vpop.f32.mrf.mxu0  ;;  %v5546_v12 = vpop.f32.mrf.mxu1  ;;  %7253 = vmatmul.mubr.bf16.vlgmr.msra.gmra.mxu0 %v16130_v44 }
 0x5b9   :  { %v5403_v47 = vadd.f32 %v5396_v30, %v19926_v5  ;;  %14953 = vmatpush3.bf16.msra.mxu0 %v16994_v39  ;;  %14977 = vmatpush3.bf16.msra.mxu1 %v19858_v18  ;;  %v16996_v18 = vld [vmem:[%s21892_s0 + $0xb0] sm:$0xff]   ;;  %v17002_v5 = vld [vmem:[%s21892_s0 + $0x98] sm:$0xff]   ;;  %v6418_v39 = vld [vmem:[%s21898_s6] sm:$0x3] }
 0x5ba   :  { %v5398_v37 = vpop.f32.mrf.mxu0  ;;  %v5547_v34 = vpop.f32.mrf.mxu1  ;;  %14954 = vmatprep.subr.bf16.mxu0 %v16995_v20  ;;  %14978 = vmatprep.subr.bf16.mxu1 %v19883_v6  ;;  %v16997_v6 = vld [vmem:[%s21892_s0 + $0xe8] sm:$0xff]  }
 0x5bb   :  { %v5404_v57 = vadd.f32 %v5398_v37, %v19934_v42  ;;  %7560 = vmatprep.mubr.bf16.mxu0 %v16138_v9  ;;  %v5549_v3 = vadd.f32 %v5542_v43, %v5403_v47  ;;  %v17004_v42 = vld [vmem:[%s21892_s0 + $0x90] sm:$0xff]  }
 0x5bc   :  { %v5400_v41 = vpop.f32.mrf.mxu0 }
 0x5bd   :  { %14955 = vmatpush3.bf16.msra.mxu0 %v16996_v18  ;;  %14979 = vmatpush3.bf16.msra.mxu1 %v19893_v56  ;;  %v20030_v46 = vadd.f32 %v5544_v61, %v5404_v57  ;;  %v16999_v56 = vld [vmem:[%s21892_s0 + $0xe0] sm:$0xff]   ;;  %v17013_v41 = vmov 1966171168  }
 0x5be   :  { %v5401_v36 = vpop.f32.mrf.mxu0  ;;  %14956 = vmatprep.subr.bf16.mxu0 %v16997_v6  ;;  %14980 = vmatprep.subr.bf16.mxu1 %v19928_v16  ;;  %v17003_v16 = vld [vmem:[%s21892_s0 + $0xd0] sm:$0xff]   ;;  %v6440_v18 = vunpack.c.l.s4 %v17013_v41 }
 0x5c1   :  { %14957 = vmatpush3.bf16.msra.mxu0 %v16998_v59  ;;  %14981 = vmatpush3.bf16.msra.mxu1 %v19940_v63  ;;  %v16139_v63 = vld [vmem:[%s21893_s1 + $0xe0] ss:$8 sps:$4 sm:$0xff]  }
 0x5c2   :  { %14958 = vmatprep.subr.bf16.mxu0 %v16999_v56  ;;  %14982 = vmatprep.subr.bf16.mxu1 %v19962_v4  ;;  %v17008_v4 = vld [vmem:[%s21892_s0 + $0x80] sm:$0xff]  }
 0x5c5   :  { %14959 = vmatpush3.bf16.msra.mxu0 %v17000_v50  ;;  %14983 = vmatpush3.bf16.msra.mxu1 %v19972_v7  ;;  %v6441_v50 = vunpack.c.0.s8 %v6440_v18 }
 0x5c6   :  { %14960 = vmatprep.subr.bf16.mxu0 %v17001_v26  ;;  %14984 = vmatprep.subr.bf16.mxu1 %v7602_v53  ;;  %v6420_v53 = vlaneseq }
 0x5c8   :  { %v20100_v61 = vshrl.u32 %v6420_v53, 7 }
 0x5c9   :  { %14961 = vmatpush3.bf16.msra.mxu0 %v17002_v5  ;;  %14985 = vmatpush3.bf16.msra.mxu1 %v7586_v11 }
 0x5ca   :  { %14962 = vmatprep.subr.bf16.mxu0 %v17003_v16  ;;  %14986 = vmatprep.subr.bf16.mxu1 %v7600_v14  ;;  %v6422_v12 = vsub.s32 0, %v20100_v61  ;;  %v6426_v34 = vsub.s32 1, %v20100_v61  ;;  %v20112_v16 = vsub.s32 %v6441_v50, %v20100_v61 }
 0x5cc   :  { %v6427_v59 = vrot.slane %v6418_v39, %v6426_v34 }
 0x5cd   :  { %14963 = vmatpush3.bf16.msra.mxu0 %v17004_v42  ;;  %14987 = vmatpush3.bf16.msra.mxu1 %v7584_v21 }
 0x5ce   :  { %14964 = vmatprep.subr.bf16.mxu0 %v17005_v60  ;;  %14988 = vmatprep.subr.bf16.mxu1 %v7598_v24 }
 0x5d1   :  { %14965 = vmatpush3.bf16.msra.mxu0 %v17006_v0  ;;  %14989 = vmatpush3.bf16.msra.mxu1 %v7582_v13  ;;  %v6461_v13 = vld [vmem:[#allocation4] sm:$0x3] }
 0x5d2   :  { %14966 = vmatprep.subr.bf16.mxu0 %v17007_v51 }
 0x5d4   :  { %v5831_v1 = vpop.f32.mrf.mxu1  ;;  %7662 = vmatmul.mubr.bf16.vlgmr.msra.gmra.mxu1 %v16139_v63 }
 0x5d5   :  { %14967 = vmatpush3.bf16.msra.mxu0 %v17008_v4 }
 0x5d6   :  { %v5833_v38 = vpop.f32.mrf.mxu1  ;;  %14996 = vmatprep.subr.bf16.mxu0 %v19836_v40  ;;  %v7701_v40 = vpop.permute.xlu1 %7700 }
 0x5d8   :  { %v5687_v7 = vpop.f32.mrf.mxu0  ;;  %v5835_v19 = vpop.f32.mrf.mxu1  ;;  %7561 = vmatmul.mubr.bf16.vlgmr.msra.gmra.mxu0 %v16136_v10 }
 0x5d9   :  { %v5694_v8 = vadd.f32 %v5687_v7, %v5549_v3  ;;  %14997 = vmatpush3.bf16.msra.mxu0 %v19838_v35  ;;  %7764 = vmatprep.mubr.bf16.mxu0 %v16144_v15  ;;  %v7685_v35 = vpop.permute.xlu0 %7684  ;;  %v6423_v3 = vrot.slane %v6418_v39, %v6422_v12 }
 0x5da   :  { %v5689_v25 = vpop.f32.mrf.mxu0  ;;  %v5836_v29 = vpop.f32.mrf.mxu1  ;;  %14998 = vmatprep.subr.bf16.mxu0 %v19868_v55 }
 0x5db   :  { %v5838_v28 = vadd.f32 %v5831_v1, %v5694_v8  ;;  %v5695_v45 = vadd.f32 %v5689_v25, %v20030_v46  ;;  %v20118_v51 = vpop.permute.xlu1 %7779 }
 0x5dc   :  { %v5691_v33 = vpop.f32.mrf.mxu0 }
 0x5dd   :  { %14999 = vmatpush3.bf16.msra.mxu0 %v19870_v2  ;;  %v16142_v2 = vld [vmem:[%s21893_s1 + $0xf0] ss:$8 sps:$4 sm:$0xff]   ;;  %v5839_v11 = vadd.f32 %v5833_v38, %v5695_v45  ;;  %v20120_v1 = vpop.permute.xlu0 %7784 }
 0x5de   :  { %v5692_v43 = vpop.f32.mrf.mxu0  ;;  %15000 = vmatprep.subr.bf16.mxu0 %v19909_v31 }
 0x5df   :  { %v7266_v10 = vpop.permute.xlu1 %7265 }
 0x5e1   :  { %15001 = vmatpush3.bf16.msra.mxu0 %v19914_v48  ;;  %v7271_v4 = vpop.permute.xlu0 %7270 }
 0x5e2   :  { %15002 = vmatprep.subr.bf16.mxu0 %v19950_v27 }
 0x5e3   :  { %v6958_v15 = vpop.permute.xlu1 %6957 }
 0x5e5   :  { %15003 = vmatpush3.bf16.msra.mxu0 %v19952_v17  ;;  %v6963_v7 = vpop.permute.xlu0 %6962 }
 0x5e6   :  { %15004 = vmatprep.subr.bf16.mxu0 %v19982_v23 }
 0x5e7   :  { %v6504_v25 = vpop.permute.xlu1 %6503 }
 0x5e9   :  { %15005 = vmatpush3.bf16.msra.mxu0 %v19987_v49 }
 0x5ea   :  { %15006 = vmatprep.subr.bf16.mxu0 %v20023_v22 }
 0x5ed   :  { %15007 = vmatpush3.bf16.msra.mxu0 %v20032_v32 }
 0x5ee   :  { %15008 = vmatprep.subr.bf16.mxu0 %v7703_v52 }
 0x5f1   :  { %15009 = vmatpush3.bf16.msra.mxu0 %v7687_v58 }
 0x5f2   :  { %15010 = vmatprep.subr.bf16.mxu0 %v7701_v40 }
 0x5f4   :  { %v6120_v55 = vpop.f32.mrf.mxu1 }
 0x5f5   :  { %15011 = vmatpush3.bf16.msra.mxu0 %v7685_v35  ;;  %v6509_v35 = vpop.permute.xlu0 %6508 }
 0x5f6   :  { %v6122_v31 = vpop.f32.mrf.mxu1 }
 0x5f8   :  { %v5976_v48 = vpop.f32.mrf.mxu0  ;;  %v6124_v27 = vpop.f32.mrf.mxu1  ;;  %7765 = vmatmul.mubr.bf16.vlgmr.msra.gmra.mxu0 %v16142_v2 }
 0x5f9   :  { %v5983_v54 = vadd.f32 %v5976_v48, %v5838_v28 }
 0x5fa   :  { %v5978_v17 = vpop.f32.mrf.mxu0  ;;  %v6125_v23 = vpop.f32.mrf.mxu1 }
 0x5fb   :  { %v5984_v30 = vadd.f32 %v5978_v17, %v5839_v11  ;;  %v6127_v37 = vadd.f32 %v6120_v55, %v5983_v54 }
 0x5fc   :  { %v5980_v49 = vpop.f32.mrf.mxu0 }
 0x5fd   :  { %v6128_v46 = vadd.f32 %v6122_v31, %v5984_v30 }
 0x5fe   :  { %v5981_v44 = vpop.f32.mrf.mxu0 }
 0x614   :  { %v6409_v9 = vpop.f32.mrf.mxu1 }
 0x616   :  { %v6411_v47 = vpop.f32.mrf.mxu1 }
 0x618   :  { %v6265_v20 = vpop.f32.mrf.mxu0  ;;  %v6413_v22 = vpop.f32.mrf.mxu1 }
 0x619   :  { %v6272_v57 = vadd.f32 %v6265_v20, %v6127_v37 }
 0x61a   :  { %v6267_v32 = vpop.f32.mrf.mxu0  ;;  %v6414_v36 = vpop.f32.mrf.mxu1 }
 0x61b   :  { %v6416_v6 = vadd.f32 %v6409_v9, %v6272_v57  ;;  %v6273_v14 = vadd.f32 %v6267_v32, %v6128_v46 }
 0x61c   :  { %v6269_v56 = vpop.f32.mrf.mxu0 }
 0x61d   :  { %v6430_v21 = vadd.f32 %v6423_v3, %v6416_v6  ;;  %v6417_v26 = vadd.f32 %v6411_v47, %v6273_v14 }
 0x61e   :  { %v6270_v52 = vpop.f32.mrf.mxu0 }
 0x61f   :  { %v6431_v5 = vadd.f32 %v6427_v59, %v6417_v26  ;;  %v6432_v58 = vmax.f32 %v6430_v21, 0.0 }
 0x621   :  { %v6433_v24 = vmax.f32 %v6431_v5, 0.0 }
 0x623   :  { %v13756_v42 = vpack.c.bf16 %v6433_v24, %v6432_v58 }
 0x625   :  { %v6445_v60 = vrot.slane %v13756_v42, %v20112_v16 }
 0x627   :  { %v6452_v63 = vrot.slane %v6445_v60, %v20112_v16 }
 0x629   :  { %v6462_v0 = vsel %vm6460_vm9, %v6452_v63, %v6461_v13 }
 0x62a   :  { %6463 = vst [vmem:[#allocation4] sm:$0x3] %v6462_v0 }
 0x634   :  { %v14858_v27 = vpop.f32.mrf.mxu1 }
 0x636   :  { %v14859_v17 = vpop.f32.mrf.mxu1 }
 0x637   :  { %v14860_v45 = vadd.f32 %v14859_v17, %v14858_v27 }
 0x638   :  { %v14836_v38 = vpop.f32.mrf.mxu0  ;;  %v14861_v23 = vpop.f32.mrf.mxu1 }
 0x63a   :  { %v14837_v19 = vpop.f32.mrf.mxu0  ;;  %v14862_v11 = vpop.f32.mrf.mxu1 }
 0x63b   :  { %v14838_v8 = vadd.f32 %v14837_v19, %v14836_v38  ;;  %v14863_v39 = vadd.f32 %v14862_v11, %v14861_v23 }
 0x63c   :  { %v14839_v29 = vpop.f32.mrf.mxu0 }
 0x63d   :  { %v6652_v28 = vadd.f32 %v14838_v8, %v6504_v25 }
 0x63e   :  { %v14840_v33 = vpop.f32.mrf.mxu0 }
 0x63f   :  { %v6658_v43 = vmax.f32 %v6652_v28, 0.0  ;;  %v14841_v40 = vadd.f32 %v14840_v33, %v14839_v29 }
 0x641   :  { %v14586_v55 = vpack.c.bf16 %v6658_v43, %v6658_v43  ;;  %v6655_v2 = vadd.f32 %v14841_v40, %v6509_v35 }
 0x643   :  { %6669 = vst.msk [vmem:[#allocation2 + $0x20] sm:$0xf] %vm260_vm0, %v14586_v55  ;;  %v6659_v31 = vmax.f32 %v6655_v2, 0.0 }
 0x645   :  { %v14587_v48 = vpack.c.bf16 %v6659_v31, %v6659_v31 }
 0x647   :  { %6670 = vst.msk [vmem:[#allocation2 + $0x24] sm:$0xf] %vm260_vm0, %v14587_v48 }
 0x64e   :  { %v20132_v19 = vld [vmem:[#allocation2 + $0x20] sm:$0xff]  }
 0x654   :  { %v14902_v32 = vpop.f32.mrf.mxu1 }
 0x656   :  { %v14903_v36 = vpop.f32.mrf.mxu1 }
 0x657   :  { %v14904_v56 = vadd.f32 %v14903_v36, %v14902_v32 }
 0x658   :  { %v14880_v49 = vpop.f32.mrf.mxu0  ;;  %v14905_v6 = vpop.f32.mrf.mxu1 }
 0x65a   :  { %v14881_v44 = vpop.f32.mrf.mxu0  ;;  %v14906_v50 = vpop.f32.mrf.mxu1 }
 0x65b   :  { %v14882_v54 = vadd.f32 %v14881_v44, %v14880_v49  ;;  %v14907_v58 = vadd.f32 %v14906_v50, %v14905_v6  ;;  %v8155_v50 = vld [vmem:[%s21895_s4 + $0x10] sm:$0xff] }
 0x65c   :  { %v14883_v9 = vpop.f32.mrf.mxu0 }
 0x65d   :  { %v6947_v30 = vadd.f32 %v14882_v54, %v14860_v45 }
 0x65e   :  { %v14884_v47 = vpop.f32.mrf.mxu0 }
 0x65f   :  { %v6965_v37 = vadd.f32 %v6958_v15, %v6947_v30  ;;  %v14885_v20 = vadd.f32 %v14884_v47, %v14883_v9 }
 0x661   :  { %v6967_v22 = vmax.f32 %v6965_v37, 0.0  ;;  %v6950_v57 = vadd.f32 %v14885_v20, %v14863_v39 }
 0x663   :  { %v14588_v3 = vpack.c.bf16 %v6967_v22, %v6967_v22  ;;  %v6966_v41 = vadd.f32 %v6963_v7, %v6950_v57 }
 0x665   :  { %6977 = vst.msk [vmem:[#allocation2 + $0x28] sm:$0xf] %vm260_vm0, %v14588_v3  ;;  %v6968_v18 = vmax.f32 %v6966_v41, 0.0 }
 0x667   :  { %v14589_v46 = vpack.c.bf16 %v6968_v18, %v6968_v18 }
 0x669   :  { %6978 = vst.msk [vmem:[#allocation2 + $0x2c] sm:$0xf] %vm260_vm0, %v14589_v46 }
 0x678   :  { %v14924_v14 = vpop.f32.mrf.mxu0 }
 0x67a   :  { %v14925_v59 = vpop.f32.mrf.mxu0 }
 0x67b   :  { %v14926_v21 = vadd.f32 %v14925_v59, %v14924_v14  ;;  %v16148_v14 = vld [vmem:[#allocation2 + $0x28] sm:$0xff]   ;;  %v8156_v59 = vld [vmem:[%s21895_s4 + $0x18] sm:$0xff] }
 0x67c   :  { %v14927_v26 = vpop.f32.mrf.mxu0 }
 0x67d   :  { %v7255_v52 = vadd.f32 %v14926_v21, %v14904_v56  ;;  %v16153_v56 = vld [vmem:[%s21896_s3 + $0x20] sm:$0xff]  }
 0x67e   :  { %v14928_v5 = vpop.f32.mrf.mxu0  ;;  %v8153_v21 = vld [vmem:[%s21895_s4] sm:$0xff]  ;;  %15144 = vmatprep.mubr.msk.bf16.mxu0 %vm1460_vm1, %v16153_v56 }
 0x67f   :  { %v7273_v24 = vadd.f32 %v7266_v10, %v7255_v52  ;;  %v14929_v42 = vadd.f32 %v14928_v5, %v14927_v26  ;;  %v14946_v10 = vpop.f32.mrf.mxu1 }
 0x681   :  { %v7275_v60 = vmax.f32 %v7273_v24, 0.0  ;;  %v7258_v13 = vadd.f32 %v14929_v42, %v14907_v58  ;;  %v14947_v8 = vpop.f32.mrf.mxu1 }
 0x682   :  { %v14948_v31 = vadd.f32 %v14947_v8, %v14946_v10  ;;  %v16152_v10 = vld [vmem:[%s21896_s3 + $0x8] sm:$0xff]  }
 0x683   :  { %v14590_v63 = vpack.c.bf16 %v7275_v60, %v7275_v60  ;;  %v7274_v0 = vadd.f32 %v7271_v4, %v7258_v13  ;;  %v14949_v25 = vpop.f32.mrf.mxu1  ;;  %v16150_v60 = vld [vmem:[%s21896_s3 + $0x18] sm:$0xff]   ;;  %v16151_v13 = vld [vmem:[%s21896_s3] sm:$0xff]  }
 0x685   :  { %7285 = vst.msk [vmem:[#allocation2 + $0x30] sm:$0xf] %vm260_vm0, %v14590_v63  ;;  %v7276_v15 = vmax.f32 %v7274_v0, 0.0  ;;  %v14950_v4 = vpop.f32.mrf.mxu1 }
 0x686   :  { %v14951_v44 = vadd.f32 %v14950_v4, %v14949_v25 }
 0x687   :  { %v14591_v38 = vpack.c.bf16 %v7276_v15, %v7276_v15  ;;  %v16154_v15 = vld [vmem:[%s21896_s3 + $0x28] sm:$0xff]  }
 0x689   :  { %7286 = vst.msk [vmem:[#allocation2 + $0x34] sm:$0xf] %vm260_vm0, %v14591_v38 }
 0x690   :  { %v20128_v7 = vld [vmem:[#allocation2 + $0x30] sm:$0xff]  }
 0x691   :  { %7851 = vrot.lane.b32.xlu0 %v20128_v7, %s17009_s13 }
 0x694   :  { %v14990_v33 = vpop.f32.mrf.mxu1 }
 0x695   :  { %7847 = vrot.lane.b32.xlu0 %v20132_v19, %s17009_s13 }
 0x696   :  { %v14991_v40 = vpop.f32.mrf.mxu1 }
 0x697   :  { %v14992_v27 = vadd.f32 %v14991_v40, %v14990_v33  ;;  %v16160_v33 = vld [vmem:[%s21897_s5 + $0xf0] ss:$8 sps:$4 sm:$0xff]   ;;  %v16163_v40 = vld [vmem:[%s21897_s5 + $0x60] ss:$8 sps:$4 sm:$0xff]  }
 0x698   :  { %v14968_v29 = vpop.f32.mrf.mxu0  ;;  %v14993_v2 = vpop.f32.mrf.mxu1 }
 0x69a   :  { %v14969_v28 = vpop.f32.mrf.mxu0  ;;  %v14994_v23 = vpop.f32.mrf.mxu1 }
 0x69b   :  { %v14970_v35 = vadd.f32 %v14969_v28, %v14968_v29  ;;  %v14995_v9 = vadd.f32 %v14994_v23, %v14993_v2  ;;  %v16157_v29 = vld [vmem:[%s21897_s5 + $0x70] ss:$8 sps:$4 sm:$0xff]   ;;  %v16159_v28 = vld [vmem:[%s21897_s5 + $0x74] ss:$8 sps:$4 sm:$0xff]   ;;  %v16166_v2 = vld [vmem:[%s21897_s5 + $0xe0] ss:$8 sps:$4 sm:$0xff]  }
 0x69c   :  { %v14971_v43 = vpop.f32.mrf.mxu0  ;;  %v16172_v23 = vld [vmem:[%s21897_s5 + $0xd0] ss:$8 sps:$4 sm:$0xff]  }
 0x69d   :  { %v7563_v48 = vadd.f32 %v14970_v35, %v14948_v31  ;;  %v16165_v35 = vld [vmem:[%s21897_s5 + $0x64] ss:$8 sps:$4 sm:$0xff]   ;;  %v16171_v31 = vld [vmem:[%s21897_s5 + $0x54] ss:$8 sps:$4 sm:$0xff]  }
 0x69e   :  { %v14972_v55 = vpop.f32.mrf.mxu0 }
 0x69f   :  { %v14973_v17 = vadd.f32 %v14972_v55, %v14971_v43  ;;  %v7670_v54 = vadd.f32 %v14992_v27, %v7563_v48  ;;  %v16162_v43 = vld [vmem:[%s21897_s5 + $0xf4] ss:$8 sps:$4 sm:$0xff]   ;;  %v16168_v55 = vld [vmem:[%s21897_s5 + $0xe4] ss:$8 sps:$4 sm:$0xff]   ;;  %v16169_v48 = vld [vmem:[%s21897_s5 + $0x50] ss:$8 sps:$4 sm:$0xff]  }
 0x6a0   :  { %v16174_v27 = vld [vmem:[%s21897_s5 + $0xd4] ss:$8 sps:$4 sm:$0xff]  }
 0x6a1   :  { %v7566_v11 = vadd.f32 %v14973_v17, %v14951_v44  ;;  %v16177_v17 = vld [vmem:[%s21897_s5 + $0x44] ss:$8 sps:$4 sm:$0xff]   ;;  %v16178_v44 = vld [vmem:[%s21897_s5 + $0xc0] ss:$8 sps:$4 sm:$0xff]  }
 0x6a3   :  { %v7671_v20 = vadd.f32 %v14995_v9, %v7566_v11  ;;  %v16183_v11 = vld [vmem:[%s21897_s5 + $0x34] ss:$8 sps:$4 sm:$0xff]   ;;  %v16184_v9 = vld [vmem:[%s21897_s5 + $0xb0] ss:$8 sps:$4 sm:$0xff]  }
 0x6b8   :  { %v15012_v49 = vpop.f32.mrf.mxu0 }
 0x6ba   :  { %v15013_v45 = vpop.f32.mrf.mxu0 }
 0x6bb   :  { %v15014_v30 = vadd.f32 %v15013_v45, %v15012_v49  ;;  %v16175_v49 = vld [vmem:[%s21897_s5 + $0x40] ss:$8 sps:$4 sm:$0xff]   ;;  %v16180_v45 = vld [vmem:[%s21897_s5 + $0xc4] ss:$8 sps:$4 sm:$0xff]  }
 0x6bc   :  { %v15015_v47 = vpop.f32.mrf.mxu0 }
 0x6bd   :  { %v7773_v39 = vadd.f32 %v15014_v30, %v7670_v54  ;;  %v16181_v54 = vld [vmem:[%s21897_s5 + $0x30] ss:$8 sps:$4 sm:$0xff]   ;;  %v16186_v30 = vld [vmem:[%s21897_s5 + $0xb4] ss:$8 sps:$4 sm:$0xff]  }
 0x6be   :  { %v15016_v37 = vpop.f32.mrf.mxu0 }
 0x6bf   :  { %v7787_v22 = vadd.f32 %v20118_v51, %v7773_v39  ;;  %v15017_v57 = vadd.f32 %v15016_v37, %v15015_v47  ;;  %v16149_v51 = vld [vmem:[%s21896_s3 + $0x10] sm:$0xff]   ;;  %v16187_v47 = vld [vmem:[%s21897_s5 + $0x20] ss:$8 sps:$4 sm:$0xff]   ;;  %v16189_v39 = vld [vmem:[%s21897_s5 + $0x24] ss:$8 sps:$4 sm:$0xff]  }
 0x6c0   :  { %15120 = vmatprep.mubr.msk.bf16.mxu1 %vm1460_vm1, %v16149_v51  ;;  %v16192_v37 = vld [vmem:[%s21897_s5 + $0xa4] ss:$8 sps:$4 sm:$0xff]   ;;  %v16211_v51 = vld [vmem:[%s21897_s5 + $0x174] ss:$8 sps:$4 sm:$0xff]  }
 0x6c1   :  { %v7789_v3 = vmax.f32 %v7787_v22, 0.0  ;;  %v7774_v41 = vadd.f32 %v15017_v57, %v7671_v20  ;;  %v16195_v20 = vld [vmem:[%s21897_s5 + $0x14] ss:$8 sps:$4 sm:$0xff]   ;;  %v16190_v22 = vld [vmem:[%s21897_s5 + $0xa0] ss:$8 sps:$4 sm:$0xff]  }
 0x6c2   :  { %v16193_v57 = vld [vmem:[%s21897_s5 + $0x10] ss:$8 sps:$4 sm:$0xff]  }
 0x6c3   :  { %v14592_v18 = vpack.c.bf16 %v7789_v3, %v7789_v3  ;;  %v7788_v46 = vadd.f32 %v20120_v1, %v7774_v41  ;;  %v8154_v1 = vld [vmem:[%s21895_s4 + $0x8] sm:$0xff]  ;;  %v16198_v3 = vld [vmem:[%s21897_s5 + $0x94] ss:$8 sps:$4 sm:$0xff]  }
 0x6c4   :  { %v16201_v41 = vld [vmem:[%s21897_s5 + $0x4] ss:$8 sps:$4 sm:$0xff]  }
 0x6c5   :  { %7799 = vst.msk [vmem:[#allocation2 + $0x38] sm:$0xf] %vm260_vm0, %v14592_v18  ;;  %v7790_v32 = vmax.f32 %v7788_v46, 0.0  ;;  %v16196_v18 = vld [vmem:[%s21897_s5 + $0x90] ss:$8 sps:$4 sm:$0xff]  }
 0x6c6   :  { %v16199_v46 = vld [vmem:[%s21897_s5] ss:$8 sps:$4 sm:$0xff]  }
 0x6c7   :  { %v14593_v36 = vpack.c.bf16 %v7790_v32, %v7790_v32  ;;  %v16204_v32 = vld [vmem:[%s21897_s5 + $0x84] ss:$8 sps:$4 sm:$0xff]  }
 0x6c9   :  { %7800 = vst.msk [vmem:[#allocation2 + $0x3c] sm:$0xf] %vm260_vm0, %v14593_v36  ;;  %v16207_v36 = vld [vmem:[%s21897_s5 + $0x1f4] ss:$8 sps:$4 sm:$0xff]  }
 0x6d0   :  { %v16147_v6 = vld [vmem:[#allocation2 + $0x38] sm:$0xff]  }
 0x6d1   :  { %7853 = vrot.lane.b32.xlu1 %v16147_v6, %s17009_s13  ;;  %8088 = vrot.lane.b32.xlu0 %v16147_v6, %s17012_s11 }
 0x6d5   :  { %7849 = vrot.lane.b32.xlu1 %v16148_v14, %s17009_s13  ;;  %8086 = vrot.lane.b32.xlu0 %v20128_v7, %s17012_s11 }
 0x6d9   :  { %8003 = vrot.lane.b32.xlu1 %v16147_v6, %s17010_s26  ;;  %8084 = vrot.lane.b32.xlu0 %v16148_v14, %s17012_s11 }
 0x6dd   :  { %8001 = vrot.lane.b32.xlu1 %v20128_v7, %s17010_s26  ;;  %8082 = vrot.lane.b32.xlu0 %v20132_v19, %s17012_s11 }
 0x6e1   :  { %7999 = vrot.lane.b32.xlu1 %v16148_v14, %s17010_s26  ;;  %8164 = vperm.xlu0 %15165, %v8154_v1  }
 0x6e5   :  { %7997 = vrot.lane.b32.xlu1 %v20132_v19, %s17010_s26  ;;  %8174 = vperm.xlu0 %15165, %v8156_v59  }
 0x6e9   :  { %8159 = vperm.xlu1 %15166, %v8153_v21  }
 0x6ed   :  { %8169 = vperm.xlu1 %15166, %v8155_v50  }
 0x703   :  { %v7852_v52 = vpop.permute.xlu0 %7851 }
 0x707   :  { %v7848_v24 = vpop.permute.xlu0 %7847 }
 0x743   :  { %v7854_v26 = vpop.permute.xlu1 %7853  ;;  %v8089_v38 = vpop.permute.xlu0 %8088 }
 0x744   :  { %15112 = vmatprep.subr.bf16.mxu1 %v7854_v26 }
 0x745   :  { %15113 = vmatpush3.bf16.msra.mxu1 %v7854_v26 }
 0x746   :  { %15114 = vmatprep.subr.bf16.mxu1 %v7852_v52 }
 0x747   :  { %v7850_v5 = vpop.permute.xlu1 %7849  ;;  %v8087_v8 = vpop.permute.xlu0 %8086 }
 0x749   :  { %15115 = vmatpush3.bf16.msra.mxu1 %v7852_v52 }
 0x74a   :  { %15116 = vmatprep.subr.bf16.mxu1 %v7850_v5 }
 0x74b   :  { %v8004_v58 = vpop.permute.xlu1 %8003  ;;  %v8085_v25 = vpop.permute.xlu0 %8084 }
 0x74c   :  { %15136 = vmatprep.subr.bf16.mxu0 %v8004_v58 }
 0x74d   :  { %15117 = vmatpush3.bf16.msra.mxu1 %v7850_v5  ;;  %15137 = vmatpush3.bf16.msra.mxu0 %v8004_v58 }
 0x74e   :  { %15118 = vmatprep.subr.bf16.mxu1 %v7848_v24 }
 0x74f   :  { %v8002_v42 = vpop.permute.xlu1 %8001  ;;  %v8083_v4 = vpop.permute.xlu0 %8082 }
 0x750   :  { %15138 = vmatprep.subr.bf16.mxu0 %v8002_v42 }
 0x751   :  { %15119 = vmatpush3.bf16.msra.mxu1 %v7848_v24  ;;  %15139 = vmatpush3.bf16.msra.mxu0 %v8002_v42 }
 0x752   :  { %15124 = vmatprep.subr.bf16.mxu1 %v16147_v6 }
 0x753   :  { %v8000_v63 = vpop.permute.xlu1 %7999 }
 0x754   :  { %15121 = vmatmul.mubr.msk.bf16.vlgmr.msra.gmra.mxu1 %vm1460_vm1, %v16150_v60  ;;  %15140 = vmatprep.subr.bf16.mxu0 %v8000_v63 }
 0x755   :  { %15125 = vmatpush3.bf16.msra.mxu1 %v16147_v6  ;;  %15141 = vmatpush3.bf16.msra.mxu0 %v8000_v63  ;;  %v16202_v6 = vld [vmem:[%s21897_s5 + $0x80] ss:$8 sps:$4 sm:$0xff]  }
 0x756   :  { %15126 = vmatprep.subr.bf16.mxu1 %v20128_v7  ;;  %15132 = vmatprep.mubr.msk.bf16.mxu1 %vm1460_vm1, %v16151_v13 }
 0x757   :  { %v7998_v0 = vpop.permute.xlu1 %7997 }
 0x758   :  { %15142 = vmatprep.subr.bf16.mxu0 %v7998_v0 }
 0x759   :  { %15127 = vmatpush3.bf16.msra.mxu1 %v20128_v7  ;;  %15143 = vmatpush3.bf16.msra.mxu0 %v7998_v0  ;;  %v16155_v7 = vld [vmem:[%s21896_s3 + $0x30] sm:$0xff]  }
 0x75a   :  { %15128 = vmatprep.subr.bf16.mxu1 %v16148_v14  ;;  %8326 = vmatprep.subr.bf16.mxu0 %v16162_v43 }
 0x75c   :  { %15145 = vmatmul.mubr.msk.bf16.vlgmr.msra.gmra.mxu0 %vm1460_vm1, %v16154_v15  ;;  %v8165_v15 = vpop.permute.xlu0 %8164 }
 0x75d   :  { %15129 = vmatpush3.bf16.msra.mxu1 %v16148_v14  ;;  %8358 = vmatprep.mubr.bf16.mxu0 %v17011_v62 }
 0x75e   :  { %15130 = vmatprep.subr.bf16.mxu1 %v20132_v19  ;;  %8327 = vmatpush1.bf16.msra.mxu0 %v16160_v33 }
 0x75f   :  { %8328 = vmatprep.subr.bf16.mxu0 %v16168_v55 }
 0x761   :  { %15131 = vmatpush3.bf16.msra.mxu1 %v20132_v19  ;;  %v16156_v19 = vld [vmem:[%s21896_s3 + $0x38] sm:$0xff]  }
 0x762   :  { %15148 = vmatprep.subr.bf16.mxu1 %v8089_v38  ;;  %8329 = vmatpush1.bf16.msra.mxu0 %v16166_v2 }
 0x763   :  { %8330 = vmatprep.subr.bf16.mxu0 %v16174_v27 }
 0x764   :  { %15133 = vmatmul.mubr.msk.bf16.vlgmr.msra.gmra.mxu1 %vm1460_vm1, %v16152_v10  ;;  %v8160_v58 = vpop.permute.xlu1 %8159 }
 0x765   :  { %15149 = vmatpush3.bf16.msra.mxu1 %v8089_v38  ;;  %15156 = vmatprep.mubr.msk.bf16.mxu1 %vm1460_vm1, %v16155_v7 }
 0x766   :  { %15150 = vmatprep.subr.bf16.mxu1 %v8087_v8  ;;  %8331 = vmatpush1.bf16.msra.mxu0 %v16172_v23 }
 0x767   :  { %8332 = vmatprep.subr.bf16.mxu0 %v16180_v45 }
 0x768   :  { %v8170_v10 = vpop.permute.xlu1 %8169 }
 0x769   :  { %15151 = vmatpush3.bf16.msra.mxu1 %v8087_v8 }
 0x76a   :  { %15152 = vmatprep.subr.bf16.mxu1 %v8085_v25  ;;  %8333 = vmatpush1.bf16.msra.mxu0 %v16178_v44 }
 0x76b   :  { %8334 = vmatprep.subr.bf16.mxu0 %v16186_v30 }
 0x76d   :  { %15153 = vmatpush3.bf16.msra.mxu1 %v8085_v25 }
 0x76e   :  { %15154 = vmatprep.subr.bf16.mxu1 %v8083_v4  ;;  %8335 = vmatpush1.bf16.msra.mxu0 %v16184_v9 }
 0x76f   :  { %8336 = vmatprep.subr.bf16.mxu0 %v16192_v37 }
 0x771   :  { %15155 = vmatpush3.bf16.msra.mxu1 %v8083_v4 }
 0x772   :  { %8447 = vmatprep.subr.bf16.mxu1 %v16159_v28  ;;  %8337 = vmatpush1.bf16.msra.mxu0 %v16190_v22  ;;  %v16209_v22 = vld [vmem:[%s21897_s5 + $0x170] ss:$8 sps:$4 sm:$0xff]  }
 0x773   :  { %8338 = vmatprep.subr.bf16.mxu0 %v16198_v3 }
 0x774   :  { %15157 = vmatmul.mubr.msk.bf16.vlgmr.msra.gmra.mxu1 %vm1460_vm1, %v16156_v19  ;;  %vm13066_vm1 = vcmask 1041408  }
 0x775   :  { %8479 = vmatprep.mubr.bf16.mxu1 %v17011_v62  ;;  %8448 = vmatpush1.bf16.msra.mxu1 %v16157_v29 }
 0x776   :  { %8449 = vmatprep.subr.bf16.mxu1 %v16165_v35  ;;  %8339 = vmatpush1.bf16.msra.mxu0 %v16196_v18  ;;  %v16220_v18 = vld [vmem:[%s21897_s5 + $0x1d4] ss:$8 sps:$4 sm:$0xff]  }
 0x777   :  { %8340 = vmatprep.subr.bf16.mxu0 %v16204_v32  ;;  %v16218_v32 = vld [vmem:[%s21897_s5 + $0x1d0] ss:$8 sps:$4 sm:$0xff]  }
 0x779   :  { %8450 = vmatpush1.bf16.msra.mxu1 %v16163_v40 }
 0x77a   :  { %8451 = vmatprep.subr.bf16.mxu1 %v16171_v31  ;;  %8341 = vmatpush1.bf16.msra.mxu0 %v16202_v6  ;;  %v8175_v31 = vpop.permute.xlu0 %8174  ;;  %v16226_v6 = vld [vmem:[%s21897_s5 + $0x1c4] ss:$8 sps:$4 sm:$0xff]  }
 0x77b   :  { %8590 = vmatprep.subr.bf16.mxu0 %v16211_v51  ;;  %v16221_v51 = vld [vmem:[%s21897_s5 + $0x150] ss:$8 sps:$4 sm:$0xff]  }
 0x77d   :  { %8452 = vmatpush1.bf16.msra.mxu1 %v16169_v48 }
 0x77e   :  { %8453 = vmatprep.subr.bf16.mxu1 %v16177_v17 }
 0x781   :  { %8454 = vmatpush1.bf16.msra.mxu1 %v16175_v49 }
 0x782   :  { %8455 = vmatprep.subr.bf16.mxu1 %v16183_v11 }
 0x785   :  { %8456 = vmatpush1.bf16.msra.mxu1 %v16181_v54 }
 0x786   :  { %8457 = vmatprep.subr.bf16.mxu1 %v16189_v39  ;;  %v16214_v39 = vld [vmem:[%s21897_s5 + $0x1e4] ss:$8 sps:$4 sm:$0xff]  }
 0x789   :  { %8458 = vmatpush1.bf16.msra.mxu1 %v16187_v47  ;;  %v16205_v47 = vld [vmem:[%s21897_s5 + $0x1f0] ss:$8 sps:$4 sm:$0xff]  }
 0x78a   :  { %8459 = vmatprep.subr.bf16.mxu1 %v16195_v20 }
 0x78d   :  { %8460 = vmatpush1.bf16.msra.mxu1 %v16193_v57  ;;  %v16212_v57 = vld [vmem:[%s21897_s5 + $0x1e0] ss:$8 sps:$4 sm:$0xff]  }
 0x78e   :  { %8461 = vmatprep.subr.bf16.mxu1 %v16201_v41  ;;  %v16217_v41 = vld [vmem:[%s21897_s5 + $0x164] ss:$8 sps:$4 sm:$0xff]  }
 0x791   :  { %8462 = vmatpush1.bf16.msra.mxu1 %v16199_v46  ;;  %v16215_v46 = vld [vmem:[%s21897_s5 + $0x160] ss:$8 sps:$4 sm:$0xff]  }
 0x792   :  { %8734 = vmatprep.subr.bf16.mxu1 %v16207_v36  ;;  %v16223_v36 = vld [vmem:[%s21897_s5 + $0x154] ss:$8 sps:$4 sm:$0xff]  }
 0x814   :  { %v15122_v14 = vpop.f32.mrf.mxu1 }
 0x816   :  { %v7899_v1 = vpop.f32.mrf.mxu1 }
 0x818   :  { %v15123_v59 = vpop.f32.mrf.mxu1 }
 0x81a   :  { %v7902_v56 = vpop.f32.mrf.mxu1 }
 0x81c   :  { %v15146_v26 = vpop.f32.mrf.mxu0 }
 0x81e   :  { %v8049_v5 = vpop.f32.mrf.mxu0 }
 0x820   :  { %v15147_v13 = vpop.f32.mrf.mxu0 }
 0x822   :  { %v8052_v4 = vpop.f32.mrf.mxu0 }
 0x824   :  { %v15134_v21 = vpop.f32.mrf.mxu1 }
 0x825   :  { %v7977_v24 = vadd.f32 %v15134_v21, %v15122_v14  ;;  %v16224_v14 = vld [vmem:[%s21897_s5 + $0x1c0] ss:$8 sps:$4 sm:$0xff]   ;;  %v16230_v21 = vld [vmem:[%s21897_s5 + $0x1b0] ss:$8 sps:$4 sm:$0xff]  }
 0x826   :  { %v7968_v50 = vpop.f32.mrf.mxu1 }
 0x827   :  { %v7969_v42 = vadd.f32 %v7968_v50, %v7899_v1  ;;  %v8066_v63 = vadd.f32 %v15146_v26, %v7977_v24  ;;  %v16229_v1 = vld [vmem:[%s21897_s5 + $0x144] ss:$8 sps:$4 sm:$0xff]   ;;  %v16235_v50 = vld [vmem:[%s21897_s5 + $0x134] ss:$8 sps:$4 sm:$0xff]  }
 0x828   :  { %v15135_v52 = vpop.f32.mrf.mxu1  ;;  %v16238_v26 = vld [vmem:[%s21897_s5 + $0x1a4] ss:$8 sps:$4 sm:$0xff]   ;;  %v16244_v24 = vld [vmem:[%s21897_s5 + $0x194] ss:$8 sps:$4 sm:$0xff]  }
 0x829   :  { %v7980_v0 = vadd.f32 %v15135_v52, %v15123_v59  ;;  %v8064_v8 = vadd.f32 %v8049_v5, %v7969_v42  ;;  %v16232_v59 = vld [vmem:[%s21897_s5 + $0x1b4] ss:$8 sps:$4 sm:$0xff]   ;;  %v16233_v52 = vld [vmem:[%s21897_s5 + $0x130] ss:$8 sps:$4 sm:$0xff]   ;;  %v16236_v5 = vld [vmem:[%s21897_s5 + $0x1a0] ss:$8 sps:$4 sm:$0xff]  }
 0x82a   :  { %v7971_v60 = vpop.f32.mrf.mxu1  ;;  %v16239_v42 = vld [vmem:[%s21897_s5 + $0x120] ss:$8 sps:$4 sm:$0xff]  }
 0x82b   :  { %v7972_v7 = vadd.f32 %v7971_v60, %v7902_v56  ;;  %v8067_v29 = vadd.f32 %v15147_v13, %v7980_v0  ;;  %v16227_v56 = vld [vmem:[%s21897_s5 + $0x140] ss:$8 sps:$4 sm:$0xff]   ;;  %v16242_v60 = vld [vmem:[%s21897_s5 + $0x190] ss:$8 sps:$4 sm:$0xff]   ;;  %v16247_v13 = vld [vmem:[%s21897_s5 + $0x114] ss:$8 sps:$4 sm:$0xff]  }
 0x82d   :  { %v8065_v40 = vadd.f32 %v8052_v4, %v7972_v7  ;;  %v16257_v7 = vld [vmem:[%s21897_s5 + $0x2f4] ss:$8 sps:$4 sm:$0xff]   ;;  %v16255_v4 = vld [vmem:[%s21897_s5 + $0x2f0] ss:$8 sps:$4 sm:$0xff]  }
 0x834   :  { %v15158_v38 = vpop.f32.mrf.mxu1 }
 0x835   :  { %v8151_v25 = vadd.f32 %v15158_v38, %v8066_v63  ;;  %v16250_v63 = vld [vmem:[%s21897_s5 + $0x184] ss:$8 sps:$4 sm:$0xff]   ;;  %v16248_v38 = vld [vmem:[%s21897_s5 + $0x180] ss:$8 sps:$4 sm:$0xff]  }
 0x836   :  { %v8134_v19 = vpop.f32.mrf.mxu1 }
 0x837   :  { %v8179_v28 = vadd.f32 %v8170_v10, %v8151_v25  ;;  %v8149_v33 = vadd.f32 %v8134_v19, %v8064_v8  ;;  %v16253_v10 = vld [vmem:[%s21897_s5 + $0x104] ss:$8 sps:$4 sm:$0xff]   ;;  %v16251_v25 = vld [vmem:[%s21897_s5 + $0x100] ss:$8 sps:$4 sm:$0xff]  }
 0x838   :  { %v15159_v43 = vpop.f32.mrf.mxu1 }
 0x839   :  { %v8183_v35 = vmax.f32 %v8179_v28, 0.0  ;;  %v8177_v55 = vadd.f32 %v8160_v58, %v8149_v33  ;;  %v8152_v2 = vadd.f32 %v15159_v43, %v8067_v29  ;;  %v16241_v58 = vld [vmem:[%s21897_s5 + $0x124] ss:$8 sps:$4 sm:$0xff]   ;;  %v16260_v29 = vld [vmem:[%s21897_s5 + $0x274] ss:$8 sps:$4 sm:$0xff]  }
 0x83a   :  { %v8137_v48 = vpop.f32.mrf.mxu1  ;;  %v16263_v28 = vld [vmem:[%s21897_s5 + $0x2e4] ss:$8 sps:$4 sm:$0xff]   ;;  %v16258_v33 = vld [vmem:[%s21897_s5 + $0x270] ss:$8 sps:$4 sm:$0xff]   ;;  %v16261_v43 = vld [vmem:[%s21897_s5 + $0x2e0] ss:$8 sps:$4 sm:$0xff]  }
 0x83b   :  { %v14596_v27 = vpack.c.bf16 %v8183_v35, %v8183_v35  ;;  %v8181_v17 = vmax.f32 %v8177_v55, 0.0  ;;  %v8180_v23 = vadd.f32 %v8175_v31, %v8152_v2  ;;  %v8150_v49 = vadd.f32 %v8137_v48, %v8065_v40  ;;  %v16266_v35 = vld [vmem:[%s21897_s5 + $0x264] ss:$8 sps:$4 sm:$0xff]   ;;  %v16269_v55 = vld [vmem:[%s21897_s5 + $0x2d4] ss:$8 sps:$4 sm:$0xff]  }
 0x83c   :  { %v16264_v2 = vld [vmem:[%s21897_s5 + $0x260] ss:$8 sps:$4 sm:$0xff]   ;;  %v16267_v31 = vld [vmem:[%s21897_s5 + $0x2d0] ss:$8 sps:$4 sm:$0xff]   ;;  %v16272_v48 = vld [vmem:[%s21897_s5 + $0x254] ss:$8 sps:$4 sm:$0xff]  }
 0x83d   :  { %8204 = vst.msk [vmem:[#allocation3 + $0x18] sm:$0xf] %vm1805_vm2, %v14596_v27  ;;  %v14594_v44 = vpack.c.bf16 %v8181_v17, %v8181_v17  ;;  %v8184_v45 = vmax.f32 %v8180_v23, 0.0  ;;  %v8178_v54 = vadd.f32 %v8165_v15, %v8150_v49  ;;  %v16245_v15 = vld [vmem:[%s21897_s5 + $0x110] ss:$8 sps:$4 sm:$0xff]  }
 0x83e   :  { %v16275_v27 = vld [vmem:[%s21897_s5 + $0x2c4] ss:$8 sps:$4 sm:$0xff]   ;;  %v16270_v17 = vld [vmem:[%s21897_s5 + $0x250] ss:$8 sps:$4 sm:$0xff]   ;;  %v16273_v23 = vld [vmem:[%s21897_s5 + $0x2c0] ss:$8 sps:$4 sm:$0xff]  }
 0x83f   :  { %8202 = vst.msk [vmem:[#allocation3 + $0x10] sm:$0xf] %vm1805_vm2, %v14594_v44  ;;  %v14597_v11 = vpack.c.bf16 %v8184_v45, %v8184_v45  ;;  %v8182_v9 = vmax.f32 %v8178_v54, 0.0  ;;  %v16278_v49 = vld [vmem:[%s21897_s5 + $0x244] ss:$8 sps:$4 sm:$0xff]  }
 0x840   :  { %v16281_v44 = vld [vmem:[%s21897_s5 + $0x2b4] ss:$8 sps:$4 sm:$0xff]   ;;  %v16276_v45 = vld [vmem:[%s21897_s5 + $0x240] ss:$8 sps:$4 sm:$0xff]   ;;  %v16279_v54 = vld [vmem:[%s21897_s5 + $0x2b0] ss:$8 sps:$4 sm:$0xff]  }
 0x841   :  { %8205 = vst.msk [vmem:[#allocation3 + $0x1c] sm:$0xf] %vm1805_vm2, %v14597_v11  ;;  %v14595_v30 = vpack.c.bf16 %v8182_v9, %v8182_v9  ;;  %v16284_v11 = vld [vmem:[%s21897_s5 + $0x234] ss:$8 sps:$4 sm:$0xff]   ;;  %v16287_v9 = vld [vmem:[%s21897_s5 + $0x2a4] ss:$8 sps:$4 sm:$0xff]  }
 0x843   :  { %8203 = vst.msk [vmem:[#allocation3 + $0x14] sm:$0xf] %vm1805_vm2, %v14595_v30  ;;  %v16282_v30 = vld [vmem:[%s21897_s5 + $0x230] ss:$8 sps:$4 sm:$0xff]  }
 0x846   :  { %v8206_v37 = vld [vmem:[#allocation3 + $0x10] sm:$0x1] }
 0x847   :  { %v14027_v20 = vcombine.low %v8206_v37, %v8206_v37  ;;  %8480 = vmatmul.mubr.bf16.vlgmr.msra.gmra.mxu1 %v8206_v37  ;;  %v16254_v0 = vld [vmem:[#allocation3 + $0x10] ss:$0 sps:$4 sm:$0x22]   ;;  %v16293_v37 = vld [vmem:[%s21897_s5 + $0x294] ss:$8 sps:$4 sm:$0xff]  }
 0x848   :  { %8735 = vmatpush1.bf16.msra.mxu1 %v16205_v47  ;;  %8766 = vmatprep.mubr.bf16.mxu1 %v17011_v62  ;;  %v8650_v8 = vshrl.u32 %v16254_v0, 16  ;;  %v8508_v40 = vrot.slane %v16254_v0, 1  ;;  %v16285_v47 = vld [vmem:[%s21897_s5 + $0x2a0] ss:$8 sps:$4 sm:$0xff]   ;;  %v16327_v0 = vld [vmem:[%s21897_s5 + $0x344] ss:$8 sps:$4 sm:$0xff]  }
 0x849   :  { %v8243_v3 = vshrl.u32 %v14027_v20, 16  ;;  %8736 = vmatprep.subr.bf16.mxu1 %v16214_v39  ;;  %v16290_v39 = vld [vmem:[%s21897_s5 + $0x224] ss:$8 sps:$4 sm:$0xff]   ;;  %v16288_v20 = vld [vmem:[%s21897_s5 + $0x220] ss:$8 sps:$4 sm:$0xff]  }
 0x84a   :  { %v8652_v19 = vrot.slane %v8650_v8, 1  ;;  %v16333_v8 = vld [vmem:[%s21897_s5 + $0x334] ss:$8 sps:$4 sm:$0xff]  }
 0x84b   :  { %8359 = vmatmul.mubr.bf16.vlgmr.msra.gmra.mxu0 %v8243_v3  ;;  %v16299_v3 = vld [vmem:[%s21897_s5 + $0x284] ss:$8 sps:$4 sm:$0xff]  }
 0x84c   :  { %8591 = vmatpush1.bf16.msra.mxu0 %v16209_v22  ;;  %8737 = vmatpush1.bf16.msra.mxu1 %v16212_v57  ;;  %v16291_v22 = vld [vmem:[%s21897_s5 + $0x290] ss:$8 sps:$4 sm:$0xff]   ;;  %v16296_v57 = vld [vmem:[%s21897_s5 + $0x214] ss:$8 sps:$4 sm:$0xff]  }
 0x84d   :  { %8592 = vmatprep.subr.bf16.mxu0 %v16217_v41  ;;  %8738 = vmatprep.subr.bf16.mxu1 %v16220_v18  ;;  %v16303_v41 = vld [vmem:[#allocation3 + $0x10] ss:$0 sps:$4 sm:$0x44]  }
 0x84e   :  { %8622 = vmatprep.mubr.bf16.mxu0 %v17011_v62  ;;  %v16294_v18 = vld [vmem:[%s21897_s5 + $0x210] ss:$8 sps:$4 sm:$0xff]  }
 0x850   :  { %8593 = vmatpush1.bf16.msra.mxu0 %v16215_v46  ;;  %8739 = vmatpush1.bf16.msra.mxu1 %v16218_v32  ;;  %v16297_v46 = vld [vmem:[%s21897_s5 + $0x280] ss:$8 sps:$4 sm:$0xff]   ;;  %v16302_v32 = vld [vmem:[%s21897_s5 + $0x204] ss:$8 sps:$4 sm:$0xff]  }
 0x851   :  { %8594 = vmatprep.subr.bf16.mxu0 %v16223_v36  ;;  %8740 = vmatprep.subr.bf16.mxu1 %v16226_v6  ;;  %v8939_v36 = vshrl.u32 %v16303_v41, 16  ;;  %v16306_v6 = vld [vmem:[%s21897_s5 + $0x3f4] ss:$8 sps:$4 sm:$0xff]  }
 0x854   :  { %8595 = vmatpush1.bf16.msra.mxu0 %v16221_v51  ;;  %8741 = vmatpush1.bf16.msra.mxu1 %v16224_v14  ;;  %v16300_v51 = vld [vmem:[%s21897_s5 + $0x200] ss:$8 sps:$4 sm:$0xff]   ;;  %v16304_v14 = vld [vmem:[%s21897_s5 + $0x3f0] ss:$8 sps:$4 sm:$0xff]  }
 0x855   :  { %8596 = vmatprep.subr.bf16.mxu0 %v16229_v1  ;;  %8742 = vmatprep.subr.bf16.mxu1 %v16232_v59  ;;  %v8941_v1 = vrot.slane %v8939_v36, 2  ;;  %v16309_v59 = vld [vmem:[%s21897_s5 + $0x374] ss:$8 sps:$4 sm:$0xff]  }
 0x856   :  { %v16382_v36 = vld [vmem:[%s21897_s5 + $0x434] ss:$8 sps:$4 sm:$0xff]  }
 0x858   :  { %8597 = vmatpush1.bf16.msra.mxu0 %v16227_v56  ;;  %8743 = vmatpush1.bf16.msra.mxu1 %v16230_v21  ;;  %v16312_v56 = vld [vmem:[%s21897_s5 + $0x3e4] ss:$8 sps:$4 sm:$0xff]   ;;  %v16307_v21 = vld [vmem:[%s21897_s5 + $0x370] ss:$8 sps:$4 sm:$0xff]  }
 0x859   :  { %8598 = vmatprep.subr.bf16.mxu0 %v16235_v50  ;;  %8744 = vmatprep.subr.bf16.mxu1 %v16238_v26  ;;  %v16310_v50 = vld [vmem:[%s21897_s5 + $0x3e0] ss:$8 sps:$4 sm:$0xff]   ;;  %v8797_v26 = vrot.slane %v16303_v41, 2  ;;  %v16376_v41 = vld [vmem:[%s21897_s5 + $0x444] ss:$8 sps:$4 sm:$0xff]  }
 0x85c   :  { %8599 = vmatpush1.bf16.msra.mxu0 %v16233_v52  ;;  %8745 = vmatpush1.bf16.msra.mxu1 %v16236_v5  ;;  %v16315_v52 = vld [vmem:[%s21897_s5 + $0x364] ss:$8 sps:$4 sm:$0xff]   ;;  %v16318_v5 = vld [vmem:[%s21897_s5 + $0x3d4] ss:$8 sps:$4 sm:$0xff]  }
 0x85d   :  { %8600 = vmatprep.subr.bf16.mxu0 %v16241_v58  ;;  %8746 = vmatprep.subr.bf16.mxu1 %v16244_v24  ;;  %v16313_v58 = vld [vmem:[%s21897_s5 + $0x360] ss:$8 sps:$4 sm:$0xff]   ;;  %v16316_v24 = vld [vmem:[%s21897_s5 + $0x3d0] ss:$8 sps:$4 sm:$0xff]  }
 0x860   :  { %8601 = vmatpush1.bf16.msra.mxu0 %v16239_v42  ;;  %8747 = vmatpush1.bf16.msra.mxu1 %v16242_v60  ;;  %v16321_v42 = vld [vmem:[%s21897_s5 + $0x354] ss:$8 sps:$4 sm:$0xff]   ;;  %v16324_v60 = vld [vmem:[%s21897_s5 + $0x3c4] ss:$8 sps:$4 sm:$0xff]  }
 0x861   :  { %8602 = vmatprep.subr.bf16.mxu0 %v16247_v13  ;;  %8748 = vmatprep.subr.bf16.mxu1 %v16250_v63  ;;  %v16319_v13 = vld [vmem:[%s21897_s5 + $0x350] ss:$8 sps:$4 sm:$0xff]   ;;  %v16322_v63 = vld [vmem:[%s21897_s5 + $0x3c0] ss:$8 sps:$4 sm:$0xff]  }
 0x864   :  { %8603 = vmatpush1.bf16.msra.mxu0 %v16245_v15  ;;  %8749 = vmatpush1.bf16.msra.mxu1 %v16248_v38  ;;  %v16330_v15 = vld [vmem:[%s21897_s5 + $0x3b4] ss:$8 sps:$4 sm:$0xff]   ;;  %v16325_v38 = vld [vmem:[%s21897_s5 + $0x340] ss:$8 sps:$4 sm:$0xff]  }
 0x865   :  { %8604 = vmatprep.subr.bf16.mxu0 %v16253_v10  ;;  %9023 = vmatprep.subr.bf16.mxu1 %v16257_v7  ;;  %v16328_v10 = vld [vmem:[%s21897_s5 + $0x3b0] ss:$8 sps:$4 sm:$0xff]   ;;  %v16336_v7 = vld [vmem:[%s21897_s5 + $0x3a4] ss:$8 sps:$4 sm:$0xff]  }
 0x867   :  { %8767 = vmatmul.mubr.bf16.vlgmr.msra.gmra.mxu1 %v8652_v19  ;;  %v16339_v19 = vld [vmem:[%s21897_s5 + $0x324] ss:$8 sps:$4 sm:$0xff]  }
 0x868   :  { %8605 = vmatpush1.bf16.msra.mxu0 %v16251_v25  ;;  %9024 = vmatpush1.bf16.msra.mxu1 %v16255_v4  ;;  %v16331_v25 = vld [vmem:[%s21897_s5 + $0x330] ss:$8 sps:$4 sm:$0xff]   ;;  %v16334_v4 = vld [vmem:[%s21897_s5 + $0x3a0] ss:$8 sps:$4 sm:$0xff]  }
 0x869   :  { %8879 = vmatprep.subr.bf16.mxu0 %v16260_v29  ;;  %9025 = vmatprep.subr.bf16.mxu1 %v16263_v28  ;;  %v16342_v29 = vld [vmem:[%s21897_s5 + $0x394] ss:$8 sps:$4 sm:$0xff]   ;;  %v16337_v28 = vld [vmem:[%s21897_s5 + $0x320] ss:$8 sps:$4 sm:$0xff]  }
 0x86a   :  { %9055 = vmatprep.mubr.bf16.mxu1 %v17011_v62 }
 0x86b   :  { %8623 = vmatmul.mubr.bf16.vlgmr.msra.gmra.mxu0 %v8508_v40  ;;  %v16348_v40 = vld [vmem:[%s21897_s5 + $0x384] ss:$8 sps:$4 sm:$0xff]  }
 0x86c   :  { %8880 = vmatpush1.bf16.msra.mxu0 %v16258_v33  ;;  %9026 = vmatpush1.bf16.msra.mxu1 %v16261_v43  ;;  %v16340_v33 = vld [vmem:[%s21897_s5 + $0x390] ss:$8 sps:$4 sm:$0xff]   ;;  %v16345_v43 = vld [vmem:[%s21897_s5 + $0x314] ss:$8 sps:$4 sm:$0xff]  }
 0x86d   :  { %8881 = vmatprep.subr.bf16.mxu0 %v16266_v35  ;;  %9027 = vmatprep.subr.bf16.mxu1 %v16269_v55  ;;  %v16352_v35 = vld [vmem:[#allocation3 + $0x10] ss:$0 sps:$4 sm:$0x88]  }
 0x86e   :  { %8911 = vmatprep.mubr.bf16.mxu0 %v17011_v62  ;;  %v16343_v55 = vld [vmem:[%s21897_s5 + $0x310] ss:$8 sps:$4 sm:$0xff]  }
 0x870   :  { %8882 = vmatpush1.bf16.msra.mxu0 %v16264_v2  ;;  %9028 = vmatpush1.bf16.msra.mxu1 %v16267_v31  ;;  %v16346_v2 = vld [vmem:[%s21897_s5 + $0x380] ss:$8 sps:$4 sm:$0xff]   ;;  %v16351_v31 = vld [vmem:[%s21897_s5 + $0x304] ss:$8 sps:$4 sm:$0xff]  }
 0x871   :  { %8883 = vmatprep.subr.bf16.mxu0 %v16272_v48  ;;  %9029 = vmatprep.subr.bf16.mxu1 %v16275_v27  ;;  %v9228_v48 = vshrl.u32 %v16352_v35, 16  ;;  %v16355_v27 = vld [vmem:[%s21897_s5 + $0x4f4] ss:$8 sps:$4 sm:$0xff]  }
 0x874   :  { %8884 = vmatpush1.bf16.msra.mxu0 %v16270_v17  ;;  %9030 = vmatpush1.bf16.msra.mxu1 %v16273_v23  ;;  %v16349_v17 = vld [vmem:[%s21897_s5 + $0x300] ss:$8 sps:$4 sm:$0xff]   ;;  %v16353_v23 = vld [vmem:[%s21897_s5 + $0x4f0] ss:$8 sps:$4 sm:$0xff]  }
 0x875   :  { %8885 = vmatprep.subr.bf16.mxu0 %v16278_v49  ;;  %9031 = vmatprep.subr.bf16.mxu1 %v16281_v44  ;;  %v9230_v49 = vrot.slane %v9228_v48, 3  ;;  %v16358_v44 = vld [vmem:[%s21897_s5 + $0x474] ss:$8 sps:$4 sm:$0xff]   ;;  %v16434_v48 = vld [vmem:[%s21897_s5 + $0x5a4] ss:$8 sps:$4 sm:$0xff]  }
 0x878   :  { %8886 = vmatpush1.bf16.msra.mxu0 %v16276_v45  ;;  %9032 = vmatpush1.bf16.msra.mxu1 %v16279_v54  ;;  %v16361_v45 = vld [vmem:[%s21897_s5 + $0x4e4] ss:$8 sps:$4 sm:$0xff]   ;;  %v16356_v54 = vld [vmem:[%s21897_s5 + $0x470] ss:$8 sps:$4 sm:$0xff]  }
 0x879   :  { %8887 = vmatprep.subr.bf16.mxu0 %v16284_v11  ;;  %9033 = vmatprep.subr.bf16.mxu1 %v16287_v9  ;;  %v16359_v11 = vld [vmem:[%s21897_s5 + $0x4e0] ss:$8 sps:$4 sm:$0xff]   ;;  %v9086_v9 = vrot.slane %v16352_v35, 3  ;;  %v16428_v35 = vld [vmem:[%s21897_s5 + $0x5b4] ss:$8 sps:$4 sm:$0xff]  }
 0x87c   :  { %8888 = vmatpush1.bf16.msra.mxu0 %v16282_v30  ;;  %9034 = vmatpush1.bf16.msra.mxu1 %v16285_v47  ;;  %v16364_v30 = vld [vmem:[%s21897_s5 + $0x464] ss:$8 sps:$4 sm:$0xff]   ;;  %v16367_v47 = vld [vmem:[%s21897_s5 + $0x4d4] ss:$8 sps:$4 sm:$0xff]  }
 0x87d   :  { %8889 = vmatprep.subr.bf16.mxu0 %v16290_v39  ;;  %9035 = vmatprep.subr.bf16.mxu1 %v16293_v37  ;;  %v16362_v39 = vld [vmem:[%s21897_s5 + $0x460] ss:$8 sps:$4 sm:$0xff]   ;;  %v16365_v37 = vld [vmem:[%s21897_s5 + $0x4d0] ss:$8 sps:$4 sm:$0xff]  }
 0x880   :  { %8890 = vmatpush1.bf16.msra.mxu0 %v16288_v20  ;;  %9036 = vmatpush1.bf16.msra.mxu1 %v16291_v22  ;;  %v16370_v20 = vld [vmem:[%s21897_s5 + $0x454] ss:$8 sps:$4 sm:$0xff]   ;;  %v16373_v22 = vld [vmem:[%s21897_s5 + $0x4c4] ss:$8 sps:$4 sm:$0xff]  }
 0x881   :  { %8891 = vmatprep.subr.bf16.mxu0 %v16296_v57  ;;  %9037 = vmatprep.subr.bf16.mxu1 %v16299_v3  ;;  %v16368_v57 = vld [vmem:[%s21897_s5 + $0x450] ss:$8 sps:$4 sm:$0xff]   ;;  %v16371_v3 = vld [vmem:[%s21897_s5 + $0x4c0] ss:$8 sps:$4 sm:$0xff]  }
 0x884   :  { %8892 = vmatpush1.bf16.msra.mxu0 %v16294_v18  ;;  %9038 = vmatpush1.bf16.msra.mxu1 %v16297_v46  ;;  %v16379_v18 = vld [vmem:[%s21897_s5 + $0x4b4] ss:$8 sps:$4 sm:$0xff]   ;;  %v16374_v46 = vld [vmem:[%s21897_s5 + $0x440] ss:$8 sps:$4 sm:$0xff]  }
 0x885   :  { %8893 = vmatprep.subr.bf16.mxu0 %v16302_v32  ;;  %9312 = vmatprep.subr.bf16.mxu1 %v16306_v6  ;;  %v16377_v32 = vld [vmem:[%s21897_s5 + $0x4b0] ss:$8 sps:$4 sm:$0xff]   ;;  %v16385_v6 = vld [vmem:[%s21897_s5 + $0x4a4] ss:$8 sps:$4 sm:$0xff]  }
 0x887   :  { %9056 = vmatmul.mubr.bf16.vlgmr.msra.gmra.mxu1 %v8941_v1  ;;  %v16388_v1 = vld [vmem:[%s21897_s5 + $0x424] ss:$8 sps:$4 sm:$0xff]  }
 0x888   :  { %8894 = vmatpush1.bf16.msra.mxu0 %v16300_v51  ;;  %9313 = vmatpush1.bf16.msra.mxu1 %v16304_v14  ;;  %v16380_v51 = vld [vmem:[%s21897_s5 + $0x430] ss:$8 sps:$4 sm:$0xff]   ;;  %v16383_v14 = vld [vmem:[%s21897_s5 + $0x4a0] ss:$8 sps:$4 sm:$0xff]  }
 0x889   :  { %9168 = vmatprep.subr.bf16.mxu0 %v16309_v59  ;;  %9314 = vmatprep.subr.bf16.mxu1 %v16312_v56  ;;  %v16391_v59 = vld [vmem:[%s21897_s5 + $0x494] ss:$8 sps:$4 sm:$0xff]   ;;  %v16386_v56 = vld [vmem:[%s21897_s5 + $0x420] ss:$8 sps:$4 sm:$0xff]  }
 0x88a   :  { %9344 = vmatprep.mubr.bf16.mxu1 %v17011_v62 }
 0x88b   :  { %8912 = vmatmul.mubr.bf16.vlgmr.msra.gmra.mxu0 %v8797_v26  ;;  %v16397_v26 = vld [vmem:[%s21897_s5 + $0x484] ss:$8 sps:$4 sm:$0xff]  }
 0x88c   :  { %9169 = vmatpush1.bf16.msra.mxu0 %v16307_v21  ;;  %9315 = vmatpush1.bf16.msra.mxu1 %v16310_v50  ;;  %v16389_v21 = vld [vmem:[%s21897_s5 + $0x490] ss:$8 sps:$4 sm:$0xff]   ;;  %v16394_v50 = vld [vmem:[%s21897_s5 + $0x414] ss:$8 sps:$4 sm:$0xff]  }
 0x88d   :  { %9170 = vmatprep.subr.bf16.mxu0 %v16315_v52  ;;  %9316 = vmatprep.subr.bf16.mxu1 %v16318_v5  ;;  %v9355_v52 = vld [vmem:[#allocation3 + $0x14] sm:$0x1]  ;;  %v16392_v5 = vld [vmem:[%s21897_s5 + $0x410] ss:$8 sps:$4 sm:$0xff]  }
 0x88e   :  { %9200 = vmatprep.mubr.bf16.mxu0 %v17011_v62 }
 0x890   :  { %9171 = vmatpush1.bf16.msra.mxu0 %v16313_v58  ;;  %9317 = vmatpush1.bf16.msra.mxu1 %v16316_v24  ;;  %v16395_v58 = vld [vmem:[%s21897_s5 + $0x480] ss:$8 sps:$4 sm:$0xff]   ;;  %v16400_v24 = vld [vmem:[%s21897_s5 + $0x404] ss:$8 sps:$4 sm:$0xff]  }
 0x891   :  { %9172 = vmatprep.subr.bf16.mxu0 %v16321_v42  ;;  %9318 = vmatprep.subr.bf16.mxu1 %v16324_v60  ;;  %v14175_v42 = vcombine.low %v9355_v52, %v9355_v52  ;;  %v16404_v60 = vld [vmem:[%s21897_s5 + $0x5f4] ss:$8 sps:$4 sm:$0xff]  }
 0x894   :  { %9173 = vmatpush1.bf16.msra.mxu0 %v16319_v13  ;;  %9319 = vmatpush1.bf16.msra.mxu1 %v16322_v63  ;;  %v16398_v13 = vld [vmem:[%s21897_s5 + $0x400] ss:$8 sps:$4 sm:$0xff]   ;;  %v16402_v63 = vld [vmem:[%s21897_s5 + $0x5f0] ss:$8 sps:$4 sm:$0xff]  }
 0x895   :  { %9174 = vmatprep.subr.bf16.mxu0 %v16327_v0  ;;  %9320 = vmatprep.subr.bf16.mxu1 %v16330_v15  ;;  %v9515_v0 = vshrl.u32 %v14175_v42, 16  ;;  %v16407_v15 = vld [vmem:[%s21897_s5 + $0x574] ss:$8 sps:$4 sm:$0xff]   ;;  %v16483_v42 = vld [vmem:[%s21897_s5 + $0x6a4] ss:$8 sps:$4 sm:$0xff]  }
 0x898   :  { %9175 = vmatpush1.bf16.msra.mxu0 %v16325_v38  ;;  %9321 = vmatpush1.bf16.msra.mxu1 %v16328_v10  ;;  %v16410_v38 = vld [vmem:[%s21897_s5 + $0x5e4] ss:$8 sps:$4 sm:$0xff]   ;;  %v16405_v10 = vld [vmem:[%s21897_s5 + $0x570] ss:$8 sps:$4 sm:$0xff]  }
 0x899   :  { %9176 = vmatprep.subr.bf16.mxu0 %v16333_v8  ;;  %9322 = vmatprep.subr.bf16.mxu1 %v16336_v7  ;;  %v16408_v8 = vld [vmem:[%s21897_s5 + $0x5e0] ss:$8 sps:$4 sm:$0xff]   ;;  %v16413_v7 = vld [vmem:[%s21897_s5 + $0x564] ss:$8 sps:$4 sm:$0xff]  }
 0x89c   :  { %9177 = vmatpush1.bf16.msra.mxu0 %v16331_v25  ;;  %9323 = vmatpush1.bf16.msra.mxu1 %v16334_v4  ;;  %v16416_v25 = vld [vmem:[%s21897_s5 + $0x5d4] ss:$8 sps:$4 sm:$0xff]   ;;  %v16411_v4 = vld [vmem:[%s21897_s5 + $0x560] ss:$8 sps:$4 sm:$0xff]  }
 0x89d   :  { %9178 = vmatprep.subr.bf16.mxu0 %v16339_v19  ;;  %9324 = vmatprep.subr.bf16.mxu1 %v16342_v29  ;;  %v16414_v19 = vld [vmem:[%s21897_s5 + $0x5d0] ss:$8 sps:$4 sm:$0xff]   ;;  %v16419_v29 = vld [vmem:[%s21897_s5 + $0x554] ss:$8 sps:$4 sm:$0xff]  }
 0x8a0   :  { %9179 = vmatpush1.bf16.msra.mxu0 %v16337_v28  ;;  %9325 = vmatpush1.bf16.msra.mxu1 %v16340_v33  ;;  %v16422_v28 = vld [vmem:[%s21897_s5 + $0x5c4] ss:$8 sps:$4 sm:$0xff]   ;;  %v16417_v33 = vld [vmem:[%s21897_s5 + $0x550] ss:$8 sps:$4 sm:$0xff]  }
 0x8a1   :  { %9180 = vmatprep.subr.bf16.mxu0 %v16345_v43  ;;  %9326 = vmatprep.subr.bf16.mxu1 %v16348_v40  ;;  %v16420_v43 = vld [vmem:[%s21897_s5 + $0x5c0] ss:$8 sps:$4 sm:$0xff]   ;;  %v16425_v40 = vld [vmem:[%s21897_s5 + $0x544] ss:$8 sps:$4 sm:$0xff]  }
 0x8a4   :  { %9181 = vmatpush1.bf16.msra.mxu0 %v16343_v55  ;;  %9327 = vmatpush1.bf16.msra.mxu1 %v16346_v2  ;;  %v16423_v55 = vld [vmem:[%s21897_s5 + $0x540] ss:$8 sps:$4 sm:$0xff]   ;;  %v16426_v2 = vld [vmem:[%s21897_s5 + $0x5b0] ss:$8 sps:$4 sm:$0xff]  }
 0x8a5   :  { %9182 = vmatprep.subr.bf16.mxu0 %v16351_v31  ;;  %9598 = vmatprep.subr.bf16.mxu1 %v16355_v27  ;;  %v16431_v31 = vld [vmem:[%s21897_s5 + $0x534] ss:$8 sps:$4 sm:$0xff]   ;;  %v16429_v27 = vld [vmem:[%s21897_s5 + $0x530] ss:$8 sps:$4 sm:$0xff]  }
 0x8a7   :  { %9345 = vmatmul.mubr.bf16.vlgmr.msra.gmra.mxu1 %v9230_v49  ;;  %v16440_v49 = vld [vmem:[%s21897_s5 + $0x594] ss:$8 sps:$4 sm:$0xff]  }
 0x8a8   :  { %9183 = vmatpush1.bf16.msra.mxu0 %v16349_v17  ;;  %9599 = vmatpush1.bf16.msra.mxu1 %v16353_v23  ;;  %v16432_v17 = vld [vmem:[%s21897_s5 + $0x5a0] ss:$8 sps:$4 sm:$0xff]   ;;  %v16437_v23 = vld [vmem:[%s21897_s5 + $0x524] ss:$8 sps:$4 sm:$0xff]  }
 0x8a9   :  { %9452 = vmatprep.subr.bf16.mxu0 %v16358_v44  ;;  %9600 = vmatprep.subr.bf16.mxu1 %v16361_v45  ;;  %v16450_v44 = vld [vmem:[#allocation3 + $0x14] ss:$0 sps:$4 sm:$0x22]   ;;  %v16435_v45 = vld [vmem:[%s21897_s5 + $0x520] ss:$8 sps:$4 sm:$0xff]  }
 0x8aa   :  { %9630 = vmatprep.mubr.bf16.mxu1 %v17011_v62 }
 0x8ab   :  { %9201 = vmatmul.mubr.bf16.vlgmr.msra.gmra.mxu0 %v9086_v9  ;;  %v16446_v9 = vld [vmem:[%s21897_s5 + $0x584] ss:$8 sps:$4 sm:$0xff]  }
 0x8ac   :  { %9453 = vmatpush1.bf16.msra.mxu0 %v16356_v54  ;;  %9601 = vmatpush1.bf16.msra.mxu1 %v16359_v11  ;;  %v16438_v54 = vld [vmem:[%s21897_s5 + $0x590] ss:$8 sps:$4 sm:$0xff]   ;;  %v16443_v11 = vld [vmem:[%s21897_s5 + $0x514] ss:$8 sps:$4 sm:$0xff]  }
 0x8ad   :  { %9454 = vmatprep.subr.bf16.mxu0 %v16364_v30  ;;  %9602 = vmatprep.subr.bf16.mxu1 %v16367_v47  ;;  %v16441_v30 = vld [vmem:[%s21897_s5 + $0x510] ss:$8 sps:$4 sm:$0xff]   ;;  %v16444_v47 = vld [vmem:[%s21897_s5 + $0x580] ss:$8 sps:$4 sm:$0xff]  }
 0x8ae   :  { %9484 = vmatprep.mubr.bf16.mxu0 %v17011_v62 }
 0x8b0   :  { %9455 = vmatpush1.bf16.msra.mxu0 %v16362_v39  ;;  %9603 = vmatpush1.bf16.msra.mxu1 %v16365_v37  ;;  %v16449_v39 = vld [vmem:[%s21897_s5 + $0x504] ss:$8 sps:$4 sm:$0xff]   ;;  %v9803_v37 = vshrl.u32 %v16450_v44, 16 }
 0x8b1   :  { %9456 = vmatprep.subr.bf16.mxu0 %v16370_v20  ;;  %9604 = vmatprep.subr.bf16.mxu1 %v16373_v22  ;;  %v16453_v20 = vld [vmem:[%s21897_s5 + $0x6f4] ss:$8 sps:$4 sm:$0xff]   ;;  %v16447_v22 = vld [vmem:[%s21897_s5 + $0x500] ss:$8 sps:$4 sm:$0xff]  }
 0x8b4   :  { %9457 = vmatpush1.bf16.msra.mxu0 %v16368_v57  ;;  %9605 = vmatpush1.bf16.msra.mxu1 %v16371_v3  ;;  %v16451_v57 = vld [vmem:[%s21897_s5 + $0x6f0] ss:$8 sps:$4 sm:$0xff]   ;;  %v9805_v3 = vrot.slane %v9803_v37, 1  ;;  %v16520_v37 = vld [vmem:[%s21897_s5 + $0x7c4] ss:$8 sps:$4 sm:$0xff]  }
 0x8b5   :  { %9458 = vmatprep.subr.bf16.mxu0 %v16376_v41  ;;  %9606 = vmatprep.subr.bf16.mxu1 %v16379_v18  ;;  %v16456_v41 = vld [vmem:[%s21897_s5 + $0x674] ss:$8 sps:$4 sm:$0xff]   ;;  %v16459_v18 = vld [vmem:[%s21897_s5 + $0x6e4] ss:$8 sps:$4 sm:$0xff]  }
 0x8b8   :  { %9459 = vmatpush1.bf16.msra.mxu0 %v16374_v46  ;;  %9607 = vmatpush1.bf16.msra.mxu1 %v16377_v32  ;;  %v16454_v46 = vld [vmem:[%s21897_s5 + $0x670] ss:$8 sps:$4 sm:$0xff]   ;;  %v16457_v32 = vld [vmem:[%s21897_s5 + $0x6e0] ss:$8 sps:$4 sm:$0xff]  }
 0x8b9   :  { %9460 = vmatprep.subr.bf16.mxu0 %v16382_v36  ;;  %9608 = vmatprep.subr.bf16.mxu1 %v16385_v6  ;;  %v9661_v36 = vrot.slane %v16450_v44, 1  ;;  %v16462_v6 = vld [vmem:[%s21897_s5 + $0x664] ss:$8 sps:$4 sm:$0xff]  }
 0x8bc   :  { %9461 = vmatpush1.bf16.msra.mxu0 %v16380_v51  ;;  %9609 = vmatpush1.bf16.msra.mxu1 %v16383_v14  ;;  %v16465_v51 = vld [vmem:[%s21897_s5 + $0x6d4] ss:$8 sps:$4 sm:$0xff]   ;;  %v16460_v14 = vld [vmem:[%s21897_s5 + $0x660] ss:$8 sps:$4 sm:$0xff]  }
 0x8bd   :  { %9462 = vmatprep.subr.bf16.mxu0 %v16388_v1  ;;  %9610 = vmatprep.subr.bf16.mxu1 %v16391_v59  ;;  %v16463_v1 = vld [vmem:[%s21897_s5 + $0x6d0] ss:$8 sps:$4 sm:$0xff]   ;;  %v16468_v59 = vld [vmem:[%s21897_s5 + $0x654] ss:$8 sps:$4 sm:$0xff]  }
 0x8c0   :  { %9463 = vmatpush1.bf16.msra.mxu0 %v16386_v56  ;;  %9611 = vmatpush1.bf16.msra.mxu1 %v16389_v21  ;;  %v16471_v56 = vld [vmem:[%s21897_s5 + $0x6c4] ss:$8 sps:$4 sm:$0xff]   ;;  %v16466_v21 = vld [vmem:[%s21897_s5 + $0x650] ss:$8 sps:$4 sm:$0xff]  }
 0x8c1   :  { %9464 = vmatprep.subr.bf16.mxu0 %v16394_v50  ;;  %9612 = vmatprep.subr.bf16.mxu1 %v16397_v26  ;;  %v16469_v50 = vld [vmem:[%s21897_s5 + $0x6c0] ss:$8 sps:$4 sm:$0xff]   ;;  %v16474_v26 = vld [vmem:[%s21897_s5 + $0x644] ss:$8 sps:$4 sm:$0xff]  }
 0x8c4   :  { %9465 = vmatpush1.bf16.msra.mxu0 %v16392_v5  ;;  %9613 = vmatpush1.bf16.msra.mxu1 %v16395_v58  ;;  %v16472_v5 = vld [vmem:[%s21897_s5 + $0x640] ss:$8 sps:$4 sm:$0xff]   ;;  %v16475_v58 = vld [vmem:[%s21897_s5 + $0x6b0] ss:$8 sps:$4 sm:$0xff]  }
 0x8c5   :  { %9466 = vmatprep.subr.bf16.mxu0 %v16400_v24  ;;  %9887 = vmatprep.subr.bf16.mxu1 %v16404_v60  ;;  %v16480_v24 = vld [vmem:[%s21897_s5 + $0x634] ss:$8 sps:$4 sm:$0xff]   ;;  %v16478_v60 = vld [vmem:[%s21897_s5 + $0x630] ss:$8 sps:$4 sm:$0xff]  }
 0x8c7   :  { %9631 = vmatmul.mubr.bf16.vlgmr.msra.gmra.mxu1 %v9515_v0  ;;  %v16489_v0 = vld [vmem:[%s21897_s5 + $0x694] ss:$8 sps:$4 sm:$0xff]  }
 0x8c8   :  { %9467 = vmatpush1.bf16.msra.mxu0 %v16398_v13  ;;  %9888 = vmatpush1.bf16.msra.mxu1 %v16402_v63  ;;  %v16481_v13 = vld [vmem:[%s21897_s5 + $0x6a0] ss:$8 sps:$4 sm:$0xff]   ;;  %v16486_v63 = vld [vmem:[%s21897_s5 + $0x624] ss:$8 sps:$4 sm:$0xff]  }
 0x8c9   :  { %9743 = vmatprep.subr.bf16.mxu0 %v16407_v15  ;;  %9889 = vmatprep.subr.bf16.mxu1 %v16410_v38  ;;  %v16499_v15 = vld [vmem:[#allocation3 + $0x14] ss:$0 sps:$4 sm:$0x44]   ;;  %v16484_v38 = vld [vmem:[%s21897_s5 + $0x620] ss:$8 sps:$4 sm:$0xff]  }
 0x8ca   :  { %9919 = vmatprep.mubr.bf16.mxu1 %v17011_v62 }
 0x8cb   :  { %9485 = vmatmul.mubr.bf16.vlgmr.msra.gmra.mxu0 %v9355_v52  ;;  %v16477_v52 = vld [vmem:[%s21897_s5 + $0x6b4] ss:$8 sps:$4 sm:$0xff]  }
 0x8cc   :  { %9744 = vmatpush1.bf16.msra.mxu0 %v16405_v10  ;;  %9890 = vmatpush1.bf16.msra.mxu1 %v16408_v8  ;;  %v16487_v10 = vld [vmem:[%s21897_s5 + $0x690] ss:$8 sps:$4 sm:$0xff]   ;;  %v16492_v8 = vld [vmem:[%s21897_s5 + $0x614] ss:$8 sps:$4 sm:$0xff]  }
 0x8cd   :  { %9745 = vmatprep.subr.bf16.mxu0 %v16413_v7  ;;  %9891 = vmatprep.subr.bf16.mxu1 %v16416_v25  ;;  %v16495_v7 = vld [vmem:[%s21897_s5 + $0x684] ss:$8 sps:$4 sm:$0xff]   ;;  %v16490_v25 = vld [vmem:[%s21897_s5 + $0x610] ss:$8 sps:$4 sm:$0xff]  }
 0x8ce   :  { %9775 = vmatprep.mubr.bf16.mxu0 %v17011_v62 }
 0x8d0   :  { %9746 = vmatpush1.bf16.msra.mxu0 %v16411_v4  ;;  %9892 = vmatpush1.bf16.msra.mxu1 %v16414_v19  ;;  %v16493_v4 = vld [vmem:[%s21897_s5 + $0x680] ss:$8 sps:$4 sm:$0xff]   ;;  %v16498_v19 = vld [vmem:[%s21897_s5 + $0x604] ss:$8 sps:$4 sm:$0xff]  }
 0x8d1   :  { %9747 = vmatprep.subr.bf16.mxu0 %v16419_v29  ;;  %9893 = vmatprep.subr.bf16.mxu1 %v16422_v28  ;;  %v10092_v29 = vshrl.u32 %v16499_v15, 16  ;;  %v16502_v28 = vld [vmem:[%s21897_s5 + $0x7f4] ss:$8 sps:$4 sm:$0xff]  }
 0x8d4   :  { %9748 = vmatpush1.bf16.msra.mxu0 %v16417_v33  ;;  %9894 = vmatpush1.bf16.msra.mxu1 %v16420_v43  ;;  %v16496_v33 = vld [vmem:[%s21897_s5 + $0x600] ss:$8 sps:$4 sm:$0xff]   ;;  %v16500_v43 = vld [vmem:[%s21897_s5 + $0x7f0] ss:$8 sps:$4 sm:$0xff]  }
 0x8d5   :  { %9749 = vmatprep.subr.bf16.mxu0 %v16425_v40  ;;  %9895 = vmatprep.subr.bf16.mxu1 %v16428_v35  ;;  %v10094_v40 = vrot.slane %v10092_v29, 2  ;;  %v16505_v35 = vld [vmem:[%s21897_s5 + $0x774] ss:$8 sps:$4 sm:$0xff]   ;;  %v16560_v29 = vld [vmem:[%s21897_s5 + $0x864] ss:$8 sps:$4 sm:$0xff]  }
 0x8d8   :  { %9750 = vmatpush1.bf16.msra.mxu0 %v16423_v55  ;;  %9896 = vmatpush1.bf16.msra.mxu1 %v16426_v2  ;;  %v16508_v55 = vld [vmem:[%s21897_s5 + $0x7e4] ss:$8 sps:$4 sm:$0xff]  }
 0x8d9   :  { %9751 = vmatprep.subr.bf16.mxu0 %v16431_v31  ;;  %9897 = vmatprep.subr.bf16.mxu1 %v16434_v48  ;;  %v16503_v31 = vld [vmem:[%s21897_s5 + $0x770] ss:$8 sps:$4 sm:$0xff]   ;;  %v16506_v48 = vld [vmem:[%s21897_s5 + $0x7e0] ss:$8 sps:$4 sm:$0xff]  }
 0x8dc   :  { %9752 = vmatpush1.bf16.msra.mxu0 %v16429_v27  ;;  %9898 = vmatpush1.bf16.msra.mxu1 %v16432_v17  ;;  %v9950_v17 = vrot.slane %v16499_v15, 2 }
 0x8dd   :  { %9753 = vmatprep.subr.bf16.mxu0 %v16437_v23  ;;  %9899 = vmatprep.subr.bf16.mxu1 %v16440_v49  ;;  %v16511_v23 = vld [vmem:[%s21897_s5 + $0x764] ss:$8 sps:$4 sm:$0xff]   ;;  %v16514_v49 = vld [vmem:[%s21897_s5 + $0x7d4] ss:$8 sps:$4 sm:$0xff]  }
 0x8e0   :  { %9754 = vmatpush1.bf16.msra.mxu0 %v16435_v45  ;;  %9900 = vmatpush1.bf16.msra.mxu1 %v16438_v54 }
 0x8e1   :  { %9755 = vmatprep.subr.bf16.mxu0 %v16443_v11  ;;  %9901 = vmatprep.subr.bf16.mxu1 %v16446_v9  ;;  %v16509_v11 = vld [vmem:[%s21897_s5 + $0x760] ss:$8 sps:$4 sm:$0xff]   ;;  %v16512_v9 = vld [vmem:[%s21897_s5 + $0x7d0] ss:$8 sps:$4 sm:$0xff]  }
 0x8e4   :  { %9756 = vmatpush1.bf16.msra.mxu0 %v16441_v30  ;;  %9902 = vmatpush1.bf16.msra.mxu1 %v16444_v47 }
 0x8e5   :  { %9757 = vmatprep.subr.bf16.mxu0 %v16449_v39  ;;  %10176 = vmatprep.subr.bf16.mxu1 %v16453_v20  ;;  %v16517_v39 = vld [vmem:[%s21897_s5 + $0x754] ss:$8 sps:$4 sm:$0xff]  }
 0x8e7   :  { %9920 = vmatmul.mubr.bf16.vlgmr.msra.gmra.mxu1 %v9805_v3  ;;  %v16518_v3 = vld [vmem:[%s21897_s5 + $0x7c0] ss:$8 sps:$4 sm:$0xff]  }
 0x8e8   :  { %9758 = vmatpush1.bf16.msra.mxu0 %v16447_v22  ;;  %10177 = vmatpush1.bf16.msra.mxu1 %v16451_v57  ;;  %v16515_v57 = vld [vmem:[%s21897_s5 + $0x750] ss:$8 sps:$4 sm:$0xff]  }
 0x8e9   :  { %10032 = vmatprep.subr.bf16.mxu0 %v16456_v41  ;;  %10178 = vmatprep.subr.bf16.mxu1 %v16459_v18  ;;  %v16523_v18 = vld [vmem:[%s21897_s5 + $0x744] ss:$8 sps:$4 sm:$0xff]  }
 0x8ea   :  { %10208 = vmatprep.mubr.bf16.mxu1 %v17011_v62 }
 0x8eb   :  { %9776 = vmatmul.mubr.bf16.vlgmr.msra.gmra.mxu0 %v9661_v36  ;;  %v16524_v36 = vld [vmem:[%s21897_s5 + $0x7b0] ss:$8 sps:$4 sm:$0xff]  }
 0x8ec   :  { %10033 = vmatpush1.bf16.msra.mxu0 %v16454_v46  ;;  %10179 = vmatpush1.bf16.msra.mxu1 %v16457_v32  ;;  %v16526_v46 = vld [vmem:[%s21897_s5 + $0x7b4] ss:$8 sps:$4 sm:$0xff]   ;;  %v16521_v32 = vld [vmem:[%s21897_s5 + $0x740] ss:$8 sps:$4 sm:$0xff]  }
 0x8ed   :  { %10034 = vmatprep.subr.bf16.mxu0 %v16462_v6  ;;  %10180 = vmatprep.subr.bf16.mxu1 %v16465_v51  ;;  %v16529_v6 = vld [vmem:[%s21897_s5 + $0x734] ss:$8 sps:$4 sm:$0xff]   ;;  %v16532_v51 = vld [vmem:[%s21897_s5 + $0x7a4] ss:$8 sps:$4 sm:$0xff]  }
 0x8ee   :  { %10064 = vmatprep.mubr.bf16.mxu0 %v17011_v62 }
 0x8f0   :  { %10035 = vmatpush1.bf16.msra.mxu0 %v16460_v14  ;;  %10181 = vmatpush1.bf16.msra.mxu1 %v16463_v1  ;;  %v16527_v14 = vld [vmem:[%s21897_s5 + $0x730] ss:$8 sps:$4 sm:$0xff]   ;;  %v16530_v1 = vld [vmem:[%s21897_s5 + $0x7a0] ss:$8 sps:$4 sm:$0xff]  }
 0x8f1   :  { %10036 = vmatprep.subr.bf16.mxu0 %v16468_v59  ;;  %10182 = vmatprep.subr.bf16.mxu1 %v16471_v56  ;;  %v16535_v59 = vld [vmem:[%s21897_s5 + $0x724] ss:$8 sps:$4 sm:$0xff]   ;;  %v16538_v56 = vld [vmem:[%s21897_s5 + $0x794] ss:$8 sps:$4 sm:$0xff]  }
 0x8f4   :  { %10037 = vmatpush1.bf16.msra.mxu0 %v16466_v21  ;;  %10183 = vmatpush1.bf16.msra.mxu1 %v16469_v50  ;;  %v16548_v21 = vld [vmem:[#allocation3 + $0x14] ss:$0 sps:$4 sm:$0x88]   ;;  %v16533_v50 = vld [vmem:[%s21897_s5 + $0x720] ss:$8 sps:$4 sm:$0xff]  }
 0x8f5   :  { %10038 = vmatprep.subr.bf16.mxu0 %v16474_v26  ;;  %10184 = vmatprep.subr.bf16.mxu1 %v16477_v52  ;;  %v16536_v26 = vld [vmem:[%s21897_s5 + $0x790] ss:$8 sps:$4 sm:$0xff]   ;;  %v16541_v52 = vld [vmem:[%s21897_s5 + $0x714] ss:$8 sps:$4 sm:$0xff]  }
 0x8f8   :  { %10039 = vmatpush1.bf16.msra.mxu0 %v16472_v5  ;;  %10185 = vmatpush1.bf16.msra.mxu1 %v16475_v58  ;;  %v16544_v5 = vld [vmem:[%s21897_s5 + $0x784] ss:$8 sps:$4 sm:$0xff]   ;;  %v16539_v58 = vld [vmem:[%s21897_s5 + $0x710] ss:$8 sps:$4 sm:$0xff]  }
 0x8f9   :  { %10040 = vmatprep.subr.bf16.mxu0 %v16480_v24  ;;  %10186 = vmatprep.subr.bf16.mxu1 %v16483_v42  ;;  %v16542_v24 = vld [vmem:[%s21897_s5 + $0x780] ss:$8 sps:$4 sm:$0xff]   ;;  %v16547_v42 = vld [vmem:[%s21897_s5 + $0x704] ss:$8 sps:$4 sm:$0xff]  }
 0x8fc   :  { %10041 = vmatpush1.bf16.msra.mxu0 %v16478_v60  ;;  %10187 = vmatpush1.bf16.msra.mxu1 %v16481_v13  ;;  %v10381_v60 = vshrl.u32 %v16548_v21, 16  ;;  %v16551_v13 = vld [vmem:[%s21897_s5 + $0x8f4] ss:$8 sps:$4 sm:$0xff]  }
 0x8fd   :  { %10042 = vmatprep.subr.bf16.mxu0 %v16486_v63  ;;  %10188 = vmatprep.subr.bf16.mxu1 %v16489_v0  ;;  %v16545_v63 = vld [vmem:[%s21897_s5 + $0x700] ss:$8 sps:$4 sm:$0xff]   ;;  %v16549_v0 = vld [vmem:[%s21897_s5 + $0x8f0] ss:$8 sps:$4 sm:$0xff]  }
 0x8fe   :  { %v10383_v15 = vrot.slane %v10381_v60, 3 }
 0x900   :  { %10043 = vmatpush1.bf16.msra.mxu0 %v16484_v38  ;;  %10189 = vmatpush1.bf16.msra.mxu1 %v16487_v10  ;;  %v16554_v38 = vld [vmem:[%s21897_s5 + $0x874] ss:$8 sps:$4 sm:$0xff]   ;;  %v16557_v10 = vld [vmem:[%s21897_s5 + $0x8e4] ss:$8 sps:$4 sm:$0xff]  }
 0x901   :  { %10044 = vmatprep.subr.bf16.mxu0 %v16492_v8  ;;  %10190 = vmatprep.subr.bf16.mxu1 %v16495_v7  ;;  %v16552_v7 = vld [vmem:[%s21897_s5 + $0x870] ss:$8 sps:$4 sm:$0xff]  }
 0x904   :  { %10045 = vmatpush1.bf16.msra.mxu0 %v16490_v25  ;;  %10191 = vmatpush1.bf16.msra.mxu1 %v16493_v4  ;;  %v16555_v25 = vld [vmem:[%s21897_s5 + $0x8e0] ss:$8 sps:$4 sm:$0xff]  }
 0x905   :  { %10046 = vmatprep.subr.bf16.mxu0 %v16498_v19  ;;  %10465 = vmatprep.subr.bf16.mxu1 %v16502_v28  ;;  %v10239_v19 = vrot.slane %v16548_v21, 3  ;;  %v16563_v28 = vld [vmem:[%s21897_s5 + $0x8d4] ss:$8 sps:$4 sm:$0xff]   ;;  %v16594_v21 = vld [vmem:[%s21897_s5 + $0x800] ss:$8 sps:$4 sm:$0xff]  }
 0x907   :  { %10209 = vmatmul.mubr.bf16.vlgmr.msra.gmra.mxu1 %v10094_v40  ;;  %v8481_v2 = vpop.f32.mrf.mxu1 }
 0x908   :  { %10047 = vmatpush1.bf16.msra.mxu0 %v16496_v33  ;;  %10466 = vmatpush1.bf16.msra.mxu1 %v16500_v43 }
 0x909   :  { %v8483_v27 = vpop.f32.mrf.mxu1  ;;  %10321 = vmatprep.subr.bf16.mxu0 %v16505_v35  ;;  %10467 = vmatprep.subr.bf16.mxu1 %v16508_v55  ;;  %v16558_v35 = vld [vmem:[%s21897_s5 + $0x860] ss:$8 sps:$4 sm:$0xff]   ;;  %v16561_v55 = vld [vmem:[%s21897_s5 + $0x8d0] ss:$8 sps:$4 sm:$0xff]  }
 0x90a   :  { %10497 = vmatprep.mubr.bf16.mxu1 %v17011_v62 }
 0x90b   :  { %10065 = vmatmul.mubr.bf16.vlgmr.msra.gmra.mxu0 %v9950_v17  ;;  %v8360_v44 = vpop.f32.mrf.mxu0  ;;  %v8485_v45 = vpop.f32.mrf.mxu1 }
 0x90c   :  { %v20917_v54 = vadd.f32 %v8481_v2, %v8360_v44  ;;  %10322 = vmatpush1.bf16.msra.mxu0 %v16503_v31  ;;  %10468 = vmatpush1.bf16.msra.mxu1 %v16506_v48  ;;  %v16566_v48 = vld [vmem:[%s21897_s5 + $0x854] ss:$8 sps:$4 sm:$0xff]   ;;  %v16564_v44 = vld [vmem:[%s21897_s5 + $0x850] ss:$8 sps:$4 sm:$0xff]   ;;  %v16567_v45 = vld [vmem:[%s21897_s5 + $0x8c0] ss:$8 sps:$4 sm:$0xff]  }
 0x90d   :  { %v8362_v30 = vpop.f32.mrf.mxu0  ;;  %v8486_v47 = vpop.f32.mrf.mxu1  ;;  %10323 = vmatprep.subr.bf16.mxu0 %v16511_v23  ;;  %10469 = vmatprep.subr.bf16.mxu1 %v16514_v49 }
 0x90e   :  { %v20931_v20 = vadd.f32 %v8483_v27, %v8362_v30  ;;  %10353 = vmatprep.mubr.bf16.mxu0 %v17011_v62  ;;  %v16569_v27 = vld [vmem:[%s21897_s5 + $0x8c4] ss:$8 sps:$4 sm:$0xff]   ;;  %v16575_v30 = vld [vmem:[%s21897_s5 + $0x8b4] ss:$8 sps:$4 sm:$0xff]   ;;  %v16570_v47 = vld [vmem:[%s21897_s5 + $0x840] ss:$8 sps:$4 sm:$0xff]  }
 0x90f   :  { %v8364_v22 = vpop.f32.mrf.mxu0 }
 0x910   :  { %10324 = vmatpush1.bf16.msra.mxu0 %v16509_v11  ;;  %10470 = vmatpush1.bf16.msra.mxu1 %v16512_v9  ;;  %v16572_v9 = vld [vmem:[%s21897_s5 + $0x844] ss:$8 sps:$4 sm:$0xff]   ;;  %v16576_v22 = vld [vmem:[%s21897_s5 + $0x830] ss:$8 sps:$4 sm:$0xff]  }
 0x911   :  { %v8365_v41 = vpop.f32.mrf.mxu0  ;;  %10325 = vmatprep.subr.bf16.mxu0 %v16517_v39  ;;  %10471 = vmatprep.subr.bf16.mxu1 %v16520_v37  ;;  %v16573_v39 = vld [vmem:[%s21897_s5 + $0x8b0] ss:$8 sps:$4 sm:$0xff]   ;;  %v16578_v37 = vld [vmem:[%s21897_s5 + $0x834] ss:$8 sps:$4 sm:$0xff]  }
 0x912   :  { %v16587_v41 = vld [vmem:[%s21897_s5 + $0x894] ss:$8 sps:$4 sm:$0xff]  }
 0x914   :  { %10326 = vmatpush1.bf16.msra.mxu0 %v16515_v57  ;;  %10472 = vmatpush1.bf16.msra.mxu1 %v16518_v3  ;;  %v16579_v57 = vld [vmem:[%s21897_s5 + $0x8a0] ss:$8 sps:$4 sm:$0xff]   ;;  %v16584_v3 = vld [vmem:[%s21897_s5 + $0x824] ss:$8 sps:$4 sm:$0xff]  }
 0x915   :  { %10327 = vmatprep.subr.bf16.mxu0 %v16523_v18  ;;  %10473 = vmatprep.subr.bf16.mxu1 %v16526_v46  ;;  %v16582_v18 = vld [vmem:[%s21897_s5 + $0x820] ss:$8 sps:$4 sm:$0xff]   ;;  %v16585_v46 = vld [vmem:[%s21897_s5 + $0x890] ss:$8 sps:$4 sm:$0xff]  }
 0x918   :  { %10328 = vmatpush1.bf16.msra.mxu0 %v16521_v32  ;;  %10474 = vmatpush1.bf16.msra.mxu1 %v16524_v36  ;;  %v16590_v32 = vld [vmem:[%s21897_s5 + $0x814] ss:$8 sps:$4 sm:$0xff]   ;;  %v16593_v36 = vld [vmem:[%s21897_s5 + $0x884] ss:$8 sps:$4 sm:$0xff]  }
 0x919   :  { %10329 = vmatprep.subr.bf16.mxu0 %v16529_v6  ;;  %10475 = vmatprep.subr.bf16.mxu1 %v16532_v51  ;;  %v10508_v6 = vld [vmem:[#allocation3 + $0x18] sm:$0x1] }
 0x91a   :  { %v16588_v51 = vld [vmem:[%s21897_s5 + $0x810] ss:$8 sps:$4 sm:$0xff]  }
 0x91c   :  { %10330 = vmatpush1.bf16.msra.mxu0 %v16527_v14  ;;  %10476 = vmatpush1.bf16.msra.mxu1 %v16530_v1  ;;  %v16591_v14 = vld [vmem:[%s21897_s5 + $0x880] ss:$8 sps:$4 sm:$0xff]   ;;  %v16596_v1 = vld [vmem:[%s21897_s5 + $0x804] ss:$8 sps:$4 sm:$0xff]  }
 0x91d   :  { %10331 = vmatprep.subr.bf16.mxu0 %v16535_v59  ;;  %10477 = vmatprep.subr.bf16.mxu1 %v16538_v56  ;;  %v14307_v59 = vcombine.low %v10508_v6, %v10508_v6  ;;  %v16600_v56 = vld [vmem:[%s21897_s5 + $0x9f4] ss:$8 sps:$4 sm:$0xff]  }
 0x920   :  { %10332 = vmatpush1.bf16.msra.mxu0 %v16533_v50  ;;  %10478 = vmatpush1.bf16.msra.mxu1 %v16536_v26  ;;  %v16598_v50 = vld [vmem:[%s21897_s5 + $0x9f0] ss:$8 sps:$4 sm:$0xff]   ;;  %v10668_v26 = vshrl.u32 %v14307_v59, 16 }
 0x921   :  { %10333 = vmatprep.subr.bf16.mxu0 %v16541_v52  ;;  %10479 = vmatprep.subr.bf16.mxu1 %v16544_v5  ;;  %v16603_v52 = vld [vmem:[%s21897_s5 + $0x974] ss:$8 sps:$4 sm:$0xff]   ;;  %v16606_v5 = vld [vmem:[%s21897_s5 + $0x9e4] ss:$8 sps:$4 sm:$0xff]  }
 0x924   :  { %10334 = vmatpush1.bf16.msra.mxu0 %v16539_v58  ;;  %10480 = vmatpush1.bf16.msra.mxu1 %v16542_v24  ;;  %v16601_v24 = vld [vmem:[%s21897_s5 + $0x970] ss:$8 sps:$4 sm:$0xff]  }
 0x925   :  { %10335 = vmatprep.subr.bf16.mxu0 %v16547_v42  ;;  %10751 = vmatprep.subr.bf16.mxu1 %v16551_v13  ;;  %v16604_v42 = vld [vmem:[%s21897_s5 + $0x9e0] ss:$8 sps:$4 sm:$0xff]   ;;  %v16609_v13 = vld [vmem:[%s21897_s5 + $0x964] ss:$8 sps:$4 sm:$0xff]  }
 0x927   :  { %v8768_v8 = vpop.f32.mrf.mxu1  ;;  %10498 = vmatmul.mubr.bf16.vlgmr.msra.gmra.mxu1 %v10383_v15 }
 0x928   :  { %10336 = vmatpush1.bf16.msra.mxu0 %v16545_v63  ;;  %10752 = vmatpush1.bf16.msra.mxu1 %v16549_v0  ;;  %v16612_v63 = vld [vmem:[%s21897_s5 + $0x9d4] ss:$8 sps:$4 sm:$0xff]  }
 0x929   :  { %v8770_v4 = vpop.f32.mrf.mxu1  ;;  %10605 = vmatprep.subr.bf16.mxu0 %v16554_v38  ;;  %10753 = vmatprep.subr.bf16.mxu1 %v16557_v10  ;;  %v16607_v10 = vld [vmem:[%s21897_s5 + $0x960] ss:$8 sps:$4 sm:$0xff]  }
 0x92a   :  { %10783 = vmatprep.mubr.bf16.mxu1 %v17011_v62 }
 0x92b   :  { %v8624_v33 = vpop.f32.mrf.mxu0  ;;  %v8772_v43 = vpop.f32.mrf.mxu1  ;;  %10354 = vmatmul.mubr.bf16.vlgmr.msra.gmra.mxu0 %v10239_v19  ;;  %v16618_v19 = vld [vmem:[%s21897_s5 + $0x9c4] ss:$8 sps:$4 sm:$0xff]  }
 0x92c   :  { %v8631_v40 = vadd.f32 %v8624_v33, %v20917_v54  ;;  %10606 = vmatpush1.bf16.msra.mxu0 %v16552_v7  ;;  %10754 = vmatpush1.bf16.msra.mxu1 %v16555_v25  ;;  %v16613_v43 = vld [vmem:[%s21897_s5 + $0x950] ss:$8 sps:$4 sm:$0xff]  }
 0x92d   :  { %v8626_v2 = vpop.f32.mrf.mxu0  ;;  %v8773_v31 = vpop.f32.mrf.mxu1  ;;  %10607 = vmatprep.subr.bf16.mxu0 %v16560_v29  ;;  %10755 = vmatprep.subr.bf16.mxu1 %v16563_v28 }
 0x92e   :  { %v8632_v17 = vadd.f32 %v8626_v2, %v20931_v20  ;;  %10637 = vmatprep.mubr.bf16.mxu0 %v17011_v62  ;;  %v21034_v23 = vadd.f32 %v8768_v8, %v8631_v40  ;;  %v16581_v20 = vld [vmem:[%s21897_s5 + $0x8a4] ss:$8 sps:$4 sm:$0xff]   ;;  %v16610_v8 = vld [vmem:[%s21897_s5 + $0x9d0] ss:$8 sps:$4 sm:$0xff]   ;;  %v16616_v40 = vld [vmem:[%s21897_s5 + $0x9c0] ss:$8 sps:$4 sm:$0xff]  }
 0x92f   :  { %v8628_v49 = vpop.f32.mrf.mxu0  ;;  %v16621_v2 = vld [vmem:[%s21897_s5 + $0x944] ss:$8 sps:$4 sm:$0xff]   ;;  %v16624_v31 = vld [vmem:[%s21897_s5 + $0x9b4] ss:$8 sps:$4 sm:$0xff]  }
 0x930   :  { %10608 = vmatpush1.bf16.msra.mxu0 %v16558_v35  ;;  %10756 = vmatpush1.bf16.msra.mxu1 %v16561_v55  ;;  %v21042_v54 = vadd.f32 %v8770_v4, %v8632_v17  ;;  %v16615_v4 = vld [vmem:[%s21897_s5 + $0x954] ss:$8 sps:$4 sm:$0xff]   ;;  %v16625_v49 = vld [vmem:[%s21897_s5 + $0x930] ss:$8 sps:$4 sm:$0xff]  }
 0x931   :  { %v8629_v11 = vpop.f32.mrf.mxu0  ;;  %10609 = vmatprep.subr.bf16.mxu0 %v16566_v48  ;;  %10757 = vmatprep.subr.bf16.mxu1 %v16569_v27  ;;  %v16619_v48 = vld [vmem:[%s21897_s5 + $0x940] ss:$8 sps:$4 sm:$0xff]   ;;  %v16622_v27 = vld [vmem:[%s21897_s5 + $0x9b0] ss:$8 sps:$4 sm:$0xff]   ;;  %v16627_v17 = vld [vmem:[%s21897_s5 + $0x934] ss:$8 sps:$4 sm:$0xff]  }
 0x932   :  { %v16646_v11 = vld [vmem:[#allocation3 + $0x18] ss:$0 sps:$4 sm:$0x22]  }
 0x933   :  { %v10814_v59 = vrot.slane %v16646_v11, 1 }
 0x934   :  { %10610 = vmatpush1.bf16.msra.mxu0 %v16564_v44  ;;  %10758 = vmatpush1.bf16.msra.mxu1 %v16567_v45  ;;  %v16628_v44 = vld [vmem:[%s21897_s5 + $0x9a0] ss:$8 sps:$4 sm:$0xff]   ;;  %v16633_v45 = vld [vmem:[%s21897_s5 + $0x924] ss:$8 sps:$4 sm:$0xff]  }
 0x935   :  { %10611 = vmatprep.subr.bf16.mxu0 %v16572_v9  ;;  %10759 = vmatprep.subr.bf16.mxu1 %v16575_v30  ;;  %v16631_v9 = vld [vmem:[%s21897_s5 + $0x920] ss:$8 sps:$4 sm:$0xff]   ;;  %v16634_v30 = vld [vmem:[%s21897_s5 + $0x990] ss:$8 sps:$4 sm:$0xff]  }
 0x938   :  { %10612 = vmatpush1.bf16.msra.mxu0 %v16570_v47  ;;  %10760 = vmatpush1.bf16.msra.mxu1 %v16573_v39  ;;  %v16639_v47 = vld [vmem:[%s21897_s5 + $0x914] ss:$8 sps:$4 sm:$0xff]   ;;  %v16642_v39 = vld [vmem:[%s21897_s5 + $0x984] ss:$8 sps:$4 sm:$0xff]  }
 0x939   :  { %10613 = vmatprep.subr.bf16.mxu0 %v16578_v37  ;;  %10761 = vmatprep.subr.bf16.mxu1 %v16581_v20  ;;  %v16637_v37 = vld [vmem:[%s21897_s5 + $0x910] ss:$8 sps:$4 sm:$0xff]   ;;  %v16640_v20 = vld [vmem:[%s21897_s5 + $0x980] ss:$8 sps:$4 sm:$0xff]  }
 0x93c   :  { %10614 = vmatpush1.bf16.msra.mxu0 %v16576_v22  ;;  %10762 = vmatpush1.bf16.msra.mxu1 %v16579_v57  ;;  %v16645_v22 = vld [vmem:[%s21897_s5 + $0x904] ss:$8 sps:$4 sm:$0xff]   ;;  %v10956_v57 = vshrl.u32 %v16646_v11, 16  ;;  %v16692_v11 = vld [vmem:[%s21897_s5 + $0xa00] ss:$8 sps:$4 sm:$0xff]  }
 0x93d   :  { %10615 = vmatprep.subr.bf16.mxu0 %v16584_v3  ;;  %10763 = vmatprep.subr.bf16.mxu1 %v16587_v41  ;;  %v16649_v3 = vld [vmem:[%s21897_s5 + $0xaf4] ss:$8 sps:$4 sm:$0xff]   ;;  %v16643_v41 = vld [vmem:[%s21897_s5 + $0x900] ss:$8 sps:$4 sm:$0xff]  }
 0x940   :  { %10616 = vmatpush1.bf16.msra.mxu0 %v16582_v18  ;;  %10764 = vmatpush1.bf16.msra.mxu1 %v16585_v46  ;;  %v16647_v18 = vld [vmem:[%s21897_s5 + $0xaf0] ss:$8 sps:$4 sm:$0xff]   ;;  %v10958_v46 = vrot.slane %v10956_v57, 1 }
 0x941   :  { %10617 = vmatprep.subr.bf16.mxu0 %v16590_v32  ;;  %10765 = vmatprep.subr.bf16.mxu1 %v16593_v36  ;;  %v16652_v32 = vld [vmem:[%s21897_s5 + $0xa74] ss:$8 sps:$4 sm:$0xff]   ;;  %v16655_v36 = vld [vmem:[%s21897_s5 + $0xae4] ss:$8 sps:$4 sm:$0xff]  }
 0x944   :  { %10618 = vmatpush1.bf16.msra.mxu0 %v16588_v51  ;;  %10766 = vmatpush1.bf16.msra.mxu1 %v16591_v14  ;;  %v16650_v51 = vld [vmem:[%s21897_s5 + $0xa70] ss:$8 sps:$4 sm:$0xff]   ;;  %v16653_v14 = vld [vmem:[%s21897_s5 + $0xae0] ss:$8 sps:$4 sm:$0xff]  }
 0x945   :  { %10619 = vmatprep.subr.bf16.mxu0 %v16596_v1  ;;  %11040 = vmatprep.subr.bf16.mxu1 %v16600_v56  ;;  %v16658_v56 = vld [vmem:[%s21897_s5 + $0xa64] ss:$8 sps:$4 sm:$0xff]  }
 0x947   :  { %v9057_v58 = vpop.f32.mrf.mxu1  ;;  %10784 = vmatmul.mubr.bf16.vlgmr.msra.gmra.mxu1 %v10668_v26 }
 0x948   :  { %10620 = vmatpush1.bf16.msra.mxu0 %v16594_v21  ;;  %11041 = vmatpush1.bf16.msra.mxu1 %v16598_v50  ;;  %v16661_v21 = vld [vmem:[%s21897_s5 + $0xad4] ss:$8 sps:$4 sm:$0xff]  }
 0x949   :  { %v9059_v60 = vpop.f32.mrf.mxu1  ;;  %10896 = vmatprep.subr.bf16.mxu0 %v16603_v52  ;;  %11042 = vmatprep.subr.bf16.mxu1 %v16606_v5  ;;  %v16656_v5 = vld [vmem:[%s21897_s5 + $0xa60] ss:$8 sps:$4 sm:$0xff]  }
 0x94a   :  { %11072 = vmatprep.mubr.bf16.mxu1 %v17011_v62 }
 0x94b   :  { %v8913_v0 = vpop.f32.mrf.mxu0  ;;  %v9061_v15 = vpop.f32.mrf.mxu1  ;;  %10638 = vmatmul.mubr.bf16.vlgmr.msra.gmra.mxu0 %v10508_v6 }
 0x94c   :  { %v8920_v38 = vadd.f32 %v8913_v0, %v21034_v23  ;;  %10897 = vmatpush1.bf16.msra.mxu0 %v16601_v24  ;;  %11043 = vmatpush1.bf16.msra.mxu1 %v16604_v42  ;;  %v16630_v23 = vld [vmem:[%s21897_s5 + $0x9a4] ss:$8 sps:$4 sm:$0xff]  }
 0x94d   :  { %v8915_v7 = vpop.f32.mrf.mxu0  ;;  %v9062_v25 = vpop.f32.mrf.mxu1  ;;  %10898 = vmatprep.subr.bf16.mxu0 %v16609_v13  ;;  %11044 = vmatprep.subr.bf16.mxu1 %v16612_v63  ;;  %v16667_v13 = vld [vmem:[%s21897_s5 + $0xac4] ss:$8 sps:$4 sm:$0xff]  }
 0x94e   :  { %v8921_v29 = vadd.f32 %v8915_v7, %v21042_v54  ;;  %10928 = vmatprep.mubr.bf16.mxu0 %v17011_v62  ;;  %v21138_v28 = vadd.f32 %v9057_v58, %v8920_v38  ;;  %v16636_v54 = vld [vmem:[%s21897_s5 + $0x994] ss:$8 sps:$4 sm:$0xff]   ;;  %v16659_v58 = vld [vmem:[%s21897_s5 + $0xad0] ss:$8 sps:$4 sm:$0xff]   ;;  %v16670_v25 = vld [vmem:[%s21897_s5 + $0xa44] ss:$8 sps:$4 sm:$0xff]  }
 0x94f   :  { %v8917_v33 = vpop.f32.mrf.mxu0  ;;  %v16662_v38 = vld [vmem:[%s21897_s5 + $0xa50] ss:$8 sps:$4 sm:$0xff]  }
 0x950   :  { %10899 = vmatpush1.bf16.msra.mxu0 %v16607_v10  ;;  %11045 = vmatpush1.bf16.msra.mxu1 %v16610_v8  ;;  %v21146_v35 = vadd.f32 %v9059_v60, %v8921_v29  ;;  %v16664_v60 = vld [vmem:[%s21897_s5 + $0xa54] ss:$8 sps:$4 sm:$0xff]   ;;  %v16665_v10 = vld [vmem:[%s21897_s5 + $0xac0] ss:$8 sps:$4 sm:$0xff]   ;;  %v16671_v29 = vld [vmem:[%s21897_s5 + $0xab0] ss:$8 sps:$4 sm:$0xff]  }
 0x951   :  { %v8918_v55 = vpop.f32.mrf.mxu0  ;;  %10900 = vmatprep.subr.bf16.mxu0 %v16615_v4  ;;  %11046 = vmatprep.subr.bf16.mxu1 %v16618_v19  ;;  %v16673_v4 = vld [vmem:[%s21897_s5 + $0xab4] ss:$8 sps:$4 sm:$0xff]   ;;  %v16668_v19 = vld [vmem:[%s21897_s5 + $0xa40] ss:$8 sps:$4 sm:$0xff]   ;;  %v16679_v33 = vld [vmem:[%s21897_s5 + $0xaa4] ss:$8 sps:$4 sm:$0xff]  }
 0x952   :  { %v16685_v55 = vld [vmem:[%s21897_s5 + $0xa94] ss:$8 sps:$4 sm:$0xff]  }
 0x954   :  { %10901 = vmatpush1.bf16.msra.mxu0 %v16613_v43  ;;  %11047 = vmatpush1.bf16.msra.mxu1 %v16616_v40  ;;  %v16674_v43 = vld [vmem:[%s21897_s5 + $0xa30] ss:$8 sps:$4 sm:$0xff]   ;;  %v16677_v40 = vld [vmem:[%s21897_s5 + $0xaa0] ss:$8 sps:$4 sm:$0xff]  }
 0x955   :  { %10902 = vmatprep.subr.bf16.mxu0 %v16621_v2  ;;  %11048 = vmatprep.subr.bf16.mxu1 %v16624_v31  ;;  %v16695_v2 = vld [vmem:[#allocation3 + $0x18] ss:$0 sps:$4 sm:$0x44]   ;;  %v16680_v31 = vld [vmem:[%s21897_s5 + $0xa20] ss:$8 sps:$4 sm:$0xff]  }
 0x958   :  { %10903 = vmatpush1.bf16.msra.mxu0 %v16619_v48  ;;  %11049 = vmatpush1.bf16.msra.mxu1 %v16622_v27  ;;  %v16683_v48 = vld [vmem:[%s21897_s5 + $0xa90] ss:$8 sps:$4 sm:$0xff]   ;;  %v16688_v27 = vld [vmem:[%s21897_s5 + $0xa14] ss:$8 sps:$4 sm:$0xff]  }
 0x959   :  { %10904 = vmatprep.subr.bf16.mxu0 %v16627_v17  ;;  %11050 = vmatprep.subr.bf16.mxu1 %v16630_v23  ;;  %v16691_v17 = vld [vmem:[%s21897_s5 + $0xa84] ss:$8 sps:$4 sm:$0xff]   ;;  %v16686_v23 = vld [vmem:[%s21897_s5 + $0xa10] ss:$8 sps:$4 sm:$0xff]  }
 0x95c   :  { %10905 = vmatpush1.bf16.msra.mxu0 %v16625_v49  ;;  %11051 = vmatpush1.bf16.msra.mxu1 %v16628_v44  ;;  %v16689_v49 = vld [vmem:[%s21897_s5 + $0xa80] ss:$8 sps:$4 sm:$0xff]   ;;  %v16694_v44 = vld [vmem:[%s21897_s5 + $0xa04] ss:$8 sps:$4 sm:$0xff]  }
 0x95d   :  { %10906 = vmatprep.subr.bf16.mxu0 %v16633_v45  ;;  %11052 = vmatprep.subr.bf16.mxu1 %v16636_v54  ;;  %v11245_v45 = vshrl.u32 %v16695_v2, 16  ;;  %v16698_v54 = vld [vmem:[%s21897_s5 + $0xbf4] ss:$8 sps:$4 sm:$0xff]  }
 0x960   :  { %10907 = vmatpush1.bf16.msra.mxu0 %v16631_v9  ;;  %11053 = vmatpush1.bf16.msra.mxu1 %v16634_v30  ;;  %v16696_v9 = vld [vmem:[%s21897_s5 + $0xbf0] ss:$8 sps:$4 sm:$0xff]   ;;  %v11247_v30 = vrot.slane %v11245_v45, 2 }
 0x961   :  { %10908 = vmatprep.subr.bf16.mxu0 %v16639_v47  ;;  %11054 = vmatprep.subr.bf16.mxu1 %v16642_v39  ;;  %v16701_v47 = vld [vmem:[%s21897_s5 + $0xb74] ss:$8 sps:$4 sm:$0xff]   ;;  %v16704_v39 = vld [vmem:[%s21897_s5 + $0xbe4] ss:$8 sps:$4 sm:$0xff]  }
 0x964   :  { %10909 = vmatpush1.bf16.msra.mxu0 %v16637_v37  ;;  %11055 = vmatpush1.bf16.msra.mxu1 %v16640_v20  ;;  %v16699_v20 = vld [vmem:[%s21897_s5 + $0xb70] ss:$8 sps:$4 sm:$0xff]  }
 0x965   :  { %10910 = vmatprep.subr.bf16.mxu0 %v16645_v22  ;;  %11329 = vmatprep.subr.bf16.mxu1 %v16649_v3  ;;  %v16702_v22 = vld [vmem:[%s21897_s5 + $0xbe0] ss:$8 sps:$4 sm:$0xff]   ;;  %v11103_v3 = vrot.slane %v16695_v2, 2 }
 0x966   :  { %v16741_v2 = vld [vmem:[%s21897_s5 + $0xb00] ss:$8 sps:$4 sm:$0xff]  }
 0x967   :  { %v9346_v6 = vpop.f32.mrf.mxu1  ;;  %11073 = vmatmul.mubr.bf16.vlgmr.msra.gmra.mxu1 %v10958_v46 }
 0x968   :  { %10911 = vmatpush1.bf16.msra.mxu0 %v16643_v41  ;;  %11330 = vmatpush1.bf16.msra.mxu1 %v16647_v18  ;;  %v16707_v41 = vld [vmem:[%s21897_s5 + $0xb64] ss:$8 sps:$4 sm:$0xff]   ;;  %v16710_v18 = vld [vmem:[%s21897_s5 + $0xbd4] ss:$8 sps:$4 sm:$0xff]  }
 0x969   :  { %v9348_v1 = vpop.f32.mrf.mxu1  ;;  %11185 = vmatprep.subr.bf16.mxu0 %v16652_v32  ;;  %11331 = vmatprep.subr.bf16.mxu1 %v16655_v36 }
 0x96a   :  { %11361 = vmatprep.mubr.bf16.mxu1 %v17011_v62 }
 0x96b   :  { %v9202_v50 = vpop.f32.mrf.mxu0  ;;  %v9350_v26 = vpop.f32.mrf.mxu1  ;;  %10929 = vmatmul.mubr.bf16.vlgmr.msra.gmra.mxu0 %v10814_v59  ;;  %v16713_v59 = vld [vmem:[%s21897_s5 + $0xb54] ss:$8 sps:$4 sm:$0xff]  }
 0x96c   :  { %v9209_v52 = vadd.f32 %v9202_v50, %v21138_v28  ;;  %11186 = vmatpush1.bf16.msra.mxu0 %v16650_v51  ;;  %11332 = vmatpush1.bf16.msra.mxu1 %v16653_v14  ;;  %v16676_v28 = vld [vmem:[%s21897_s5 + $0xa34] ss:$8 sps:$4 sm:$0xff]   ;;  %v16708_v51 = vld [vmem:[%s21897_s5 + $0xbd0] ss:$8 sps:$4 sm:$0xff]  }
 0x96d   :  { %v9204_v24 = vpop.f32.mrf.mxu0  ;;  %v9351_v42 = vpop.f32.mrf.mxu1  ;;  %11187 = vmatprep.subr.bf16.mxu0 %v16658_v56  ;;  %11333 = vmatprep.subr.bf16.mxu1 %v16661_v21  ;;  %v16716_v56 = vld [vmem:[%s21897_s5 + $0xbc4] ss:$8 sps:$4 sm:$0xff]  }
 0x96e   :  { %v9210_v63 = vadd.f32 %v9204_v24, %v21146_v35  ;;  %11217 = vmatprep.mubr.bf16.mxu0 %v17011_v62  ;;  %v21242_v0 = vadd.f32 %v9346_v6, %v9209_v52  ;;  %v16682_v35 = vld [vmem:[%s21897_s5 + $0xa24] ss:$8 sps:$4 sm:$0xff]   ;;  %v16705_v6 = vld [vmem:[%s21897_s5 + $0xb60] ss:$8 sps:$4 sm:$0xff]   ;;  %v16711_v52 = vld [vmem:[%s21897_s5 + $0xb50] ss:$8 sps:$4 sm:$0xff]  }
 0x96f   :  { %v9206_v15 = vpop.f32.mrf.mxu0  ;;  %v16719_v42 = vld [vmem:[%s21897_s5 + $0xb44] ss:$8 sps:$4 sm:$0xff]  }
 0x970   :  { %11188 = vmatpush1.bf16.msra.mxu0 %v16656_v5  ;;  %11334 = vmatpush1.bf16.msra.mxu1 %v16659_v58  ;;  %v21250_v8 = vadd.f32 %v9348_v1, %v9210_v63  ;;  %v16714_v5 = vld [vmem:[%s21897_s5 + $0xbc0] ss:$8 sps:$4 sm:$0xff]   ;;  %v16720_v63 = vld [vmem:[%s21897_s5 + $0xbb0] ss:$8 sps:$4 sm:$0xff]   ;;  %v16728_v15 = vld [vmem:[%s21897_s5 + $0xba4] ss:$8 sps:$4 sm:$0xff]  }
 0x971   :  { %v9207_v7 = vpop.f32.mrf.mxu0  ;;  %11189 = vmatprep.subr.bf16.mxu0 %v16664_v60  ;;  %11335 = vmatprep.subr.bf16.mxu1 %v16667_v13  ;;  %v16722_v60 = vld [vmem:[%s21897_s5 + $0xbb4] ss:$8 sps:$4 sm:$0xff]   ;;  %v16717_v13 = vld [vmem:[%s21897_s5 + $0xb40] ss:$8 sps:$4 sm:$0xff]  }
 0x972   :  { %v16734_v7 = vld [vmem:[%s21897_s5 + $0xb94] ss:$8 sps:$4 sm:$0xff]  }
 0x974   :  { %11190 = vmatpush1.bf16.msra.mxu0 %v16662_v38  ;;  %11336 = vmatpush1.bf16.msra.mxu1 %v16665_v10  ;;  %v16723_v38 = vld [vmem:[%s21897_s5 + $0xb30] ss:$8 sps:$4 sm:$0xff]   ;;  %v16726_v10 = vld [vmem:[%s21897_s5 + $0xba0] ss:$8 sps:$4 sm:$0xff]  }
 0x975   :  { %11191 = vmatprep.subr.bf16.mxu0 %v16670_v25  ;;  %11337 = vmatprep.subr.bf16.mxu1 %v16673_v4  ;;  %v16744_v25 = vld [vmem:[#allocation3 + $0x18] ss:$0 sps:$4 sm:$0x88]   ;;  %v16729_v4 = vld [vmem:[%s21897_s5 + $0xb20] ss:$8 sps:$4 sm:$0xff]  }
 0x978   :  { %11192 = vmatpush1.bf16.msra.mxu0 %v16668_v19  ;;  %11338 = vmatpush1.bf16.msra.mxu1 %v16671_v29  ;;  %v16732_v19 = vld [vmem:[%s21897_s5 + $0xb90] ss:$8 sps:$4 sm:$0xff]   ;;  %v16737_v29 = vld [vmem:[%s21897_s5 + $0xb14] ss:$8 sps:$4 sm:$0xff]  }
 0x979   :  { %11193 = vmatprep.subr.bf16.mxu0 %v16676_v28  ;;  %11339 = vmatprep.subr.bf16.mxu1 %v16679_v33  ;;  %v16740_v28 = vld [vmem:[%s21897_s5 + $0xb84] ss:$8 sps:$4 sm:$0xff]   ;;  %v16735_v33 = vld [vmem:[%s21897_s5 + $0xb10] ss:$8 sps:$4 sm:$0xff]  }
 0x97c   :  { %11194 = vmatpush1.bf16.msra.mxu0 %v16674_v43  ;;  %11340 = vmatpush1.bf16.msra.mxu1 %v16677_v40  ;;  %v16738_v43 = vld [vmem:[%s21897_s5 + $0xb80] ss:$8 sps:$4 sm:$0xff]   ;;  %v16743_v40 = vld [vmem:[%s21897_s5 + $0xb04] ss:$8 sps:$4 sm:$0xff]  }
 0x97d   :  { %11195 = vmatprep.subr.bf16.mxu0 %v16682_v35  ;;  %11341 = vmatprep.subr.bf16.mxu1 %v16685_v55  ;;  %v11534_v35 = vshrl.u32 %v16744_v25, 16  ;;  %v16747_v55 = vld [vmem:[%s21897_s5 + $0xcf4] ss:$8 sps:$4 sm:$0xff]  }
 0x980   :  { %11196 = vmatpush1.bf16.msra.mxu0 %v16680_v31  ;;  %11342 = vmatpush1.bf16.msra.mxu1 %v16683_v48  ;;  %v16745_v31 = vld [vmem:[%s21897_s5 + $0xcf0] ss:$8 sps:$4 sm:$0xff]   ;;  %v11536_v48 = vrot.slane %v11534_v35, 3 }
 0x981   :  { %11197 = vmatprep.subr.bf16.mxu0 %v16688_v27  ;;  %11343 = vmatprep.subr.bf16.mxu1 %v16691_v17  ;;  %v16750_v27 = vld [vmem:[%s21897_s5 + $0xc74] ss:$8 sps:$4 sm:$0xff]   ;;  %v16753_v17 = vld [vmem:[%s21897_s5 + $0xce4] ss:$8 sps:$4 sm:$0xff]  }
 0x984   :  { %11198 = vmatpush1.bf16.msra.mxu0 %v16686_v23  ;;  %11344 = vmatpush1.bf16.msra.mxu1 %v16689_v49  ;;  %v16748_v49 = vld [vmem:[%s21897_s5 + $0xc70] ss:$8 sps:$4 sm:$0xff]  }
 0x985   :  { %11199 = vmatprep.subr.bf16.mxu0 %v16694_v44  ;;  %11618 = vmatprep.subr.bf16.mxu1 %v16698_v54  ;;  %v16751_v44 = vld [vmem:[%s21897_s5 + $0xce0] ss:$8 sps:$4 sm:$0xff]   ;;  %v11392_v54 = vrot.slane %v16744_v25, 3 }
 0x986   :  { %v16790_v25 = vld [vmem:[%s21897_s5 + $0xc00] ss:$8 sps:$4 sm:$0xff]  }
 0x987   :  { %v9632_v37 = vpop.f32.mrf.mxu1  ;;  %11362 = vmatmul.mubr.bf16.vlgmr.msra.gmra.mxu1 %v11247_v30 }
 0x988   :  { %11200 = vmatpush1.bf16.msra.mxu0 %v16692_v11  ;;  %11619 = vmatpush1.bf16.msra.mxu1 %v16696_v9  ;;  %v16756_v11 = vld [vmem:[%s21897_s5 + $0xc64] ss:$8 sps:$4 sm:$0xff]   ;;  %v16759_v9 = vld [vmem:[%s21897_s5 + $0xcd4] ss:$8 sps:$4 sm:$0xff]  }
 0x989   :  { %v9634_v57 = vpop.f32.mrf.mxu1  ;;  %11474 = vmatprep.subr.bf16.mxu0 %v16701_v47  ;;  %11620 = vmatprep.subr.bf16.mxu1 %v16704_v39 }
 0x98a   :  { %11650 = vmatprep.mubr.bf16.mxu1 %v17011_v62 }
 0x98b   :  { %v9486_v46 = vpop.f32.mrf.mxu0  ;;  %v9636_v32 = vpop.f32.mrf.mxu1  ;;  %11218 = vmatmul.mubr.bf16.vlgmr.msra.gmra.mxu0 %v11103_v3  ;;  %v16762_v3 = vld [vmem:[%s21897_s5 + $0xc54] ss:$8 sps:$4 sm:$0xff]  }
 0x98c   :  { %v9493_v36 = vadd.f32 %v9486_v46, %v21242_v0  ;;  %11475 = vmatpush1.bf16.msra.mxu0 %v16699_v20  ;;  %11621 = vmatpush1.bf16.msra.mxu1 %v16702_v22  ;;  %v16725_v0 = vld [vmem:[%s21897_s5 + $0xb34] ss:$8 sps:$4 sm:$0xff]   ;;  %v16757_v20 = vld [vmem:[%s21897_s5 + $0xcd0] ss:$8 sps:$4 sm:$0xff]  }
 0x98d   :  { %v9488_v14 = vpop.f32.mrf.mxu0  ;;  %v9637_v1 = vpop.f32.mrf.mxu1  ;;  %11476 = vmatprep.subr.bf16.mxu0 %v16707_v41  ;;  %11622 = vmatprep.subr.bf16.mxu1 %v16710_v18  ;;  %v16765_v41 = vld [vmem:[%s21897_s5 + $0xcc4] ss:$8 sps:$4 sm:$0xff]  }
 0x98e   :  { %v9494_v21 = vadd.f32 %v9488_v14, %v21250_v8  ;;  %11506 = vmatprep.mubr.bf16.mxu0 %v17011_v62  ;;  %v21346_v50 = vadd.f32 %v9632_v37, %v9493_v36  ;;  %v16731_v8 = vld [vmem:[%s21897_s5 + $0xb24] ss:$8 sps:$4 sm:$0xff]   ;;  %v16754_v37 = vld [vmem:[%s21897_s5 + $0xc60] ss:$8 sps:$4 sm:$0xff]   ;;  %v16760_v36 = vld [vmem:[%s21897_s5 + $0xc50] ss:$8 sps:$4 sm:$0xff]  }
 0x98f   :  { %v9490_v26 = vpop.f32.mrf.mxu0  ;;  %v16768_v1 = vld [vmem:[%s21897_s5 + $0xc44] ss:$8 sps:$4 sm:$0xff]  }
 0x990   :  { %11477 = vmatpush1.bf16.msra.mxu0 %v16705_v6  ;;  %11623 = vmatpush1.bf16.msra.mxu1 %v16708_v51  ;;  %v21354_v58 = vadd.f32 %v9634_v57, %v9494_v21  ;;  %v16763_v6 = vld [vmem:[%s21897_s5 + $0xcc0] ss:$8 sps:$4 sm:$0xff]   ;;  %v16769_v21 = vld [vmem:[%s21897_s5 + $0xcb0] ss:$8 sps:$4 sm:$0xff]   ;;  %v16777_v26 = vld [vmem:[%s21897_s5 + $0xca4] ss:$8 sps:$4 sm:$0xff]  }
 0x991   :  { %v9491_v24 = vpop.f32.mrf.mxu0  ;;  %11478 = vmatprep.subr.bf16.mxu0 %v16713_v59  ;;  %11624 = vmatprep.subr.bf16.mxu1 %v16716_v56  ;;  %v16771_v59 = vld [vmem:[%s21897_s5 + $0xcb4] ss:$8 sps:$4 sm:$0xff]   ;;  %v16766_v56 = vld [vmem:[%s21897_s5 + $0xc40] ss:$8 sps:$4 sm:$0xff]  }
 0x992   :  { %v16783_v24 = vld [vmem:[%s21897_s5 + $0xc94] ss:$8 sps:$4 sm:$0xff]  }
 0x994   :  { %11479 = vmatpush1.bf16.msra.mxu0 %v16711_v52  ;;  %11625 = vmatpush1.bf16.msra.mxu1 %v16714_v5  ;;  %v16772_v52 = vld [vmem:[%s21897_s5 + $0xc30] ss:$8 sps:$4 sm:$0xff]   ;;  %v16775_v5 = vld [vmem:[%s21897_s5 + $0xca0] ss:$8 sps:$4 sm:$0xff]  }
 0x995   :  { %11480 = vmatprep.subr.bf16.mxu0 %v16719_v42  ;;  %11626 = vmatprep.subr.bf16.mxu1 %v16722_v60  ;;  %v16778_v42 = vld [vmem:[%s21897_s5 + $0xc20] ss:$8 sps:$4 sm:$0xff]   ;;  %v16781_v60 = vld [vmem:[%s21897_s5 + $0xc90] ss:$8 sps:$4 sm:$0xff]  }
 0x998   :  { %11481 = vmatpush1.bf16.msra.mxu0 %v16717_v13  ;;  %11627 = vmatpush1.bf16.msra.mxu1 %v16720_v63  ;;  %v16786_v13 = vld [vmem:[%s21897_s5 + $0xc14] ss:$8 sps:$4 sm:$0xff]   ;;  %v16789_v63 = vld [vmem:[%s21897_s5 + $0xc84] ss:$8 sps:$4 sm:$0xff]  }
 0x999   :  { %11482 = vmatprep.subr.bf16.mxu0 %v16725_v0  ;;  %11628 = vmatprep.subr.bf16.mxu1 %v16728_v15  ;;  %v11661_v0 = vld [vmem:[#allocation3 + $0x1c] sm:$0x1]  ;;  %v16784_v15 = vld [vmem:[%s21897_s5 + $0xc10] ss:$8 sps:$4 sm:$0xff]  }
 0x99c   :  { %11483 = vmatpush1.bf16.msra.mxu0 %v16723_v38  ;;  %11629 = vmatpush1.bf16.msra.mxu1 %v16726_v10  ;;  %v16787_v38 = vld [vmem:[%s21897_s5 + $0xc80] ss:$8 sps:$4 sm:$0xff]   ;;  %v16792_v10 = vld [vmem:[%s21897_s5 + $0xc04] ss:$8 sps:$4 sm:$0xff]  }
 0x99d   :  { %11484 = vmatprep.subr.bf16.mxu0 %v16731_v8  ;;  %11630 = vmatprep.subr.bf16.mxu1 %v16734_v7  ;;  %v14439_v8 = vcombine.low %v11661_v0, %v11661_v0  ;;  %v16796_v7 = vld [vmem:[%s21897_s5 + $0xdf4] ss:$8 sps:$4 sm:$0xff]  }
 0x9a0   :  { %11485 = vmatpush1.bf16.msra.mxu0 %v16729_v4  ;;  %11631 = vmatpush1.bf16.msra.mxu1 %v16732_v19  ;;  %v16794_v4 = vld [vmem:[%s21897_s5 + $0xdf0] ss:$8 sps:$4 sm:$0xff]   ;;  %v11821_v19 = vshrl.u32 %v14439_v8, 16 }
 0x9a1   :  { %11486 = vmatprep.subr.bf16.mxu0 %v16737_v29  ;;  %11632 = vmatprep.subr.bf16.mxu1 %v16740_v28  ;;  %v16799_v29 = vld [vmem:[%s21897_s5 + $0xd74] ss:$8 sps:$4 sm:$0xff]   ;;  %v16802_v28 = vld [vmem:[%s21897_s5 + $0xde4] ss:$8 sps:$4 sm:$0xff]  }
 0x9a4   :  { %11487 = vmatpush1.bf16.msra.mxu0 %v16735_v33  ;;  %11633 = vmatpush1.bf16.msra.mxu1 %v16738_v43  ;;  %v16797_v43 = vld [vmem:[%s21897_s5 + $0xd70] ss:$8 sps:$4 sm:$0xff]  }
 0x9a5   :  { %11488 = vmatprep.subr.bf16.mxu0 %v16743_v40  ;;  %11904 = vmatprep.subr.bf16.mxu1 %v16747_v55  ;;  %v16800_v40 = vld [vmem:[%s21897_s5 + $0xde0] ss:$8 sps:$4 sm:$0xff]   ;;  %v16805_v55 = vld [vmem:[%s21897_s5 + $0xd64] ss:$8 sps:$4 sm:$0xff]  }
 0x9a7   :  { %v9921_v23 = vpop.f32.mrf.mxu1  ;;  %11651 = vmatmul.mubr.bf16.vlgmr.msra.gmra.mxu1 %v11536_v48 }
 0x9a8   :  { %11489 = vmatpush1.bf16.msra.mxu0 %v16741_v2  ;;  %11905 = vmatpush1.bf16.msra.mxu1 %v16745_v31  ;;  %v16808_v2 = vld [vmem:[%s21897_s5 + $0xdd4] ss:$8 sps:$4 sm:$0xff]  }
 0x9a9   :  { %v9923_v45 = vpop.f32.mrf.mxu1  ;;  %11758 = vmatprep.subr.bf16.mxu0 %v16750_v27  ;;  %11906 = vmatprep.subr.bf16.mxu1 %v16753_v17  ;;  %v16803_v17 = vld [vmem:[%s21897_s5 + $0xd60] ss:$8 sps:$4 sm:$0xff]  }
 0x9aa   :  { %11936 = vmatprep.mubr.bf16.mxu1 %v17011_v62 }
 0x9ab   :  { %v9777_v30 = vpop.f32.mrf.mxu0  ;;  %v9925_v47 = vpop.f32.mrf.mxu1  ;;  %11507 = vmatmul.mubr.bf16.vlgmr.msra.gmra.mxu0 %v11392_v54  ;;  %v16814_v54 = vld [vmem:[%s21897_s5 + $0xdc4] ss:$8 sps:$4 sm:$0xff]  }
 0x9ac   :  { %v9784_v39 = vadd.f32 %v9777_v30, %v21346_v50  ;;  %11759 = vmatpush1.bf16.msra.mxu0 %v16748_v49  ;;  %11907 = vmatpush1.bf16.msra.mxu1 %v16751_v44  ;;  %v16774_v50 = vld [vmem:[%s21897_s5 + $0xc34] ss:$8 sps:$4 sm:$0xff]   ;;  %v16809_v47 = vld [vmem:[%s21897_s5 + $0xd50] ss:$8 sps:$4 sm:$0xff]  }
 0x9ad   :  { %v9779_v22 = vpop.f32.mrf.mxu0  ;;  %v9926_v57 = vpop.f32.mrf.mxu1  ;;  %11760 = vmatprep.subr.bf16.mxu0 %v16756_v11  ;;  %11908 = vmatprep.subr.bf16.mxu1 %v16759_v9 }
 0x9ae   :  { %v9785_v18 = vadd.f32 %v9779_v22, %v21354_v58  ;;  %11790 = vmatprep.mubr.bf16.mxu0 %v17011_v62  ;;  %v21450_v46 = vadd.f32 %v9921_v23, %v9784_v39  ;;  %v16780_v58 = vld [vmem:[%s21897_s5 + $0xc24] ss:$8 sps:$4 sm:$0xff]   ;;  %v16806_v23 = vld [vmem:[%s21897_s5 + $0xdd0] ss:$8 sps:$4 sm:$0xff]   ;;  %v16812_v39 = vld [vmem:[%s21897_s5 + $0xdc0] ss:$8 sps:$4 sm:$0xff]  }
 0x9af   :  { %v9781_v32 = vpop.f32.mrf.mxu0  ;;  %v16817_v22 = vld [vmem:[%s21897_s5 + $0xd44] ss:$8 sps:$4 sm:$0xff]   ;;  %v16820_v57 = vld [vmem:[%s21897_s5 + $0xdb4] ss:$8 sps:$4 sm:$0xff]  }
 0x9b0   :  { %11761 = vmatpush1.bf16.msra.mxu0 %v16754_v37  ;;  %11909 = vmatpush1.bf16.msra.mxu1 %v16757_v20  ;;  %v21458_v51 = vadd.f32 %v9923_v45, %v9785_v18  ;;  %v16811_v45 = vld [vmem:[%s21897_s5 + $0xd54] ss:$8 sps:$4 sm:$0xff]   ;;  %v16821_v32 = vld [vmem:[%s21897_s5 + $0xd30] ss:$8 sps:$4 sm:$0xff]  }
 0x9b1   :  { %v9782_v14 = vpop.f32.mrf.mxu0  ;;  %11762 = vmatprep.subr.bf16.mxu0 %v16762_v3  ;;  %11910 = vmatprep.subr.bf16.mxu1 %v16765_v41  ;;  %v16815_v3 = vld [vmem:[%s21897_s5 + $0xd40] ss:$8 sps:$4 sm:$0xff]   ;;  %v16818_v41 = vld [vmem:[%s21897_s5 + $0xdb0] ss:$8 sps:$4 sm:$0xff]   ;;  %v16823_v18 = vld [vmem:[%s21897_s5 + $0xd34] ss:$8 sps:$4 sm:$0xff]  }
 0x9b2   :  { %v16842_v14 = vld [vmem:[#allocation3 + $0x1c] ss:$0 sps:$4 sm:$0x22]  }
 0x9b3   :  { %v11967_v8 = vrot.slane %v16842_v14, 1 }
 0x9b4   :  { %11763 = vmatpush1.bf16.msra.mxu0 %v16760_v36  ;;  %11911 = vmatpush1.bf16.msra.mxu1 %v16763_v6  ;;  %v16824_v36 = vld [vmem:[%s21897_s5 + $0xda0] ss:$8 sps:$4 sm:$0xff]   ;;  %v16829_v6 = vld [vmem:[%s21897_s5 + $0xd24] ss:$8 sps:$4 sm:$0xff]  }
 0x9b5   :  { %11764 = vmatprep.subr.bf16.mxu0 %v16768_v1  ;;  %11912 = vmatprep.subr.bf16.mxu1 %v16771_v59  ;;  %v16827_v1 = vld [vmem:[%s21897_s5 + $0xd20] ss:$8 sps:$4 sm:$0xff]   ;;  %v16830_v59 = vld [vmem:[%s21897_s5 + $0xd90] ss:$8 sps:$4 sm:$0xff]  }
 0x9b8   :  { %11765 = vmatpush1.bf16.msra.mxu0 %v16766_v56  ;;  %11913 = vmatpush1.bf16.msra.mxu1 %v16769_v21  ;;  %v16835_v56 = vld [vmem:[%s21897_s5 + $0xd14] ss:$8 sps:$4 sm:$0xff]   ;;  %v16838_v21 = vld [vmem:[%s21897_s5 + $0xd84] ss:$8 sps:$4 sm:$0xff]  }
 0x9b9   :  { %11766 = vmatprep.subr.bf16.mxu0 %v16774_v50  ;;  %11914 = vmatprep.subr.bf16.mxu1 %v16777_v26  ;;  %v16833_v50 = vld [vmem:[%s21897_s5 + $0xd10] ss:$8 sps:$4 sm:$0xff]   ;;  %v16836_v26 = vld [vmem:[%s21897_s5 + $0xd80] ss:$8 sps:$4 sm:$0xff]  }
 0x9bc   :  { %11767 = vmatpush1.bf16.msra.mxu0 %v16772_v52  ;;  %11915 = vmatpush1.bf16.msra.mxu1 %v16775_v5  ;;  %v16841_v52 = vld [vmem:[%s21897_s5 + $0xd04] ss:$8 sps:$4 sm:$0xff]   ;;  %v12109_v5 = vshrl.u32 %v16842_v14, 16  ;;  %v16888_v14 = vld [vmem:[%s21897_s5 + $0xe00] ss:$8 sps:$4 sm:$0xff]  }
 0x9bd   :  { %11768 = vmatprep.subr.bf16.mxu0 %v16780_v58  ;;  %11916 = vmatprep.subr.bf16.mxu1 %v16783_v24  ;;  %v16845_v58 = vld [vmem:[%s21897_s5 + $0xef4] ss:$8 sps:$4 sm:$0xff]   ;;  %v16839_v24 = vld [vmem:[%s21897_s5 + $0xd00] ss:$8 sps:$4 sm:$0xff]  }
 0x9c0   :  { %11769 = vmatpush1.bf16.msra.mxu0 %v16778_v42  ;;  %11917 = vmatpush1.bf16.msra.mxu1 %v16781_v60  ;;  %v16843_v42 = vld [vmem:[%s21897_s5 + $0xef0] ss:$8 sps:$4 sm:$0xff]   ;;  %v12111_v60 = vrot.slane %v12109_v5, 1 }
 0x9c1   :  { %11770 = vmatprep.subr.bf16.mxu0 %v16786_v13  ;;  %11918 = vmatprep.subr.bf16.mxu1 %v16789_v63  ;;  %v16848_v13 = vld [vmem:[%s21897_s5 + $0xe74] ss:$8 sps:$4 sm:$0xff]   ;;  %v16851_v63 = vld [vmem:[%s21897_s5 + $0xee4] ss:$8 sps:$4 sm:$0xff]  }
 0x9c4   :  { %11771 = vmatpush1.bf16.msra.mxu0 %v16784_v15  ;;  %11919 = vmatpush1.bf16.msra.mxu1 %v16787_v38  ;;  %v16846_v15 = vld [vmem:[%s21897_s5 + $0xe70] ss:$8 sps:$4 sm:$0xff]   ;;  %v16849_v38 = vld [vmem:[%s21897_s5 + $0xee0] ss:$8 sps:$4 sm:$0xff]  }
 0x9c5   :  { %11772 = vmatprep.subr.bf16.mxu0 %v16792_v10  ;;  %12193 = vmatprep.subr.bf16.mxu1 %v16796_v7  ;;  %v16854_v7 = vld [vmem:[%s21897_s5 + $0xe64] ss:$8 sps:$4 sm:$0xff]  }
 0x9c7   :  { %v10210_v33 = vpop.f32.mrf.mxu1  ;;  %11937 = vmatmul.mubr.bf16.vlgmr.msra.gmra.mxu1 %v11821_v19 }
 0x9c8   :  { %11773 = vmatpush1.bf16.msra.mxu0 %v16790_v25  ;;  %12194 = vmatpush1.bf16.msra.mxu1 %v16794_v4  ;;  %v16857_v25 = vld [vmem:[%s21897_s5 + $0xed4] ss:$8 sps:$4 sm:$0xff]  }
 0x9c9   :  { %v10212_v35 = vpop.f32.mrf.mxu1  ;;  %12049 = vmatprep.subr.bf16.mxu0 %v16799_v29  ;;  %12195 = vmatprep.subr.bf16.mxu1 %v16802_v28  ;;  %v16852_v28 = vld [vmem:[%s21897_s5 + $0xe60] ss:$8 sps:$4 sm:$0xff]  }
 0x9ca   :  { %12225 = vmatprep.mubr.bf16.mxu1 %v17011_v62 }
 0x9cb   :  { %v10066_v31 = vpop.f32.mrf.mxu0  ;;  %v10214_v48 = vpop.f32.mrf.mxu1  ;;  %11791 = vmatmul.mubr.bf16.vlgmr.msra.gmra.mxu0 %v11661_v0 }
 0x9cc   :  { %v10073_v27 = vadd.f32 %v10066_v31, %v21450_v46  ;;  %12050 = vmatpush1.bf16.msra.mxu0 %v16797_v43  ;;  %12196 = vmatpush1.bf16.msra.mxu1 %v16800_v40  ;;  %v16826_v46 = vld [vmem:[%s21897_s5 + $0xda4] ss:$8 sps:$4 sm:$0xff]  }
 0x9cd   :  { %v10068_v49 = vpop.f32.mrf.mxu0  ;;  %v10215_v44 = vpop.f32.mrf.mxu1  ;;  %12051 = vmatprep.subr.bf16.mxu0 %v16805_v55  ;;  %12197 = vmatprep.subr.bf16.mxu1 %v16808_v2  ;;  %v16863_v55 = vld [vmem:[%s21897_s5 + $0xec4] ss:$8 sps:$4 sm:$0xff]  }
 0x9ce   :  { %v10074_v11 = vadd.f32 %v10068_v49, %v21458_v51  ;;  %12081 = vmatprep.mubr.bf16.mxu0 %v17011_v62  ;;  %v21554_v9 = vadd.f32 %v10210_v33, %v10073_v27  ;;  %v16832_v51 = vld [vmem:[%s21897_s5 + $0xd94] ss:$8 sps:$4 sm:$0xff]   ;;  %v16855_v33 = vld [vmem:[%s21897_s5 + $0xed0] ss:$8 sps:$4 sm:$0xff]   ;;  %v16866_v44 = vld [vmem:[%s21897_s5 + $0xe44] ss:$8 sps:$4 sm:$0xff]  }
 0x9cf   :  { %v10070_v30 = vpop.f32.mrf.mxu0  ;;  %v16858_v27 = vld [vmem:[%s21897_s5 + $0xe50] ss:$8 sps:$4 sm:$0xff]  }
 0x9d0   :  { %12052 = vmatpush1.bf16.msra.mxu0 %v16803_v17  ;;  %12198 = vmatpush1.bf16.msra.mxu1 %v16806_v23  ;;  %v21562_v37 = vadd.f32 %v10212_v35, %v10074_v11  ;;  %v16860_v35 = vld [vmem:[%s21897_s5 + $0xe54] ss:$8 sps:$4 sm:$0xff]   ;;  %v16861_v17 = vld [vmem:[%s21897_s5 + $0xec0] ss:$8 sps:$4 sm:$0xff]   ;;  %v16867_v11 = vld [vmem:[%s21897_s5 + $0xeb0] ss:$8 sps:$4 sm:$0xff]  }
 0x9d1   :  { %v10071_v20 = vpop.f32.mrf.mxu0  ;;  %12053 = vmatprep.subr.bf16.mxu0 %v16811_v45  ;;  %12199 = vmatprep.subr.bf16.mxu1 %v16814_v54  ;;  %v16869_v45 = vld [vmem:[%s21897_s5 + $0xeb4] ss:$8 sps:$4 sm:$0xff]   ;;  %v16864_v54 = vld [vmem:[%s21897_s5 + $0xe40] ss:$8 sps:$4 sm:$0xff]   ;;  %v16875_v30 = vld [vmem:[%s21897_s5 + $0xea4] ss:$8 sps:$4 sm:$0xff]  }
 0x9d2   :  { %v16881_v20 = vld [vmem:[%s21897_s5 + $0xe94] ss:$8 sps:$4 sm:$0xff]  }
 0x9d4   :  { %12054 = vmatpush1.bf16.msra.mxu0 %v16809_v47  ;;  %12200 = vmatpush1.bf16.msra.mxu1 %v16812_v39  ;;  %v16870_v47 = vld [vmem:[%s21897_s5 + $0xe30] ss:$8 sps:$4 sm:$0xff]   ;;  %v16873_v39 = vld [vmem:[%s21897_s5 + $0xea0] ss:$8 sps:$4 sm:$0xff]  }
 0x9d5   :  { %12055 = vmatprep.subr.bf16.mxu0 %v16817_v22  ;;  %12201 = vmatprep.subr.bf16.mxu1 %v16820_v57  ;;  %v16891_v22 = vld [vmem:[#allocation3 + $0x1c] ss:$0 sps:$4 sm:$0x44]   ;;  %v16876_v57 = vld [vmem:[%s21897_s5 + $0xe20] ss:$8 sps:$4 sm:$0xff]  }
 0x9d8   :  { %12056 = vmatpush1.bf16.msra.mxu0 %v16815_v3  ;;  %12202 = vmatpush1.bf16.msra.mxu1 %v16818_v41  ;;  %v16879_v3 = vld [vmem:[%s21897_s5 + $0xe90] ss:$8 sps:$4 sm:$0xff]   ;;  %v16884_v41 = vld [vmem:[%s21897_s5 + $0xe14] ss:$8 sps:$4 sm:$0xff]  }
 0x9d9   :  { %12057 = vmatprep.subr.bf16.mxu0 %v16823_v18  ;;  %12203 = vmatprep.subr.bf16.mxu1 %v16826_v46  ;;  %v16887_v18 = vld [vmem:[%s21897_s5 + $0xe84] ss:$8 sps:$4 sm:$0xff]   ;;  %v16882_v46 = vld [vmem:[%s21897_s5 + $0xe10] ss:$8 sps:$4 sm:$0xff]  }
 0x9dc   :  { %12058 = vmatpush1.bf16.msra.mxu0 %v16821_v32  ;;  %12204 = vmatpush1.bf16.msra.mxu1 %v16824_v36  ;;  %v16885_v32 = vld [vmem:[%s21897_s5 + $0xe80] ss:$8 sps:$4 sm:$0xff]   ;;  %v16890_v36 = vld [vmem:[%s21897_s5 + $0xe04] ss:$8 sps:$4 sm:$0xff]  }
 0x9dd   :  { %12059 = vmatprep.subr.bf16.mxu0 %v16829_v6  ;;  %12205 = vmatprep.subr.bf16.mxu1 %v16832_v51  ;;  %v12398_v6 = vshrl.u32 %v16891_v22, 16  ;;  %v16894_v51 = vld [vmem:[%s21897_s5 + $0xff4] ss:$8 sps:$4 sm:$0xff]  }
 0x9e0   :  { %12060 = vmatpush1.bf16.msra.mxu0 %v16827_v1  ;;  %12206 = vmatpush1.bf16.msra.mxu1 %v16830_v59  ;;  %v16892_v1 = vld [vmem:[%s21897_s5 + $0xff0] ss:$8 sps:$4 sm:$0xff]   ;;  %v12400_v59 = vrot.slane %v12398_v6, 2 }
 0x9e1   :  { %12061 = vmatprep.subr.bf16.mxu0 %v16835_v56  ;;  %12207 = vmatprep.subr.bf16.mxu1 %v16838_v21  ;;  %v16897_v56 = vld [vmem:[%s21897_s5 + $0xf74] ss:$8 sps:$4 sm:$0xff]   ;;  %v16900_v21 = vld [vmem:[%s21897_s5 + $0xfe4] ss:$8 sps:$4 sm:$0xff]  }
 0x9e4   :  { %12062 = vmatpush1.bf16.msra.mxu0 %v16833_v50  ;;  %12208 = vmatpush1.bf16.msra.mxu1 %v16836_v26  ;;  %v16895_v26 = vld [vmem:[%s21897_s5 + $0xf70] ss:$8 sps:$4 sm:$0xff]  }
 0x9e5   :  { %12063 = vmatprep.subr.bf16.mxu0 %v16841_v52  ;;  %12482 = vmatprep.subr.bf16.mxu1 %v16845_v58  ;;  %v16898_v52 = vld [vmem:[%s21897_s5 + $0xfe0] ss:$8 sps:$4 sm:$0xff]   ;;  %v12256_v58 = vrot.slane %v16891_v22, 2 }
 0x9e7   :  { %v10499_v0 = vpop.f32.mrf.mxu1  ;;  %12226 = vmatmul.mubr.bf16.vlgmr.msra.gmra.mxu1 %v12111_v60 }
 0x9e8   :  { %12064 = vmatpush1.bf16.msra.mxu0 %v16839_v24  ;;  %12483 = vmatpush1.bf16.msra.mxu1 %v16843_v42  ;;  %v16903_v24 = vld [vmem:[%s21897_s5 + $0xf64] ss:$8 sps:$4 sm:$0xff]   ;;  %v16906_v42 = vld [vmem:[%s21897_s5 + $0xfd4] ss:$8 sps:$4 sm:$0xff]  }
 0x9e9   :  { %v10501_v10 = vpop.f32.mrf.mxu1  ;;  %12338 = vmatprep.subr.bf16.mxu0 %v16848_v13  ;;  %12484 = vmatprep.subr.bf16.mxu1 %v16851_v63 }
 0x9ea   :  { %12514 = vmatprep.mubr.bf16.mxu1 %v17011_v62 }
 0x9eb   :  { %v10355_v4 = vpop.f32.mrf.mxu0  ;;  %v10503_v19 = vpop.f32.mrf.mxu1  ;;  %12082 = vmatmul.mubr.bf16.vlgmr.msra.gmra.mxu0 %v11967_v8  ;;  %v16909_v8 = vld [vmem:[%s21897_s5 + $0xf54] ss:$8 sps:$4 sm:$0xff]  }
 0x9ec   :  { %v10362_v29 = vadd.f32 %v10355_v4, %v21554_v9  ;;  %12339 = vmatpush1.bf16.msra.mxu0 %v16846_v15  ;;  %12485 = vmatpush1.bf16.msra.mxu1 %v16849_v38  ;;  %v16872_v9 = vld [vmem:[%s21897_s5 + $0xe34] ss:$8 sps:$4 sm:$0xff]   ;;  %v16904_v15 = vld [vmem:[%s21897_s5 + $0xfd0] ss:$8 sps:$4 sm:$0xff]  }
 0x9ed   :  { %v10357_v43 = vpop.f32.mrf.mxu0  ;;  %v10504_v40 = vpop.f32.mrf.mxu1  ;;  %12340 = vmatprep.subr.bf16.mxu0 %v16854_v7  ;;  %12486 = vmatprep.subr.bf16.mxu1 %v16857_v25  ;;  %v16912_v7 = vld [vmem:[%s21897_s5 + $0xfc4] ss:$8 sps:$4 sm:$0xff]  }
 0x9ee   :  { %v10363_v2 = vadd.f32 %v10357_v43, %v21562_v37  ;;  %12370 = vmatprep.mubr.bf16.mxu0 %v17011_v62  ;;  %v21658_v31 = vadd.f32 %v10499_v0, %v10362_v29  ;;  %v16878_v37 = vld [vmem:[%s21897_s5 + $0xe24] ss:$8 sps:$4 sm:$0xff]   ;;  %v16901_v0 = vld [vmem:[%s21897_s5 + $0xf60] ss:$8 sps:$4 sm:$0xff]   ;;  %v16907_v29 = vld [vmem:[%s21897_s5 + $0xf50] ss:$8 sps:$4 sm:$0xff]  }
 0x9ef   :  { %v10359_v48 = vpop.f32.mrf.mxu0  ;;  %v16918_v40 = vld [vmem:[%s21897_s5 + $0xfb4] ss:$8 sps:$4 sm:$0xff]  }
 0x9f0   :  { %12341 = vmatpush1.bf16.msra.mxu0 %v16852_v28  ;;  %12487 = vmatpush1.bf16.msra.mxu1 %v16855_v33  ;;  %v21666_v23 = vadd.f32 %v10501_v10, %v10363_v2  ;;  %v16910_v28 = vld [vmem:[%s21897_s5 + $0xfc0] ss:$8 sps:$4 sm:$0xff]   ;;  %v16921_v2 = vld [vmem:[%s21897_s5 + $0xf34] ss:$8 sps:$4 sm:$0xff]   ;;  %v16919_v48 = vld [vmem:[%s21897_s5 + $0xf30] ss:$8 sps:$4 sm:$0xff]  }
 0x9f1   :  { %v10360_v49 = vpop.f32.mrf.mxu0  ;;  %12342 = vmatprep.subr.bf16.mxu0 %v16860_v35  ;;  %12488 = vmatprep.subr.bf16.mxu1 %v16863_v55  ;;  %v16913_v35 = vld [vmem:[%s21897_s5 + $0xf40] ss:$8 sps:$4 sm:$0xff]   ;;  %v16916_v55 = vld [vmem:[%s21897_s5 + $0xfb0] ss:$8 sps:$4 sm:$0xff]  }
 0x9f2   :  { %v16940_v49 = vld [vmem:[#allocation3 + $0x1c] ss:$0 sps:$4 sm:$0x88]  }
 0x9f4   :  { %12343 = vmatpush1.bf16.msra.mxu0 %v16858_v27  ;;  %12489 = vmatpush1.bf16.msra.mxu1 %v16861_v17  ;;  %v16922_v27 = vld [vmem:[%s21897_s5 + $0xfa0] ss:$8 sps:$4 sm:$0xff]   ;;  %v16927_v17 = vld [vmem:[%s21897_s5 + $0xf24] ss:$8 sps:$4 sm:$0xff]  }
 0x9f5   :  { %12344 = vmatprep.subr.bf16.mxu0 %v16866_v44  ;;  %12490 = vmatprep.subr.bf16.mxu1 %v16869_v45  ;;  %v16925_v44 = vld [vmem:[%s21897_s5 + $0xf20] ss:$8 sps:$4 sm:$0xff]   ;;  %v16928_v45 = vld [vmem:[%s21897_s5 + $0xf90] ss:$8 sps:$4 sm:$0xff]  }
 0x9f8   :  { %12345 = vmatpush1.bf16.msra.mxu0 %v16864_v54  ;;  %12491 = vmatpush1.bf16.msra.mxu1 %v16867_v11  ;;  %v16933_v54 = vld [vmem:[%s21897_s5 + $0xf14] ss:$8 sps:$4 sm:$0xff]   ;;  %v16936_v11 = vld [vmem:[%s21897_s5 + $0xf84] ss:$8 sps:$4 sm:$0xff]  }
 0x9f9   :  { %12346 = vmatprep.subr.bf16.mxu0 %v16872_v9  ;;  %12492 = vmatprep.subr.bf16.mxu1 %v16875_v30  ;;  %v16931_v9 = vld [vmem:[%s21897_s5 + $0xf10] ss:$8 sps:$4 sm:$0xff]   ;;  %v16934_v30 = vld [vmem:[%s21897_s5 + $0xf80] ss:$8 sps:$4 sm:$0xff]  }
 0x9fc   :  { %12347 = vmatpush1.bf16.msra.mxu0 %v16870_v47  ;;  %12493 = vmatpush1.bf16.msra.mxu1 %v16873_v39  ;;  %v16939_v47 = vld [vmem:[%s21897_s5 + $0xf04] ss:$8 sps:$4 sm:$0xff]   ;;  %v12687_v39 = vshrl.u32 %v16940_v49, 16 }
 0x9fd   :  { %12348 = vmatprep.subr.bf16.mxu0 %v16878_v37  ;;  %12494 = vmatprep.subr.bf16.mxu1 %v16881_v20  ;;  %v16937_v37 = vld [vmem:[%s21897_s5 + $0xf00] ss:$8 sps:$4 sm:$0xff]  }
 0x9fe   :  { %v12689_v20 = vrot.slane %v12687_v39, 3  ;;  %v16951_v39 = vld [vmem:[%s21899_s7 + $0x50] sm:$0xff]  }
 0xa00   :  { %12349 = vmatpush1.bf16.msra.mxu0 %v16876_v57  ;;  %12495 = vmatpush1.bf16.msra.mxu1 %v16879_v3  ;;  %v12545_v3 = vrot.slane %v16940_v49, 3 }
 0xa01   :  { %12350 = vmatprep.subr.bf16.mxu0 %v16884_v41  ;;  %12496 = vmatprep.subr.bf16.mxu1 %v16887_v18 }
 0xa04   :  { %12351 = vmatpush1.bf16.msra.mxu0 %v16882_v46  ;;  %12497 = vmatpush1.bf16.msra.mxu1 %v16885_v32 }
 0xa05   :  { %12352 = vmatprep.subr.bf16.mxu0 %v16890_v36  ;;  %12771 = vmatprep.subr.bf16.mxu1 %v16894_v51 }
 0xa07   :  { %v10785_v50 = vpop.f32.mrf.mxu1  ;;  %12515 = vmatmul.mubr.bf16.vlgmr.msra.gmra.mxu1 %v12400_v59 }
 0xa08   :  { %12353 = vmatpush1.bf16.msra.mxu0 %v16888_v14  ;;  %12772 = vmatpush1.bf16.msra.mxu1 %v16892_v1 }
 0xa09   :  { %v10787_v5 = vpop.f32.mrf.mxu1  ;;  %12627 = vmatprep.subr.bf16.mxu0 %v16897_v56  ;;  %12773 = vmatprep.subr.bf16.mxu1 %v16900_v21 }
 0xa0a   :  { %12803 = vmatprep.mubr.bf16.mxu1 %v17011_v62 }
 0xa0b   :  { %v10639_v60 = vpop.f32.mrf.mxu0  ;;  %v10789_v13 = vpop.f32.mrf.mxu1  ;;  %12371 = vmatmul.mubr.bf16.vlgmr.msra.gmra.mxu0 %v12256_v58 }
 0xa0c   :  { %v10646_v63 = vadd.f32 %v10639_v60, %v21658_v31  ;;  %12628 = vmatpush1.bf16.msra.mxu0 %v16895_v26  ;;  %12774 = vmatpush1.bf16.msra.mxu1 %v16898_v52  ;;  %v16924_v31 = vld [vmem:[%s21897_s5 + $0xfa4] ss:$8 sps:$4 sm:$0xff]  }
 0xa0d   :  { %v10641_v38 = vpop.f32.mrf.mxu0  ;;  %v10790_v10 = vpop.f32.mrf.mxu1  ;;  %12629 = vmatprep.subr.bf16.mxu0 %v16903_v24  ;;  %12775 = vmatprep.subr.bf16.mxu1 %v16906_v42 }
 0xa0e   :  { %v10647_v25 = vadd.f32 %v10641_v38, %v21666_v23  ;;  %12659 = vmatprep.mubr.bf16.mxu0 %v17011_v62  ;;  %v10792_v4 = vadd.f32 %v10785_v50, %v10646_v63  ;;  %v16915_v62 = vld [vmem:[%s21897_s5 + $0xf44] ss:$8 sps:$4 sm:$0xff]   ;;  %v16930_v23 = vld [vmem:[%s21897_s5 + $0xf94] ss:$8 sps:$4 sm:$0xff]  }
 0xa0f   :  { %v10643_v19 = vpop.f32.mrf.mxu0 }
 0xa10   :  { %12630 = vmatpush1.bf16.msra.mxu0 %v16901_v0  ;;  %12776 = vmatpush1.bf16.msra.mxu1 %v16904_v15  ;;  %v10793_v33 = vadd.f32 %v10787_v5, %v10647_v25 }
 0xa11   :  { %v10644_v43 = vpop.f32.mrf.mxu0  ;;  %12631 = vmatprep.subr.bf16.mxu0 %v16909_v8  ;;  %12777 = vmatprep.subr.bf16.mxu1 %v16912_v7 }
 0xa12   :  { %v16941_v43 = vld [vmem:[%s21899_s7 + $0x78] sm:$0xff]  }
 0xa14   :  { %12632 = vmatpush1.bf16.msra.mxu0 %v16907_v29  ;;  %12778 = vmatpush1.bf16.msra.mxu1 %v16910_v28 }
 0xa15   :  { %12633 = vmatprep.subr.bf16.mxu0 %v16915_v62  ;;  %12779 = vmatprep.subr.bf16.mxu1 %v16918_v40  ;;  %v16942_v62 = vld [vmem:[%s21899_s7 + $0x38] sm:$0xff]   ;;  %v16943_v40 = vld [vmem:[%s21899_s7 + $0x70] sm:$0xff]  }
 0xa18   :  { %12634 = vmatpush1.bf16.msra.mxu0 %v16913_v35  ;;  %12780 = vmatpush1.bf16.msra.mxu1 %v16916_v55  ;;  %v16944_v35 = vld [vmem:[%s21899_s7 + $0x30] sm:$0xff]   ;;  %v16945_v55 = vld [vmem:[%s21899_s7 + $0x68] sm:$0xff]  }
 0xa19   :  { %12635 = vmatprep.subr.bf16.mxu0 %v16921_v2  ;;  %12781 = vmatprep.subr.bf16.mxu1 %v16924_v31  ;;  %v16946_v2 = vld [vmem:[%s21899_s7 + $0x28] sm:$0xff]   ;;  %v16947_v31 = vld [vmem:[%s21899_s7 + $0x60] sm:$0xff]  }
 0xa1c   :  { %12636 = vmatpush1.bf16.msra.mxu0 %v16919_v48  ;;  %12782 = vmatpush1.bf16.msra.mxu1 %v16922_v27 }
 0xa1d   :  { %12637 = vmatprep.subr.bf16.mxu0 %v16927_v17  ;;  %12783 = vmatprep.subr.bf16.mxu1 %v16930_v23  ;;  %v16948_v17 = vld [vmem:[%s21899_s7 + $0x20] sm:$0xff]   ;;  %v16949_v23 = vld [vmem:[%s21899_s7 + $0x58] sm:$0xff]  }
 0xa20   :  { %12638 = vmatpush1.bf16.msra.mxu0 %v16925_v44  ;;  %12784 = vmatpush1.bf16.msra.mxu1 %v16928_v45 }
 0xa21   :  { %12639 = vmatprep.subr.bf16.mxu0 %v16933_v54  ;;  %12785 = vmatprep.subr.bf16.mxu1 %v16936_v11 }
 0xa24   :  { %12640 = vmatpush1.bf16.msra.mxu0 %v16931_v9  ;;  %12786 = vmatpush1.bf16.msra.mxu1 %v16934_v30  ;;  %v16950_v9 = vld [vmem:[%s21899_s7 + $0x18] sm:$0xff]  }
 0xa25   :  { %12641 = vmatprep.subr.bf16.mxu0 %v16939_v47 }
 0xa27   :  { %v11074_v22 = vpop.f32.mrf.mxu1  ;;  %12804 = vmatmul.mubr.bf16.vlgmr.msra.gmra.mxu1 %v12689_v20 }
 0xa28   :  { %12642 = vmatpush1.bf16.msra.mxu0 %v16937_v37 }
 0xa29   :  { %v11076_v57 = vpop.f32.mrf.mxu1  ;;  %15042 = vmatprep.subr.bf16.mxu0 %v16941_v43 }
 0xa2b   :  { %v10930_v41 = vpop.f32.mrf.mxu0  ;;  %v11078_v18 = vpop.f32.mrf.mxu1  ;;  %12660 = vmatmul.mubr.bf16.vlgmr.msra.gmra.mxu0 %v12545_v3  ;;  %v16953_v3 = vld [vmem:[%s21899_s7 + $0x48] sm:$0xff]  }
 0xa2c   :  { %v10937_v46 = vadd.f32 %v10930_v41, %v10792_v4  ;;  %15043 = vmatpush3.bf16.msra.mxu0 %v16942_v62  ;;  %v16954_v41 = vld [vmem:[%s21899_s7 + $0x8] sm:$0xff]   ;;  %v16955_v18 = vld [vmem:[%s21899_s7 + $0x40] sm:$0xff]  }
 0xa2d   :  { %v10932_v32 = vpop.f32.mrf.mxu0  ;;  %v11079_v36 = vpop.f32.mrf.mxu1  ;;  %15044 = vmatprep.subr.bf16.mxu0 %v16943_v40 }
 0xa2e   :  { %v10938_v6 = vadd.f32 %v10932_v32, %v10793_v33  ;;  %v11081_v51 = vadd.f32 %v11074_v22, %v10937_v46  ;;  %v16956_v46 = vld [vmem:[%s21899_s7] sm:$0xff]  }
 0xa2f   :  { %v10934_v14 = vpop.f32.mrf.mxu0 }
 0xa30   :  { %v11082_v1 = vadd.f32 %v11076_v57, %v10938_v6  ;;  %15045 = vmatpush3.bf16.msra.mxu0 %v16944_v35  ;;  %v16952_v57 = vld [vmem:[%s21899_s7 + $0x10] sm:$0xff]  }
 0xa31   :  { %v10935_v59 = vpop.f32.mrf.mxu0  ;;  %15046 = vmatprep.subr.bf16.mxu0 %v16945_v55 }
 0xa34   :  { %15047 = vmatpush3.bf16.msra.mxu0 %v16946_v2 }
 0xa35   :  { %15048 = vmatprep.subr.bf16.mxu0 %v16947_v31 }
 0xa38   :  { %15049 = vmatpush3.bf16.msra.mxu0 %v16948_v17 }
 0xa39   :  { %15050 = vmatprep.subr.bf16.mxu0 %v16949_v23 }
 0xa3c   :  { %15051 = vmatpush3.bf16.msra.mxu0 %v16950_v9 }
 0xa3d   :  { %15052 = vmatprep.subr.bf16.mxu0 %v16951_v39 }
 0xa40   :  { %15053 = vmatpush3.bf16.msra.mxu0 %v16952_v57 }
 0xa41   :  { %15054 = vmatprep.subr.bf16.mxu0 %v16953_v3 }
 0xa44   :  { %15055 = vmatpush3.bf16.msra.mxu0 %v16954_v41 }
 0xa45   :  { %15056 = vmatprep.subr.bf16.mxu0 %v16955_v18 }
 0xa47   :  { %v11363_v56 = vpop.f32.mrf.mxu1 }
 0xa48   :  { %15057 = vmatpush3.bf16.msra.mxu0 %v16956_v46 }
 0xa49   :  { %v11365_v21 = vpop.f32.mrf.mxu1 }
 0xa4b   :  { %v11219_v50 = vpop.f32.mrf.mxu0  ;;  %v11367_v26 = vpop.f32.mrf.mxu1 }
 0xa4c   :  { %v11226_v52 = vadd.f32 %v11219_v50, %v11081_v51 }
 0xa4d   :  { %v11221_v5 = vpop.f32.mrf.mxu0  ;;  %v11368_v58 = vpop.f32.mrf.mxu1 }
 0xa4e   :  { %v11227_v24 = vadd.f32 %v11221_v5, %v11082_v1  ;;  %v11370_v42 = vadd.f32 %v11363_v56, %v11226_v52 }
 0xa4f   :  { %v11223_v60 = vpop.f32.mrf.mxu0 }
 0xa50   :  { %v11371_v13 = vadd.f32 %v11365_v21, %v11227_v24 }
 0xa51   :  { %v11224_v63 = vpop.f32.mrf.mxu0 }
 0xa67   :  { %v11652_v0 = vpop.f32.mrf.mxu1 }
 0xa69   :  { %v11654_v15 = vpop.f32.mrf.mxu1 }
 0xa6b   :  { %v11508_v38 = vpop.f32.mrf.mxu0  ;;  %v11656_v10 = vpop.f32.mrf.mxu1 }
 0xa6c   :  { %v11515_v8 = vadd.f32 %v11508_v38, %v11370_v42 }
 0xa6d   :  { %v11510_v7 = vpop.f32.mrf.mxu0  ;;  %v11657_v25 = vpop.f32.mrf.mxu1 }
 0xa6e   :  { %v11516_v4 = vadd.f32 %v11510_v7, %v11371_v13  ;;  %v11659_v19 = vadd.f32 %v11652_v0, %v11515_v8  ;;  %v12814_v7 = vld [vmem:[%s21898_s6] sm:$0x3] }
 0xa6f   :  { %v11512_v29 = vpop.f32.mrf.mxu0  ;;  %v12823_v55 = vrot.slane %v12814_v7, %v6426_v34  ;;  %v12858_v34 = vld [vmem:[#allocation4] sm:$0x3] }
 0xa70   :  { %v11660_v28 = vadd.f32 %v11654_v15, %v11516_v4 }
 0xa71   :  { %v11513_v33 = vpop.f32.mrf.mxu0 }
 0xa87   :  { %v11938_v48 = vpop.f32.mrf.mxu1 }
 0xa89   :  { %v11940_v27 = vpop.f32.mrf.mxu1 }
 0xa8b   :  { %v11792_v49 = vpop.f32.mrf.mxu0  ;;  %v11942_v44 = vpop.f32.mrf.mxu1 }
 0xa8c   :  { %v11799_v45 = vadd.f32 %v11792_v49, %v11659_v19 }
 0xa8d   :  { %v11794_v54 = vpop.f32.mrf.mxu0  ;;  %v11943_v11 = vpop.f32.mrf.mxu1 }
 0xa8e   :  { %v11800_v30 = vadd.f32 %v11794_v54, %v11660_v28  ;;  %v11945_v47 = vadd.f32 %v11938_v48, %v11799_v45  ;;  %v12819_v28 = vrot.slane %v12814_v7, %v6422_v12 }
 0xa8f   :  { %v11796_v37 = vpop.f32.mrf.mxu0 }
 0xa90   :  { %v11946_v20 = vadd.f32 %v11940_v27, %v11800_v30  ;;  %v13063_v37 = vand.u32 127, %v6420_v53 }
 0xa91   :  { %v11797_v22 = vpop.f32.mrf.mxu0 }
 0xa92   :  { %vm13078_vm15 = vcmp.eq.s32.totalorder %v13063_v37, 4  ;;  %vm13064_vm0 = vcmp.lt.s32.totalorder %v13063_v37, 4 }
 0xaa7   :  { %v12227_v32 = vpop.f32.mrf.mxu1 }
 0xaa9   :  { %v12229_v36 = vpop.f32.mrf.mxu1 }
 0xaab   :  { %v12083_v6 = vpop.f32.mrf.mxu0  ;;  %v12231_v51 = vpop.f32.mrf.mxu1 }
 0xaac   :  { %v12090_v14 = vadd.f32 %v12083_v6, %v11945_v47 }
 0xaad   :  { %v12085_v1 = vpop.f32.mrf.mxu0  ;;  %v12232_v59 = vpop.f32.mrf.mxu1 }
 0xaae   :  { %v12234_v56 = vadd.f32 %v12227_v32, %v12090_v14  ;;  %v12091_v63 = vadd.f32 %v12085_v1, %v11946_v20  ;;  %v14556_v20 = vld [vmem:[%s21900_s8] ss:$0 sm:$0xff] }
 0xaaf   :  { %v12087_v21 = vpop.f32.mrf.mxu0 }
 0xab0   :  { %v12235_v15 = vadd.f32 %v12229_v36, %v12091_v63 }
 0xab1   :  { %v12088_v50 = vpop.f32.mrf.mxu0 }
 0xac7   :  { %v12516_v26 = vpop.f32.mrf.mxu1 }
 0xac9   :  { %v12518_v52 = vpop.f32.mrf.mxu1 }
 0xacb   :  { %v12372_v5 = vpop.f32.mrf.mxu0  ;;  %v12520_v58 = vpop.f32.mrf.mxu1 }
 0xacc   :  { %v12379_v0 = vadd.f32 %v12372_v5, %v12234_v56 }
 0xacd   :  { %v12374_v24 = vpop.f32.mrf.mxu0  ;;  %v12521_v42 = vpop.f32.mrf.mxu1 }
 0xace   :  { %v12380_v10 = vadd.f32 %v12374_v24, %v12235_v15  ;;  %v12523_v25 = vadd.f32 %v12516_v26, %v12379_v0 }
 0xacf   :  { %v12376_v60 = vpop.f32.mrf.mxu0 }
 0xad0   :  { %v12524_v33 = vadd.f32 %v12518_v52, %v12380_v10 }
 0xad1   :  { %v12377_v13 = vpop.f32.mrf.mxu0 }
 0xae7   :  { %v12805_v38 = vpop.f32.mrf.mxu1 }
 0xae9   :  { %v12807_v8 = vpop.f32.mrf.mxu1 }
 0xaeb   :  { %v12661_v4 = vpop.f32.mrf.mxu0  ;;  %v12809_v19 = vpop.f32.mrf.mxu1 }
 0xaec   :  { %v12668_v29 = vadd.f32 %v12661_v4, %v12523_v25 }
 0xaed   :  { %v12663_v43 = vpop.f32.mrf.mxu0  ;;  %v12810_v62 = vpop.f32.mrf.mxu1 }
 0xaee   :  { %v12812_v40 = vadd.f32 %v12805_v38, %v12668_v29  ;;  %v12669_v35 = vadd.f32 %v12663_v43, %v12524_v33 }
 0xaef   :  { %v12665_v2 = vpop.f32.mrf.mxu0 }
 0xaf0   :  { %v12826_v31 = vadd.f32 %v12819_v28, %v12812_v40  ;;  %v12813_v48 = vadd.f32 %v12807_v8, %v12669_v35 }
 0xaf1   :  { %v12666_v27 = vpop.f32.mrf.mxu0 }
 0xaf2   :  { %v12827_v17 = vadd.f32 %v12823_v55, %v12813_v48  ;;  %v12828_v23 = vmax.f32 %v12826_v31, 0.0 }
 0xaf4   :  { %v12829_v49 = vmax.f32 %v12827_v17, 0.0 }
 0xaf6   :  { %v14555_v44 = vpack.c.bf16 %v12829_v49, %v12828_v23 }
 0xaf8   :  { %v12841_v12 = vrot.slane %v14555_v44, %v20112_v16 }
 0xafa   :  { %v12848_v45 = vrot.slane %v12841_v12, %v20112_v16 }
 0xafc   :  { %v12850_v61 = vshll.u32 %v12848_v45, 16 }
 0xafe   :  { %v12859_v54 = vsel %vm12857_vm14, %v12850_v61, %v12858_v34 }
 0xaff   :  { %12860 = vst [vmem:[#allocation4] sm:$0x3] %v12859_v54 }
 0xb06   :  { %v14557_v11 = vld.sshfl [vmem:[#allocation4] sm:$0x11 pattern:$0x75316420] }
 0xb07   :  { %v12909_v9 = vcombine.high %v14557_v11, %v14557_v11  ;;  %v12916_v47 = vrot.slane %v14557_v11, %v20112_v16 }
 0xb09   :  { %v12923_v30 = vrot.slane %v12909_v9, %v20112_v16 }
 0xb0b   :  { %13054 = vmatprep.mubr.bf16.mxu0 %v12923_v30 }
 0xb0c   :  { %13055 = vmatmul.mubr.bf16.vlgmr.msra.gmra.mxu0 %v12916_v47 }
 0xbcc   :  { %v15058_v39 = vpop.f32.mrf.mxu0 }
 0xbce   :  { %v15059_v22 = vpop.f32.mrf.mxu0 }
 0xbcf   :  { %v15060_v57 = vadd.f32 %v15059_v22, %v15058_v39 }
 0xbd0   :  { %v15061_v3 = vpop.f32.mrf.mxu0 }
 0xbd1   :  { %v13057_v41 = vadd.f32 %v15060_v57, %v14556_v20 }
 0xbd2   :  { %v15062_v18 = vpop.f32.mrf.mxu0 }
 0xbd3   :  { %v13079_v46 = vsel %vm13078_vm15, %v13057_v41, 0.0  ;;  %v13065_v16 = vsel %vm13064_vm0, %v13057_v41, -1e+30 }
 0xbd4   :  { %v13067_v32 = vsel %vm13066_vm1, %v13065_v16, -inf }
 0xbd5   :  { %13068 = vmax.xlane.f32.xlu1 %v13067_v32 }
 0xc5e   :  { %v13069_v36 = vpop.xlane.xlu1 %13068 }
 0xc5f   :  { %v13070_v6 = vsub.f32 %v13065_v16, %v13069_v36 }
 0xc61   :  { %v13071_v53 = vmul.f32 1.442695, %v13070_v6 }
 0xc63   :  { %16957 = vpow2.f32 %v13071_v53 }
 0xc70   :  { %v16958_v51 = vpop.eup %16957 }
 0xc71   :  { %v13073_v14 = vsel %vm13066_vm1, %v16958_v51, 0.0 }
 0xc72   :  { %13074 = vadd.xlane.f32.xlu0 %v13073_v14 }
 0xcfb   :  { %v13075_v1 = vpop.xlane.xlu0 %13074 }
 0xcfc   :  { %16959 = vrcp.f32 %v13075_v1 }
 0xd09   :  { %v16960_v59 = vpop.eup %16959 }
 0xd0a   :  { %v13077_v56 = vmul.f32 %v16960_v59, %v16958_v51 }
 0xd0c   :  { %v13080_v21 = vsel %vm13064_vm0, %v13077_v56, %v13079_v46 }
 0xd0d   :  { %13081 = vst [vmem:[%s21901_s9] sm:$0x3] %v13080_v21 }

</bundles_post_ra>
